<compile_context>
chip_gen: v5e
topology: v5e:2x2
jax: 0.10.0
libtpu: 0.0.40
codegen_flags: <defaults>
</compile_context>

<pallas_src>
import jax
import jax.numpy as jnp
from jax.experimental import pallas as pl
from jax.experimental.pallas import tpu as pltpu


# ----------------------------------------------------------------------------
# Config (VGG5, INPUT_SIZE = (4, 16, 16), num_classes = 10)
# ----------------------------------------------------------------------------
C_IN, H_IN, W_IN = 4, 16, 16
NUM_CLASSES = 10
FC_HIDDEN = 1024


# ----------------------------------------------------------------------------
# In-kernel helpers
# ----------------------------------------------------------------------------
def _conv3x3_bn_relu(pad_ref, w_ref, scale_ref, shift_ref, H, W, C):
    """3x3 'same' conv from a zero-padded VMEM scratch as ONE im2col matmul.

    pad_ref:   (H+2, W+2, C) f32 VMEM scratch (zero border, data in [1:H+1,1:W+1])
    w_ref:     (9*C, Cout)   bf16 weights, rows ordered (dy, dx, cin)
    scale_ref: (1, Cout)     folded BN scale (f32)
    shift_ref: (1, Cout)     folded BN shift incl. conv bias (f32)
    returns:   (H*W, Cout)   f32, rows in (h, w) order
    """
    cols = []
    for dy in range(3):
        for dx in range(3):
            win = pad_ref[dy:dy + H, dx:dx + W, :]          # (H, W, C)
            cols.append(win.reshape(H * W, C))
    patches = jnp.concatenate(cols, axis=-1)                # (H*W, 9*C)
    y = jnp.dot(patches.astype(jnp.bfloat16), w_ref[...],
                preferred_element_type=jnp.float32)         # (H*W, Cout)
    return jnp.maximum(y * scale_ref[...] + shift_ref[...], 0.0)


def _maxpool2x2(y_flat, H, W, pw_ref):
    """Fused 2x2/stride-2 max-pool on a (H*W, C) activation (rows in (h,w) order).

    H-direction: pure-view reshape (W % 8 == 0) + leading-index max.
    W-direction: sublane-strided reads from a small VMEM scratch.
    Returns (H//2 * W//2, C) with rows in (h', w') order.
    """
    Ho, Wo = H // 2, W // 2
    C = y_flat.shape[-1]
    y4 = y_flat.reshape(Ho, 2, W, C)
    yh = jnp.maximum(y4[:, 0], y4[:, 1]).reshape(Ho * W, C)   # rows (h', w)
    pw_ref[...] = yh
    even = pw_ref[pl.ds(0, Ho * Wo, 2), :]                    # (h', 2w')
    odd = pw_ref[pl.ds(1, Ho * Wo, 2), :]                     # (h', 2w'+1)
    return jnp.maximum(even, odd)                             # rows (h', w')


# ----------------------------------------------------------------------------
# Fused VGG5 kernel (one batch element per grid step)
# ----------------------------------------------------------------------------
def _vgg5_fused_kernel(
    p1_ref,                       # (1, 256, 36) bf16   im2col'ed input sample
    w1_ref, s1_ref, b1_ref,       # (36, 64) bf16, (1,64) f32, (1,64) f32
    w2_ref, s2_ref, b2_ref,       # (576, 128) bf16, (1,128), (1,128)
    w3_ref, s3_ref, b3_ref,       # (1152, 128) bf16, (1,128), (1,128)
    fc1w_ref, fc1b_ref,           # (2048, 1024) bf16, (1,1024) f32
    fc2w_ref, fc2b_ref,           # (1024, NC) bf16, (1, NC) f32
    out_ref,                      # (1, 1, NC) f32
    p1pad_ref,                    # (10, 10, 64)  f32 scratch (conv2 input, padded)
    a2pad_ref,                    # (10, 10, 128) f32 scratch (conv3 input, padded)
    pw1_ref,                      # (128, 64)  f32 scratch (pool1 W-stage)
    pw2_ref,                      # (32, 128)  f32 scratch (pool2 W-stage)
):
    f32 = jnp.float32
    bf16 = jnp.bfloat16

    # ---- conv1 (4 -> 64): single im2col matmul (patches built in wrapper) ----
    y1 = jnp.dot(p1_ref[0], w1_ref[...], preferred_element_type=f32)   # (256, 64)
    y1 = jnp.maximum(y1 * s1_ref[...] + b1_ref[...], 0.0)

    # ---- maxpool 2x2 : 16x16 -> 8x8 (fused) ----
    pooled1 = _maxpool2x2(y1, 16, 16, pw1_ref)                # (64, 64), rows (h', w')

    # stage padded conv2 input (zero border; scratch re-zeroed every step so it
    # is correct on every core under megacore parallel splitting)
    p1pad_ref[...] = jnp.zeros(p1pad_ref.shape, f32)
    p1pad_ref[1:9, 1:9, :] = pooled1.reshape(8, 8, 64)

    # ---- conv2 (64 -> 128) ----
    y2 = _conv3x3_bn_relu(p1pad_ref, w2_ref, s2_ref, b2_ref, 8, 8, 64)   # (64, 128)
    a2pad_ref[...] = jnp.zeros(a2pad_ref.shape, f32)
    a2pad_ref[1:9, 1:9, :] = y2.reshape(8, 8, 128)

    # ---- conv3 (128 -> 128) ----
    y3 = _conv3x3_bn_relu(a2pad_ref, w3_ref, s3_ref, b3_ref, 8, 8, 128)  # (64, 128)

    # ---- maxpool 2x2 : 8x8 -> 4x4 (fused) ----
    pooled2 = _maxpool2x2(y3, 8, 8, pw2_ref)                  # (16, 128), rows (h', w')

    # ---- flatten: lane-dense (1, 2048) feature row; FC1 weight rows were
    #      pre-permuted to (h, w, c) order so torch's NCHW flatten is preserved.
    feat = jnp.concatenate([pooled2[r:r + 1, :] for r in range(16)], axis=-1)  # (1, 2048)

    # ---- fc1 (2048 -> 1024) + ReLU ----
    h = jnp.dot(feat.astype(bf16), fc1w_ref[...], preferred_element_type=f32)
    h = jnp.maximum(h + fc1b_ref[...], 0.0)                   # (1, 1024)

    # ---- fc2 (1024 -> num_classes) ----
    logits = jnp.dot(h.astype(bf16), fc2w_ref[...], preferred_element_type=f32)
    out_ref[0] = logits + fc2b_ref[...]


# ----------------------------------------------------------------------------
# Wrapper
# ----------------------------------------------------------------------------
def _im2col_3x3_nhwc(x):
    """(N, H, W, C) -> (N, H*W, 9*C) patches, column order (dy, dx, cin)."""
    N, H, W, C = x.shape
    xp = jnp.pad(x, ((0, 0), (1, 1), (1, 1), (0, 0)))
    cols = [xp[:, dy:dy + H, dx:dx + W, :] for dy in range(3) for dx in range(3)]
    return jnp.concatenate(cols, axis=-1).reshape(N, H * W, 9 * C)


@jax.jit
def vgg5_forward(x_nchw, kp):
    N = x_nchw.shape[0]
    # NCHW (torch) -> NHWC, then one-time im2col of the tiny network input.
    x = jnp.transpose(x_nchw, (0, 2, 3, 1)).astype(jnp.float32)
    patches1 = _im2col_3x3_nhwc(x).astype(jnp.bfloat16)        # (N, 256, 36)

    full2d = lambda n: (0, 0)
    out = pl.pallas_call(
        _vgg5_fused_kernel,
        out_shape=jax.ShapeDtypeStruct((N, 1, NUM_CLASSES), jnp.float32),
        grid=(N,),
        in_specs=[
            pl.BlockSpec((1, 256, 36), lambda n: (n, 0, 0)),   # per-sample patches
            pl.BlockSpec((36, 64), full2d),
            pl.BlockSpec((1, 64), full2d),
            pl.BlockSpec((1, 64), full2d),
            pl.BlockSpec((576, 128), full2d),
            pl.BlockSpec((1, 128), full2d),
            pl.BlockSpec((1, 128), full2d),
            pl.BlockSpec((1152, 128), full2d),
            pl.BlockSpec((1, 128), full2d),
            pl.BlockSpec((1, 128), full2d),
            pl.BlockSpec((2048, FC_HIDDEN), full2d),
            pl.BlockSpec((1, FC_HIDDEN), full2d),
            pl.BlockSpec((FC_HIDDEN, NUM_CLASSES), full2d),
            pl.BlockSpec((1, NUM_CLASSES), full2d),
        ],
        out_specs=pl.BlockSpec((1, 1, NUM_CLASSES), lambda n: (n, 0, 0)),
        scratch_shapes=[
            pltpu.VMEM((10, 10, 64), jnp.float32),    # padded conv2 input
            pltpu.VMEM((10, 10, 128), jnp.float32),   # padded conv3 input
            pltpu.VMEM((128, 64), jnp.float32),       # pool1 W-stage buffer
            pltpu.VMEM((32, 128), jnp.float32),       # pool2 W-stage buffer
        ],
        compiler_params=pltpu.CompilerParams(
            dimension_semantics=("parallel",),
            vmem_limit_bytes=32 * 1024 * 1024,
        ),
    )(patches1,
      kp["w1"], kp["s1"], kp["b1"],
      kp["w2"], kp["s2"], kp["b2"],
      kp["w3"], kp["s3"], kp["b3"],
      kp["fc1_w"], kp["fc1_b"], kp["fc2_w"], kp["fc2_b"])
    return out[:, 0, :]                                        # (N, num_classes)


# ----------------------------------------------------------------------------
# Deterministic synthetic parameters (torch-layout) + kernel-layout conversion
# ----------------------------------------------------------------------------
def _fold_bn(key, cout):
    """Conv bias + inference-mode BN folded into (scale, shift)."""
    k_g, k_be, k_bi = jax.random.split(key, 3)
    gamma = 1.0 + 0.1 * jax.random.normal(k_g, (1, cout), jnp.float32)
    beta = 0.1 * jax.random.normal(k_be, (1, cout), jnp.float32)
    conv_bias = 0.1 * jax.random.normal(k_bi, (1, cout), jnp.float32)
    running_mean = jnp.zeros((1, cout), jnp.float32)
    running_var = jnp.ones((1, cout), jnp.float32)
    eps = 1e-5
    scale = gamma / jnp.sqrt(running_var + eps)
    shift = beta + (conv_bias - running_mean) * scale
    return scale, shift


def init_params(key):
    keys = jax.random.split(key, 10)
    p = {}
    chans = [(C_IN, 64), (64, 128), (128, 128)]
    for i, (ci, co) in enumerate(chans, start=1):
        p[f"w{i}_hwio"] = 0.05 * jax.random.normal(
            keys[2 * (i - 1)], (3, 3, ci, co), jnp.float32)
        p[f"scale{i}"], p[f"shift{i}"] = _fold_bn(keys[2 * (i - 1) + 1], co)
    hf, wf = H_IN // 4, W_IN // 4                # two 2x2 pools
    fc_in = 128 * hf * wf
    # fc1 rows in torch NCHW-flatten order (c, h, w)
    p["fc1_w_chw"] = 0.02 * jax.random.normal(keys[6], (fc_in, FC_HIDDEN), jnp.float32)
    p["fc1_b"] = 0.02 * jax.random.normal(keys[7], (FC_HIDDEN,), jnp.float32)
    p["fc2_w"] = 0.02 * jax.random.normal(keys[8], (FC_HIDDEN, NUM_CLASSES), jnp.float32)
    p["fc2_b"] = 0.02 * jax.random.normal(keys[9], (NUM_CLASSES,), jnp.float32)
    return p


def prepare_kernel_params(p):
    """Reshape / permute / bf16-cast torch-layout params into kernel layout."""
    hf, wf = H_IN // 4, W_IN // 4
    kp = {}
    for i in range(1, 4):
        w = p[f"w{i}_hwio"]                      # (3, 3, Cin, Cout)
        kh, kw, ci, co = w.shape
        kp[f"w{i}"] = w.reshape(kh * kw * ci, co).astype(jnp.bfloat16)
        kp[f"s{i}"] = p[f"scale{i}"]
        kp[f"b{i}"] = p[f"shift{i}"]
    # permute fc1 rows from (c, h, w) to the kernel's (h, w, c) flatten order
    fc1 = p["fc1_w_chw"].reshape(128, hf, wf, FC_HIDDEN)
    fc1 = jnp.transpose(fc1, (1, 2, 0, 3)).reshape(128 * hf * wf, FC_HIDDEN)
    kp["fc1_w"] = fc1.astype(jnp.bfloat16)
    kp["fc1_b"] = p["fc1_b"].reshape(1, FC_HIDDEN)
    kp["fc2_w"] = p["fc2_w"].astype(jnp.bfloat16)
    kp["fc2_b"] = p["fc2_b"].reshape(1, NUM_CLASSES)
    return kp


if __name__ == "__main__":
    key = jax.random.PRNGKey(0)
    k_x, k_p = jax.random.split(key)
    # input consistent with INPUT_SIZE = (4, 16, 16), batch = 2
    x = jax.random.normal(k_x, (2, C_IN, H_IN, W_IN), jnp.float32)
    params = init_params(k_p)
    kparams = prepare_kernel_params(params)

    out = vgg5_forward(x, kparams)
    out = jax.block_until_ready(out)
    assert out.shape == (2, NUM_CLASSES), out.shape
    assert bool(jnp.all(jnp.isfinite(out)))
    print("KERNEL_OK")
</pallas_src>

<mosaic_0001>
module attributes {stable_mosaic.version = 11 : i64} {
  func.func @_vgg5_fused_kernel(%arg0: i32, %arg1: memref<1x256x36xbf16, #tpu.memory_space<vmem>>, %arg2: memref<36x64xbf16, #tpu.memory_space<vmem>>, %arg3: memref<1x64xf32, #tpu.memory_space<vmem>>, %arg4: memref<1x64xf32, #tpu.memory_space<vmem>>, %arg5: memref<576x128xbf16, #tpu.memory_space<vmem>>, %arg6: memref<1x128xf32, #tpu.memory_space<vmem>>, %arg7: memref<1x128xf32, #tpu.memory_space<vmem>>, %arg8: memref<1152x128xbf16, #tpu.memory_space<vmem>>, %arg9: memref<1x128xf32, #tpu.memory_space<vmem>>, %arg10: memref<1x128xf32, #tpu.memory_space<vmem>>, %arg11: memref<2048x1024xbf16, #tpu.memory_space<vmem>>, %arg12: memref<1x1024xf32, #tpu.memory_space<vmem>>, %arg13: memref<1024x10xbf16, #tpu.memory_space<vmem>>, %arg14: memref<1x10xf32, #tpu.memory_space<vmem>>, %arg15: memref<1x1x10xf32, #tpu.memory_space<vmem>>, %arg16: memref<10x10x64xf32, #tpu.memory_space<vmem>>, %arg17: memref<10x10x128xf32, #tpu.memory_space<vmem>>, %arg18: memref<128x64xf32, #tpu.memory_space<vmem>>, %arg19: memref<32x128xf32, #tpu.memory_space<vmem>>) attributes {dimension_semantics = [#tpu.dimension_semantics<parallel>], iteration_bounds = array<i64: 2>, scalar_prefetch = 0 : i64, scratch_operands = 4 : i64, tpu.core_type = #tpu.core_type<tc>, window_params = [{transform_indices = @transform_0, window_bounds = array<i64: 1, 256, 36>}, {pipeline_mode = #tpu.pipeline_mode<synchronous>, transform_indices = @transform_1, window_bounds = array<i64: 36, 64>}, {pipeline_mode = #tpu.pipeline_mode<synchronous>, transform_indices = @transform_2, window_bounds = array<i64: 1, 64>}, {pipeline_mode = #tpu.pipeline_mode<synchronous>, transform_indices = @transform_3, window_bounds = array<i64: 1, 64>}, {pipeline_mode = #tpu.pipeline_mode<synchronous>, transform_indices = @transform_4, window_bounds = array<i64: 576, 128>}, {pipeline_mode = #tpu.pipeline_mode<synchronous>, transform_indices = @transform_5, window_bounds = array<i64: 1, 128>}, {pipeline_mode = #tpu.pipeline_mode<synchronous>, transform_indices = @transform_6, window_bounds = array<i64: 1, 128>}, {pipeline_mode = #tpu.pipeline_mode<synchronous>, transform_indices = @transform_7, window_bounds = array<i64: 1152, 128>}, {pipeline_mode = #tpu.pipeline_mode<synchronous>, transform_indices = @transform_8, window_bounds = array<i64: 1, 128>}, {pipeline_mode = #tpu.pipeline_mode<synchronous>, transform_indices = @transform_9, window_bounds = array<i64: 1, 128>}, {pipeline_mode = #tpu.pipeline_mode<synchronous>, transform_indices = @transform_10, window_bounds = array<i64: 2048, 1024>}, {pipeline_mode = #tpu.pipeline_mode<synchronous>, transform_indices = @transform_11, window_bounds = array<i64: 1, 1024>}, {pipeline_mode = #tpu.pipeline_mode<synchronous>, transform_indices = @transform_12, window_bounds = array<i64: 1024, 10>}, {pipeline_mode = #tpu.pipeline_mode<synchronous>, transform_indices = @transform_13, window_bounds = array<i64: 1, 10>}, {transform_indices = @transform_14, window_bounds = array<i64: 1, 1, 10>}]} {
    %c0 = arith.constant 0 : index
    %c0_0 = arith.constant 0 : index
    %c0_1 = arith.constant 0 : index
    %0 = vector.load %arg1[%c0, %c0_0, %c0_1] : memref<1x256x36xbf16, #tpu.memory_space<vmem>>, vector<1x256x36xbf16>
    %1 = vector.shape_cast %0 : vector<1x256x36xbf16> to vector<256x36xbf16>
    %c0_2 = arith.constant 0 : index
    %c0_3 = arith.constant 0 : index
    %2 = vector.load %arg2[%c0_2, %c0_3] : memref<36x64xbf16, #tpu.memory_space<vmem>>, vector<36x64xbf16>
    %cst = arith.constant dense<0.000000e+00> : vector<256x64xf32>
    %3 = tpu.matmul %1, %2, %cst {dimension_numbers = #tpu.dot_dimension_numbers<[1], [0], [0], [1], [0, 0, 1, 1], [], []>} : vector<256x36xbf16>, vector<36x64xbf16>, vector<256x64xf32> -> vector<256x64xf32>
    %c0_4 = arith.constant 0 : index
    %c0_5 = arith.constant 0 : index
    %4 = vector.load %arg3[%c0_4, %c0_5] : memref<1x64xf32, #tpu.memory_space<vmem>>, vector<1x64xf32>
    %5 = vector.broadcast %4 : vector<1x64xf32> to vector<256x64xf32>
    %6 = arith.mulf %3, %5 : vector<256x64xf32>
    %c0_6 = arith.constant 0 : index
    %c0_7 = arith.constant 0 : index
    %7 = vector.load %arg4[%c0_6, %c0_7] : memref<1x64xf32, #tpu.memory_space<vmem>>, vector<1x64xf32>
    %8 = vector.broadcast %7 : vector<1x64xf32> to vector<256x64xf32>
    %9 = arith.addf %6, %8 : vector<256x64xf32>
    %cst_8 = arith.constant 0.000000e+00 : f32
    %10 = vector.broadcast %cst_8 : f32 to vector<256x64xf32>
    %11 = arith.maximumf %9, %10 : vector<256x64xf32>
    %12 = vector.shape_cast %11 : vector<256x64xf32> to vector<8x2x16x64xf32>
    %13 = vector.extract_strided_slice %12 {offsets = [0, 0, 0, 0], sizes = [8, 1, 16, 64], strides = [1, 1, 1, 1]} : vector<8x2x16x64xf32> to vector<8x1x16x64xf32>
    %14 = vector.shape_cast %13 : vector<8x1x16x64xf32> to vector<8x16x64xf32>
    %15 = vector.extract_strided_slice %12 {offsets = [0, 1, 0, 0], sizes = [8, 1, 16, 64], strides = [1, 1, 1, 1]} : vector<8x2x16x64xf32> to vector<8x1x16x64xf32>
    %16 = vector.shape_cast %15 : vector<8x1x16x64xf32> to vector<8x16x64xf32>
    %17 = arith.maximumf %14, %16 : vector<8x16x64xf32>
    %18 = vector.shape_cast %17 : vector<8x16x64xf32> to vector<128x64xf32>
    %c0_9 = arith.constant 0 : index
    %c0_10 = arith.constant 0 : index
    %19 = vector.load %arg18[%c0_9, %c0_10] : memref<128x64xf32, #tpu.memory_space<vmem>>, vector<128x64xf32>
    tpu.vector_store %arg18[%c0_9, %c0_10], %18 {strides = array<i32>} : memref<128x64xf32, #tpu.memory_space<vmem>>, vector<128x64xf32>,
    %c0_11 = arith.constant 0 : index
    %c0_12 = arith.constant 0 : index
    %20 = tpu.strided_load %arg18[%c0_11, %c0_12] {strides = array<i32: 2, 1>} : memref<128x64xf32, #tpu.memory_space<vmem>>, vector<64x64xf32>
    %c1 = arith.constant 1 : index
    %c0_13 = arith.constant 0 : index
    %21 = tpu.strided_load %arg18[%c1, %c0_13] {strides = array<i32: 2, 1>} : memref<128x64xf32, #tpu.memory_space<vmem>>, vector<64x64xf32>
    %22 = arith.maximumf %20, %21 : vector<64x64xf32>
    %cst_14 = arith.constant 0.000000e+00 : f32
    %23 = vector.broadcast %cst_14 : f32 to vector<10x10x64xf32>
    %c0_15 = arith.constant 0 : index
    %c0_16 = arith.constant 0 : index
    %c0_17 = arith.constant 0 : index
    %24 = vector.load %arg16[%c0_15, %c0_16, %c0_17] : memref<10x10x64xf32, #tpu.memory_space<vmem>>, vector<10x10x64xf32>
    tpu.vector_store %arg16[%c0_15, %c0_16, %c0_17], %23 {strides = array<i32>} : memref<10x10x64xf32, #tpu.memory_space<vmem>>, vector<10x10x64xf32>,
    %25 = vector.shape_cast %22 : vector<64x64xf32> to vector<8x8x64xf32>
    %c1_18 = arith.constant 1 : index
    %c1_19 = arith.constant 1 : index
    %c0_20 = arith.constant 0 : index
    %26 = vector.load %arg16[%c1_18, %c1_19, %c0_20] : memref<10x10x64xf32, #tpu.memory_space<vmem>>, vector<8x8x64xf32>
    tpu.vector_store %arg16[%c1_18, %c1_19, %c0_20], %25 {strides = array<i32>} : memref<10x10x64xf32, #tpu.memory_space<vmem>>, vector<8x8x64xf32>,
    %c0_21 = arith.constant 0 : index
    %c0_22 = arith.constant 0 : index
    %c0_23 = arith.constant 0 : index
    %27 = vector.load %arg16[%c0_21, %c0_22, %c0_23] : memref<10x10x64xf32, #tpu.memory_space<vmem>>, vector<8x8x64xf32>
    %28 = vector.shape_cast %27 : vector<8x8x64xf32> to vector<64x64xf32>
    %c0_24 = arith.constant 0 : index
    %c1_25 = arith.constant 1 : index
    %c0_26 = arith.constant 0 : index
    %29 = vector.load %arg16[%c0_24, %c1_25, %c0_26] : memref<10x10x64xf32, #tpu.memory_space<vmem>>, vector<8x8x64xf32>
    %30 = vector.shape_cast %29 : vector<8x8x64xf32> to vector<64x64xf32>
    %c0_27 = arith.constant 0 : index
    %c2 = arith.constant 2 : index
    %c0_28 = arith.constant 0 : index
    %31 = vector.load %arg16[%c0_27, %c2, %c0_28] : memref<10x10x64xf32, #tpu.memory_space<vmem>>, vector<8x8x64xf32>
    %32 = vector.shape_cast %31 : vector<8x8x64xf32> to vector<64x64xf32>
    %c1_29 = arith.constant 1 : index
    %c0_30 = arith.constant 0 : index
    %c0_31 = arith.constant 0 : index
    %33 = vector.load %arg16[%c1_29, %c0_30, %c0_31] : memref<10x10x64xf32, #tpu.memory_space<vmem>>, vector<8x8x64xf32>
    %34 = vector.shape_cast %33 : vector<8x8x64xf32> to vector<64x64xf32>
    %c1_32 = arith.constant 1 : index
    %c1_33 = arith.constant 1 : index
    %c0_34 = arith.constant 0 : index
    %35 = vector.load %arg16[%c1_32, %c1_33, %c0_34] : memref<10x10x64xf32, #tpu.memory_space<vmem>>, vector<8x8x64xf32>
    %36 = vector.shape_cast %35 : vector<8x8x64xf32> to vector<64x64xf32>
    %c1_35 = arith.constant 1 : index
    %c2_36 = arith.constant 2 : index
    %c0_37 = arith.constant 0 : index
    %37 = vector.load %arg16[%c1_35, %c2_36, %c0_37] : memref<10x10x64xf32, #tpu.memory_space<vmem>>, vector<8x8x64xf32>
    %38 = vector.shape_cast %37 : vector<8x8x64xf32> to vector<64x64xf32>
    %c2_38 = arith.constant 2 : index
    %c0_39 = arith.constant 0 : index
    %c0_40 = arith.constant 0 : index
    %39 = vector.load %arg16[%c2_38, %c0_39, %c0_40] : memref<10x10x64xf32, #tpu.memory_space<vmem>>, vector<8x8x64xf32>
    %40 = vector.shape_cast %39 : vector<8x8x64xf32> to vector<64x64xf32>
    %c2_41 = arith.constant 2 : index
    %c1_42 = arith.constant 1 : index
    %c0_43 = arith.constant 0 : index
    %41 = vector.load %arg16[%c2_41, %c1_42, %c0_43] : memref<10x10x64xf32, #tpu.memory_space<vmem>>, vector<8x8x64xf32>
    %42 = vector.shape_cast %41 : vector<8x8x64xf32> to vector<64x64xf32>
    %c2_44 = arith.constant 2 : index
    %c2_45 = arith.constant 2 : index
    %c0_46 = arith.constant 0 : index
    %43 = vector.load %arg16[%c2_44, %c2_45, %c0_46] : memref<10x10x64xf32, #tpu.memory_space<vmem>>, vector<8x8x64xf32>
    %44 = vector.shape_cast %43 : vector<8x8x64xf32> to vector<64x64xf32>
    %45 = tpu.concatenate %28, %30, %32, %34, %36, %38, %40, %42, %44 in 1 : vector<64x64xf32>, vector<64x64xf32>, vector<64x64xf32>, vector<64x64xf32>, vector<64x64xf32>, vector<64x64xf32>, vector<64x64xf32>, vector<64x64xf32>, vector<64x64xf32> -> vector<64x576xf32>
    %46 = arith.truncf %45 : vector<64x576xf32> to vector<64x576xbf16>
    %c0_47 = arith.constant 0 : index
    %c0_48 = arith.constant 0 : index
    %47 = vector.load %arg5[%c0_47, %c0_48] : memref<576x128xbf16, #tpu.memory_space<vmem>>, vector<576x128xbf16>
    %cst_49 = arith.constant dense<0.000000e+00> : vector<64x128xf32>
    %48 = tpu.matmul %46, %47, %cst_49 {dimension_numbers = #tpu.dot_dimension_numbers<[1], [0], [0], [1], [0, 0, 1, 1], [], []>} : vector<64x576xbf16>, vector<576x128xbf16>, vector<64x128xf32> -> vector<64x128xf32>
    %c0_50 = arith.constant 0 : index
    %c0_51 = arith.constant 0 : index
    %49 = vector.load %arg6[%c0_50, %c0_51] : memref<1x128xf32, #tpu.memory_space<vmem>>, vector<1x128xf32>
    %50 = vector.broadcast %49 : vector<1x128xf32> to vector<64x128xf32>
    %51 = arith.mulf %48, %50 : vector<64x128xf32>
    %c0_52 = arith.constant 0 : index
    %c0_53 = arith.constant 0 : index
    %52 = vector.load %arg7[%c0_52, %c0_53] : memref<1x128xf32, #tpu.memory_space<vmem>>, vector<1x128xf32>
    %53 = vector.broadcast %52 : vector<1x128xf32> to vector<64x128xf32>
    %54 = arith.addf %51, %53 : vector<64x128xf32>
    %cst_54 = arith.constant 0.000000e+00 : f32
    %55 = vector.broadcast %cst_54 : f32 to vector<64x128xf32>
    %56 = arith.maximumf %54, %55 : vector<64x128xf32>
    %cst_55 = arith.constant 0.000000e+00 : f32
    %57 = vector.broadcast %cst_55 : f32 to vector<10x10x128xf32>
    %c0_56 = arith.constant 0 : index
    %c0_57 = arith.constant 0 : index
    %c0_58 = arith.constant 0 : index
    %58 = vector.load %arg17[%c0_56, %c0_57, %c0_58] : memref<10x10x128xf32, #tpu.memory_space<vmem>>, vector<10x10x128xf32>
    tpu.vector_store %arg17[%c0_56, %c0_57, %c0_58], %57 {strides = array<i32>} : memref<10x10x128xf32, #tpu.memory_space<vmem>>, vector<10x10x128xf32>,
    %59 = vector.shape_cast %56 : vector<64x128xf32> to vector<8x8x128xf32>
    %c1_59 = arith.constant 1 : index
    %c1_60 = arith.constant 1 : index
    %c0_61 = arith.constant 0 : index
    %60 = vector.load %arg17[%c1_59, %c1_60, %c0_61] : memref<10x10x128xf32, #tpu.memory_space<vmem>>, vector<8x8x128xf32>
    tpu.vector_store %arg17[%c1_59, %c1_60, %c0_61], %59 {strides = array<i32>} : memref<10x10x128xf32, #tpu.memory_space<vmem>>, vector<8x8x128xf32>,
    %c0_62 = arith.constant 0 : index
    %c0_63 = arith.constant 0 : index
    %c0_64 = arith.constant 0 : index
    %61 = vector.load %arg17[%c0_62, %c0_63, %c0_64] : memref<10x10x128xf32, #tpu.memory_space<vmem>>, vector<8x8x128xf32>
    %62 = vector.shape_cast %61 : vector<8x8x128xf32> to vector<64x128xf32>
    %c0_65 = arith.constant 0 : index
    %c1_66 = arith.constant 1 : index
    %c0_67 = arith.constant 0 : index
    %63 = vector.load %arg17[%c0_65, %c1_66, %c0_67] : memref<10x10x128xf32, #tpu.memory_space<vmem>>, vector<8x8x128xf32>
    %64 = vector.shape_cast %63 : vector<8x8x128xf32> to vector<64x128xf32>
    %c0_68 = arith.constant 0 : index
    %c2_69 = arith.constant 2 : index
    %c0_70 = arith.constant 0 : index
    %65 = vector.load %arg17[%c0_68, %c2_69, %c0_70] : memref<10x10x128xf32, #tpu.memory_space<vmem>>, vector<8x8x128xf32>
    %66 = vector.shape_cast %65 : vector<8x8x128xf32> to vector<64x128xf32>
    %c1_71 = arith.constant 1 : index
    %c0_72 = arith.constant 0 : index
    %c0_73 = arith.constant 0 : index
    %67 = vector.load %arg17[%c1_71, %c0_72, %c0_73] : memref<10x10x128xf32, #tpu.memory_space<vmem>>, vector<8x8x128xf32>
    %68 = vector.shape_cast %67 : vector<8x8x128xf32> to vector<64x128xf32>
    %c1_74 = arith.constant 1 : index
    %c1_75 = arith.constant 1 : index
    %c0_76 = arith.constant 0 : index
    %69 = vector.load %arg17[%c1_74, %c1_75, %c0_76] : memref<10x10x128xf32, #tpu.memory_space<vmem>>, vector<8x8x128xf32>
    %70 = vector.shape_cast %69 : vector<8x8x128xf32> to vector<64x128xf32>
    %c1_77 = arith.constant 1 : index
    %c2_78 = arith.constant 2 : index
    %c0_79 = arith.constant 0 : index
    %71 = vector.load %arg17[%c1_77, %c2_78, %c0_79] : memref<10x10x128xf32, #tpu.memory_space<vmem>>, vector<8x8x128xf32>
    %72 = vector.shape_cast %71 : vector<8x8x128xf32> to vector<64x128xf32>
    %c2_80 = arith.constant 2 : index
    %c0_81 = arith.constant 0 : index
    %c0_82 = arith.constant 0 : index
    %73 = vector.load %arg17[%c2_80, %c0_81, %c0_82] : memref<10x10x128xf32, #tpu.memory_space<vmem>>, vector<8x8x128xf32>
    %74 = vector.shape_cast %73 : vector<8x8x128xf32> to vector<64x128xf32>
    %c2_83 = arith.constant 2 : index
    %c1_84 = arith.constant 1 : index
    %c0_85 = arith.constant 0 : index
    %75 = vector.load %arg17[%c2_83, %c1_84, %c0_85] : memref<10x10x128xf32, #tpu.memory_space<vmem>>, vector<8x8x128xf32>
    %76 = vector.shape_cast %75 : vector<8x8x128xf32> to vector<64x128xf32>
    %c2_86 = arith.constant 2 : index
    %c2_87 = arith.constant 2 : index
    %c0_88 = arith.constant 0 : index
    %77 = vector.load %arg17[%c2_86, %c2_87, %c0_88] : memref<10x10x128xf32, #tpu.memory_space<vmem>>, vector<8x8x128xf32>
    %78 = vector.shape_cast %77 : vector<8x8x128xf32> to vector<64x128xf32>
    %79 = tpu.concatenate %62, %64, %66, %68, %70, %72, %74, %76, %78 in 1 : vector<64x128xf32>, vector<64x128xf32>, vector<64x128xf32>, vector<64x128xf32>, vector<64x128xf32>, vector<64x128xf32>, vector<64x128xf32>, vector<64x128xf32>, vector<64x128xf32> -> vector<64x1152xf32>
    %80 = arith.truncf %79 : vector<64x1152xf32> to vector<64x1152xbf16>
    %c0_89 = arith.constant 0 : index
    %c0_90 = arith.constant 0 : index
    %81 = vector.load %arg8[%c0_89, %c0_90] : memref<1152x128xbf16, #tpu.memory_space<vmem>>, vector<1152x128xbf16>
    %cst_91 = arith.constant dense<0.000000e+00> : vector<64x128xf32>
    %82 = tpu.matmul %80, %81, %cst_91 {dimension_numbers = #tpu.dot_dimension_numbers<[1], [0], [0], [1], [0, 0, 1, 1], [], []>} : vector<64x1152xbf16>, vector<1152x128xbf16>, vector<64x128xf32> -> vector<64x128xf32>
    %c0_92 = arith.constant 0 : index
    %c0_93 = arith.constant 0 : index
    %83 = vector.load %arg9[%c0_92, %c0_93] : memref<1x128xf32, #tpu.memory_space<vmem>>, vector<1x128xf32>
    %84 = vector.broadcast %83 : vector<1x128xf32> to vector<64x128xf32>
    %85 = arith.mulf %82, %84 : vector<64x128xf32>
    %c0_94 = arith.constant 0 : index
    %c0_95 = arith.constant 0 : index
    %86 = vector.load %arg10[%c0_94, %c0_95] : memref<1x128xf32, #tpu.memory_space<vmem>>, vector<1x128xf32>
    %87 = vector.broadcast %86 : vector<1x128xf32> to vector<64x128xf32>
    %88 = arith.addf %85, %87 : vector<64x128xf32>
    %cst_96 = arith.constant 0.000000e+00 : f32
    %89 = vector.broadcast %cst_96 : f32 to vector<64x128xf32>
    %90 = arith.maximumf %88, %89 : vector<64x128xf32>
    %91 = vector.shape_cast %90 : vector<64x128xf32> to vector<4x2x8x128xf32>
    %92 = vector.extract_strided_slice %91 {offsets = [0, 0, 0, 0], sizes = [4, 1, 8, 128], strides = [1, 1, 1, 1]} : vector<4x2x8x128xf32> to vector<4x1x8x128xf32>
    %93 = vector.shape_cast %92 : vector<4x1x8x128xf32> to vector<4x8x128xf32>
    %94 = vector.extract_strided_slice %91 {offsets = [0, 1, 0, 0], sizes = [4, 1, 8, 128], strides = [1, 1, 1, 1]} : vector<4x2x8x128xf32> to vector<4x1x8x128xf32>
    %95 = vector.shape_cast %94 : vector<4x1x8x128xf32> to vector<4x8x128xf32>
    %96 = arith.maximumf %93, %95 : vector<4x8x128xf32>
    %97 = vector.shape_cast %96 : vector<4x8x128xf32> to vector<32x128xf32>
    %c0_97 = arith.constant 0 : index
    %c0_98 = arith.constant 0 : index
    %98 = vector.load %arg19[%c0_97, %c0_98] : memref<32x128xf32, #tpu.memory_space<vmem>>, vector<32x128xf32>
    tpu.vector_store %arg19[%c0_97, %c0_98], %97 {strides = array<i32>} : memref<32x128xf32, #tpu.memory_space<vmem>>, vector<32x128xf32>,
    %c0_99 = arith.constant 0 : index
    %c0_100 = arith.constant 0 : index
    %99 = tpu.strided_load %arg19[%c0_99, %c0_100] {strides = array<i32: 2, 1>} : memref<32x128xf32, #tpu.memory_space<vmem>>, vector<16x128xf32>
    %c1_101 = arith.constant 1 : index
    %c0_102 = arith.constant 0 : index
    %100 = tpu.strided_load %arg19[%c1_101, %c0_102] {strides = array<i32: 2, 1>} : memref<32x128xf32, #tpu.memory_space<vmem>>, vector<16x128xf32>
    %101 = arith.maximumf %99, %100 : vector<16x128xf32>
    %102 = vector.extract_strided_slice %101 {offsets = [0, 0], sizes = [1, 128], strides = [1, 1]} : vector<16x128xf32> to vector<1x128xf32>
    %103 = vector.extract_strided_slice %101 {offsets = [1, 0], sizes = [1, 128], strides = [1, 1]} : vector<16x128xf32> to vector<1x128xf32>
    %104 = vector.extract_strided_slice %101 {offsets = [2, 0], sizes = [1, 128], strides = [1, 1]} : vector<16x128xf32> to vector<1x128xf32>
    %105 = vector.extract_strided_slice %101 {offsets = [3, 0], sizes = [1, 128], strides = [1, 1]} : vector<16x128xf32> to vector<1x128xf32>
    %106 = vector.extract_strided_slice %101 {offsets = [4, 0], sizes = [1, 128], strides = [1, 1]} : vector<16x128xf32> to vector<1x128xf32>
    %107 = vector.extract_strided_slice %101 {offsets = [5, 0], sizes = [1, 128], strides = [1, 1]} : vector<16x128xf32> to vector<1x128xf32>
    %108 = vector.extract_strided_slice %101 {offsets = [6, 0], sizes = [1, 128], strides = [1, 1]} : vector<16x128xf32> to vector<1x128xf32>
    %109 = vector.extract_strided_slice %101 {offsets = [7, 0], sizes = [1, 128], strides = [1, 1]} : vector<16x128xf32> to vector<1x128xf32>
    %110 = vector.extract_strided_slice %101 {offsets = [8, 0], sizes = [1, 128], strides = [1, 1]} : vector<16x128xf32> to vector<1x128xf32>
    %111 = vector.extract_strided_slice %101 {offsets = [9, 0], sizes = [1, 128], strides = [1, 1]} : vector<16x128xf32> to vector<1x128xf32>
    %112 = vector.extract_strided_slice %101 {offsets = [10, 0], sizes = [1, 128], strides = [1, 1]} : vector<16x128xf32> to vector<1x128xf32>
    %113 = vector.extract_strided_slice %101 {offsets = [11, 0], sizes = [1, 128], strides = [1, 1]} : vector<16x128xf32> to vector<1x128xf32>
    %114 = vector.extract_strided_slice %101 {offsets = [12, 0], sizes = [1, 128], strides = [1, 1]} : vector<16x128xf32> to vector<1x128xf32>
    %115 = vector.extract_strided_slice %101 {offsets = [13, 0], sizes = [1, 128], strides = [1, 1]} : vector<16x128xf32> to vector<1x128xf32>
    %116 = vector.extract_strided_slice %101 {offsets = [14, 0], sizes = [1, 128], strides = [1, 1]} : vector<16x128xf32> to vector<1x128xf32>
    %117 = vector.extract_strided_slice %101 {offsets = [15, 0], sizes = [1, 128], strides = [1, 1]} : vector<16x128xf32> to vector<1x128xf32>
    %118 = tpu.concatenate %102, %103, %104, %105, %106, %107, %108, %109, %110, %111, %112, %113, %114, %115, %116, %117 in 1 : vector<1x128xf32>, vector<1x128xf32>, vector<1x128xf32>, vector<1x128xf32>, vector<1x128xf32>, vector<1x128xf32>, vector<1x128xf32>, vector<1x128xf32>, vector<1x128xf32>, vector<1x128xf32>, vector<1x128xf32>, vector<1x128xf32>, vector<1x128xf32>, vector<1x128xf32>, vector<1x128xf32>, vector<1x128xf32> -> vector<1x2048xf32>
    %119 = arith.truncf %118 : vector<1x2048xf32> to vector<1x2048xbf16>
    %c0_103 = arith.constant 0 : index
    %c0_104 = arith.constant 0 : index
    %120 = vector.load %arg11[%c0_103, %c0_104] : memref<2048x1024xbf16, #tpu.memory_space<vmem>>, vector<2048x1024xbf16>
    %cst_105 = arith.constant dense<0.000000e+00> : vector<1x1024xf32>
    %121 = tpu.matmul %119, %120, %cst_105 {dimension_numbers = #tpu.dot_dimension_numbers<[1], [0], [0], [1], [0, 0, 1, 1], [], []>} : vector<1x2048xbf16>, vector<2048x1024xbf16>, vector<1x1024xf32> -> vector<1x1024xf32>
    %c0_106 = arith.constant 0 : index
    %c0_107 = arith.constant 0 : index
    %122 = vector.load %arg12[%c0_106, %c0_107] : memref<1x1024xf32, #tpu.memory_space<vmem>>, vector<1x1024xf32>
    %123 = arith.addf %121, %122 : vector<1x1024xf32>
    %cst_108 = arith.constant 0.000000e+00 : f32
    %124 = vector.broadcast %cst_108 : f32 to vector<1x1024xf32>
    %125 = arith.maximumf %123, %124 : vector<1x1024xf32>
    %126 = arith.truncf %125 : vector<1x1024xf32> to vector<1x1024xbf16>
    %c0_109 = arith.constant 0 : index
    %c0_110 = arith.constant 0 : index
    %127 = vector.load %arg13[%c0_109, %c0_110] : memref<1024x10xbf16, #tpu.memory_space<vmem>>, vector<1024x10xbf16>
    %cst_111 = arith.constant dense<0.000000e+00> : vector<1x10xf32>
    %128 = tpu.matmul %126, %127, %cst_111 {dimension_numbers = #tpu.dot_dimension_numbers<[1], [0], [0], [1], [0, 0, 1, 1], [], []>} : vector<1x1024xbf16>, vector<1024x10xbf16>, vector<1x10xf32> -> vector<1x10xf32>
    %c0_112 = arith.constant 0 : index
    %c0_113 = arith.constant 0 : index
    %129 = vector.load %arg14[%c0_112, %c0_113] : memref<1x10xf32, #tpu.memory_space<vmem>>, vector<1x10xf32>
    %130 = arith.addf %128, %129 : vector<1x10xf32>
    %c0_114 = arith.constant 0 : index
    %c0_115 = arith.constant 0 : index
    %c0_116 = arith.constant 0 : index
    %131 = vector.load %arg15[%c0_114, %c0_115, %c0_116] : memref<1x1x10xf32, #tpu.memory_space<vmem>>, vector<1x1x10xf32>
    %132 = vector.shape_cast %131 : vector<1x1x10xf32> to vector<1x10xf32>
    %133 = vector.shape_cast %130 : vector<1x10xf32> to vector<1x1x10xf32>
    tpu.vector_store %arg15[%c0_114, %c0_115, %c0_116], %133 {strides = array<i32>} : memref<1x1x10xf32, #tpu.memory_space<vmem>>, vector<1x1x10xf32>,
    return
  }
  func.func @transform_0(%arg0: i32) -> (i32, i32, i32) {
    %c0_i32 = arith.constant 0 : i32
    %c0_i32_0 = arith.constant 0 : i32
    %c0_i32_1 = arith.constant 0 : i32
    return %arg0, %c0_i32, %c0_i32_0 : i32, i32, i32
  }
  func.func @transform_1(%arg0: i32) -> (i32, i32) {
    %c0_i32 = arith.constant 0 : i32
    %c0_i32_0 = arith.constant 0 : i32
    %c0_i32_1 = arith.constant 0 : i32
    return %c0_i32, %c0_i32_0 : i32, i32
  }
  func.func @transform_2(%arg0: i32) -> (i32, i32) {
    %c0_i32 = arith.constant 0 : i32
    %c0_i32_0 = arith.constant 0 : i32
    %c0_i32_1 = arith.constant 0 : i32
    return %c0_i32, %c0_i32_0 : i32, i32
  }
  func.func @transform_3(%arg0: i32) -> (i32, i32) {
    %c0_i32 = arith.constant 0 : i32
    %c0_i32_0 = arith.constant 0 : i32
    %c0_i32_1 = arith.constant 0 : i32
    return %c0_i32, %c0_i32_0 : i32, i32
  }
  func.func @transform_4(%arg0: i32) -> (i32, i32) {
    %c0_i32 = arith.constant 0 : i32
    %c0_i32_0 = arith.constant 0 : i32
    %c0_i32_1 = arith.constant 0 : i32
    return %c0_i32, %c0_i32_0 : i32, i32
  }
  func.func @transform_5(%arg0: i32) -> (i32, i32) {
    %c0_i32 = arith.constant 0 : i32
    %c0_i32_0 = arith.constant 0 : i32
    %c0_i32_1 = arith.constant 0 : i32
    return %c0_i32, %c0_i32_0 : i32, i32
  }
  func.func @transform_6(%arg0: i32) -> (i32, i32) {
    %c0_i32 = arith.constant 0 : i32
    %c0_i32_0 = arith.constant 0 : i32
    %c0_i32_1 = arith.constant 0 : i32
    return %c0_i32, %c0_i32_0 : i32, i32
  }
  func.func @transform_7(%arg0: i32) -> (i32, i32) {
    %c0_i32 = arith.constant 0 : i32
    %c0_i32_0 = arith.constant 0 : i32
    %c0_i32_1 = arith.constant 0 : i32
    return %c0_i32, %c0_i32_0 : i32, i32
  }
  func.func @transform_8(%arg0: i32) -> (i32, i32) {
    %c0_i32 = arith.constant 0 : i32
    %c0_i32_0 = arith.constant 0 : i32
    %c0_i32_1 = arith.constant 0 : i32
    return %c0_i32, %c0_i32_0 : i32, i32
  }
  func.func @transform_9(%arg0: i32) -> (i32, i32) {
    %c0_i32 = arith.constant 0 : i32
    %c0_i32_0 = arith.constant 0 : i32
    %c0_i32_1 = arith.constant 0 : i32
    return %c0_i32, %c0_i32_0 : i32, i32
  }
  func.func @transform_10(%arg0: i32) -> (i32, i32) {
    %c0_i32 = arith.constant 0 : i32
    %c0_i32_0 = arith.constant 0 : i32
    %c0_i32_1 = arith.constant 0 : i32
    return %c0_i32, %c0_i32_0 : i32, i32
  }
  func.func @transform_11(%arg0: i32) -> (i32, i32) {
    %c0_i32 = arith.constant 0 : i32
    %c0_i32_0 = arith.constant 0 : i32
    %c0_i32_1 = arith.constant 0 : i32
    return %c0_i32, %c0_i32_0 : i32, i32
  }
  func.func @transform_12(%arg0: i32) -> (i32, i32) {
    %c0_i32 = arith.constant 0 : i32
    %c0_i32_0 = arith.constant 0 : i32
    %c0_i32_1 = arith.constant 0 : i32
    return %c0_i32, %c0_i32_0 : i32, i32
  }
  func.func @transform_13(%arg0: i32) -> (i32, i32) {
    %c0_i32 = arith.constant 0 : i32
    %c0_i32_0 = arith.constant 0 : i32
    %c0_i32_1 = arith.constant 0 : i32
    return %c0_i32, %c0_i32_0 : i32, i32
  }
  func.func @transform_14(%arg0: i32) -> (i32, i32, i32) {
    %c0_i32 = arith.constant 0 : i32
    %c0_i32_0 = arith.constant 0 : i32
    %c0_i32_1 = arith.constant 0 : i32
    return %arg0, %c0_i32, %c0_i32_0 : i32, i32, i32
  }
}

</mosaic_0001>

<bundles_post_ra>
// kernel: vgg5_forward.1
= control target key start
LH: loop header
LB: loop body
LE: loop exit
PB: predicated region body
PF: predicated region fallthrough
CT: control target
= control target key end

     0   :  { %19 = vsyncpa [#allocation7], 0  ;;  %s25364_s0 = inlined_call_operand.vmem [shape: bf16[2,256,36], index: 0, kind: input, shape index: {}]   ;;  %s25365_s1 = inlined_call_operand.vmem [shape: bf16[36,64], index: 1, kind: input, shape index: {}]   ;;  %s25366_s2 = inlined_call_operand.vmem [shape: f32[1,64], index: 2, kind: input, shape index: {}]   ;;  %s25367_s3 = inlined_call_operand.vmem [shape: f32[1,64], index: 3, kind: input, shape index: {}]   ;;  %s25368_s4 = inlined_call_operand.hbm [shape: bf16[576,128], index: 4, kind: input, shape index: {}]   ;;  %s25369_s5 = inlined_call_operand.vmem [shape: f32[1,128], index: 5, kind: input, shape index: {}]   ;;  %s25370_s6 = inlined_call_operand.vmem [shape: f32[1,128], index: 6, kind: input, shape index: {}]   ;;  %s25371_s7 = inlined_call_operand.hbm [shape: bf16[1152,128], index: 7, kind: input, shape index: {}]   ;;  %s25372_s8 = inlined_call_operand.vmem [shape: f32[1,128], index: 8, kind: input, shape index: {}]   ;;  %s25373_s9 = inlined_call_operand.vmem [shape: f32[1,128], index: 9, kind: input, shape index: {}]   ;;  %s25374_s10 = inlined_call_operand.vmem [shape: bf16[2048,1024], index: 10, kind: input, shape index: {}]   ;;  %s25375_s11 = inlined_call_operand.vmem [shape: f32[1,1024], index: 11, kind: input, shape index: {}]   ;;  %s25376_s12 = inlined_call_operand.vmem [shape: bf16[1024,10], index: 12, kind: input, shape index: {}]   ;;  %s25377_s13 = inlined_call_operand.vmem [shape: f32[1,10], index: 13, kind: input, shape index: {}]   ;;  %s25378_s14 = inlined_call_operand.hbm [shape: f32[2,1,10], index: 14, kind: output, shape index: {}]  }
   0x1   :  { %20 = vsyncpa [#allocation10], 0 }
   0x2   :  { %21 = vsyncpa [#allocation8], 0 }
   0x3   :  { %23 = vsyncpa [#allocation8 + $0x1], 0  ;;  %s17804_s29 = smov 0   ;;  %s17806_s30 = smov 0  }
   0x4   :  { %s17808_s15 = smov 0   ;;  %s17810_s16 = smov 0  }
   0x5 LB: > { %25384 = sst [smem:[#allocation15_spill]] %s17709_s29  ;;  %s17825_s17 = sadd.s32 4294967295, %s17721_s16   ;;  %s17721_s16 = sphi %s17810_s16, %s25394_s16   ;;  %s17717_s15 = sphi %s17808_s15, %s25399_s15   ;;  %s17713_s30 = sphi %s17806_s30, %s25398_s30   ;;  %s17709_s29 = sphi %s17804_s29, %s25397_s29  }
   0x6   : > { %25385 = sst [smem:[#allocation16_spill]] %s17717_s15  ;;  %s11331_s18 = sadd.s32 4294967294, %s17721_s16  }
   0x7   : > { %s17829_s19 = sadd.s32 1, %s17721_s16   ;;  %s335_s20 = sadd.s32 1, %s17717_s15 }
   0x8   : > { %25386 = sst [smem:[#allocation17_spill]] %s17829_s19  ;;  %s332_s21 = ssub.s32 %s17721_s16, %s17829_s19 }
   0x9   : > { %p345_p0 = scmp.ne.s32.totalorder %s17717_s15, %s17713_s30  ;;  %p333_p1 = scmp.eq.s32.totalorder %s332_s21, 0 }
   0xa   : > { %p346_p2 = scmp.eq.s32.totalorder %s17825_s17, 1  ;;  %p351_p3 = scmp.ne.s32.totalorder %s17713_s30, %s17709_s29 }
   0xb   : > { %p352_p4 = scmp.eq.s32.totalorder %s11331_s18, 1  ;;  %p11332_p7 = scmp.ge.s32.totalorder %s17721_s16, 1 }
   0xc   : > { %s17840_s22 = scalar_select %p333_p1, %s17717_s15, %s335_s20  }
   0xd   : > { %p17842_p5 = por %p346_p2, %p345_p0  ;;  %p17846_p6 = por %p352_p4, %p351_p3 }
   0xe   : > { %25387 = sst [smem:[#allocation18_spill]] %s17840_s22  ;;  %p359_p8 = scmp.lt.s32.totalorder %s17721_s16, 3 }
   0xf   : > { %s25389_s24 = scalar_select %p17846_p6, 1, 0 }
  0x10   : > { %p17455_p9 = scmp.eq.s32.totalorder %s17825_s17, 0  ;;  %p17853_p10 = pnand %p11332_p7, %p359_p8 }
  0x11   : > { %25390 = sst [smem:[#allocation19_spill]] %s25389_s24  ;;  %s379_s28 = sshll.u32 %s25368_s4, 4  ;;  %s380_s28 = int_to_ptr.hbm [resolvable:$true] %s379_s28 }
  0x12   : > { %p17444_p11 = pneg %p17853_p10  ;;  %s17723_s18 = smov [#allocation6]  }
  0x13   : > { %s381_s20 = sshll.u32 %s17723_s18, 4  ;;  %s399_s15 = sshll.u32 %s25371_s7, 4  ;;  %s382_s20 = int_to_ptr.vmem [resolvable:$true] %s381_s20  ;;  %s400_s15 = int_to_ptr.hbm [resolvable:$true] %s399_s15 }
  0x14   : > { %p17445_p12 = pnand %p17455_p9, %p17444_p11  ;;  %s17724_s19 = smov 64  }
  0x15   : > { %s17725_s24 = smov 4   ;;  %s17726_s29 = smov [#allocation9]  }
  0x16   : > { %17447 = dma.hbm_to_vmem [thread:$0]  (!%p17445_p12), %s380_s28, 4608, %s382_s20, [#allocation7], %s17724_s19, %s17724_s19, %s17725_s24  }
  0x17   : > { %s401_s26 = sshll.u32 %s17726_s29, 4  ;;  %443 = sbr.rel (%p17853_p10) target bundleno = 2736 (0xab0), region = 76  ;;  %s402_s26 = int_to_ptr.vmem [resolvable:$true] %s401_s26 }
  0x18   : > { %17450 = dma.hbm_to_vmem [thread:$0]  (!%p17445_p12), %s400_s15, 9216, %s402_s26, [#allocation10], %s17724_s19, %s17724_s19, %s17725_s24  }
  0x1c   : > { %17696 = dma.done.wait (%p17455_p9), [#allocation7], 4608  }
  0x1d   : > { %17698 = vsyncadd (%p17455_p9), [#allocation7], 4294962688 }
  0x1e   : > { %17700 = dma.done.wait (%p17455_p9), [#allocation10], 9216  }
  0x1f   : > { %17702 = vsyncadd (%p17455_p9), [#allocation10], 4294958080  ;;  %p494_p13 = scmp.lt.s32.totalorder %s17825_s17, 1  ;;  %v536_v0 = vld [vmem:[%s25365_s1 + $0x10] sm:$0x3]  ;;  %vm681_vm0 = vcmask 1041408   ;;  %s11250_s28 = scalar_lea.hbm %s25378_s14, %s17825_s17 }
  0x20   : > { %v626_v1 = vunpack.c.l.b16 %v536_v0  ;;  %v16237_v4 = vld [vmem:[%s25365_s1 + $0x8] sm:$0xff]  ;;  %v16236_v5 = vld [vmem:[%s25365_s1] sm:$0xff]  ;;  %vm632_vm1 = vcmask 293888   ;;  %vm894_vm2 = vcmask 523264   ;;  %vm951_vm3 = vcmask 517120   ;;  %s17728_s22 = smov 64  }
  0x21   : > { %s495_s19 = scalar_select %p494_p13, %s17825_s17, 1  ;;  %v17914_v17 = vld [vmem:[%s25366_s2] ss:$0 sm:$0xff]  ;;  %v17727_v18 = vmov 0.0   ;;  %vm11239_vm4 = vcmask 73728  }
  0x22   : > { %v629_v2 = vpack.c.b16 %v626_v1, %v626_v1  ;;  %953 = vst.msk [vmem:[#allocation2 + $0x10] sm:$0xff] %vm894_vm2, %v17727_v18  ;;  %v17926_v20 = vld [vmem:[%s25367_s3] ss:$0 sm:$0xff]  ;;  %s492_s24 = sand.u32 1, %s17713_s30   ;;  %s17671_s17 = scalar_lea.hbm %s25378_s14, 2 }
  0x23   : > { %s16219_s25 = sshll.u32 %s495_s19, 7  ;;  %954 = vst.msk [vmem:[#allocation2 + $0x18] sm:$0x3] %vm951_vm3, %v17727_v18  ;;  %s493_s18 = scalar_lea.vmem [#allocation11], %s492_s24 }
  0x24   : > { %v683_v3 = vsel %vm681_vm0, %v629_v2, 0  ;;  %s17891_s21 = scalar_lea.vmem %s25364_s0, %s16219_s25  ;;  %955 = vst.msk [vmem:[#allocation2 + $0x20] sm:$0xff] %vm894_vm2, %v17727_v18  ;;  %s11252_s20 = sshll.u32 %s493_s18, 4  ;;  %s11253_s20 = int_to_ptr.vmem [resolvable:$true] %s11252_s20 }
  0x25   : > { %690 = vmatpush.bf16.msra.mxu0 %v683_v3  ;;  %v16220_v6 = vld [vmem:[%s17891_s21] sm:$0xff]  ;;  %v16221_v7 = vld [vmem:[%s17891_s21 + $0x8] sm:$0xff]  ;;  %v16222_v8 = vld [vmem:[%s17891_s21 + $0x10] sm:$0xff]  ;;  %956 = vst.msk [vmem:[#allocation2 + $0x28] sm:$0x3] %vm951_vm3, %v17727_v18  ;;  %s11242_s26 = scalar_lea.sflag [#allocation8], %s492_s24 }
  0x26   : > { %v16223_v9 = vld [vmem:[%s17891_s21 + $0x18] sm:$0xff]  ;;  %v16224_v10 = vld [vmem:[%s17891_s21 + $0x20] sm:$0xff]  ;;  %v16225_v11 = vld [vmem:[%s17891_s21 + $0x28] sm:$0xff]  ;;  %950 = vst.msk [vmem:[#allocation2] sm:$0xff] %vm894_vm2, %v17727_v18 }
  0x27   : > { %v16226_v12 = vld [vmem:[%s17891_s21 + $0x30] sm:$0xff]  ;;  %v16227_v13 = vld [vmem:[%s17891_s21 + $0x38] sm:$0xff]  ;;  %v16228_v14 = vld [vmem:[%s17891_s21 + $0x40] sm:$0xff]  ;;  %952 = vst.msk [vmem:[#allocation2 + $0x8] sm:$0x3] %vm951_vm3, %v17727_v18 }
  0x28   : > { %v16229_v21 = vld [vmem:[%s17891_s21 + $0x48] sm:$0xff]  ;;  %957 = vst.msk [vmem:[#allocation2 + $0x30] sm:$0xff] %vm894_vm2, %v17727_v18  ;;  %v16230_v37 = vld [vmem:[%s17891_s21 + $0x50] sm:$0xff]  ;;  %v16231_v44 = vld [vmem:[%s17891_s21 + $0x58] sm:$0xff] }
  0x29   : > { %691 = vmatpush.bf16.msra.mxu0 %v16237_v4  ;;  %958 = vst.msk [vmem:[#allocation2 + $0x38] sm:$0x3] %vm951_vm3, %v17727_v18  ;;  %v16232_v60 = vld [vmem:[%s17891_s21 + $0x60] sm:$0xff]  ;;  %v16233_v3 = vld [vmem:[%s17891_s21 + $0x68] sm:$0xff] }
  0x2a   : > { %959 = vst.msk [vmem:[#allocation2 + $0x40] sm:$0xff] %vm894_vm2, %v17727_v18 }
  0x2b   : > { %960 = vst.msk [vmem:[#allocation2 + $0x48] sm:$0x3] %vm951_vm3, %v17727_v18 }
  0x2c   : > { %961 = vst.msk [vmem:[#allocation2 + $0x50] sm:$0xff] %vm894_vm2, %v17727_v18 }
  0x2d   : > { %692 = vmatpush.bf16.msra.mxu0 %v16236_v5  ;;  %962 = vst.msk [vmem:[#allocation2 + $0x58] sm:$0x3] %vm951_vm3, %v17727_v18 }
  0x2e   : > { %963 = vst.msk [vmem:[#allocation2 + $0x60] sm:$0xff] %vm894_vm2, %v17727_v18 }
  0x2f   : > { %964 = vst.msk [vmem:[#allocation2 + $0x68] sm:$0x3] %vm951_vm3, %v17727_v18 }
  0x30   : > { %11413 = vmatmul.msk.bf16.vlgmr.msra.gmra.mxu0 %vm632_vm1, %v16220_v6  ;;  %965 = vst.msk [vmem:[#allocation2 + $0x70] sm:$0xff] %vm894_vm2, %v17727_v18 }
  0x31   : > { %966 = vst.msk [vmem:[#allocation2 + $0x78] sm:$0x3] %vm951_vm3, %v17727_v18 }
  0x32   : > { %967 = vst.msk [vmem:[#allocation2 + $0x80] sm:$0xff] %vm894_vm2, %v17727_v18 }
  0x33   : > { %968 = vst.msk [vmem:[#allocation2 + $0x88] sm:$0x3] %vm951_vm3, %v17727_v18 }
  0x34   : > { %969 = vst.msk [vmem:[#allocation2 + $0x90] sm:$0xff] %vm894_vm2, %v17727_v18 }
  0x35   : > { %970 = vst.msk [vmem:[#allocation2 + $0x98] sm:$0x3] %vm951_vm3, %v17727_v18 }
  0x36   : > { %1710 = vst [vmem:[#allocation3] sm:$0xff] %v17727_v18 }
  0x37   : > { %1711 = vst [vmem:[#allocation3 + $0x8] sm:$0x3] %v17727_v18 }
  0x38   : > { %1712 = vst [vmem:[#allocation3 + $0x10] sm:$0xff] %v17727_v18 }
  0x39   : > { %1713 = vst [vmem:[#allocation3 + $0x18] sm:$0x3] %v17727_v18 }
  0x3a   : > { %1714 = vst [vmem:[#allocation3 + $0x20] sm:$0xff] %v17727_v18 }
  0x3b   : > { %1715 = vst [vmem:[#allocation3 + $0x28] sm:$0x3] %v17727_v18 }
  0x3c   : > { %1716 = vst [vmem:[#allocation3 + $0x30] sm:$0xff] %v17727_v18 }
  0x3d   : > { %1717 = vst [vmem:[#allocation3 + $0x38] sm:$0x3] %v17727_v18 }
  0x3e   : > { %1718 = vst [vmem:[#allocation3 + $0x40] sm:$0xff] %v17727_v18 }
  0x3f   : > { %1719 = vst [vmem:[#allocation3 + $0x48] sm:$0x3] %v17727_v18 }
  0x40   : > { %11414 = vmatmul.msk.bf16.gmra.mxu0 %vm632_vm1, %v16221_v7  ;;  %1720 = vst [vmem:[#allocation3 + $0x50] sm:$0xff] %v17727_v18 }
  0x41   : > { %1721 = vst [vmem:[#allocation3 + $0x58] sm:$0x3] %v17727_v18 }
  0x42   : > { %1722 = vst [vmem:[#allocation3 + $0x60] sm:$0xff] %v17727_v18 }
  0x43   : > { %1723 = vst [vmem:[#allocation3 + $0x68] sm:$0x3] %v17727_v18 }
  0x44   : > { %1724 = vst [vmem:[#allocation3 + $0x70] sm:$0xff] %v17727_v18 }
  0x45   : > { %1725 = vst [vmem:[#allocation3 + $0x78] sm:$0x3] %v17727_v18 }
  0x46   : > { %1726 = vst [vmem:[#allocation3 + $0x80] sm:$0xff] %v17727_v18 }
  0x47   : > { %1727 = vst [vmem:[#allocation3 + $0x88] sm:$0x3] %v17727_v18 }
  0x48   : > { %1728 = vst [vmem:[#allocation3 + $0x90] sm:$0xff] %v17727_v18 }
  0x49   : > { %1729 = vst [vmem:[#allocation3 + $0x98] sm:$0x3] %v17727_v18 }
  0x50   : > { %11415 = vmatmul.msk.bf16.gmra.mxu0 %vm632_vm1, %v16222_v8 }
  0x60   : > { %11416 = vmatmul.msk.bf16.gmra.mxu0 %vm632_vm1, %v16223_v9 }
  0x70   : > { %11417 = vmatmul.msk.bf16.gmra.mxu0 %vm632_vm1, %v16224_v10 }
  0x80   : > { %11418 = vmatmul.msk.bf16.gmra.mxu0 %vm632_vm1, %v16225_v11 }
  0x90   : > { %11419 = vmatmul.msk.bf16.gmra.mxu0 %vm632_vm1, %v16226_v12 }
  0xa0   : > { %11420 = vmatmul.msk.bf16.gmra.mxu0 %vm632_vm1, %v16227_v13 }
  0xad   : > { %v694_v15 = vpop.f32.mrf.mxu0 }
  0xae   : > { %v778_v19 = vmul.f32 %v17914_v17, %v694_v15 }
  0xb0   : > { %11421 = vmatmul.msk.bf16.gmra.mxu0 %vm632_vm1, %v16228_v14  ;;  %v814_v23 = vadd.f32 %v17926_v20, %v778_v19 }
  0xb2   : > { %v846_v26 = vmax.f32 %v814_v23, 0.0 }
  0xb5   : > { %v696_v16 = vpop.f32.mrf.mxu0 }
  0xb6   : > { %v779_v27 = vmul.f32 %v17914_v17, %v696_v16  ;;  %v988_v16 = vld [vmem:[#allocation2 + $0x1] sm:$0xff] }
  0xb8   : > { %v815_v31 = vadd.f32 %v17926_v20, %v779_v27  ;;  %v16234_v27 = vld [vmem:[%s17891_s21 + $0x70] sm:$0xff] }
  0xba   : > { %v847_v34 = vmax.f32 %v815_v31, 0.0 }
  0xbd   : > { %v699_v22 = vpop.f32.mrf.mxu0 }
  0xbe   : > { %v780_v24 = vmul.f32 %v17914_v17, %v699_v22 }
  0xc0   : > { %v816_v25 = vadd.f32 %v17926_v20, %v780_v24  ;;  %11422 = vmatmul.msk.bf16.gmra.mxu0 %vm632_vm1, %v16229_v21 }
  0xc2   : > { %v848_v28 = vmax.f32 %v816_v25, 0.0 }
  0xc4   : > { %v878_v29 = vmax.f32 %v846_v26, %v848_v28 }
  0xc5   : > { %v701_v30 = vpop.f32.mrf.mxu0 }
  0xc6   : > { %895 = vst.msk [vmem:[#allocation4] sm:$0xff] %vm894_vm2, %v878_v29  ;;  %v781_v32 = vmul.f32 %v17914_v17, %v701_v30 }
  0xc8   : > { %v817_v33 = vadd.f32 %v17926_v20, %v781_v32 }
  0xca   : > { %v849_v35 = vmax.f32 %v817_v33, 0.0 }
  0xcc   : > { %v879_v36 = vmax.f32 %v847_v34, %v849_v35  ;;  %v16235_v34 = vld [vmem:[%s17891_s21 + $0x78] sm:$0xff]  ;;  %s11254_s21 = sshll.u32 %s11250_s28, 4  ;;  %s11255_s21 = int_to_ptr.hbm [resolvable:$true] %s11254_s21 }
  0xcd   : > { %v704_v38 = vpop.f32.mrf.mxu0  ;;  %s17665_s29 = sshra.s32 %s11255_s21, 4  ;;  %s17666_s29 = int_to_ptr.hbm [resolvable:$true] %s17665_s29 }
  0xce   : > { %896 = vst.msk [vmem:[#allocation4 + $0x8] sm:$0xff] %vm894_vm2, %v879_v36  ;;  %v782_v43 = vmul.f32 %v17914_v17, %v704_v38  ;;  %s17667_s15 = scalar_lea.hbm %s17666_s29, 1  ;;  %p17672_p3 = scmp.lt.s32.totalorder %s17666_s29, %s25378_s14 }
  0xcf   : > { %p17668_p0 = scmp.ne.s32.totalorder %s17666_s29, %s17667_s15  ;;  %p17673_p4 = scmp.lt.s32.totalorder %s17671_s17, %s17667_s15 }
  0xd0   : > { %11423 = vmatmul.msk.bf16.gmra.mxu0 %vm632_vm1, %v16230_v37  ;;  %v818_v46 = vadd.f32 %v17926_v20, %v782_v43 }
  0xd1   : > { %p17669_p1 = pnand %p17668_p0, %p17842_p5  ;;  %p17674_p7 = por %p17673_p4, %p17672_p3 }
  0xd2   : > { %v850_v49 = vmax.f32 %v818_v46, 0.0 }
  0xd3   : > { %p17670_p2 = pneg %p17669_p1 }
  0xd5   : > { %v911_v39 = vld [vmem:[#allocation4] ss:$2 sm:$0xff]  ;;  %v927_v40 = vld [vmem:[#allocation4 + $0x1] ss:$2 sm:$0xff]  ;;  %v706_v41 = vpop.f32.mrf.mxu0  ;;  %p17675_p8 = pnand %p17674_p7, %p17670_p2 }
  0xd6   : > { %v942_v42 = vmax.f32 %v911_v39, %v927_v40  ;;  %v783_v50 = vmul.f32 %v17914_v17, %v706_v41 }
  0xd8   : > { %972 = vst.msk [vmem:[#allocation2 + $0x11] sm:$0xff] %vm894_vm2, %v942_v42  ;;  %v819_v54 = vadd.f32 %v17926_v20, %v783_v50 }
  0xda   : > { %v851_v57 = vmax.f32 %v819_v54, 0.0 }
  0xdd   : > { %v709_v45 = vpop.f32.mrf.mxu0 }
  0xde   : > { %v784_v47 = vmul.f32 %v17914_v17, %v709_v45 }
  0xdf   : > { %v18015_v7 = vld [vmem:[#allocation2 + $0x10] sm:$0xff] }
  0xe0   : > { %v820_v48 = vadd.f32 %v17926_v20, %v784_v47  ;;  %11424 = vmatmul.msk.bf16.gmra.mxu0 %vm632_vm1, %v16231_v44  ;;  %v18025_v18 = vld [vmem:[#allocation2 + $0x11] sm:$0xff] }
  0xe1   : > { %v17503_v23 = vpack.i.bf16 %v18025_v18, %v988_v16 }
  0xe2   : > { %v852_v51 = vmax.f32 %v820_v48, 0.0 }
  0xe4   : > { %v880_v52 = vmax.f32 %v850_v49, %v852_v51 }
  0xe5   : > { %v711_v53 = vpop.f32.mrf.mxu0 }
  0xe6   : > { %897 = vst.msk [vmem:[#allocation4 + $0x10] sm:$0xff] %vm894_vm2, %v880_v52  ;;  %v785_v55 = vmul.f32 %v17914_v17, %v711_v53 }
  0xe8   : > { %v821_v56 = vadd.f32 %v17926_v20, %v785_v55  ;;  %v16253_v55 = vld [vmem:[#allocation6 + $0x78] sm:$0xff] }
  0xe9   : > { %1562 = vmatpush.bf16.msra.mxu2 %v16253_v55 }
  0xea   : > { %v853_v58 = vmax.f32 %v821_v56, 0.0 }
  0xec   : > { %v881_v59 = vmax.f32 %v851_v57, %v853_v58  ;;  %v16252_v58 = vld [vmem:[#allocation6 + $0x70] sm:$0xff] }
  0xed   : > { %v714_v61 = vpop.f32.mrf.mxu0  ;;  %1563 = vmatpush.bf16.msra.mxu2 %v16252_v58 }
  0xee   : > { %898 = vst.msk [vmem:[#allocation4 + $0x18] sm:$0xff] %vm894_vm2, %v881_v59  ;;  %v786_v2 = vmul.f32 %v17914_v17, %v714_v61 }
  0xf0   : > { %11425 = vmatmul.msk.bf16.gmra.mxu0 %vm632_vm1, %v16232_v60  ;;  %v822_v5 = vadd.f32 %v17926_v20, %v786_v2  ;;  %v16251_v2 = vld [vmem:[#allocation6 + $0x68] sm:$0xff] }
  0xf1   : > { %1564 = vmatpush.bf16.msra.mxu2 %v16251_v2  ;;  %v997_v2 = vld [vmem:[#allocation2 + $0x12] sm:$0xff] }
  0xf2   : > { %v854_v11 = vmax.f32 %v822_v5, 0.0 }
  0xf5   : > { %v913_v62 = vld [vmem:[#allocation4 + $0x10] ss:$2 sm:$0xff]  ;;  %v929_v63 = vld [vmem:[#allocation4 + $0x11] ss:$2 sm:$0xff]  ;;  %v716_v0 = vpop.f32.mrf.mxu0 }
  0xf6   : > { %v943_v1 = vmax.f32 %v913_v62, %v929_v63  ;;  %v787_v12 = vmul.f32 %v17914_v17, %v716_v0 }
  0xf8   : > { %973 = vst.msk [vmem:[#allocation2 + $0x21] sm:$0xff] %vm894_vm2, %v943_v1  ;;  %v823_v19 = vadd.f32 %v17926_v20, %v787_v12  ;;  %v16245_v1 = vld [vmem:[#allocation6 + $0x38] sm:$0xff]  ;;  %v16250_v12 = vld [vmem:[#allocation6 + $0x60] sm:$0xff] }
  0xf9   : > { %1533 = vmatpush.bf16.msra.mxu1 %v16245_v1  ;;  %1565 = vmatpush.bf16.msra.mxu2 %v16250_v12 }
  0xfa   : > { %v855_v24 = vmax.f32 %v823_v19, 0.0 }
  0xfd   : > { %v719_v4 = vpop.f32.mrf.mxu0 }
  0xfe   : > { %v788_v6 = vmul.f32 %v17914_v17, %v719_v4 }
  0xff   : > { %v18017_v8 = vld [vmem:[#allocation2 + $0x20] sm:$0xff] }
 0x100   : > { %v824_v9 = vadd.f32 %v17926_v20, %v788_v6  ;;  %11426 = vmatmul.msk.bf16.gmra.mxu0 %vm632_vm1, %v16233_v3  ;;  %v17498_v10 = vpack.i.bf16 %v18017_v8, %v18015_v7 }
 0x102   : > { %v856_v13 = vmax.f32 %v824_v9, 0.0  ;;  %17499 = vrot.lane.b32.xlu0 %v17498_v10, %s17728_s22 }
 0x104   : > { %v882_v14 = vmax.f32 %v854_v11, %v856_v13  ;;  %v16244_v11 = vld [vmem:[#allocation6 + $0x30] sm:$0xff] }
 0x105   : > { %v721_v15 = vpop.f32.mrf.mxu0  ;;  %1534 = vmatpush.bf16.msra.mxu1 %v16244_v11  ;;  %v980_v11 = vld [vmem:[#allocation2] sm:$0xff] }
 0x106   : > { %899 = vst.msk [vmem:[#allocation4 + $0x20] sm:$0xff] %vm894_vm2, %v882_v14  ;;  %v789_v21 = vmul.f32 %v17914_v17, %v721_v15  ;;  %v18067_v15 = vld [vmem:[#allocation2 + $0x21] sm:$0xff] }
 0x108   : > { %v825_v22 = vadd.f32 %v17926_v20, %v789_v21  ;;  %v16243_v21 = vld [vmem:[#allocation6 + $0x28] sm:$0xff] }
 0x109   : > { %1535 = vmatpush.bf16.msra.mxu1 %v16243_v21 }
 0x10a   : > { %v857_v25 = vmax.f32 %v825_v22, 0.0  ;;  %17504 = vrot.lane.b32.xlu0 %v17503_v23, %s17728_s22  ;;  %v16249_v22 = vld [vmem:[#allocation6 + $0x58] sm:$0xff] }
 0x10b   : > { %1566 = vmatpush.bf16.msra.mxu2 %v16249_v22 }
 0x10c   : > { %v883_v26 = vmax.f32 %v855_v24, %v857_v25 }
 0x10d   : > { %v724_v28 = vpop.f32.mrf.mxu0 }
 0x10e   : > { %900 = vst.msk [vmem:[#allocation4 + $0x28] sm:$0xff] %vm894_vm2, %v883_v26  ;;  %v790_v33 = vmul.f32 %v17914_v17, %v724_v28  ;;  %v16248_v28 = vld [vmem:[#allocation6 + $0x50] sm:$0xff] }
 0x10f   : > { %1567 = vmatpush.bf16.msra.mxu2 %v16248_v28 }
 0x110   : > { %11427 = vmatmul.msk.bf16.gmra.mxu0 %vm632_vm1, %v16234_v27  ;;  %v826_v36 = vadd.f32 %v17926_v20, %v790_v33  ;;  %v16242_v27 = vld [vmem:[#allocation6 + $0x20] sm:$0xff] }
 0x111   : > { %1536 = vmatpush.bf16.msra.mxu1 %v16242_v27 }
 0x112   : > { %v858_v39 = vmax.f32 %v826_v36, 0.0  ;;  %v16246_v36 = vld [vmem:[#allocation6 + $0x40] sm:$0xff] }
 0x115   : > { %v915_v29 = vld [vmem:[#allocation4 + $0x20] ss:$2 sm:$0xff]  ;;  %v931_v30 = vld [vmem:[#allocation4 + $0x21] ss:$2 sm:$0xff]  ;;  %v726_v31 = vpop.f32.mrf.mxu0 }
 0x116   : > { %v944_v32 = vmax.f32 %v915_v29, %v931_v30  ;;  %v791_v40 = vmul.f32 %v17914_v17, %v726_v31  ;;  %v16241_v29 = vld [vmem:[#allocation6 + $0x18] sm:$0xff]  ;;  %v16247_v30 = vld [vmem:[#allocation6 + $0x48] sm:$0xff] }
 0x117   : > { %1537 = vmatpush.bf16.msra.mxu1 %v16241_v29  ;;  %1568 = vmatpush.bf16.msra.mxu2 %v16247_v30 }
 0x118   : > { %974 = vst.msk [vmem:[#allocation2 + $0x31] sm:$0xff] %vm894_vm2, %v944_v32  ;;  %v827_v44 = vadd.f32 %v17926_v20, %v791_v40  ;;  %v16238_v40 = vld [vmem:[#allocation6] sm:$0xff] }
 0x11a   : > { %v859_v47 = vmax.f32 %v827_v44, 0.0 }
 0x11b   : > { %1569 = vmatpush.bf16.msra.mxu2 %v16246_v36 }
 0x11d   : > { %v729_v35 = vpop.f32.mrf.mxu0 }
 0x11e   : > { %v792_v37 = vmul.f32 %v17914_v17, %v729_v35 }
 0x11f   : > { %v18053_v61 = vld [vmem:[#allocation2 + $0x30] sm:$0xff] }
 0x120   : > { %v828_v38 = vadd.f32 %v17926_v20, %v792_v37  ;;  %11428 = vmatmul.msk.bf16.gmra.mxu0 %vm632_vm1, %v16235_v34  ;;  %v18062_v10 = vld [vmem:[#allocation2 + $0x31] sm:$0xff]  ;;  %v16239_v37 = vld [vmem:[#allocation6 + $0x8] sm:$0xff] }
 0x121   : > { %v18072_v19 = vpack.i.bf16 %v18062_v10, %v18067_v15  ;;  %v16240_v34 = vld [vmem:[#allocation6 + $0x10] sm:$0xff] }
 0x122   : > { %v860_v41 = vmax.f32 %v828_v38, 0.0  ;;  %1538 = vmatpush.bf16.msra.mxu1 %v16240_v34 }
 0x124   : > { %v884_v42 = vmax.f32 %v858_v39, %v860_v41 }
 0x125   : > { %v731_v43 = vpop.f32.mrf.mxu0 }
 0x126   : > { %901 = vst.msk [vmem:[#allocation4 + $0x30] sm:$0xff] %vm894_vm2, %v884_v42  ;;  %v793_v45 = vmul.f32 %v17914_v17, %v731_v43  ;;  %1539 = vmatpush.bf16.msra.mxu1 %v16239_v37 }
 0x128   : > { %v829_v46 = vadd.f32 %v17926_v20, %v793_v45 }
 0x12a   : > { %v861_v48 = vmax.f32 %v829_v46, 0.0  ;;  %1540 = vmatpush.bf16.msra.mxu1 %v16238_v40 }
 0x12c   : > { %v885_v49 = vmax.f32 %v859_v47, %v861_v48 }
 0x12d   : > { %v734_v50 = vpop.f32.mrf.mxu0 }
 0x12e   : > { %902 = vst.msk [vmem:[#allocation4 + $0x38] sm:$0xff] %vm894_vm2, %v885_v49  ;;  %v794_v56 = vmul.f32 %v17914_v17, %v734_v50 }
 0x130   : > { %v830_v59 = vadd.f32 %v17926_v20, %v794_v56 }
 0x132   : > { %v862_v3 = vmax.f32 %v830_v59, 0.0 }
 0x135   : > { %v917_v51 = vld [vmem:[#allocation4 + $0x30] ss:$2 sm:$0xff]  ;;  %v933_v52 = vld [vmem:[#allocation4 + $0x31] ss:$2 sm:$0xff]  ;;  %v736_v53 = vpop.f32.mrf.mxu0 }
 0x136   : > { %v945_v54 = vmax.f32 %v917_v51, %v933_v52  ;;  %v795_v4 = vmul.f32 %v17914_v17, %v736_v53 }
 0x138   : > { %975 = vst.msk [vmem:[#allocation2 + $0x41] sm:$0xff] %vm894_vm2, %v945_v54  ;;  %v831_v13 = vadd.f32 %v17926_v20, %v795_v4 }
 0x13a   : > { %v863_v23 = vmax.f32 %v831_v13, 0.0 }
 0x13d   : > { %v739_v57 = vpop.f32.mrf.mxu0 }
 0x13e   : > { %v796_v60 = vmul.f32 %v17914_v17, %v739_v57  ;;  %v996_v57 = vld [vmem:[#allocation2 + $0x2] sm:$0xff] }
 0x13f   : > { %v18055_v62 = vld [vmem:[#allocation2 + $0x40] sm:$0xff] }
 0x140   : > { %v832_v63 = vadd.f32 %v17926_v20, %v796_v60  ;;  %v17508_v0 = vpack.i.bf16 %v18055_v62, %v18053_v61  ;;  %v18111_v36 = vld [vmem:[#allocation2 + $0x41] sm:$0xff] }
 0x142   : > { %v864_v5 = vmax.f32 %v832_v63, 0.0  ;;  %17509 = vrot.lane.b32.xlu1 %v17508_v0, %s17728_s22 }
 0x144   : > { %v886_v6 = vmax.f32 %v862_v3, %v864_v5 }
 0x145   : > { %v741_v9 = vpop.f32.mrf.mxu0 }
 0x146   : > { %903 = vst.msk [vmem:[#allocation4 + $0x40] sm:$0xff] %vm894_vm2, %v886_v6  ;;  %v797_v14 = vmul.f32 %v17914_v17, %v741_v9 }
 0x148   : > { %v833_v16 = vadd.f32 %v17926_v20, %v797_v14 }
 0x14a   : > { %v865_v24 = vmax.f32 %v833_v16, 0.0  ;;  %17514 = vrot.lane.b32.xlu1 %v18072_v19, %s17728_s22 }
 0x14c   : > { %v887_v25 = vmax.f32 %v863_v23, %v865_v24 }
 0x14d   : > { %v744_v26 = vpop.f32.mrf.mxu0 }
 0x14e   : > { %904 = vst.msk [vmem:[#allocation4 + $0x48] sm:$0xff] %vm894_vm2, %v887_v25  ;;  %v798_v38 = vmul.f32 %v17914_v17, %v744_v26 }
 0x150   : > { %v834_v41 = vadd.f32 %v17926_v20, %v798_v38 }
 0x152   : > { %v866_v44 = vmax.f32 %v834_v41, 0.0 }
 0x155   : > { %v919_v31 = vld [vmem:[#allocation4 + $0x40] ss:$2 sm:$0xff]  ;;  %v935_v32 = vld [vmem:[#allocation4 + $0x41] ss:$2 sm:$0xff]  ;;  %v746_v33 = vpop.f32.mrf.mxu0 }
 0x156   : > { %v946_v35 = vmax.f32 %v919_v31, %v935_v32  ;;  %v799_v45 = vmul.f32 %v17914_v17, %v746_v33 }
 0x158   : > { %976 = vst.msk [vmem:[#allocation2 + $0x51] sm:$0xff] %vm894_vm2, %v946_v35  ;;  %v835_v49 = vadd.f32 %v17926_v20, %v799_v45 }
 0x15a   : > { %v867_v52 = vmax.f32 %v835_v49, 0.0 }
 0x15d   : > { %v749_v39 = vpop.f32.mrf.mxu0 }
 0x15e   : > { %v800_v42 = vmul.f32 %v17914_v17, %v749_v39 }
 0x15f   : > { %v18097_v24 = vld [vmem:[#allocation2 + $0x50] sm:$0xff] }
 0x160   : > { %v836_v43 = vadd.f32 %v17926_v20, %v800_v42 }
 0x162   : > { %v868_v46 = vmax.f32 %v836_v43, 0.0  ;;  %v18117_v43 = vld [vmem:[#allocation2 + $0x22] sm:$0xff] }
 0x164   : > { %v888_v47 = vmax.f32 %v866_v44, %v868_v46  ;;  %v17538_v44 = vpack.i.bf16 %v18117_v43, %v997_v2 }
 0x165   : > { %v751_v48 = vpop.f32.mrf.mxu0 }
 0x166   : > { %905 = vst.msk [vmem:[#allocation4 + $0x50] sm:$0xff] %vm894_vm2, %v888_v47  ;;  %v801_v50 = vmul.f32 %v17914_v17, %v751_v48 }
 0x168   : > { %v837_v51 = vadd.f32 %v17926_v20, %v801_v50 }
 0x16a   : > { %v869_v53 = vmax.f32 %v837_v51, 0.0 }
 0x16c   : > { %v889_v54 = vmax.f32 %v867_v52, %v869_v53 }
 0x16d   : > { %v754_v55 = vpop.f32.mrf.mxu0 }
 0x16e   : > { %906 = vst.msk [vmem:[#allocation4 + $0x58] sm:$0xff] %vm894_vm2, %v889_v54  ;;  %v802_v6 = vmul.f32 %v17914_v17, %v754_v55 }
 0x170   : > { %v838_v16 = vadd.f32 %v17926_v20, %v802_v6 }
 0x172   : > { %v870_v29 = vmax.f32 %v838_v16, 0.0 }
 0x174   : > { %v17500_v56 = vpop.permute.xlu0 %17499 }
 0x175   : > { %v921_v58 = vld [vmem:[#allocation4 + $0x50] ss:$2 sm:$0xff]  ;;  %v937_v59 = vld [vmem:[#allocation4 + $0x51] ss:$2 sm:$0xff]  ;;  %v17502_v60 = vunpack.i.h.bf16 %v17500_v56  ;;  %v17501_v63 = vunpack.i.l.bf16 %v17500_v56  ;;  %v756_v0 = vpop.f32.mrf.mxu0 }
 0x176   : > { %v947_v1 = vmax.f32 %v921_v58, %v937_v59  ;;  %v803_v30 = vmul.f32 %v17914_v17, %v756_v0  ;;  %v18136_v0 = vld [vmem:[#allocation2 + $0x42] sm:$0xff] }
 0x177   : > { %v1189_v3 = vsel %vm894_vm2, %v996_v57, %v17501_v63  ;;  %v1190_v4 = vsel %vm894_vm2, %v997_v2, %v17502_v60 }
 0x178   : > { %977 = vst.msk [vmem:[#allocation2 + $0x61] sm:$0xff] %vm894_vm2, %v947_v1  ;;  %v1214_v5 = vpack.c.bf16 %v1190_v4, %v1189_v3  ;;  %v839_v34 = vadd.f32 %v17926_v20, %v803_v30  ;;  %v18141_v3 = vld [vmem:[#allocation2 + $0x32] sm:$0xff] }
 0x17a   : > { %1570 = vmatmul.bf16.vlgmr.msra.gmra.mxu2 %v1214_v5  ;;  %v871_v39 = vmax.f32 %v839_v34, 0.0  ;;  %v17548_v5 = vpack.i.bf16 %v18136_v0, %v18141_v3 }
 0x17c   : > { %v17505_v9 = vpop.permute.xlu0 %17504 }
 0x17d   : > { %v17507_v12 = vunpack.i.h.bf16 %v17505_v9  ;;  %v17506_v13 = vunpack.i.l.bf16 %v17505_v9  ;;  %v759_v14 = vpop.f32.mrf.mxu0 }
 0x17e   : > { %v804_v21 = vmul.f32 %v17914_v17, %v759_v14 }
 0x17f   : > { %v1181_v22 = vsel %vm894_vm2, %v980_v11, %v17506_v13  ;;  %v1182_v23 = vsel %vm894_vm2, %v18015_v7, %v17507_v12  ;;  %v18099_v25 = vld [vmem:[#allocation2 + $0x60] sm:$0xff]  ;;  %v18106_v7 = vld [vmem:[#allocation2 + $0x51] sm:$0xff] }
 0x180   : > { %v840_v26 = vadd.f32 %v17926_v20, %v804_v21  ;;  %v1213_v27 = vpack.c.bf16 %v1182_v23, %v1181_v22  ;;  %v17518_v28 = vpack.i.bf16 %v18099_v25, %v18097_v24  ;;  %v17523_v38 = vpack.i.bf16 %v18106_v7, %v18111_v36  ;;  %v18127_v53 = vld [vmem:[#allocation2 + $0x61] sm:$0xff]  ;;  %v16261_v12 = vld [vmem:[#allocation6 + $0xb8] sm:$0xff] }
 0x181   : > { %1591 = vmatpush.bf16.msra.mxu3 %v16261_v12 }
 0x182   : > { %v872_v31 = vmax.f32 %v840_v26, 0.0  ;;  %1541 = vmatmul.bf16.vlgmr.msra.gmra.mxu1 %v1213_v27  ;;  %17519 = vrot.lane.b32.xlu2 %v17518_v28, %s17728_s22  ;;  %v16259_v28 = vld [vmem:[#allocation6 + $0xa8] sm:$0xff] }
 0x184   : > { %v890_v32 = vmax.f32 %v870_v29, %v872_v31 }
 0x185   : > { %v761_v33 = vpop.f32.mrf.mxu0 }
 0x186   : > { %907 = vst.msk [vmem:[#allocation4 + $0x60] sm:$0xff] %vm894_vm2, %v890_v32  ;;  %v805_v35 = vmul.f32 %v17914_v17, %v761_v33  ;;  %v16258_v32 = vld [vmem:[#allocation6 + $0xa0] sm:$0xff] }
 0x188   : > { %v841_v37 = vadd.f32 %v17926_v20, %v805_v35 }
 0x18a   : > { %v873_v40 = vmax.f32 %v841_v37, 0.0  ;;  %17524 = vrot.lane.b32.xlu2 %v17523_v38, %s17728_s22 }
 0x18c   : > { %v891_v41 = vmax.f32 %v871_v39, %v873_v40 }
 0x18d   : > { %v764_v42 = vpop.f32.mrf.mxu0 }
 0x18e   : > { %908 = vst.msk [vmem:[#allocation4 + $0x68] sm:$0xff] %vm894_vm2, %v891_v41  ;;  %v806_v49 = vmul.f32 %v17914_v17, %v764_v42 }
 0x190   : > { %v842_v51 = vadd.f32 %v17926_v20, %v806_v49  ;;  %v18176_v49 = vld [vmem:[#allocation2 + $0x52] sm:$0xff] }
 0x192   : > { %17539 = vrot.lane.b32.xlu2 %v17538_v44, %s17728_s22  ;;  %v874_v57 = vmax.f32 %v842_v51, 0.0  ;;  %v16257_v44 = vld [vmem:[#allocation6 + $0x98] sm:$0xff] }
 0x195   : > { %v923_v45 = vld [vmem:[#allocation4 + $0x60] ss:$2 sm:$0xff]  ;;  %v939_v46 = vld [vmem:[#allocation4 + $0x61] ss:$2 sm:$0xff]  ;;  %v766_v47 = vpop.f32.mrf.mxu0 }
 0x196   : > { %v948_v48 = vmax.f32 %v923_v45, %v939_v46  ;;  %v807_v58 = vmul.f32 %v17914_v17, %v766_v47  ;;  %v16256_v45 = vld [vmem:[#allocation6 + $0x90] sm:$0xff]  ;;  %v16255_v46 = vld [vmem:[#allocation6 + $0x88] sm:$0xff]  ;;  %v16254_v47 = vld [vmem:[#allocation6 + $0x80] sm:$0xff] }
 0x198   : > { %978 = vst.msk [vmem:[#allocation2 + $0x71] sm:$0xff] %vm894_vm2, %v948_v48  ;;  %v843_v1 = vadd.f32 %v17926_v20, %v807_v58  ;;  %v18174_v48 = vld [vmem:[#allocation2 + $0x62] sm:$0xff] }
 0x19a   : > { %17554 = vrot.lane.b32.xlu2 %v17523_v38, %s17728_s22  ;;  %v875_v6 = vmax.f32 %v843_v1, 0.0 }
 0x19d   : > { %v769_v50 = vpop.f32.mrf.mxu0 }
 0x19e   : > { %v808_v52 = vmul.f32 %v17914_v17, %v769_v50  ;;  %v17558_v50 = vpack.i.bf16 %v18174_v48, %v18176_v49 }
 0x19f   : > { %v18129_v54 = vld [vmem:[#allocation2 + $0x71] sm:$0xff] }
 0x1a0   : > { %v844_v55 = vadd.f32 %v17926_v20, %v808_v52  ;;  %v17533_v56 = vpack.i.bf16 %v18129_v54, %v18127_v53  ;;  %v18154_v33 = vld [vmem:[#allocation2 + $0x72] sm:$0xff] }
 0x1a1   : > { %v18162_v38 = vld [vmem:[#allocation2 + $0x70] sm:$0xff] }
 0x1a2   : > { %v876_v59 = vmax.f32 %v844_v55, 0.0  ;;  %17534 = vrot.lane.b32.xlu1 %v17533_v56, %s17728_s22  ;;  %v1044_v52 = vld [vmem:[#allocation2 + $0x91] sm:$0xff] }
 0x1a4   : > { %v892_v60 = vmax.f32 %v874_v57, %v876_v59 }
 0x1a5   : > { %v771_v63 = vpop.f32.mrf.mxu0 }
 0x1a6   : > { %909 = vst.msk [vmem:[#allocation4 + $0x70] sm:$0xff] %vm894_vm2, %v892_v60  ;;  %v809_v2 = vmul.f32 %v17914_v17, %v771_v63  ;;  %v16260_v17 = vld [vmem:[#allocation6 + $0xb0] sm:$0xff] }
 0x1a7   : > { %1592 = vmatpush.bf16.msra.mxu3 %v16260_v17 }
 0x1a8   : > { %v845_v4 = vadd.f32 %v17926_v20, %v809_v2 }
 0x1aa   : > { %v877_v9 = vmax.f32 %v845_v4, 0.0  ;;  %17549 = vrot.lane.b32.xlu1 %v17548_v5, %s17728_s22 }
 0x1ab   : > { %1593 = vmatpush.bf16.msra.mxu3 %v16259_v28 }
 0x1ac   : > { %v893_v11 = vmax.f32 %v875_v6, %v877_v9 }
 0x1ae   : > { %910 = vst.msk [vmem:[#allocation4 + $0x78] sm:$0xff] %vm894_vm2, %v893_v11 }
 0x1af   : > { %1594 = vmatpush.bf16.msra.mxu3 %v16258_v32  ;;  %v16273_v32 = vld [vmem:[#allocation6 + $0x118] sm:$0xff] }
 0x1b0   : > { %1653 = vmatpush.bf16.msrb.mxu2 %v16273_v32 }
 0x1b2   : > { %17564 = vrot.lane.b32.xlu1 %v17533_v56, %s17728_s22 }
 0x1b3   : > { %1595 = vmatpush.bf16.msra.mxu3 %v16257_v44 }
 0x1b4   : > { %v17510_v13 = vpop.permute.xlu1 %17509 }
 0x1b5   : > { %v925_v14 = vld [vmem:[#allocation4 + $0x70] ss:$2 sm:$0xff]  ;;  %v941_v16 = vld [vmem:[#allocation4 + $0x71] ss:$2 sm:$0xff]  ;;  %v17512_v21 = vunpack.i.h.bf16 %v17510_v13  ;;  %v17511_v20 = vunpack.i.l.bf16 %v17510_v13 }
 0x1b6   : > { %v949_v22 = vmax.f32 %v925_v14, %v941_v16  ;;  %v16269_v16 = vld [vmem:[#allocation6 + $0xf8] sm:$0xff] }
 0x1b7   : > { %v1191_v23 = vsel %vm894_vm2, %v18117_v43, %v17511_v20  ;;  %v1192_v26 = vsel %vm894_vm2, %v18141_v3, %v17512_v21  ;;  %1596 = vmatpush.bf16.msra.mxu3 %v16256_v45  ;;  %1620 = vmatpush.bf16.msrb.mxu1 %v16269_v16  ;;  %v16268_v21 = vld [vmem:[#allocation6 + $0xf0] sm:$0xff]  ;;  %v16267_v20 = vld [vmem:[#allocation6 + $0xe8] sm:$0xff] }
 0x1b8   : > { %979 = vst.msk [vmem:[#allocation2 + $0x81] sm:$0xff] %vm894_vm2, %v949_v22  ;;  %v1219_v27 = vpack.c.bf16 %v1192_v26, %v1191_v23  ;;  %v16266_v22 = vld [vmem:[#allocation6 + $0xe0] sm:$0xff]  ;;  %v16265_v23 = vld [vmem:[#allocation6 + $0xd8] sm:$0xff] }
 0x1ba   : > { %1575 = vmatmul.bf16.gmra.mxu2 %v1219_v27 }
 0x1bb   : > { %1597 = vmatpush.bf16.msra.mxu3 %v16255_v46  ;;  %1621 = vmatpush.bf16.msrb.mxu1 %v16268_v21 }
 0x1bc   : > { %v17515_v29 = vpop.permute.xlu1 %17514 }
 0x1bd   : > { %v17517_v30 = vunpack.i.h.bf16 %v17515_v29  ;;  %v17516_v31 = vunpack.i.l.bf16 %v17515_v29  ;;  %v16264_v29 = vld [vmem:[#allocation6 + $0xd0] sm:$0xff] }
 0x1bf   : > { %v1183_v34 = vsel %vm894_vm2, %v18017_v8, %v17516_v31  ;;  %v1184_v35 = vsel %vm894_vm2, %v18053_v61, %v17517_v30  ;;  %v18160_v37 = vld [vmem:[#allocation2 + $0x82] sm:$0xff]  ;;  %1598 = vmatpush.bf16.msra.mxu3 %v16254_v47  ;;  %1622 = vmatpush.bf16.msrb.mxu1 %v16267_v20 }
 0x1c0   : > { %v18164_v39 = vld [vmem:[#allocation2 + $0x80] sm:$0xff]  ;;  %v1218_v40 = vpack.c.bf16 %v1184_v35, %v1183_v34  ;;  %v17568_v41 = vpack.i.bf16 %v18160_v37, %v18154_v33  ;;  %v16263_v31 = vld [vmem:[#allocation6 + $0xc8] sm:$0xff] }
 0x1c1   : > { %v17528_v42 = vpack.i.bf16 %v18164_v39, %v18162_v38  ;;  %v18181_v51 = vld [vmem:[#allocation2 + $0x81] sm:$0xff] }
 0x1c2   : > { %1546 = vmatmul.bf16.gmra.mxu1 %v1218_v40  ;;  %17569 = vrot.lane.b32.xlu2 %v17568_v41, %s17728_s22  ;;  %v17573_v55 = vpack.i.bf16 %v1044_v52, %v18181_v51  ;;  %v16262_v41 = vld [vmem:[#allocation6 + $0xc0] sm:$0xff]  ;;  %v16271_v47 = vld [vmem:[#allocation6 + $0x108] sm:$0xff] }
 0x1c3   : > { %17529 = vrot.lane.b32.xlu0 %v17528_v42, %s17728_s22  ;;  %1623 = vmatpush.bf16.msrb.mxu1 %v16266_v22  ;;  %v16272_v42 = vld [vmem:[#allocation6 + $0x110] sm:$0xff] }
 0x1c4   : > { %1654 = vmatpush.bf16.msrb.mxu2 %v16272_v42  ;;  %v16288_v42 = vld [vmem:[#allocation9 + $0x70] sm:$0xff] }
 0x1c7   : > { %1624 = vmatpush.bf16.msrb.mxu1 %v16265_v23  ;;  %v1222_v23 = vpack.c.bf16 %v18176_v49, %v18136_v0 }
 0x1c8   : > { %1655 = vmatpush.bf16.msrb.mxu2 %v16271_v47  ;;  %v16280_v47 = vld [vmem:[#allocation9 + $0x30] sm:$0xff] }
 0x1cb   : > { %17544 = vrot.lane.b32.xlu0 %v18072_v19, %s17728_s22  ;;  %1625 = vmatpush.bf16.msrb.mxu1 %v16264_v29 }
 0x1cf   : > { %1626 = vmatpush.bf16.msrb.mxu1 %v16263_v31 }
 0x1d3   : > { %17559 = vrot.lane.b32.xlu0 %v17558_v50, %s17728_s22  ;;  %1627 = vmatpush.bf16.msrb.mxu1 %v16262_v41  ;;  %v16270_v50 = vld [vmem:[#allocation6 + $0x100] sm:$0xff] }
 0x1d4   : > { %1656 = vmatpush.bf16.msrb.mxu2 %v16270_v50  ;;  %v16296_v50 = vld [vmem:[#allocation9 + $0xb0] sm:$0xff] }
 0x1db   : > { %17574 = vrot.lane.b32.xlu0 %v17573_v55, %s17728_s22 }
 0x1dc   : > { %v17520_v19 = vpop.permute.xlu2 %17519 }
 0x1dd   : > { %v17522_v56 = vunpack.i.h.bf16 %v17520_v19  ;;  %v17521_v57 = vunpack.i.l.bf16 %v17520_v19 }
 0x1df   : > { %v1193_v58 = vsel %vm894_vm2, %v18136_v0, %v17521_v57  ;;  %v1194_v59 = vsel %vm894_vm2, %v18176_v49, %v17522_v56  ;;  %v1036_v0 = vld [vmem:[#allocation2 + $0x90] sm:$0xff] }
 0x1e0   : > { %v1224_v60 = vpack.c.bf16 %v1194_v59, %v1193_v58 }
 0x1e2   : > { %1580 = vmatmul.bf16.gmra.mxu2 %v1224_v60 }
 0x1e4   : > { %v17525_v63 = vpop.permute.xlu2 %17524 }
 0x1e5   : > { %v17527_v1 = vunpack.i.h.bf16 %v17525_v63  ;;  %v17526_v2 = vunpack.i.l.bf16 %v17525_v63 }
 0x1e7   : > { %v1185_v4 = vsel %vm894_vm2, %v18055_v62, %v17526_v2  ;;  %v1186_v5 = vsel %vm894_vm2, %v18097_v24, %v17527_v1 }
 0x1e8   : > { %v1223_v6 = vpack.c.bf16 %v1186_v5, %v1185_v4 }
 0x1ea   : > { %1551 = vmatmul.bf16.gmra.mxu1 %v1223_v6 }
 0x1ec   : > { %v17540_v9 = vpop.permute.xlu2 %17539 }
 0x1ed   : > { %v17542_v11 = vunpack.i.h.bf16 %v17540_v9  ;;  %v17541_v12 = vunpack.i.l.bf16 %v17540_v9 }
 0x1ef   : > { %v1197_v13 = vsel %vm894_vm2, %v18025_v18, %v17541_v12  ;;  %v1198_v17 = vsel %vm894_vm2, %v18067_v15, %v17542_v11 }
 0x1f0   : > { %v1215_v14 = vpack.c.bf16 %v1198_v17, %v1197_v13  ;;  %v1217_v13 = vpack.c.bf16 %v18141_v3, %v18117_v43 }
 0x1f2   : > { %1599 = vmatmul.bf16.vlgmr.msra.gmra.mxu3 %v1215_v14 }
 0x1f4   : > { %v17555_v6 = vpop.permute.xlu2 %17554 }
 0x1f5   : > { %v17556_v17 = vunpack.i.l.bf16 %v17555_v6 }
 0x214   : > { %v17535_v26 = vpop.permute.xlu1 %17534 }
 0x215   : > { %v17537_v27 = vunpack.i.h.bf16 %v17535_v26  ;;  %v17536_v28 = vunpack.i.l.bf16 %v17535_v26 }
 0x217   : > { %v1187_v18 = vsel %vm894_vm2, %v18099_v25, %v17536_v28  ;;  %v1188_v15 = vsel %vm894_vm2, %v18162_v38, %v17537_v27 }
 0x218   : > { %v1228_v30 = vpack.c.bf16 %v1188_v15, %v1187_v18 }
 0x21a   : > { %1556 = vmatmul.bf16.gmra.mxu1 %v1228_v30  ;;  %v1052_v30 = vld [vmem:[#allocation2 + $0x92] sm:$0xff] }
 0x21b   : > { %v1232_v31 = vpack.c.bf16 %v1052_v30, %v18160_v37  ;;  %v16281_v37 = vld [vmem:[#allocation9 + $0x38] sm:$0xff] }
 0x21c   : > { %v17550_v34 = vpop.permute.xlu1 %17549  ;;  %v17570_v16 = vpop.permute.xlu2 %17569  ;;  %2424 = vmatpush.bf16.msrb.mxu3 %v16281_v37 }
 0x21d   : > { %v17552_v35 = vunpack.i.h.bf16 %v17550_v34  ;;  %v17551_v40 = vunpack.i.l.bf16 %v17550_v34  ;;  %v17572_v21 = vunpack.i.h.bf16 %v17570_v16  ;;  %v17571_v20 = vunpack.i.l.bf16 %v17570_v16  ;;  %v16333_v16 = vld [vmem:[#allocation9 + $0x1d8] sm:$0xff] }
 0x21f   : > { %v1199_v44 = vsel %vm894_vm2, %v18062_v10, %v17551_v40  ;;  %v1200_v45 = vsel %vm894_vm2, %v18111_v36, %v17552_v35  ;;  %v1204_v43 = vsel %vm894_vm2, %v18181_v51, %v17572_v21  ;;  %v1227_v51 = vpack.c.bf16 %v18154_v33, %v18174_v48  ;;  %v16289_v35 = vld [vmem:[#allocation9 + $0x78] sm:$0xff]  ;;  %v16290_v21 = vld [vmem:[#allocation9 + $0x80] sm:$0xff] }
 0x220   : > { %v1220_v46 = vpack.c.bf16 %v1200_v45, %v1199_v44  ;;  %2453 = vmatpush.bf16.msra.mxu1 %v16289_v35  ;;  %v16297_v44 = vld [vmem:[#allocation9 + $0xb8] sm:$0xff]  ;;  %v16287_v45 = vld [vmem:[#allocation9 + $0x68] sm:$0xff]  ;;  %2425 = vmatpush.bf16.msrb.mxu3 %v16280_v47 }
 0x221   : > { %2482 = vmatpush.bf16.msra.mxu2 %v16297_v44  ;;  %v16313_v47 = vld [vmem:[#allocation9 + $0x138] sm:$0xff] }
 0x222   : > { %1604 = vmatmul.bf16.gmra.mxu3 %v1220_v46 }
 0x224   : > { %v17565_v3 = vpop.permute.xlu1 %17564  ;;  %2454 = vmatpush.bf16.msra.mxu1 %v16288_v42 }
 0x225   : > { %v17566_v26 = vunpack.i.l.bf16 %v17565_v3  ;;  %2483 = vmatpush.bf16.msra.mxu2 %v16296_v50 }
 0x228   : > { %2455 = vmatpush.bf16.msra.mxu1 %v16287_v45 }
 0x235   : > { %v17530_v52 = vpop.permute.xlu0 %17529 }
 0x236   : > { %v17532_v55 = vunpack.i.h.bf16 %v17530_v52  ;;  %v17531_v19 = vunpack.i.l.bf16 %v17530_v52  ;;  %v16286_v52 = vld [vmem:[#allocation9 + $0x60] sm:$0xff] }
 0x237   : > { %2456 = vmatpush.bf16.msra.mxu1 %v16286_v52 }
 0x238   : > { %v1195_v56 = vsel %vm894_vm2, %v18174_v48, %v17531_v19  ;;  %v1196_v10 = vsel %vm894_vm2, %v18154_v33, %v17532_v55  ;;  %v18247_v48 = vpop.f32.mrf.mxu2  ;;  %v16279_v19 = vld [vmem:[#allocation9 + $0x28] sm:$0xff] }
 0x239   : > { %v1229_v57 = vpack.c.bf16 %v1196_v10, %v1195_v56  ;;  %v16295_v56 = vld [vmem:[#allocation9 + $0xa8] sm:$0xff]  ;;  %v16285_v10 = vld [vmem:[#allocation9 + $0x58] sm:$0xff]  ;;  %2426 = vmatpush.bf16.msrb.mxu3 %v16279_v19 }
 0x23a   : > { %2484 = vmatpush.bf16.msra.mxu2 %v16295_v56 }
 0x23b   : > { %1585 = vmatmul.bf16.gmra.mxu2 %v1229_v57  ;;  %v16337_v57 = vld [vmem:[#allocation9 + $0x1f8] sm:$0xff]  ;;  %2457 = vmatpush.bf16.msra.mxu1 %v16285_v10  ;;  %v1755_v10 = vld [vmem:[#allocation3 + $0x2] sm:$0xff] }
 0x23c   : > { %2627 = vmatpush.bf16.msrb.mxu0 %v16337_v57  ;;  %v16312_v57 = vld [vmem:[#allocation9 + $0x130] sm:$0xff] }
 0x23d   : > { %v17545_v36 = vpop.permute.xlu0 %17544 }
 0x23e   : > { %v17547_v58 = vunpack.i.h.bf16 %v17545_v36  ;;  %v17546_v59 = vunpack.i.l.bf16 %v17545_v36 }
 0x240   : > { %v1205_v60 = vsel %vm894_vm2, %v18017_v8, %v17546_v59  ;;  %v1206_v63 = vsel %vm894_vm2, %v18053_v61, %v17547_v58  ;;  %v17557_v8 = vunpack.i.h.bf16 %v17555_v6  ;;  %v1207_v61 = vsel %vm894_vm2, %v18055_v62, %v17556_v17  ;;  %v18251_v34 = vpop.f32.mrf.mxu2  ;;  %v16278_v58 = vld [vmem:[#allocation9 + $0x20] sm:$0xff]  ;;  %v16335_v6 = vld [vmem:[#allocation9 + $0x1e8] sm:$0xff] }
 0x241   : > { %v1216_v1 = vpack.c.bf16 %v1206_v63, %v1205_v60  ;;  %v17567_v62 = vunpack.i.h.bf16 %v17565_v3  ;;  %v16294_v59 = vld [vmem:[#allocation9 + $0xa0] sm:$0xff]  ;;  %v16284_v60 = vld [vmem:[#allocation9 + $0x50] sm:$0xff]  ;;  %2427 = vmatpush.bf16.msrb.mxu3 %v16278_v58 }
 0x242   : > { %v1208_v14 = vsel %vm894_vm2, %v18097_v24, %v17557_v8  ;;  %v1209_v24 = vsel %vm894_vm2, %v18099_v25, %v17566_v26  ;;  %v16336_v63 = vld [vmem:[#allocation9 + $0x1f0] sm:$0xff]  ;;  %2485 = vmatpush.bf16.msra.mxu2 %v16294_v59  ;;  %2458 = vmatpush.bf16.msra.mxu1 %v16284_v60 }
 0x243   : > { %1628 = vmatmul.bf16.vlgmr.msrb.gmra.mxu1 %v1216_v1  ;;  %v1210_v27 = vsel %vm894_vm2, %v18162_v38, %v17567_v62  ;;  %v18241_v38 = vpop.f32.mrf.mxu1  ;;  %2628 = vmatpush.bf16.msrb.mxu0 %v16336_v63 }
 0x245   : > { %v17560_v2 = vpop.permute.xlu0 %17559 }
 0x246   : > { %v17562_v4 = vunpack.i.h.bf16 %v17560_v2  ;;  %v17561_v5 = vunpack.i.l.bf16 %v17560_v2  ;;  %v16277_v2 = vld [vmem:[#allocation9 + $0x18] sm:$0xff] }
 0x247   : > { %2428 = vmatpush.bf16.msrb.mxu3 %v16277_v2  ;;  %2629 = vmatpush.bf16.msrb.mxu0 %v16335_v6  ;;  %v16305_v6 = vld [vmem:[#allocation9 + $0xf8] sm:$0xff] }
 0x248   : > { %v1201_v9 = vsel %vm894_vm2, %v18106_v7, %v17561_v5  ;;  %v1202_v11 = vsel %vm894_vm2, %v18127_v53, %v17562_v4  ;;  %v1221_v7 = vpack.c.bf16 %v1208_v14, %v1207_v61  ;;  %v1203_v53 = vsel %vm894_vm2, %v18129_v54, %v17571_v20  ;;  %v18255_v40 = vpop.f32.mrf.mxu2  ;;  %v16293_v4 = vld [vmem:[#allocation9 + $0x98] sm:$0xff]  ;;  %v16283_v5 = vld [vmem:[#allocation9 + $0x48] sm:$0xff]  ;;  %v16332_v20 = vld [vmem:[#allocation9 + $0x1d0] sm:$0xff] }
 0x249   : > { %v1225_v12 = vpack.c.bf16 %v1202_v11, %v1201_v9  ;;  %v1230_v22 = vpack.c.bf16 %v1204_v43, %v1203_v53  ;;  %v1226_v54 = vpack.c.bf16 %v1210_v27, %v1209_v24  ;;  %2486 = vmatpush.bf16.msra.mxu2 %v16293_v4  ;;  %2459 = vmatpush.bf16.msra.mxu1 %v16283_v5  ;;  %v16276_v9 = vld [vmem:[#allocation9 + $0x10] sm:$0xff]  ;;  %v16275_v61 = vld [vmem:[#allocation9 + $0x8] sm:$0xff] }
 0x24a   : > { %v16292_v11 = vld [vmem:[#allocation9 + $0x90] sm:$0xff]  ;;  %v16291_v14 = vld [vmem:[#allocation9 + $0x88] sm:$0xff]  ;;  %v1572_v27 = vadd.f32 %v18247_v48, %v18241_v38 }
 0x24b   : > { %1609 = vmatmul.bf16.gmra.mxu3 %v1225_v12  ;;  %11573 = vmatmul.msk.bf16.vlgmr.msrb.gmra.mxu2 %vm894_vm2, %v1217_v13  ;;  %v18245_v33 = vpop.f32.mrf.mxu1  ;;  %v16282_v12 = vld [vmem:[#allocation9 + $0x40] sm:$0xff] }
 0x24c   : > { %v16334_v13 = vld [vmem:[#allocation9 + $0x1e0] sm:$0xff]  ;;  %2429 = vmatpush.bf16.msrb.mxu3 %v16276_v9  ;;  %v16321_v9 = vld [vmem:[#allocation9 + $0x178] sm:$0xff] }
 0x24d   : > { %v17575_v28 = vpop.permute.xlu0 %17574  ;;  %2487 = vmatpush.bf16.msra.mxu2 %v16292_v11  ;;  %2460 = vmatpush.bf16.msra.mxu1 %v16282_v12  ;;  %v1747_v48 = vld [vmem:[#allocation3 + $0x1] sm:$0xff] }
 0x24e   : > { %v17577_v29 = vunpack.i.h.bf16 %v17575_v28  ;;  %v17576_v18 = vunpack.i.l.bf16 %v17575_v28  ;;  %2630 = vmatpush.bf16.msrb.mxu0 %v16334_v13  ;;  %v16311_v11 = vld [vmem:[#allocation9 + $0x128] sm:$0xff] }
 0x250   : > { %v1211_v49 = vsel %vm894_vm2, %v18164_v39, %v17576_v18  ;;  %v1212_v15 = vsel %vm894_vm2, %v1036_v0, %v17577_v29  ;;  %v18259_v46 = vpop.f32.mrf.mxu2  ;;  %2430 = vmatpush.bf16.msrb.mxu3 %v16275_v61  ;;  %v18285_v0 = vld [vmem:[%s25370_s6] ss:$0 sm:$0xff] }
 0x251   : > { %v1231_v25 = vpack.c.bf16 %v1212_v15, %v1211_v49  ;;  %2488 = vmatpush.bf16.msra.mxu2 %v16291_v14  ;;  %2540 = vmatpush.bf16.msrb.mxu1 %v16313_v47 }
 0x252   : > { %2631 = vmatpush.bf16.msrb.mxu0 %v16333_v16 }
 0x253   : > { %1633 = vmatmul.bf16.gmra.mxu1 %v1221_v7  ;;  %v18249_v32 = vpop.f32.mrf.mxu1  ;;  %v16274_v7 = vld [vmem:[#allocation9] sm:$0xff] }
 0x254   : > { %2431 = vmatpush.bf16.msrb.mxu3 %v16274_v7  ;;  %v1577_v50 = vadd.f32 %v18255_v40, %v18249_v32  ;;  %v18306_v40 = vld [vmem:[#allocation3] sm:$0xff] }
 0x255   : > { %2489 = vmatpush.bf16.msra.mxu2 %v16290_v21  ;;  %2541 = vmatpush.bf16.msrb.mxu1 %v16312_v57  ;;  %v16304_v21 = vld [vmem:[#allocation9 + $0xf0] sm:$0xff] }
 0x256   : > { %2632 = vmatpush.bf16.msrb.mxu0 %v16332_v20  ;;  %v16320_v20 = vld [vmem:[#allocation9 + $0x170] sm:$0xff] }
 0x257   : > { %v16316_v57 = vld [vmem:[#allocation9 + $0x150] sm:$0xff] }
 0x258   : > { %2511 = vmatpush.bf16.msra.mxu3 %v16305_v6 }
 0x259   : > { %2569 = vmatpush.bf16.msrb.mxu2 %v16321_v9  ;;  %2542 = vmatpush.bf16.msrb.mxu1 %v16311_v11  ;;  %v16315_v9 = vld [vmem:[#allocation9 + $0x148] sm:$0xff] }
 0x25b   : > { %1614 = vmatmul.bf16.gmra.mxu3 %v1230_v22  ;;  %11574 = vmatmul.msk.bf16.gmra.mxu2 %vm894_vm2, %v1222_v23  ;;  %v18253_v39 = vpop.f32.mrf.mxu1  ;;  %v16331_v22 = vld [vmem:[#allocation9 + $0x1c8] sm:$0xff]  ;;  %v16330_v23 = vld [vmem:[#allocation9 + $0x1c0] sm:$0xff] }
 0x25c   : > { %2633 = vmatpush.bf16.msrb.mxu0 %v16331_v22  ;;  %v1579_v12 = vadd.f32 %v18259_v46, %v18253_v39  ;;  %2512 = vmatpush.bf16.msra.mxu3 %v16304_v21 }
 0x25d   : > { %2570 = vmatpush.bf16.msrb.mxu2 %v16320_v20 }
 0x260   : > { %2634 = vmatpush.bf16.msrb.mxu0 %v16330_v23 }
 0x263   : > { %1638 = vmatmul.bf16.gmra.mxu1 %v1226_v54 }
 0x265   : > { %v18263_v36 = vpop.f32.mrf.mxu2 }
 0x267   : > { %v18257_v41 = vpop.f32.mrf.mxu1 }
 0x26b   : > { %11575 = vmatmul.msk.bf16.gmra.mxu2 %vm894_vm2, %v1227_v51  ;;  %v18280_v51 = vld [vmem:[%s25369_s5] ss:$0 sm:$0xff] }
 0x26d   : > { %v18267_v8 = vpop.f32.mrf.mxu2 }
 0x26f   : > { %v18261_v55 = vpop.f32.mrf.mxu1 }
 0x273   : > { %1643 = vmatmul.bf16.gmra.mxu1 %v1231_v25  ;;  %v1574_v25 = vadd.f32 %v18251_v34, %v18245_v33 }
 0x275   : > { %v1600_v53 = vpop.f32.mrf.mxu3 }
 0x276   : > { %v1601_v54 = vadd.f32 %v1600_v53, %v1572_v27  ;;  %v16310_v53 = vld [vmem:[#allocation9 + $0x120] sm:$0xff]  ;;  %v16309_v27 = vld [vmem:[#allocation9 + $0x118] sm:$0xff] }
 0x277   : > { %2543 = vmatpush.bf16.msrb.mxu1 %v16310_v53 }
 0x27b   : > { %11576 = vmatmul.msk.bf16.gmra.mxu2 %vm894_vm2, %v1232_v31  ;;  %2544 = vmatpush.bf16.msrb.mxu1 %v16309_v27 }
 0x27d   : > { %v1602_v26 = vpop.f32.mrf.mxu3 }
 0x27e   : > { %v1603_v38 = vadd.f32 %v1602_v26, %v1574_v25  ;;  %v16303_v26 = vld [vmem:[#allocation9 + $0xe8] sm:$0xff]  ;;  %v16318_v25 = vld [vmem:[#allocation9 + $0x160] sm:$0xff] }
 0x27f   : > { %2513 = vmatpush.bf16.msra.mxu3 %v16303_v26 }
 0x297   : > { %v18265_v1 = vpop.f32.mrf.mxu1 }
 0x29f   : > { %v18269_v17 = vpop.f32.mrf.mxu1 }
 0x2a5   : > { %v1605_v49 = vpop.f32.mrf.mxu3 }
 0x2a6   : > { %v1606_v19 = vadd.f32 %v1605_v49, %v1577_v50 }
 0x2ad   : > { %v1607_v34 = vpop.f32.mrf.mxu3 }
 0x2ae   : > { %v1608_v14 = vadd.f32 %v1607_v34, %v1579_v12  ;;  %v16317_v34 = vld [vmem:[#allocation9 + $0x158] sm:$0xff] }
 0x2be   : > { %v18271_v43 = vpop.f32.mrf.mxu2 }
 0x2c0   : > { %v1629_v3 = vpop.f32.mrf.mxu1 }
 0x2c1   : > { %v1630_v28 = vadd.f32 %v1629_v3, %v1601_v54  ;;  %v1582_v54 = vadd.f32 %v18263_v36, %v18257_v41 }
 0x2c6   : > { %v18273_v62 = vpop.f32.mrf.mxu2 }
 0x2c8   : > { %v1631_v24 = vpop.f32.mrf.mxu1 }
 0x2c9   : > { %v1632_v35 = vadd.f32 %v1631_v24, %v1603_v38  ;;  %v16319_v24 = vld [vmem:[#allocation9 + $0x168] sm:$0xff] }
 0x2ca   : > { %2571 = vmatpush.bf16.msrb.mxu2 %v16319_v24 }
 0x2ce   : > { %v1658_v29 = vpop.f32.mrf.mxu2  ;;  %v1610_v61 = vpop.f32.mrf.mxu3  ;;  %2572 = vmatpush.bf16.msrb.mxu2 %v16318_v25 }
 0x2cf   : > { %v1659_v18 = vadd.f32 %v1658_v29, %v1630_v28  ;;  %v1611_v29 = vadd.f32 %v1610_v61, %v1582_v54  ;;  %v1587_v61 = vadd.f32 %v18271_v43, %v18265_v1 }
 0x2d0   : > { %v1634_v15 = vpop.f32.mrf.mxu1 }
 0x2d1   : > { %v1682_v30 = vmul.f32 %v18280_v51, %v1659_v18  ;;  %v1635_v58 = vadd.f32 %v1634_v15, %v1606_v19  ;;  %v16302_v15 = vld [vmem:[#allocation9 + $0xe0] sm:$0xff]  ;;  %v1584_v19 = vadd.f32 %v18267_v8, %v18261_v55  ;;  %v16299_v8 = vld [vmem:[#allocation9 + $0xc8] sm:$0xff] }
 0x2d2   : > { %2514 = vmatpush.bf16.msra.mxu3 %v16302_v15  ;;  %2573 = vmatpush.bf16.msrb.mxu2 %v16317_v34 }
 0x2d3   : > { %v1694_v31 = vadd.f32 %v18285_v0, %v1682_v30  ;;  %v16308_v30 = vld [vmem:[#allocation9 + $0x110] sm:$0xff] }
 0x2d4   : > { %2545 = vmatpush.bf16.msrb.mxu1 %v16308_v30 }
 0x2d5   : > { %v18291_v42 = vmax.f32 %v1694_v31, 0.0 }
 0x2d6   : > { %v1660_v37 = vpop.f32.mrf.mxu2  ;;  %v1612_v49 = vpop.f32.mrf.mxu3  ;;  %2574 = vmatpush.bf16.msrb.mxu2 %v16316_v57 }
 0x2d7   : > { %1731 = vst [vmem:[#allocation3 + $0x11] sm:$0xff] %v18291_v42  ;;  %v1661_v44 = vadd.f32 %v1660_v37, %v1632_v35  ;;  %v1813_v45 = vpack.c.bf16 %v18291_v42, %v1747_v48 }
 0x2d8   : > { %v1636_v52 = vpop.f32.mrf.mxu1 }
 0x2d9   : > { %v1683_v33 = vmul.f32 %v18280_v51, %v1661_v44  ;;  %2461 = vmatmul.bf16.vlgmr.msra.gmra.mxu1 %v1813_v45  ;;  %v1637_v3 = vadd.f32 %v1636_v52, %v1608_v14  ;;  %v16307_v52 = vld [vmem:[#allocation9 + $0x108] sm:$0xff] }
 0x2da   : > { %2546 = vmatpush.bf16.msrb.mxu1 %v16307_v52  ;;  %2575 = vmatpush.bf16.msrb.mxu2 %v16315_v9  ;;  %v16327_v9 = vld [vmem:[#allocation9 + $0x1a8] sm:$0xff] }
 0x2db   : > { %v1695_v56 = vadd.f32 %v18285_v0, %v1683_v33  ;;  %v16301_v33 = vld [vmem:[#allocation9 + $0xd8] sm:$0xff] }
 0x2dc   : > { %2515 = vmatpush.bf16.msra.mxu3 %v16301_v33 }
 0x2dd   : > { %v18299_v59 = vmax.f32 %v1695_v56, 0.0 }
 0x2de   : > { %v1663_v60 = vpop.f32.mrf.mxu2  ;;  %v18301_v63 = vld [vmem:[#allocation3 + $0x10] sm:$0xff]  ;;  %v1615_v6 = vpop.f32.mrf.mxu3 }
 0x2df   : > { %v18303_v2 = vld [vmem:[#allocation3 + $0x12] sm:$0xff]  ;;  %1732 = vst [vmem:[#allocation3 + $0x21] sm:$0xff] %v18299_v59  ;;  %v1664_v32 = vadd.f32 %v1663_v60, %v1635_v58  ;;  %v1812_v4 = vpack.c.bf16 %v18301_v63, %v18306_v40  ;;  %v1613_v58 = vadd.f32 %v1612_v49, %v1584_v19  ;;  %v1616_v21 = vadd.f32 %v1615_v6, %v1587_v61 }
 0x2e0   : > { %v1814_v5 = vpack.c.bf16 %v18303_v2, %v1755_v10  ;;  %v1639_v7 = vpop.f32.mrf.mxu1  ;;  %v16300_v10 = vld [vmem:[#allocation9 + $0xd0] sm:$0xff]  ;;  %v16329_v6 = vld [vmem:[#allocation9 + $0x1b8] sm:$0xff] }
 0x2e1   : > { %v1684_v13 = vmul.f32 %v18280_v51, %v1664_v32  ;;  %2432 = vmatmul.bf16.vlgmr.msrb.gmra.mxu3 %v1812_v4  ;;  %v1640_v38 = vadd.f32 %v1639_v7, %v1611_v29  ;;  %v16306_v32 = vld [vmem:[#allocation9 + $0x100] sm:$0xff] }
 0x2e2   : > { %2490 = vmatmul.bf16.vlgmr.msra.gmra.mxu2 %v1814_v5  ;;  %2516 = vmatpush.bf16.msra.mxu3 %v16300_v10  ;;  %v16314_v7 = vld [vmem:[#allocation9 + $0x140] sm:$0xff] }
 0x2e3   : > { %v1696_v16 = vadd.f32 %v18285_v0, %v1684_v13  ;;  %2547 = vmatpush.bf16.msrb.mxu1 %v16306_v32  ;;  %2576 = vmatpush.bf16.msrb.mxu2 %v16314_v7 }
 0x2e5   : > { %v18315_v22 = vmax.f32 %v1696_v16, 0.0  ;;  %v16298_v16 = vld [vmem:[#allocation9 + $0xc0] sm:$0xff] }
 0x2e6   : > { %v1665_v23 = vpop.f32.mrf.mxu2  ;;  %v18326_v48 = vld [vmem:[#allocation3 + $0x20] sm:$0xff]  ;;  %2517 = vmatpush.bf16.msra.mxu3 %v16299_v8  ;;  %v1617_v54 = vpop.f32.mrf.mxu3 }
 0x2e7   : > { %1733 = vst [vmem:[#allocation3 + $0x31] sm:$0xff] %v18315_v22  ;;  %v1666_v39 = vadd.f32 %v1665_v23, %v1637_v3  ;;  %v1822_v46 = vpack.c.bf16 %v18315_v22, %v18299_v59  ;;  %v18330_v37 = vld [vmem:[#allocation3 + $0x22] sm:$0xff]  ;;  %v1815_v32 = vpack.c.bf16 %v18326_v48, %v18301_v63  ;;  %v16341_v63 = vld [vmem:[#allocation9 + $0x218] sm:$0xff] }
 0x2e8   : > { %v1641_v41 = vpop.f32.mrf.mxu1 }
 0x2e9   : > { %v1685_v28 = vmul.f32 %v18280_v51, %v1666_v39  ;;  %2466 = vmatmul.bf16.gmra.mxu1 %v1822_v46  ;;  %2635 = vmatmul.bf16.vlgmr.msrb.gmra.mxu0 %v1822_v46  ;;  %v1642_v4 = vadd.f32 %v1641_v41, %v1613_v58  ;;  %v16345_v58 = vld [vmem:[#allocation9 + $0x238] sm:$0xff] }
 0x2ea   : > { %2518 = vmatpush.bf16.msra.mxu3 %v16298_v16  ;;  %2656 = vmatpush.bf16.msra.mxu1 %v16345_v58 }
 0x2eb   : > { %v1697_v18 = vadd.f32 %v18285_v0, %v1685_v28  ;;  %v1589_v28 = vadd.f32 %v18273_v62, %v18269_v17 }
 0x2ed   : > { %v18324_v31 = vmax.f32 %v1697_v18, 0.0  ;;  %v1618_v49 = vadd.f32 %v1617_v54, %v1589_v28 }
 0x2ee   : > { %v1668_v36 = vpop.f32.mrf.mxu2  ;;  %v18328_v35 = vld [vmem:[#allocation3 + $0x30] sm:$0xff]  ;;  %2598 = vmatpush.bf16.msrb.mxu3 %v16329_v6 }
 0x2ef   : > { %v18332_v44 = vld [vmem:[#allocation3 + $0x32] sm:$0xff]  ;;  %1734 = vst [vmem:[#allocation3 + $0x41] sm:$0xff] %v18324_v31  ;;  %v1669_v45 = vadd.f32 %v1668_v36, %v1640_v38  ;;  %v18337_v47 = vpack.c.bf16 %v18328_v35, %v18326_v48  ;;  %v1825_v8 = vpack.c.bf16 %v18324_v31, %v18315_v22  ;;  %v16326_v48 = vld [vmem:[#allocation9 + $0x1a0] sm:$0xff] }
 0x2f0   : > { %v18341_v50 = vpack.c.bf16 %v18332_v44, %v18330_v37  ;;  %v1644_v13 = vpop.f32.mrf.mxu1  ;;  %v16325_v22 = vld [vmem:[#allocation9 + $0x198] sm:$0xff] }
 0x2f1   : > { %v1686_v56 = vmul.f32 %v18280_v51, %v1669_v45  ;;  %2437 = vmatmul.bf16.gmra.mxu3 %v18337_v47  ;;  %v1645_v53 = vadd.f32 %v1644_v13, %v1616_v21  ;;  %v16338_v13 = vld [vmem:[#allocation9 + $0x200] sm:$0xff] }
 0x2f2   : > { %2495 = vmatmul.bf16.gmra.mxu2 %v18341_v50 }
 0x2f3   : > { %v1698_v60 = vadd.f32 %v18285_v0, %v1686_v56 }
 0x2f5   : > { %v18349_v5 = vmax.f32 %v1698_v60, 0.0  ;;  %v16344_v60 = vld [vmem:[#allocation9 + $0x230] sm:$0xff] }
 0x2f6   : > { %v1670_v55 = vpop.f32.mrf.mxu2  ;;  %v18360_v23 = vld [vmem:[#allocation3 + $0x40] sm:$0xff]  ;;  %2657 = vmatpush.bf16.msra.mxu1 %v16344_v60 }
 0x2f7   : > { %1735 = vst [vmem:[#allocation3 + $0x51] sm:$0xff] %v18349_v5  ;;  %v1671_v11 = vadd.f32 %v1670_v55, %v1642_v4  ;;  %v1831_v12 = vpack.c.bf16 %v18349_v5, %v18324_v31  ;;  %v18364_v1 = vld [vmem:[#allocation3 + $0x42] sm:$0xff]  ;;  %v1817_v4 = vpack.c.bf16 %v18330_v37, %v18303_v2  ;;  %v16340_v2 = vld [vmem:[#allocation9 + $0x210] sm:$0xff]  ;;  %v1824_v37 = vpack.c.bf16 %v18360_v23, %v18328_v35 }
 0x2f8   : > { %v1646_v18 = vpop.f32.mrf.mxu1  ;;  %v16343_v55 = vld [vmem:[#allocation9 + $0x228] sm:$0xff]  ;;  %v16322_v35 = vld [vmem:[#allocation9 + $0x180] sm:$0xff] }
 0x2f9   : > { %v1687_v14 = vmul.f32 %v18280_v51, %v1671_v11  ;;  %2471 = vmatmul.bf16.gmra.mxu1 %v1831_v12  ;;  %2640 = vmatmul.bf16.gmra.mxu0 %v1831_v12  ;;  %v1647_v25 = vadd.f32 %v1646_v18, %v1618_v49  ;;  %v1826_v11 = vpack.c.bf16 %v18364_v1, %v18332_v44  ;;  %v16339_v31 = vld [vmem:[#allocation9 + $0x208] sm:$0xff]  ;;  %v16324_v12 = vld [vmem:[#allocation9 + $0x190] sm:$0xff] }
 0x2fa   : > { %2658 = vmatpush.bf16.msra.mxu1 %v16343_v55 }
 0x2fb   : > { %v1699_v20 = vadd.f32 %v18285_v0, %v1687_v14  ;;  %v16323_v14 = vld [vmem:[#allocation9 + $0x188] sm:$0xff] }
 0x2fd   : > { %v18358_v3 = vmax.f32 %v1699_v20, 0.0 }
 0x2fe   : > { %v1673_v39 = vpop.f32.mrf.mxu2  ;;  %v18362_v46 = vld [vmem:[#allocation3 + $0x50] sm:$0xff] }
 0x2ff   : > { %v18366_v43 = vld [vmem:[#allocation3 + $0x52] sm:$0xff]  ;;  %1736 = vst [vmem:[#allocation3 + $0x61] sm:$0xff] %v18358_v3  ;;  %v1674_v26 = vadd.f32 %v1673_v39, %v1645_v53  ;;  %v18371_v24 = vpack.c.bf16 %v18362_v46, %v18360_v23  ;;  %v1834_v61 = vpack.c.bf16 %v18358_v3, %v18349_v5 }
 0x300   : > { %v18375_v27 = vpack.c.bf16 %v18366_v43, %v18364_v1 }
 0x301   : > { %v1688_v29 = vmul.f32 %v18280_v51, %v1674_v26  ;;  %2442 = vmatmul.bf16.gmra.mxu3 %v18371_v24 }
 0x302   : > { %2500 = vmatmul.bf16.gmra.mxu2 %v18375_v27 }
 0x303   : > { %v1700_v15 = vadd.f32 %v18285_v0, %v1688_v29 }
 0x305   : > { %v18383_v30 = vmax.f32 %v1700_v15, 0.0 }
 0x306   : > { %v1675_v38 = vpop.f32.mrf.mxu2  ;;  %v1745_v33 = vld [vmem:[#allocation3 + $0x60] sm:$0xff] }
 0x307   : > { %1737 = vst [vmem:[#allocation3 + $0x71] sm:$0xff] %v18383_v30  ;;  %v1676_v41 = vadd.f32 %v1675_v38, %v1647_v25  ;;  %v1840_v17 = vpack.c.bf16 %v18383_v30, %v18358_v3  ;;  %v1761_v52 = vld [vmem:[#allocation3 + $0x62] sm:$0xff]  ;;  %v1833_v44 = vpack.c.bf16 %v1745_v33, %v18362_v46 }
 0x308   : > { %v1835_v16 = vpack.c.bf16 %v1761_v52, %v18366_v43 }
 0x309   : > { %v1689_v62 = vmul.f32 %v18280_v51, %v1676_v41  ;;  %2476 = vmatmul.bf16.gmra.mxu1 %v1840_v17  ;;  %2645 = vmatmul.bf16.gmra.mxu0 %v1840_v17  ;;  %v1803_v51 = vld [vmem:[#allocation3 + $0x91] sm:$0xff] }
 0x30a   : > { %v1811_v17 = vld [vmem:[#allocation3 + $0x92] sm:$0xff] }
 0x30b   : > { %v1701_v36 = vadd.f32 %v18285_v0, %v1689_v62  ;;  %v1816_v0 = vpack.c.bf16 %v18299_v59, %v18291_v42  ;;  %v16328_v42 = vld [vmem:[#allocation9 + $0x1b0] sm:$0xff]  ;;  %v16342_v59 = vld [vmem:[#allocation9 + $0x220] sm:$0xff] }
 0x30c   : > { %2599 = vmatpush.bf16.msrb.mxu3 %v16328_v42  ;;  %2659 = vmatpush.bf16.msra.mxu1 %v16342_v59 }
 0x30d   : > { %v18390_v45 = vmax.f32 %v1701_v36, 0.0 }
 0x30e   : > { %v18392_v34 = vld [vmem:[#allocation3 + $0x70] sm:$0xff] }
 0x30f   : > { %v18394_v19 = vld [vmem:[#allocation3 + $0x72] sm:$0xff]  ;;  %1738 = vst [vmem:[#allocation3 + $0x81] sm:$0xff] %v18390_v45  ;;  %v18398_v56 = vpack.c.bf16 %v18392_v34, %v1745_v33  ;;  %v1846_v57 = vpack.c.bf16 %v1803_v51, %v18390_v45  ;;  %v1843_v7 = vpack.c.bf16 %v18390_v45, %v18383_v30 }
 0x310   : > { %v18401_v10 = vpack.c.bf16 %v18394_v19, %v1761_v52  ;;  %2600 = vmatpush.bf16.msrb.mxu3 %v16327_v9  ;;  %2660 = vmatpush.bf16.msra.mxu1 %v16341_v63 }
 0x311   : > { %2447 = vmatmul.bf16.gmra.mxu3 %v18398_v56 }
 0x312   : > { %2505 = vmatmul.bf16.gmra.mxu2 %v18401_v10 }
 0x314   : > { %2601 = vmatpush.bf16.msrb.mxu3 %v16326_v48  ;;  %2661 = vmatpush.bf16.msra.mxu1 %v16340_v2  ;;  %v12091_v48 = vld [vmem:[%s25374_s10 + $0x1c0] sm:$0xf] }
 0x315   : > { %v16406_v2 = vld [vmem:[%s25374_s10 + $0x1dc] sm:$0xf0] }
 0x316   : > { %v1770_v21 = vld [vmem:[#allocation3 + $0x80] sm:$0xff] }
 0x317   : > { %v1786_v20 = vld [vmem:[#allocation3 + $0x82] sm:$0xff]  ;;  %v1842_v5 = vpack.c.bf16 %v1770_v21, %v18392_v34 }
 0x318   : > { %2602 = vmatpush.bf16.msrb.mxu3 %v16325_v22  ;;  %2662 = vmatpush.bf16.msra.mxu1 %v16339_v31  ;;  %v1844_v53 = vpack.c.bf16 %v1786_v20, %v18394_v19  ;;  %v1847_v45 = vpack.c.bf16 %v1811_v17, %v1786_v20  ;;  %v1845_v19 = vpack.c.bf16 %v18306_v40, %v1770_v21  ;;  %v12347_v22 = vld [vmem:[%s25374_s10 + $0x3c0] sm:$0xf] }
 0x319   : > { %2548 = vmatmul.bf16.vlgmr.msrb.gmra.mxu1 %v1816_v0  ;;  %2650 = vmatmul.bf16.gmra.mxu0 %v1846_v57  ;;  %v16470_v31 = vld [vmem:[%s25374_s10 + $0x3dc] sm:$0xf0] }
 0x31a   : > { %v13371_v21 = vld [vmem:[%s25374_s10 + $0xbc0] sm:$0xf] }
 0x31b   : > { %v16726_v20 = vld [vmem:[%s25374_s10 + $0xbdc] sm:$0xf0] }
 0x31c   : > { %2603 = vmatpush.bf16.msrb.mxu3 %v16324_v12  ;;  %2663 = vmatpush.bf16.msra.mxu1 %v16338_v13  ;;  %v12348_v13 = vor.u32 %v16470_v31, %v12347_v22  ;;  %v12283_v17 = vld [vmem:[%s25374_s10 + $0x340] sm:$0xf] }
 0x31d   : > { %v16638_v22 = vld [vmem:[%s25374_s10 + $0x91c] sm:$0xf0] }
 0x320   : > { %2604 = vmatpush.bf16.msrb.mxu3 %v16323_v14  ;;  %v16662_v14 = vld [vmem:[%s25374_s10 + $0x9dc] sm:$0xf0] }
 0x321   : > { %2519 = vmatmul.bf16.vlgmr.msra.gmra.mxu3 %v1815_v32 }
 0x322   : > { %2577 = vmatmul.bf16.vlgmr.msrb.gmra.mxu2 %v1817_v4 }
 0x324   : > { %2605 = vmatpush.bf16.msrb.mxu3 %v16322_v35 }
 0x328   : > { %8955 = vmatpush.bf16.msra.mxu3 %v12348_v13  ;;  %v11963_v13 = vld [vmem:[%s25374_s10 + $0xc0] sm:$0xf] }
 0x329   : > { %2553 = vmatmul.bf16.gmra.mxu1 %v1825_v8 }
 0x331   : > { %2524 = vmatmul.bf16.gmra.mxu3 %v1824_v37 }
 0x332   : > { %2582 = vmatmul.bf16.gmra.mxu2 %v1826_v11  ;;  %v12092_v11 = vor.u32 %v16406_v2, %v12091_v48  ;;  %v16446_v48 = vld [vmem:[%s25374_s10 + $0x31c] sm:$0xf0] }
 0x334   : > { %8942 = vmatpush.bf16.msra.mxu2 %v12092_v11  ;;  %v13019_v11 = vld [vmem:[%s25374_s10 + $0x900] sm:$0xf] }
 0x335   : > { %v13020_v31 = vor.u32 %v16638_v22, %v13019_v11 }
 0x339   : > { %2558 = vmatmul.bf16.gmra.mxu1 %v1834_v61  ;;  %v13115_v61 = vld [vmem:[%s25374_s10 + $0x9c0] sm:$0xf] }
 0x33a   : > { %v13116_v35 = vor.u32 %v16662_v14, %v13115_v61  ;;  %v16374_v61 = vld [vmem:[%s25374_s10 + $0xdc] sm:$0xf0] }
 0x33c   : > { %8994 = vmatpush.bf16.msra.mxu0 %v13116_v35  ;;  %v11964_v35 = vor.u32 %v16374_v61, %v11963_v13  ;;  %v16350_v13 = vld [vmem:[%s25374_s10 + $0x1c] sm:$0xf0] }
 0x341   : > { %2529 = vmatmul.bf16.gmra.mxu3 %v1833_v44  ;;  %v12059_v44 = vld [vmem:[%s25374_s10 + $0x180] sm:$0xf] }
 0x342   : > { %2587 = vmatmul.bf16.gmra.mxu2 %v1835_v16  ;;  %v16398_v16 = vld [vmem:[%s25374_s10 + $0x19c] sm:$0xf0] }
 0x349   : > { %2563 = vmatmul.bf16.gmra.mxu1 %v1843_v7  ;;  %v12060_v7 = vor.u32 %v16398_v16, %v12059_v44  ;;  %v13275_v44 = vld [vmem:[%s25374_s10 + $0xb00] sm:$0xf] }
 0x34a   : > { %v16702_v16 = vld [vmem:[%s25374_s10 + $0xb1c] sm:$0xf0] }
 0x34b   : > { %8943 = vmatpush.bf16.msra.mxu2 %v12060_v7  ;;  %v13276_v7 = vor.u32 %v16702_v16, %v13275_v44  ;;  %v12603_v44 = vld [vmem:[%s25374_s10 + $0x5c0] sm:$0xf] }
 0x34c   : > { %v13179_v16 = vld [vmem:[%s25374_s10 + $0xa40] sm:$0xf] }
 0x351   : > { %2534 = vmatmul.bf16.gmra.mxu3 %v1842_v5  ;;  %v13372_v5 = vor.u32 %v16726_v20, %v13371_v21  ;;  %v12219_v21 = vld [vmem:[%s25374_s10 + $0x2c0] sm:$0xf] }
 0x352   : > { %2592 = vmatmul.bf16.gmra.mxu2 %v1844_v53  ;;  %v12315_v53 = vld [vmem:[%s25374_s10 + $0x380] sm:$0xf] }
 0x353   : > { %9007 = vmatpush.bf16.msrb.mxu1 %v13372_v5  ;;  %v16438_v20 = vld [vmem:[%s25374_s10 + $0x2dc] sm:$0xf0] }
 0x354   : > { %v12220_v5 = vor.u32 %v16438_v20, %v12219_v21  ;;  %v16678_v21 = vld [vmem:[%s25374_s10 + $0xa5c] sm:$0xf0] }
 0x355   : > { %v12123_v20 = vld [vmem:[%s25374_s10 + $0x200] sm:$0xf] }
 0x356   : > { %v2462_v3 = vpop.f32.mrf.mxu1 }
 0x359   : > { %2664 = vmatmul.bf16.vlgmr.msra.gmra.mxu1 %v18341_v50 }
 0x35e   : > { %v18427_v23 = vpop.f32.mrf.mxu1 }
 0x361   : > { %2606 = vmatmul.bf16.vlgmr.msrb.gmra.mxu3 %v18337_v47 }
 0x364   : > { %v2433_v39 = vpop.f32.mrf.mxu3 }
 0x365   : > { %v2491_v46 = vpop.f32.mrf.mxu2  ;;  %v2463_v1 = vadd.f32 %v2462_v3, %v2433_v39  ;;  %v16462_v3 = vld [vmem:[%s25374_s10 + $0x39c] sm:$0xf0] }
 0x366   : > { %v2467_v43 = vpop.f32.mrf.mxu1  ;;  %v12316_v39 = vor.u32 %v16462_v3, %v12315_v53  ;;  %v12987_v53 = vld [vmem:[%s25374_s10 + $0x8c0] sm:$0xf]  ;;  %v18655_v61 = vpop.f32.mrf.mxu0 }
 0x367   : > { %v2492_v26 = vadd.f32 %v2491_v46, %v2463_v1  ;;  %v13083_v46 = vld [vmem:[%s25374_s10 + $0x980] sm:$0xf] }
 0x368   : > { %v16654_v1 = vld [vmem:[%s25374_s10 + $0x99c] sm:$0xf0]  ;;  %8956 = vmatpush.bf16.msra.mxu3 %v12316_v39 }
 0x369   : > { %2669 = vmatmul.bf16.gmra.mxu1 %v18375_v27  ;;  %v16630_v3 = vld [vmem:[%s25374_s10 + $0x8dc] sm:$0xf0] }
 0x36a   : > { %v12988_v39 = vor.u32 %v16630_v3, %v12987_v53  ;;  %v13180_v3 = vor.u32 %v16678_v21, %v13179_v16  ;;  %v12795_v21 = vld [vmem:[%s25374_s10 + $0x740] sm:$0xf] }
 0x36c   : > { %v18431_v54 = vpop.f32.mrf.mxu3 }
 0x36d   : > { %v18433_v28 = vpop.f32.mrf.mxu2 }
 0x36e   : > { %v18435_v29 = vpop.f32.mrf.mxu1  ;;  %v18744_v16 = vpop.f32.mrf.mxu0 }
 0x371   : > { %2611 = vmatmul.bf16.gmra.mxu3 %v18371_v24 }
 0x374   : > { %v2438_v50 = vpop.f32.mrf.mxu3 }
 0x375   : > { %v2496_v18 = vpop.f32.mrf.mxu2  ;;  %v2468_v49 = vadd.f32 %v2467_v43, %v2438_v50  ;;  %v13084_v43 = vor.u32 %v16654_v1, %v13083_v46  ;;  %v16390_v50 = vld [vmem:[%s25374_s10 + $0x15c] sm:$0xf0] }
 0x376   : > { %v2472_v15 = vpop.f32.mrf.mxu1  ;;  %v11931_v46 = vld [vmem:[%s25374_s10 + $0x80] sm:$0xf] }
 0x377   : > { %v2497_v47 = vadd.f32 %v2496_v18, %v2468_v49  ;;  %8995 = vmatpush.bf16.msra.mxu0 %v13084_v43  ;;  %v16366_v1 = vld [vmem:[%s25374_s10 + $0x9c] sm:$0xf0] }
 0x379   : > { %2674 = vmatmul.bf16.gmra.mxu1 %v18401_v10 }
 0x37c   : > { %v18439_v25 = vpop.f32.mrf.mxu3 }
 0x37d   : > { %v18441_v30 = vpop.f32.mrf.mxu2 }
 0x37e   : > { %v18443_v27 = vpop.f32.mrf.mxu1 }
 0x381   : > { %2616 = vmatmul.bf16.gmra.mxu3 %v18398_v56 }
 0x384   : > { %v2443_v38 = vpop.f32.mrf.mxu3 }
 0x385   : > { %v2501_v41 = vpop.f32.mrf.mxu2  ;;  %v2473_v62 = vadd.f32 %v2472_v15, %v2443_v38  ;;  %v13339_v15 = vld [vmem:[%s25374_s10 + $0xb80] sm:$0xf] }
 0x386   : > { %v2477_v24 = vpop.f32.mrf.mxu1 }
 0x387   : > { %v2502_v36 = vadd.f32 %v2501_v41, %v2473_v62  ;;  %v16454_v62 = vld [vmem:[%s25374_s10 + $0x35c] sm:$0xf0] }
 0x389   : > { %2679 = vmatmul.bf16.gmra.mxu1 %v1847_v45  ;;  %v12284_v45 = vor.u32 %v16454_v62, %v12283_v17  ;;  %v16622_v17 = vld [vmem:[%s25374_s10 + $0x89c] sm:$0xf0] }
 0x38b   : > { %8957 = vmatpush.bf16.msra.mxu3 %v12284_v45 }
 0x38c   : > { %v18446_v33 = vpop.f32.mrf.mxu3 }
 0x38d   : > { %v18448_v34 = vpop.f32.mrf.mxu2 }
 0x38e   : > { %v18450_v52 = vpop.f32.mrf.mxu1 }
 0x391   : > { %2621 = vmatmul.bf16.gmra.mxu3 %v1845_v19  ;;  %v13051_v19 = vld [vmem:[%s25374_s10 + $0x940] sm:$0xf] }
 0x394   : > { %v2448_v10 = vpop.f32.mrf.mxu3 }
 0x395   : > { %v2478_v51 = vadd.f32 %v2477_v24, %v2448_v10  ;;  %v2506_v56 = vpop.f32.mrf.mxu2 }
 0x396   : > { %v2549_v0 = vpop.f32.mrf.mxu1 }
 0x397   : > { %v18453_v57 = vadd.f32 %v2506_v56, %v2478_v51  ;;  %v11995_v56 = vld [vmem:[%s25374_s10 + $0x100] sm:$0xf] }
 0x39c   : > { %v18455_v58 = vpop.f32.mrf.mxu3 }
 0x39e   : > { %v18457_v60 = vpop.f32.mrf.mxu1 }
 0x3a4   : > { %v2520_v32 = vpop.f32.mrf.mxu3 }
 0x3a5   : > { %v2521_v4 = vadd.f32 %v2520_v32, %v2492_v26  ;;  %v12027_v26 = vld [vmem:[%s25374_s10 + $0x140] sm:$0xf] }
 0x3a6   : > { %v2554_v6 = vpop.f32.mrf.mxu1  ;;  %v12028_v49 = vor.u32 %v16390_v50, %v12027_v26  ;;  %v11932_v26 = vor.u32 %v16366_v1, %v11931_v46  ;;  %v13243_v50 = vld [vmem:[%s25374_s10 + $0xac0] sm:$0xf] }
 0x3a7   : > { %v18459_v55 = vadd.f32 %v2549_v0, %v2521_v4  ;;  %v16382_v0 = vld [vmem:[%s25374_s10 + $0x11c] sm:$0xf0] }
 0x3a8   : > { %8944 = vmatpush.bf16.msra.mxu2 %v12028_v49  ;;  %v11996_v32 = vor.u32 %v16382_v0, %v11995_v56  ;;  %v13307_v4 = vld [vmem:[%s25374_s10 + $0xb40] sm:$0xf] }
 0x3a9   : > { %v13211_v0 = vld [vmem:[%s25374_s10 + $0xa80] sm:$0xf] }
 0x3aa   : > { %v12859_v46 = vld [vmem:[%s25374_s10 + $0x7c0] sm:$0xf] }
 0x3ab   : > { %v16598_v1 = vld [vmem:[%s25374_s10 + $0x7dc] sm:$0xf0] }
 0x3ac   : > { %v18461_v42 = vpop.f32.mrf.mxu3  ;;  %8945 = vmatpush.bf16.msra.mxu2 %v11996_v32  ;;  %v16686_v32 = vld [vmem:[%s25374_s10 + $0xa9c] sm:$0xf0] }
 0x3ae   : > { %v18463_v59 = vpop.f32.mrf.mxu1 }
 0x3b0   : > { %8946 = vmatpush.bf16.msra.mxu2 %v11964_v35 }
 0x3b4   : > { %v2525_v40 = vpop.f32.mrf.mxu3  ;;  %8947 = vmatpush.bf16.msra.mxu2 %v11932_v26  ;;  %v12891_v26 = vld [vmem:[%s25374_s10 + $0x800] sm:$0xf] }
 0x3b5   : > { %v2526_v8 = vadd.f32 %v2525_v40, %v2497_v47  ;;  %v16718_v47 = vld [vmem:[%s25374_s10 + $0xb9c] sm:$0xf0]  ;;  %v18553_v40 = vpop.f32.mrf.mxu2 }
 0x3b6   : > { %v2559_v9 = vpop.f32.mrf.mxu1  ;;  %v13340_v41 = vor.u32 %v16718_v47, %v13339_v15  ;;  %v12187_v15 = vld [vmem:[%s25374_s10 + $0x280] sm:$0xf] }
 0x3b7   : > { %v18465_v63 = vadd.f32 %v2554_v6, %v2526_v8  ;;  %v16710_v6 = vld [vmem:[%s25374_s10 + $0xb5c] sm:$0xf0] }
 0x3b8   : > { %9008 = vmatpush.bf16.msrb.mxu1 %v13340_v41  ;;  %v13308_v8 = vor.u32 %v16710_v6, %v13307_v4  ;;  %v16430_v47 = vld [vmem:[%s25374_s10 + $0x29c] sm:$0xf0]  ;;  %v13212_v6 = vor.u32 %v16686_v32, %v13211_v0 }
 0x3b9   : > { %v12955_v41 = vld [vmem:[%s25374_s10 + $0x880] sm:$0xf] }
 0x3ba   : > { %v12956_v45 = vor.u32 %v16622_v17, %v12955_v41  ;;  %v12571_v17 = vld [vmem:[%s25374_s10 + $0x580] sm:$0xf] }
 0x3bb   : > { %v16670_v0 = vld [vmem:[%s25374_s10 + $0xa1c] sm:$0xf0] }
 0x3bc   : > { %v18473_v37 = vpop.f32.mrf.mxu3  ;;  %9009 = vmatpush.bf16.msrb.mxu1 %v13308_v8  ;;  %v12155_v8 = vld [vmem:[%s25374_s10 + $0x240] sm:$0xf] }
 0x3bd   : > { %v18619_v62 = vpop.f32.mrf.mxu2  ;;  %v14395_v32 = vld [vmem:[%s25374_s10 + $0x13c0] sm:$0xf] }
 0x3be   : > { %v18481_v12 = vpop.f32.mrf.mxu1 }
 0x3c0   : > { %9010 = vmatpush.bf16.msrb.mxu1 %v13276_v7 }
 0x3c4   : > { %v2530_v18 = vpop.f32.mrf.mxu3 }
 0x3c5   : > { %v2531_v38 = vadd.f32 %v2530_v18, %v2502_v36  ;;  %v16646_v36 = vld [vmem:[%s25374_s10 + $0x95c] sm:$0xf0] }
 0x3c6   : > { %v18531_v24 = vpop.f32.mrf.mxu1  ;;  %v13052_v51 = vor.u32 %v16646_v36, %v13051_v19  ;;  %v16694_v18 = vld [vmem:[%s25374_s10 + $0xadc] sm:$0xf0] }
 0x3c7   : > { %v18539_v10 = vadd.f32 %v2559_v9, %v2531_v38  ;;  %v12251_v9 = vld [vmem:[%s25374_s10 + $0x300] sm:$0xf]  ;;  %v13244_v49 = vor.u32 %v16694_v18, %v13243_v50  ;;  %v12188_v38 = vor.u32 %v16430_v47, %v12187_v15  ;;  %v12860_v50 = vor.u32 %v16598_v1, %v12859_v46 }
 0x3c8   : > { %8996 = vmatpush.bf16.msra.mxu0 %v13052_v51  ;;  %v12252_v2 = vor.u32 %v16446_v48, %v12251_v9  ;;  %v11899_v19 = vld [vmem:[%s25374_s10 + $0x40] sm:$0xf] }
 0x3c9   : > { %9011 = vmatpush.bf16.msrb.mxu1 %v13244_v49  ;;  %v16358_v36 = vld [vmem:[%s25374_s10 + $0x5c] sm:$0xf0] }
 0x3ca   : > { %8958 = vmatpush.bf16.msra.mxu3 %v12252_v2  ;;  %v11900_v56 = vor.u32 %v16358_v36, %v11899_v19  ;;  %v16422_v9 = vld [vmem:[%s25374_s10 + $0x25c] sm:$0xf0]  ;;  %v2465_v36 = vadd.f32 %v18427_v23, %v18431_v54 }
 0x3cb   : > { %v12156_v48 = vor.u32 %v16422_v9, %v12155_v8  ;;  %v12923_v2 = vld [vmem:[%s25374_s10 + $0x840] sm:$0xf] }
 0x3cc   : > { %v18573_v14 = vpop.f32.mrf.mxu3  ;;  %8997 = vmatpush.bf16.msra.mxu0 %v13020_v31  ;;  %8948 = vmatpush.bf16.msra.mxu2 %v11900_v56  ;;  %v11867_v31 = vld [vmem:[%s25374_s10] sm:$0xf] }
 0x3cd   : > { %9012 = vmatpush.bf16.msrb.mxu1 %v13212_v6  ;;  %v11868_v35 = vor.u32 %v16350_v13, %v11867_v31  ;;  %v16606_v18 = vld [vmem:[%s25374_s10 + $0x81c] sm:$0xf0]  ;;  %v2494_v13 = vadd.f32 %v18433_v28, %v2465_v36 }
 0x3ce   : > { %v18599_v43 = vpop.f32.mrf.mxu1  ;;  %8959 = vmatpush.bf16.msra.mxu3 %v12220_v5  ;;  %v16414_v5 = vld [vmem:[%s25374_s10 + $0x21c] sm:$0xf0] }
 0x3cf   : > { %v14139_v49 = vld [vmem:[%s25374_s10 + $0x11c0] sm:$0xf] }
 0x3d0   : > { %8998 = vmatpush.bf16.msra.mxu0 %v12988_v39  ;;  %8949 = vmatpush.bf16.msra.mxu2 %v11868_v35  ;;  %v12124_v39 = vor.u32 %v16414_v5, %v12123_v20  ;;  %v16918_v15 = vld [vmem:[%s25374_s10 + $0x11dc] sm:$0xf0]  ;;  %v2579_v20 = vadd.f32 %v18619_v62, %v18459_v55  ;;  %v2523_v5 = vadd.f32 %v18461_v42, %v2494_v13 }
 0x3d1   : > { %9013 = vmatpush.bf16.msrb.mxu1 %v13180_v3  ;;  %v14140_v41 = vor.u32 %v16918_v15, %v14139_v49  ;;  %v13147_v19 = vld [vmem:[%s25374_s10 + $0xa00] sm:$0xf] }
 0x3d2   : > { %8960 = vmatpush.bf16.msra.mxu3 %v12188_v38  ;;  %v12892_v38 = vor.u32 %v16606_v18, %v12891_v26  ;;  %v13148_v6 = vor.u32 %v16670_v0, %v13147_v19  ;;  %v12827_v23 = vld [vmem:[%s25374_s10 + $0x780] sm:$0xf] }
 0x3d3   : > { %v16590_v54 = vld [vmem:[%s25374_s10 + $0x79c] sm:$0xf0] }
 0x3d4   : > { %v2535_v51 = vpop.f32.mrf.mxu3  ;;  %8999 = vmatpush.bf16.msra.mxu0 %v12956_v45  ;;  %v16526_v45 = vld [vmem:[%s25374_s10 + $0x59c] sm:$0xf0]  ;;  %v12828_v9 = vor.u32 %v16590_v54, %v12827_v23 }
 0x3d5   : > { %v2536_v4 = vadd.f32 %v2535_v51, %v18453_v57  ;;  %v16614_v57 = vld [vmem:[%s25374_s10 + $0x85c] sm:$0xf0]  ;;  %v18708_v51 = vpop.f32.mrf.mxu2  ;;  %v12572_v56 = vor.u32 %v16526_v45, %v12571_v17  ;;  %9014 = vmatpush.bf16.msrb.mxu1 %v13148_v6  ;;  %v2552_v45 = vadd.f32 %v18457_v60, %v2523_v5 }
 0x3d6   : > { %v12924_v22 = vor.u32 %v16614_v57, %v12923_v2  ;;  %8961 = vmatpush.bf16.msra.mxu3 %v12156_v48  ;;  %v18675_v53 = vpop.f32.mrf.mxu1  ;;  %v14107_v48 = vld [vmem:[%s25374_s10 + $0x1180] sm:$0xf] }
 0x3d7   : > { %v18647_v11 = vadd.f32 %v18531_v24, %v2536_v4  ;;  %v16534_v24 = vld [vmem:[%s25374_s10 + $0x5dc] sm:$0xf0] }
 0x3d8   : > { %9000 = vmatpush.bf16.msra.mxu0 %v12924_v22  ;;  %v12604_v7 = vor.u32 %v16534_v24, %v12603_v44  ;;  %v16982_v4 = vld [vmem:[%s25374_s10 + $0x13dc] sm:$0xf0] }
 0x3d9   : > { %v14396_v8 = vor.u32 %v16982_v4, %v14395_v32  ;;  %v16910_v2 = vld [vmem:[%s25374_s10 + $0x119c] sm:$0xf0] }
 0x3da   : > { %8968 = vmatpush.bf16.msrb.mxu2 %v12604_v7  ;;  %8962 = vmatpush.bf16.msra.mxu3 %v12124_v39  ;;  %v14108_v57 = vor.u32 %v16910_v2, %v14107_v48  ;;  %v12539_v22 = vld [vmem:[%s25374_s10 + $0x540] sm:$0xf] }
 0x3db   : > { %v16518_v31 = vld [vmem:[%s25374_s10 + $0x55c] sm:$0xf0]  ;;  %9059 = vmatpush.bf16.msra.mxu1 %v14396_v8 }
 0x3dc   : > { %v18695_v47 = vpop.f32.mrf.mxu3  ;;  %9001 = vmatpush.bf16.msra.mxu0 %v12892_v38  ;;  %v12540_v35 = vor.u32 %v16518_v31, %v12539_v22  ;;  %v14363_v44 = vld [vmem:[%s25374_s10 + $0x1380] sm:$0xf] }
 0x3dd   : > { %v16974_v24 = vld [vmem:[%s25374_s10 + $0x139c] sm:$0xf0]  ;;  %v18782_v19 = vpop.f32.mrf.mxu2 }
 0x3de   : > { %8981 = vmatpush.bf16.msrb.mxu3 %v12860_v50  ;;  %8969 = vmatpush.bf16.msrb.mxu2 %v12572_v56  ;;  %v14364_v7 = vor.u32 %v16974_v24, %v14363_v44  ;;  %v16582_v28 = vld [vmem:[%s25374_s10 + $0x75c] sm:$0xf0]  ;;  %v18761_v26 = vpop.f32.mrf.mxu1  ;;  %v18824_v44 = vpop.f32.mrf.mxu0 }
 0x3df   : > { %v12796_v3 = vor.u32 %v16582_v28, %v12795_v21  ;;  %v14075_v39 = vld [vmem:[%s25374_s10 + $0x1140] sm:$0xf] }
 0x3e0   : > { %9046 = vmatpush.bf16.msrb.mxu0 %v14140_v41  ;;  %v16902_v46 = vld [vmem:[%s25374_s10 + $0x115c] sm:$0xf0]  ;;  %9060 = vmatpush.bf16.msra.mxu1 %v14364_v7 }
 0x3e1   : > { %v14076_v50 = vor.u32 %v16902_v46, %v14075_v39  ;;  %v12507_v55 = vld [vmem:[%s25374_s10 + $0x500] sm:$0xf] }
 0x3e2   : > { %8982 = vmatpush.bf16.msrb.mxu3 %v12828_v9  ;;  %8970 = vmatpush.bf16.msrb.mxu2 %v12540_v35  ;;  %v16510_v42 = vld [vmem:[%s25374_s10 + $0x51c] sm:$0xf0]  ;;  %v2470_v35 = vadd.f32 %v18435_v29, %v18439_v25 }
 0x3e3   : > { %v12508_v18 = vor.u32 %v16510_v42, %v12507_v55  ;;  %v14331_v49 = vld [vmem:[%s25374_s10 + $0x1340] sm:$0xf] }
 0x3e4   : > { %9047 = vmatpush.bf16.msrb.mxu0 %v14108_v57  ;;  %v2607_v1 = vpop.f32.mrf.mxu3  ;;  %v16966_v15 = vld [vmem:[%s25374_s10 + $0x135c] sm:$0xf0]  ;;  %v2581_v57 = vadd.f32 %v18708_v51, %v2552_v45 }
 0x3e5   : > { %v2608_v62 = vadd.f32 %v2607_v1, %v2579_v20  ;;  %v14332_v38 = vor.u32 %v16966_v15, %v14331_v49  ;;  %v12763_v41 = vld [vmem:[%s25374_s10 + $0x700] sm:$0xf]  ;;  %v2499_v49 = vadd.f32 %v18441_v30, %v2470_v35 }
 0x3e6   : > { %8983 = vmatpush.bf16.msrb.mxu3 %v12796_v3  ;;  %v16574_v17 = vld [vmem:[%s25374_s10 + $0x71c] sm:$0xf0]  ;;  %8971 = vmatpush.bf16.msrb.mxu2 %v12508_v18  ;;  %v18844_v39 = vpop.f32.mrf.mxu1 }
 0x3e7   : > { %v2637_v36 = vadd.f32 %v18655_v61, %v2608_v62  ;;  %v12764_v56 = vor.u32 %v16574_v17, %v12763_v41  ;;  %v14043_v0 = vld [vmem:[%s25374_s10 + $0x1100] sm:$0xf]  ;;  %9061 = vmatpush.bf16.msra.mxu1 %v14332_v38  ;;  %v2585_v41 = vpop.f32.mrf.mxu2 }
 0x3e8   : > { %9048 = vmatpush.bf16.msrb.mxu0 %v14076_v50  ;;  %v16894_v32 = vld [vmem:[%s25374_s10 + $0x111c] sm:$0xf0] }
 0x3e9   : > { %v14044_v4 = vor.u32 %v16894_v32, %v14043_v0  ;;  %v12475_v60 = vld [vmem:[%s25374_s10 + $0x4c0] sm:$0xf]  ;;  %v2666_v6 = vadd.f32 %v18675_v53, %v2637_v36  ;;  %v2528_v0 = vadd.f32 %v18473_v37, %v2499_v49  ;;  %v2475_v49 = vadd.f32 %v18443_v27, %v18446_v33 }
 0x3ea   : > { %v16502_v61 = vld [vmem:[%s25374_s10 + $0x4dc] sm:$0xf0]  ;;  %8984 = vmatpush.bf16.msrb.mxu3 %v12764_v56 }
 0x3eb   : > { %v18801_v8 = vld [vmem:[%s25372_s8] ss:$0 sm:$0xff]  ;;  %v12476_v23 = vor.u32 %v16502_v61, %v12475_v60  ;;  %v2584_v60 = vadd.f32 %v18782_v19, %v18465_v63 }
 0x3ec   : > { %v14299_v54 = vld [vmem:[%s25374_s10 + $0x1300] sm:$0xf]  ;;  %9049 = vmatpush.bf16.msrb.mxu0 %v14044_v4  ;;  %v2609_v24 = vpop.f32.mrf.mxu3  ;;  %v2689_v28 = vmul.f32 %v18801_v8, %v2666_v6 }
 0x3ed   : > { %v16958_v9 = vld [vmem:[%s25374_s10 + $0x131c] sm:$0xf0]  ;;  %8972 = vmatpush.bf16.msrb.mxu2 %v12476_v23  ;;  %v2610_v29 = vadd.f32 %v2609_v24, %v2581_v57 }
 0x3ee   : > { %v14300_v48 = vor.u32 %v16958_v9, %v14299_v54  ;;  %v12731_v53 = vld [vmem:[%s25374_s10 + $0x6c0] sm:$0xf] }
 0x3ef   : > { %v16566_v2 = vld [vmem:[%s25374_s10 + $0x6dc] sm:$0xf0]  ;;  %v2639_v55 = vadd.f32 %v18744_v16, %v2610_v29 }
 0x3f0   : > { %v12732_v22 = vor.u32 %v16566_v2, %v12731_v53  ;;  %v14011_v31 = vld [vmem:[%s25374_s10 + $0x10c0] sm:$0xf]  ;;  %9062 = vmatpush.bf16.msra.mxu1 %v14300_v48 }
 0x3f1   : > { %v16886_v13 = vld [vmem:[%s25374_s10 + $0x10dc] sm:$0xf0]  ;;  %v2668_v45 = vadd.f32 %v18761_v26, %v2639_v55 }
 0x3f2   : > { %v14012_v7 = vor.u32 %v16886_v13, %v14011_v31  ;;  %v12443_v51 = vld [vmem:[%s25374_s10 + $0x480] sm:$0xf]  ;;  %8985 = vmatpush.bf16.msrb.mxu3 %v12732_v22  ;;  %v2643_v31 = vpop.f32.mrf.mxu0  ;;  %v2557_v13 = vadd.f32 %v18463_v59, %v2528_v0  ;;  %v2672_v59 = vpop.f32.mrf.mxu1 }
 0x3f3   : > { %v16494_v21 = vld [vmem:[%s25374_s10 + $0x49c] sm:$0xf0]  ;;  %v2690_v61 = vmul.f32 %v18801_v8, %v2668_v45 }
 0x3f4   : > { %v18836_v20 = vld [vmem:[%s25373_s9] ss:$0 sm:$0xff]  ;;  %v12444_v25 = vor.u32 %v16494_v21, %v12443_v51  ;;  %9050 = vmatpush.bf16.msrb.mxu0 %v14012_v7  ;;  %v2612_v54 = vpop.f32.mrf.mxu3 }
 0x3f5   : > { %v14267_v5 = vld [vmem:[%s25374_s10 + $0x12c0] sm:$0xf]  ;;  %v2701_v17 = vadd.f32 %v18836_v20, %v2689_v28  ;;  %v2702_v53 = vadd.f32 %v18836_v20, %v2690_v61  ;;  %v2613_v2 = vadd.f32 %v2612_v54, %v2584_v60 }
 0x3f6   : > { %v16950_v3 = vld [vmem:[%s25374_s10 + $0x12dc] sm:$0xf0]  ;;  %8973 = vmatpush.bf16.msrb.mxu2 %v12444_v25 }
 0x3f7   : > { %v14268_v46 = vor.u32 %v16950_v3, %v14267_v5  ;;  %v12699_v1 = vld [vmem:[%s25374_s10 + $0x680] sm:$0xf]  ;;  %v2709_v19 = vmax.f32 %v2701_v17, 0.0  ;;  %v2710_v51 = vmax.f32 %v2702_v53, 0.0  ;;  %v2642_v21 = vadd.f32 %v18824_v44, %v2613_v2 }
 0x3f8   : > { %v16558_v50 = vld [vmem:[%s25374_s10 + $0x69c] sm:$0xf0]  ;;  %v2504_v17 = vadd.f32 %v18448_v34, %v2475_v49 }
 0x3f9   : > { %v12700_v42 = vor.u32 %v16558_v50, %v12699_v1  ;;  %v13979_v62 = vld [vmem:[%s25374_s10 + $0x1080] sm:$0xf]  ;;  %9063 = vmatpush.bf16.msra.mxu1 %v14268_v46  ;;  %v2717_v3 = vmax.f32 %v2709_v19, %v2710_v51  ;;  %v2586_v1 = vadd.f32 %v2585_v41, %v2557_v13  ;;  %v2588_v50 = vpop.f32.mrf.mxu2  ;;  %v2671_v55 = vadd.f32 %v18844_v39, %v2642_v21 }
 0x3fa   : > { %v16878_v18 = vld [vmem:[%s25374_s10 + $0x109c] sm:$0xf0]  ;;  %v2646_v41 = vpop.f32.mrf.mxu0  ;;  %v2675_v39 = vpop.f32.mrf.mxu1 }
 0x3fb   : > { %v13980_v15 = vor.u32 %v16878_v18, %v13979_v62  ;;  %v12411_v38 = vld [vmem:[%s25374_s10 + $0x440] sm:$0xf]  ;;  %8986 = vmatpush.bf16.msrb.mxu3 %v12700_v42  ;;  %2721 = vst [vmem:[#allocation5] sm:$0xff] %v2717_v3 }
 0x3fc   : > { %v16486_v16 = vld [vmem:[%s25374_s10 + $0x45c] sm:$0xf0]  ;;  %v2614_v62 = vpop.f32.mrf.mxu3 }
 0x3fd   : > { %v12412_v36 = vor.u32 %v16486_v16, %v12411_v38  ;;  %v14235_v30 = vld [vmem:[%s25374_s10 + $0x1280] sm:$0xf]  ;;  %9051 = vmatpush.bf16.msrb.mxu0 %v13980_v15  ;;  %v2615_v15 = vadd.f32 %v2614_v62, %v2586_v1  ;;  %v2691_v38 = vmul.f32 %v18801_v8, %v2671_v55 }
 0x3fe   : > { %v16942_v56 = vld [vmem:[%s25374_s10 + $0x129c] sm:$0xf0] }
 0x3ff   : > { %v14236_v32 = vor.u32 %v16942_v56, %v14235_v30  ;;  %v12667_v4 = vld [vmem:[%s25374_s10 + $0x640] sm:$0xf]  ;;  %8974 = vmatpush.bf16.msrb.mxu2 %v12412_v36  ;;  %v2644_v16 = vadd.f32 %v2643_v31, %v2615_v15  ;;  %v2589_v36 = vadd.f32 %v2588_v50, %v18539_v10  ;;  %v2533_v30 = vadd.f32 %v18573_v14, %v2504_v17 }
 0x400   : > { %v16550_v26 = vld [vmem:[%s25374_s10 + $0x65c] sm:$0xf0]  ;;  %v2703_v56 = vadd.f32 %v18836_v20, %v2691_v38  ;;  %v2480_v10 = vadd.f32 %v18450_v52, %v18455_v58 }
 0x401   : > { %v12668_v6 = vor.u32 %v16550_v26, %v12667_v4  ;;  %v13947_v37 = vld [vmem:[%s25374_s10 + $0x1040] sm:$0xf]  ;;  %9064 = vmatpush.bf16.msra.mxu1 %v14236_v32  ;;  %v2673_v45 = vadd.f32 %v2672_v59, %v2644_v16  ;;  %v2590_v27 = vpop.f32.mrf.mxu2  ;;  %v2562_v26 = vadd.f32 %v18481_v12, %v2533_v30 }
 0x402   : > { %v16870_v23 = vld [vmem:[%s25374_s10 + $0x105c] sm:$0xf0]  ;;  %v2711_v60 = vmax.f32 %v2703_v56, 0.0  ;;  %v2677_v54 = vpop.f32.mrf.mxu1 }
 0x403   : > { %v13948_v9 = vor.u32 %v16870_v23, %v13947_v37  ;;  %v12379_v48 = vld [vmem:[%s25374_s10 + $0x400] sm:$0xf]  ;;  %8987 = vmatpush.bf16.msrb.mxu3 %v12668_v6  ;;  %v2692_v0 = vmul.f32 %v18801_v8, %v2673_v45  ;;  %v2648_v37 = vpop.f32.mrf.mxu0  ;;  %v2591_v14 = vadd.f32 %v2590_v27, %v2562_v26 }
 0x404   : > { %v16478_v63 = vld [vmem:[%s25374_s10 + $0x41c] sm:$0xf0]  ;;  %v2617_v32 = vpop.f32.mrf.mxu3 }
 0x405   : > { %v12380_v57 = vor.u32 %v16478_v63, %v12379_v48  ;;  %v14203_v22 = vld [vmem:[%s25374_s10 + $0x1240] sm:$0xf]  ;;  %9052 = vmatpush.bf16.msrb.mxu0 %v13948_v9  ;;  %v2704_v33 = vadd.f32 %v18836_v20, %v2692_v0  ;;  %v2618_v4 = vadd.f32 %v2617_v32, %v2589_v36  ;;  %v2509_v63 = vadd.f32 %v18553_v40, %v2480_v10 }
 0x406   : > { %v16934_v35 = vld [vmem:[%s25374_s10 + $0x125c] sm:$0xf0] }
 0x407   : > { %v12635_v24 = vld [vmem:[%s25374_s10 + $0x600] sm:$0xf]  ;;  %8975 = vmatpush.bf16.msrb.mxu2 %v12380_v57  ;;  %v14204_v28 = vor.u32 %v16934_v35, %v14203_v22  ;;  %v2712_v61 = vmax.f32 %v2704_v33, 0.0  ;;  %v2647_v34 = vadd.f32 %v2646_v41, %v2618_v4  ;;  %v2538_v2 = vadd.f32 %v18695_v47, %v2509_v63 }
 0x408   : > { %v16542_v7 = vld [vmem:[%s25374_s10 + $0x61c] sm:$0xf0] }
 0x409   : > { %v12636_v29 = vor.u32 %v16542_v7, %v12635_v24  ;;  %v13915_v25 = vld [vmem:[%s25374_s10 + $0x1000] sm:$0xf]  ;;  %9065 = vmatpush.bf16.msra.mxu1 %v14204_v28  ;;  %v2718_v6 = vmax.f32 %v2711_v60, %v2712_v61  ;;  %v2676_v23 = vadd.f32 %v2675_v39, %v2647_v34  ;;  %v2593_v19 = vpop.f32.mrf.mxu2 }
 0x40a   : > { %v16862_v5 = vld [vmem:[%s25374_s10 + $0x101c] sm:$0xf0]  ;;  %v2594_v13 = vadd.f32 %v2593_v19, %v18647_v11  ;;  %v2567_v11 = vadd.f32 %v18599_v43, %v2538_v2  ;;  %v2680_v55 = vpop.f32.mrf.mxu1 }
 0x40b   : > { %8988 = vmatpush.bf16.msrb.mxu3 %v12636_v29  ;;  %v13916_v46 = vor.u32 %v16862_v5, %v13915_v25  ;;  %v14171_v44 = vld [vmem:[%s25374_s10 + $0x1200] sm:$0xf]  ;;  %2722 = vst [vmem:[#allocation5 + $0x8] sm:$0xff] %v2718_v6  ;;  %v2693_v53 = vmul.f32 %v18801_v8, %v2676_v23  ;;  %v2651_v28 = vpop.f32.mrf.mxu0 }
 0x40c   : > { %v16926_v42 = vld [vmem:[%s25374_s10 + $0x121c] sm:$0xf0]  ;;  %v2619_v9 = vpop.f32.mrf.mxu3 }
 0x40d   : > { %9053 = vmatpush.bf16.msrb.mxu0 %v13916_v46  ;;  %v14172_v18 = vor.u32 %v16926_v42, %v14171_v44  ;;  %v2620_v48 = vadd.f32 %v2619_v9, %v2591_v14  ;;  %v13627_v22 = vld [vmem:[%s25374_s10 + $0xdc0] sm:$0xf]  ;;  %v2705_v47 = vadd.f32 %v18836_v20, %v2693_v53 }
 0x40e   : > { %v16790_v52 = vld [vmem:[%s25374_s10 + $0xddc] sm:$0xf0] }
 0x40f   : > { %9066 = vmatpush.bf16.msra.mxu1 %v14172_v18  ;;  %v2649_v12 = vadd.f32 %v2648_v37, %v2620_v48  ;;  %v13883_v40 = vld [vmem:[%s25374_s10 + $0xfc0] sm:$0xf]  ;;  %v13628_v59 = vor.u32 %v16790_v52, %v13627_v22  ;;  %v2713_v15 = vmax.f32 %v2705_v47, 0.0 }
 0x410   : > { %v16854_v7 = vld [vmem:[%s25374_s10 + $0xfdc] sm:$0xf0] }
 0x411   : > { %v2678_v57 = vadd.f32 %v2677_v54, %v2649_v12  ;;  %v15163_v51 = vld [vmem:[%s25374_s10 + $0x19c0] sm:$0xf]  ;;  %v13884_v18 = vor.u32 %v16854_v7, %v13883_v40  ;;  %v2595_v33 = vpop.f32.mrf.mxu2 }
 0x412   : > { %v2725_v58 = vld [vmem:[#allocation5] ss:$2 sm:$0xff]  ;;  %v2729_v31 = vld [vmem:[#allocation5 + $0x1] ss:$2 sm:$0xff]  ;;  %v2596_v34 = vadd.f32 %v2595_v33, %v2567_v11  ;;  %v2682_v7 = vpop.f32.mrf.mxu1 }
 0x413   : > { %v18949_v35 = vmax.f32 %v2725_v58, %v2729_v31  ;;  %v2694_v24 = vmul.f32 %v18801_v8, %v2678_v57  ;;  %v17174_v21 = vld [vmem:[%s25374_s10 + $0x19dc] sm:$0xf0]  ;;  %v2653_v52 = vpop.f32.mrf.mxu0 }
 0x414   : > { %v2622_v29 = vpop.f32.mrf.mxu3  ;;  %v13595_v25 = vld [vmem:[%s25374_s10 + $0xd80] sm:$0xf]  ;;  %v15164_v49 = vor.u32 %v17174_v21, %v15163_v51 }
 0x415   : > { %v16782_v5 = vld [vmem:[%s25374_s10 + $0xd9c] sm:$0xf0]  ;;  %v2706_v3 = vadd.f32 %v18836_v20, %v2694_v24  ;;  %v2623_v46 = vadd.f32 %v2622_v29, %v2594_v13  ;;  %v18972_v44 = vpack.c.bf16 %v18949_v35, %v18949_v35  ;;  %v2735_v1 = vrot.slane %v18949_v35, 1 }
 0x416   : > { %v15419_v43 = vld [vmem:[%s25374_s10 + $0x1bc0] sm:$0xf]  ;;  %v2741_v42 = vrot.slane %v18949_v35, 4  ;;  %v2743_v62 = vrot.slane %v18949_v35, 5  ;;  %v13596_v30 = vor.u32 %v16782_v5, %v13595_v25 }
 0x417   : > { %v17238_v50 = vld [vmem:[%s25374_s10 + $0x1bdc] sm:$0xf0]  ;;  %v2714_v38 = vmax.f32 %v2706_v3, 0.0  ;;  %v2652_v16 = vadd.f32 %v2651_v28, %v2623_v46  ;;  %8950 = vmatmul.bf16.vlgmr.msra.gmra.mxu2 %v18972_v44  ;;  %v18984_v41 = vpack.c.bf16 %v2735_v1, %v2735_v1  ;;  %v2737_v3 = vrot.slane %v18949_v35, 2 }
 0x418   : > { %v13851_v17 = vld [vmem:[%s25374_s10 + $0xf80] sm:$0xf]  ;;  %9020 = vmatpush.bf16.msra.mxu2 %v13628_v59  ;;  %v18992_v39 = vpack.c.bf16 %v2741_v42, %v2741_v42  ;;  %v18994_v36 = vpack.c.bf16 %v2743_v62, %v2743_v62  ;;  %v15420_v56 = vor.u32 %v17238_v50, %v15419_v43  ;;  %v2739_v42 = vrot.slane %v18949_v35, 3 }
 0x419   : > { %v16846_v45 = vld [vmem:[%s25374_s10 + $0xf9c] sm:$0xf0]  ;;  %v2719_v4 = vmax.f32 %v2713_v15, %v2714_v38  ;;  %8963 = vmatmul.bf16.vlgmr.msra.gmra.mxu3 %v18984_v41  ;;  %v2681_v6 = vadd.f32 %v2680_v55, %v2652_v16 }
 0x41a   : > { %v15131_v0 = vld [vmem:[%s25374_s10 + $0x1980] sm:$0xf]  ;;  %9002 = vmatmul.bf16.vlgmr.msra.gmra.mxu0 %v18992_v39  ;;  %9015 = vmatmul.bf16.vlgmr.msrb.gmra.mxu1 %v18994_v36  ;;  %v13852_v37 = vor.u32 %v16846_v45, %v13851_v17  ;;  %v19097_v33 = vpack.c.bf16 %v2739_v42, %v2739_v42 }
 0x41b   : > { %v17166_v32 = vld [vmem:[%s25374_s10 + $0x199c] sm:$0xf0]  ;;  %2723 = vst [vmem:[#allocation5 + $0x10] sm:$0xff] %v2719_v4  ;;  %9033 = vmatpush.bf16.msra.mxu3 %v13884_v18  ;;  %9098 = vmatpush.bf16.msra.mxu0 %v15164_v49  ;;  %v2695_v31 = vmul.f32 %v18801_v8, %v2681_v6 }
 0x41c   : > { %v13563_v27 = vld [vmem:[%s25374_s10 + $0xd40] sm:$0xf]  ;;  %v15132_v10 = vor.u32 %v17166_v32, %v15131_v0  ;;  %9021 = vmatpush.bf16.msra.mxu2 %v13596_v30  ;;  %v2624_v54 = vpop.f32.mrf.mxu3  ;;  %9111 = vmatpush.bf16.msrb.mxu1 %v15420_v56  ;;  %v19089_v30 = vpack.c.bf16 %v2737_v3, %v2737_v3  ;;  %v2745_v3 = vrot.slane %v18949_v35, 6 }
 0x41d   : > { %v16774_v26 = vld [vmem:[%s25374_s10 + $0xd5c] sm:$0xf0]  ;;  %v2625_v12 = vadd.f32 %v2624_v54, %v2596_v34  ;;  %v2707_v43 = vadd.f32 %v18836_v20, %v2695_v31 }
 0x41e   : > { %v15387_v60 = vld [vmem:[%s25374_s10 + $0x1b80] sm:$0xf]  ;;  %v13564_v9 = vor.u32 %v16774_v26, %v13563_v27 }
 0x41f   : > { %v17230_v61 = vld [vmem:[%s25374_s10 + $0x1b9c] sm:$0xf0]  ;;  %v2654_v40 = vadd.f32 %v2653_v52, %v2625_v12  ;;  %9034 = vmatpush.bf16.msra.mxu3 %v13852_v37  ;;  %9099 = vmatpush.bf16.msra.mxu0 %v15132_v10  ;;  %v2715_v32 = vmax.f32 %v2707_v43, 0.0 }
 0x420   : > { %v13819_v14 = vld [vmem:[%s25374_s10 + $0xf40] sm:$0xf]  ;;  %v15388_v48 = vor.u32 %v17230_v61, %v15387_v60  ;;  %9022 = vmatpush.bf16.msra.mxu2 %v13564_v9 }
 0x421   : > { %v16838_v23 = vld [vmem:[%s25374_s10 + $0xf5c] sm:$0xf0]  ;;  %v2683_v29 = vadd.f32 %v2682_v7, %v2654_v40 }
 0x422   : > { %v15099_v63 = vld [vmem:[%s25374_s10 + $0x1940] sm:$0xf]  ;;  %v13820_v58 = vor.u32 %v16838_v23, %v13819_v14  ;;  %9112 = vmatpush.bf16.msrb.mxu1 %v15388_v48 }
 0x423   : > { %v17158_v19 = vld [vmem:[%s25374_s10 + $0x195c] sm:$0xf0]  ;;  %v2696_v50 = vmul.f32 %v18801_v8, %v2683_v29 }
 0x424   : > { %v13531_v53 = vld [vmem:[%s25374_s10 + $0xd00] sm:$0xf]  ;;  %v15100_v13 = vor.u32 %v17158_v19, %v15099_v63  ;;  %9035 = vmatpush.bf16.msra.mxu3 %v13820_v58 }
 0x425   : > { %v16766_v2 = vld [vmem:[%s25374_s10 + $0xd1c] sm:$0xf0]  ;;  %v2708_v38 = vadd.f32 %v18836_v20, %v2696_v50 }
 0x426   : > { %v15355_v57 = vld [vmem:[%s25374_s10 + $0x1b40] sm:$0xf]  ;;  %v13532_v51 = vor.u32 %v16766_v2, %v13531_v53  ;;  %9100 = vmatpush.bf16.msra.mxu0 %v15100_v13 }
 0x427   : > { %v17222_v22 = vld [vmem:[%s25374_s10 + $0x1b5c] sm:$0xf0]  ;;  %v2716_v27 = vmax.f32 %v2708_v38, 0.0  ;;  %8976 = vmatmul.bf16.vlgmr.msrb.gmra.mxu2 %v19089_v30 }
 0x428   : > { %v13787_v47 = vld [vmem:[%s25374_s10 + $0xf00] sm:$0xf]  ;;  %v15356_v21 = vor.u32 %v17222_v22, %v15355_v57  ;;  %9023 = vmatpush.bf16.msra.mxu2 %v13532_v51 }
 0x429   : > { %v16830_v24 = vld [vmem:[%s25374_s10 + $0xf1c] sm:$0xf0]  ;;  %v2720_v37 = vmax.f32 %v2715_v32, %v2716_v27  ;;  %8989 = vmatmul.bf16.vlgmr.msrb.gmra.mxu3 %v19097_v33 }
 0x42a   : > { %v15067_v28 = vld [vmem:[%s25374_s10 + $0x1900] sm:$0xf]  ;;  %v13788_v5 = vor.u32 %v16830_v24, %v13787_v47  ;;  %9113 = vmatpush.bf16.msrb.mxu1 %v15356_v21 }
 0x42b   : > { %v17150_v11 = vld [vmem:[%s25374_s10 + $0x191c] sm:$0xf0]  ;;  %2724 = vst [vmem:[#allocation5 + $0x18] sm:$0xff] %v2720_v37 }
 0x42c   : > { %v15323_v59 = vld [vmem:[%s25374_s10 + $0x1b00] sm:$0xf]  ;;  %v15068_v55 = vor.u32 %v17150_v11, %v15067_v28  ;;  %9036 = vmatpush.bf16.msra.mxu3 %v13788_v5 }
 0x42d   : > { %v17214_v25 = vld [vmem:[%s25374_s10 + $0x1b1c] sm:$0xf0] }
 0x42e   : > { %v13499_v46 = vld [vmem:[%s25374_s10 + $0xcc0] sm:$0xf]  ;;  %v15324_v49 = vor.u32 %v17214_v25, %v15323_v59  ;;  %9101 = vmatpush.bf16.msra.mxu0 %v15068_v55 }
 0x42f   : > { %v16758_v1 = vld [vmem:[%s25374_s10 + $0xcdc] sm:$0xf0] }
 0x430   : > { %v13755_v62 = vld [vmem:[%s25374_s10 + $0xec0] sm:$0xf]  ;;  %v13500_v16 = vor.u32 %v16758_v1, %v13499_v46  ;;  %9114 = vmatpush.bf16.msrb.mxu1 %v15324_v49  ;;  %v16402_v46 = vld [vmem:[%s25374_s10 + $0x1c4] sm:$0xf] }
 0x431   : > { %v16822_v18 = vld [vmem:[%s25374_s10 + $0xedc] sm:$0xf0] }
 0x432   : > { %v15035_v8 = vld [vmem:[%s25374_s10 + $0x18c0] sm:$0xf]  ;;  %v13756_v56 = vor.u32 %v16822_v18, %v13755_v62  ;;  %9024 = vmatpush.bf16.msra.mxu2 %v13500_v16  ;;  %v2727_v43 = vld [vmem:[#allocation5 + $0x10] ss:$2 sm:$0xff]  ;;  %v2731_v50 = vld [vmem:[#allocation5 + $0x11] ss:$2 sm:$0xff] }
 0x433   : > { %v17142_v15 = vld [vmem:[%s25374_s10 + $0x18dc] sm:$0xf0]  ;;  %v19183_v62 = vmax.f32 %v2727_v43, %v2731_v50 }
 0x434   : > { %v15291_v17 = vld [vmem:[%s25374_s10 + $0x1ac0] sm:$0xf]  ;;  %v15036_v4 = vor.u32 %v17142_v15, %v15035_v8  ;;  %9037 = vmatpush.bf16.msra.mxu3 %v13756_v56  ;;  %v12093_v8 = vld [vmem:[%s25374_s10 + $0x1e0] sm:$0xf0] }
 0x435   : > { %v17206_v45 = vld [vmem:[%s25374_s10 + $0x1adc] sm:$0xf0]  ;;  %v19202_v56 = vpack.c.bf16 %v19183_v62, %v19183_v62  ;;  %v2750_v32 = vrot.slane %v19183_v62, 1 }
 0x436   : > { %v13467_v0 = vld [vmem:[%s25374_s10 + $0xc80] sm:$0xf]  ;;  %v15292_v60 = vor.u32 %v17206_v45, %v15291_v17  ;;  %9102 = vmatpush.bf16.msra.mxu0 %v15036_v4  ;;  %v16466_v17 = vld [vmem:[%s25374_s10 + $0x3c4] sm:$0xf] }
 0x437   : > { %v16750_v20 = vld [vmem:[%s25374_s10 + $0xc9c] sm:$0xf0]  ;;  %v12349_v45 = vld [vmem:[%s25374_s10 + $0x3e0] sm:$0xf0]  ;;  %9054 = vmatmul.bf16.vlgmr.msrb.gmra.mxu0 %v19202_v56 }
 0x438   : > { %v13723_v26 = vld [vmem:[%s25374_s10 + $0xe80] sm:$0xf]  ;;  %v13468_v10 = vor.u32 %v16750_v20, %v13467_v0  ;;  %9115 = vmatpush.bf16.msrb.mxu1 %v15292_v60  ;;  %v2747_v20 = vrot.slane %v18949_v35, 7  ;;  %v12096_v60 = vor.u32 %v16402_v46, %v12093_v8  ;;  %v19217_v35 = vpack.c.bf16 %v2750_v32, %v2750_v32 }
 0x439   : > { %v16814_v61 = vld [vmem:[%s25374_s10 + $0xe9c] sm:$0xf0] }
 0x43a   : > { %v15003_v34 = vld [vmem:[%s25374_s10 + $0x1880] sm:$0xf]  ;;  %v13724_v48 = vor.u32 %v16814_v61, %v13723_v26  ;;  %9025 = vmatpush.bf16.msra.mxu2 %v13468_v10  ;;  %v19212_v26 = vpack.c.bf16 %v2745_v3, %v2745_v3  ;;  %9067 = vmatmul.bf16.vlgmr.msra.gmra.mxu1 %v19217_v35  ;;  %v12253_v3 = vld [vmem:[%s25374_s10 + $0x320] sm:$0xf0] }
 0x43b   : > { %v17134_v6 = vld [vmem:[%s25374_s10 + $0x189c] sm:$0xf0] }
 0x43c   : > { %v15259_v14 = vld [vmem:[%s25374_s10 + $0x1a80] sm:$0xf]  ;;  %v15004_v63 = vor.u32 %v17134_v6, %v15003_v34  ;;  %9038 = vmatpush.bf16.msra.mxu3 %v13724_v48  ;;  %v16394_v34 = vld [vmem:[%s25374_s10 + $0x184] sm:$0xf] }
 0x43d   : > { %v17198_v23 = vld [vmem:[%s25374_s10 + $0x1a9c] sm:$0xf0]  ;;  %v12061_v6 = vld [vmem:[%s25374_s10 + $0x1a0] sm:$0xf0] }
 0x43e   : > { %v13435_v54 = vld [vmem:[%s25374_s10 + $0xc40] sm:$0xf]  ;;  %v15260_v53 = vor.u32 %v17198_v23, %v15259_v14  ;;  %9103 = vmatpush.bf16.msra.mxu0 %v15004_v63  ;;  %v12352_v14 = vor.u32 %v16466_v17, %v12349_v45  ;;  %v12317_v48 = vld [vmem:[%s25374_s10 + $0x3a0] sm:$0xf0]  ;;  %v2758_v45 = vrot.slane %v19183_v62, 5 }
 0x43f   : > { %v16742_v9 = vld [vmem:[%s25374_s10 + $0xc5c] sm:$0xf0]  ;;  %v12221_v17 = vld [vmem:[%s25374_s10 + $0x2e0] sm:$0xf0] }
 0x440   : > { %v13691_v19 = vld [vmem:[%s25374_s10 + $0xe40] sm:$0xf]  ;;  %v13436_v22 = vor.u32 %v16742_v9, %v13435_v54  ;;  %9116 = vmatpush.bf16.msrb.mxu1 %v15260_v53  ;;  %v16458_v54 = vld [vmem:[%s25374_s10 + $0x384] sm:$0xf]  ;;  %v19233_v9 = vpack.c.bf16 %v2747_v20, %v2747_v20  ;;  %v12064_v53 = vor.u32 %v16394_v34, %v12061_v6 }
 0x441   : > { %v16806_v12 = vld [vmem:[%s25374_s10 + $0xe5c] sm:$0xf0] }
 0x442   : > { %v14971_v2 = vld [vmem:[%s25374_s10 + $0x1840] sm:$0xf]  ;;  %v13692_v24 = vor.u32 %v16806_v12, %v13691_v19  ;;  %9026 = vmatpush.bf16.msra.mxu2 %v13436_v22 }
 0x443   : > { %v17126_v57 = vld [vmem:[%s25374_s10 + $0x185c] sm:$0xf0] }
 0x444   : > { %v13403_v52 = vld [vmem:[%s25374_s10 + $0xc00] sm:$0xf]  ;;  %v14972_v7 = vor.u32 %v17126_v57, %v14971_v2  ;;  %9039 = vmatpush.bf16.msra.mxu3 %v13692_v24  ;;  %v16386_v2 = vld [vmem:[%s25374_s10 + $0x144] sm:$0xf] }
 0x445   : > { %v15227_v58 = vld [vmem:[%s25374_s10 + $0x1a40] sm:$0xf]  ;;  %v12029_v57 = vld [vmem:[%s25374_s10 + $0x160] sm:$0xf0] }
 0x446   : > { %v17190_v31 = vld [vmem:[%s25374_s10 + $0x1a5c] sm:$0xf0]  ;;  %9104 = vmatpush.bf16.msra.mxu0 %v14972_v7  ;;  %v12032_v7 = vor.u32 %v16386_v2, %v12029_v57  ;;  %v11901_v2 = vld [vmem:[%s25374_s10 + $0x60] sm:$0xf0] }
 0x447   : > { %v16734_v40 = vld [vmem:[%s25374_s10 + $0xc1c] sm:$0xf0]  ;;  %v15228_v11 = vor.u32 %v17190_v31, %v15227_v58  ;;  %v12320_v58 = vor.u32 %v16458_v54, %v12317_v48  ;;  %v12189_v54 = vld [vmem:[%s25374_s10 + $0x2a0] sm:$0xf0] }
 0x448   : > { %v14651_v13 = vld [vmem:[%s25374_s10 + $0x15c0] sm:$0xf]  ;;  %v13404_v5 = vor.u32 %v16734_v40, %v13403_v52  ;;  %v16450_v40 = vld [vmem:[%s25374_s10 + $0x344] sm:$0xf] }
 0x449   : > { %v17046_v47 = vld [vmem:[%s25374_s10 + $0x15dc] sm:$0xf0]  ;;  %9117 = vmatpush.bf16.msrb.mxu1 %v15228_v11 }
 0x44a   : > { %v13659_v51 = vld [vmem:[%s25374_s10 + $0xe00] sm:$0xf]  ;;  %v14652_v55 = vor.u32 %v17046_v47, %v14651_v13  ;;  %9027 = vmatpush.bf16.msra.mxu2 %v13404_v5  ;;  %v12285_v13 = vld [vmem:[%s25374_s10 + $0x360] sm:$0xf0] }
 0x44b   : > { %v16798_v21 = vld [vmem:[%s25374_s10 + $0xe1c] sm:$0xf0]  ;;  %v16442_v5 = vld [vmem:[%s25374_s10 + $0x304] sm:$0xf] }
 0x44c   : > { %v14907_v28 = vld [vmem:[%s25374_s10 + $0x17c0] sm:$0xf]  ;;  %v13660_v18 = vor.u32 %v16798_v21, %v13659_v51  ;;  %v16378_v21 = vld [vmem:[%s25374_s10 + $0x104] sm:$0xf] }
 0x44d   : > { %v17110_v29 = vld [vmem:[%s25374_s10 + $0x17dc] sm:$0xf0]  ;;  %9028 = vmatmul.bf16.vlgmr.msra.gmra.mxu2 %v19212_v26 }
 0x44e   : > { %v14939_v59 = vld [vmem:[%s25374_s10 + $0x1800] sm:$0xf]  ;;  %v14908_v16 = vor.u32 %v17110_v29, %v14907_v28  ;;  %9072 = vmatpush.bf16.msrb.mxu2 %v14652_v55  ;;  %9040 = vmatpush.bf16.msra.mxu3 %v13660_v18  ;;  %v11997_v28 = vld [vmem:[%s25374_s10 + $0x120] sm:$0xf0]  ;;  %v2756_v18 = vrot.slane %v19183_v62, 4 }
 0x44f   : > { %v17118_v25 = vld [vmem:[%s25374_s10 + $0x181c] sm:$0xf0]  ;;  %v12000_v43 = vor.u32 %v16378_v21, %v11997_v28  ;;  %v16370_v55 = vld [vmem:[%s25374_s10 + $0xc4] sm:$0xf]  ;;  %v2752_v28 = vrot.slane %v19183_v62, 2 }
 0x450   : > { %v15195_v1 = vld [vmem:[%s25374_s10 + $0x1a00] sm:$0xf]  ;;  %v14940_v49 = vor.u32 %v17118_v25, %v14939_v59  ;;  %v12288_v59 = vor.u32 %v16450_v40, %v12285_v13  ;;  %v16418_v13 = vld [vmem:[%s25374_s10 + $0x244] sm:$0xf] }
 0x451   : > { %v17182_v42 = vld [vmem:[%s25374_s10 + $0x1a1c] sm:$0xf0]  ;;  %9041 = vmatmul.bf16.vlgmr.msra.gmra.mxu3 %v19233_v9 }
 0x452   : > { %v14619_v15 = vld [vmem:[%s25374_s10 + $0x1580] sm:$0xf]  ;;  %v15196_v0 = vor.u32 %v17182_v42, %v15195_v1  ;;  %9105 = vmatpush.bf16.msra.mxu0 %v14940_v49  ;;  %9085 = vmatpush.bf16.msrb.mxu3 %v14908_v16  ;;  %v11965_v42 = vld [vmem:[%s25374_s10 + $0xe0] sm:$0xf0] }
 0x453   : > { %v17038_v38 = vld [vmem:[%s25374_s10 + $0x159c] sm:$0xf0]  ;;  %v16434_v16 = vld [vmem:[%s25374_s10 + $0x2c4] sm:$0xf]  ;;  %v11968_v32 = vor.u32 %v16370_v55, %v11965_v42 }
 0x454   : > { %v14875_v27 = vld [vmem:[%s25374_s10 + $0x1780] sm:$0xf]  ;;  %v14620_v61 = vor.u32 %v17038_v38, %v14619_v15  ;;  %9118 = vmatpush.bf16.msrb.mxu1 %v15196_v0  ;;  %v12256_v15 = vor.u32 %v16442_v5, %v12253_v3  ;;  %v16346_v5 = vld [vmem:[%s25374_s10 + $0x4] sm:$0xf] }
 0x455   : > { %v17102_v4 = vld [vmem:[%s25374_s10 + $0x179c] sm:$0xf0]  ;;  %v11869_v3 = vld [vmem:[%s25374_s10 + $0x20] sm:$0xf0] }
 0x456   : > { %v14587_v37 = vld [vmem:[%s25374_s10 + $0x1540] sm:$0xf]  ;;  %v14876_v23 = vor.u32 %v17102_v4, %v14875_v27  ;;  %9150 = vmatpush.bf16.msrb.mxu0 %v12096_v60  ;;  %9073 = vmatpush.bf16.msrb.mxu2 %v14620_v61  ;;  %v16362_v4 = vld [vmem:[%s25374_s10 + $0x84] sm:$0xf]  ;;  %v19323_v60 = vpack.c.bf16 %v2756_v18, %v2756_v18 }
 0x457   : > { %v17030_v10 = vld [vmem:[%s25374_s10 + $0x155c] sm:$0xf0]  ;;  %v11933_v61 = vld [vmem:[%s25374_s10 + $0xa0] sm:$0xf0] }
 0x458   : > { %v14843_v63 = vld [vmem:[%s25374_s10 + $0x1740] sm:$0xf]  ;;  %v14588_v12 = vor.u32 %v17030_v10, %v14587_v37  ;;  %9163 = vmatpush.bf16.msra.mxu1 %v12352_v14  ;;  %9086 = vmatpush.bf16.msrb.mxu3 %v14876_v23  ;;  %v12224_v37 = vor.u32 %v16434_v16, %v12221_v17  ;;  %v16426_v14 = vld [vmem:[%s25374_s10 + $0x284] sm:$0xf]  ;;  %v19338_v23 = vpack.c.bf16 %v2758_v45, %v2758_v45 }
 0x459   : > { %v17094_v19 = vld [vmem:[%s25374_s10 + $0x175c] sm:$0xf0]  ;;  %9106 = vmatmul.bf16.vlgmr.msra.gmra.mxu0 %v19323_v60  ;;  %v13373_v16 = vld [vmem:[%s25374_s10 + $0xbe0] sm:$0xf0] }
 0x45a   : > { %v14555_v22 = vld [vmem:[%s25374_s10 + $0x1500] sm:$0xf]  ;;  %v14844_v31 = vor.u32 %v17094_v19, %v14843_v63  ;;  %9151 = vmatpush.bf16.msrb.mxu0 %v12064_v53  ;;  %9074 = vmatpush.bf16.msrb.mxu2 %v14588_v12  ;;  %v11936_v19 = vor.u32 %v16362_v4, %v11933_v61  ;;  %v16354_v12 = vld [vmem:[%s25374_s10 + $0x44] sm:$0xf] }
 0x45b   : > { %v17022_v52 = vld [vmem:[%s25374_s10 + $0x151c] sm:$0xf0]  ;;  %9119 = vmatmul.bf16.vlgmr.msrb.gmra.mxu1 %v19338_v23  ;;  %v16650_v4 = vld [vmem:[%s25374_s10 + $0x984] sm:$0xf] }
 0x45c   : > { %v14811_v47 = vld [vmem:[%s25374_s10 + $0x1700] sm:$0xf]  ;;  %v14556_v51 = vor.u32 %v17022_v52, %v14555_v22  ;;  %9164 = vmatpush.bf16.msra.mxu1 %v12320_v58  ;;  %9087 = vmatpush.bf16.msrb.mxu3 %v14844_v31  ;;  %v12192_v52 = vor.u32 %v16426_v14, %v12189_v54  ;;  %v13085_v61 = vld [vmem:[%s25374_s10 + $0x9a0] sm:$0xf0] }
 0x45d   : > { %v17086_v24 = vld [vmem:[%s25374_s10 + $0x171c] sm:$0xf0]  ;;  %v16714_v54 = vld [vmem:[%s25374_s10 + $0xb84] sm:$0xf] }
 0x45e   : > { %v14523_v11 = vld [vmem:[%s25374_s10 + $0x14c0] sm:$0xf]  ;;  %v14812_v25 = vor.u32 %v17086_v24, %v14811_v47  ;;  %9152 = vmatpush.bf16.msrb.mxu0 %v12032_v7  ;;  %9075 = vmatpush.bf16.msrb.mxu2 %v14556_v51  ;;  %v12157_v47 = vld [vmem:[%s25374_s10 + $0x260] sm:$0xf0]  ;;  %v11904_v51 = vor.u32 %v16354_v12, %v11901_v2 }
 0x45f   : > { %v17014_v29 = vld [vmem:[%s25374_s10 + $0x14dc] sm:$0xf0]  ;;  %v16642_v2 = vld [vmem:[%s25374_s10 + $0x944] sm:$0xf] }
 0x460   : > { %v14779_v46 = vld [vmem:[%s25374_s10 + $0x16c0] sm:$0xf]  ;;  %v14524_v50 = vor.u32 %v17014_v29, %v14523_v11  ;;  %9165 = vmatpush.bf16.msra.mxu1 %v12288_v59  ;;  %9088 = vmatpush.bf16.msrb.mxu3 %v14812_v25  ;;  %v2754_v59 = vrot.slane %v19183_v62, 3 }
 0x461   : > { %v17078_v1 = vld [vmem:[%s25374_s10 + $0x16dc] sm:$0xf0] }
 0x462   : > { %v14491_v49 = vld [vmem:[%s25374_s10 + $0x1480] sm:$0xf]  ;;  %v14780_v38 = vor.u32 %v17078_v1, %v14779_v46  ;;  %9153 = vmatpush.bf16.msrb.mxu0 %v12000_v43  ;;  %9076 = vmatpush.bf16.msrb.mxu2 %v14524_v50  ;;  %v16658_v46 = vld [vmem:[%s25374_s10 + $0x9c4] sm:$0xf]  ;;  %v12160_v1 = vor.u32 %v16418_v13, %v12157_v47 }
 0x463   : > { %v17006_v8 = vld [vmem:[%s25374_s10 + $0x149c] sm:$0xf0]  ;;  %v13117_v50 = vld [vmem:[%s25374_s10 + $0x9e0] sm:$0xf0] }
 0x464   : > { %v14747_v0 = vld [vmem:[%s25374_s10 + $0x1680] sm:$0xf]  ;;  %v14492_v27 = vor.u32 %v17006_v8, %v14491_v49  ;;  %9166 = vmatpush.bf16.msra.mxu1 %v12256_v15  ;;  %9089 = vmatpush.bf16.msrb.mxu3 %v14780_v38  ;;  %v16410_v49 = vld [vmem:[%s25374_s10 + $0x204] sm:$0xf]  ;;  %v11872_v38 = vor.u32 %v16346_v5, %v11869_v3 }
 0x465   : > { %v17070_v20 = vld [vmem:[%s25374_s10 + $0x169c] sm:$0xf0]  ;;  %v12125_v8 = vld [vmem:[%s25374_s10 + $0x220] sm:$0xf0] }
 0x466   : > { %v14459_v34 = vld [vmem:[%s25374_s10 + $0x1440] sm:$0xf]  ;;  %v14748_v10 = vor.u32 %v17070_v20, %v14747_v0  ;;  %9154 = vmatpush.bf16.msrb.mxu0 %v11968_v32  ;;  %9077 = vmatpush.bf16.msrb.mxu2 %v14492_v27  ;;  %v16722_v15 = vld [vmem:[%s25374_s10 + $0xbc4] sm:$0xf]  ;;  %v19424_v0 = vpack.c.bf16 %v2752_v28, %v2752_v28  ;;  %v13120_v20 = vor.u32 %v16658_v46, %v13117_v50 }
 0x467   : > { %v16998_v6 = vld [vmem:[%s25374_s10 + $0x145c] sm:$0xf0]  ;;  %v12128_v27 = vor.u32 %v16410_v49, %v12125_v8  ;;  %v13309_v13 = vld [vmem:[%s25374_s10 + $0xb60] sm:$0xf0] }
 0x468   : > { %v14715_v48 = vld [vmem:[%s25374_s10 + $0x1640] sm:$0xf]  ;;  %v14460_v53 = vor.u32 %v16998_v6, %v14459_v34  ;;  %9167 = vmatpush.bf16.msra.mxu1 %v12224_v37  ;;  %9090 = vmatpush.bf16.msrb.mxu3 %v14748_v10  ;;  %v19433_v34 = vpack.c.bf16 %v2754_v59, %v2754_v59  ;;  %v13376_v6 = vor.u32 %v16722_v15, %v13373_v16  ;;  %v13021_v28 = vld [vmem:[%s25374_s10 + $0x920] sm:$0xf0] }
 0x469   : > { %v17062_v63 = vld [vmem:[%s25374_s10 + $0x165c] sm:$0xf0]  ;;  %v16698_v5 = vld [vmem:[%s25374_s10 + $0xb04] sm:$0xf] }
 0x46a   : > { %v14427_v57 = vld [vmem:[%s25374_s10 + $0x1400] sm:$0xf]  ;;  %v14716_v58 = vor.u32 %v17062_v63, %v14715_v48  ;;  %9155 = vmatpush.bf16.msrb.mxu0 %v11936_v19  ;;  %9078 = vmatpush.bf16.msrb.mxu2 %v14460_v53  ;;  %v13341_v48 = vld [vmem:[%s25374_s10 + $0xba0] sm:$0xf0]  ;;  %v13088_v53 = vor.u32 %v16650_v4, %v13085_v61 }
 0x46b   : > { %v16990_v22 = vld [vmem:[%s25374_s10 + $0x141c] sm:$0xf0]  ;;  %v13277_v3 = vld [vmem:[%s25374_s10 + $0xb20] sm:$0xf0] }
 0x46c   : > { %v15675_v31 = vld [vmem:[%s25374_s10 + $0x1dc0] sm:$0xf]  ;;  %v14428_v21 = vor.u32 %v16990_v22, %v14427_v57  ;;  %9168 = vmatpush.bf16.msra.mxu1 %v12192_v52  ;;  %9091 = vmatpush.bf16.msrb.mxu3 %v14716_v58  ;;  %v13053_v57 = vld [vmem:[%s25374_s10 + $0x960] sm:$0xf0]  ;;  %v13344_v22 = vor.u32 %v16714_v54, %v13341_v48 }
 0x46d   : > { %v17302_v40 = vld [vmem:[%s25374_s10 + $0x1ddc] sm:$0xf0]  ;;  %v13245_v16 = vld [vmem:[%s25374_s10 + $0xae0] sm:$0xf0] }
 0x46e   : > { %v14683_v24 = vld [vmem:[%s25374_s10 + $0x1600] sm:$0xf]  ;;  %v15676_v25 = vor.u32 %v17302_v40, %v15675_v31  ;;  %9156 = vmatpush.bf16.msrb.mxu0 %v11904_v51  ;;  %9079 = vmatpush.bf16.msrb.mxu2 %v14428_v21  ;;  %v16706_v40 = vld [vmem:[%s25374_s10 + $0xb44] sm:$0xf] }
 0x46f   : > { %v17054_v7 = vld [vmem:[%s25374_s10 + $0x161c] sm:$0xf0]  ;;  %v16634_v21 = vld [vmem:[%s25374_s10 + $0x904] sm:$0xf] }
 0x470   : > { %v15931_v11 = vld [vmem:[%s25374_s10 + $0x1fc0] sm:$0xf]  ;;  %v14684_v43 = vor.u32 %v17054_v7, %v14683_v24  ;;  %9169 = vmatpush.bf16.msra.mxu1 %v12160_v1  ;;  %v13056_v7 = vor.u32 %v16642_v2, %v13053_v57  ;;  %v12957_v4 = vld [vmem:[%s25374_s10 + $0x8a0] sm:$0xf0] }
 0x471   : > { %v17366_v29 = vld [vmem:[%s25374_s10 + $0x1fdc] sm:$0xf0]  ;;  %9080 = vmatmul.bf16.vlgmr.msrb.gmra.mxu2 %v19424_v0  ;;  %v13213_v54 = vld [vmem:[%s25374_s10 + $0xaa0] sm:$0xf0] }
 0x472   : > { %v15643_v55 = vld [vmem:[%s25374_s10 + $0x1d80] sm:$0xf]  ;;  %v15932_v18 = vor.u32 %v17366_v29, %v15931_v11  ;;  %9124 = vmatpush.bf16.msra.mxu2 %v15676_v25  ;;  %9092 = vmatpush.bf16.msrb.mxu3 %v14684_v43  ;;  %v13312_v11 = vor.u32 %v16706_v40, %v13309_v13  ;;  %v13024_v43 = vor.u32 %v16634_v21, %v13021_v28  ;;  %v12925_v2 = vld [vmem:[%s25374_s10 + $0x860] sm:$0xf0] }
 0x473   : > { %v17294_v42 = vld [vmem:[%s25374_s10 + $0x1d9c] sm:$0xf0]  ;;  %9157 = vmatpush.bf16.msrb.mxu0 %v11872_v38  ;;  %v16690_v38 = vld [vmem:[%s25374_s10 + $0xac4] sm:$0xf] }
 0x474   : > { %v15899_v17 = vld [vmem:[%s25374_s10 + $0x1f80] sm:$0xf]  ;;  %v15644_v32 = vor.u32 %v17294_v42, %v15643_v55  ;;  %9170 = vmatpush.bf16.msra.mxu1 %v12128_v27  ;;  %v16626_v55 = vld [vmem:[%s25374_s10 + $0x8c4] sm:$0xf]  ;;  %v13248_v61 = vor.u32 %v16690_v38, %v13245_v16 }
 0x475   : > { %v17358_v45 = vld [vmem:[%s25374_s10 + $0x1f9c] sm:$0xf0]  ;;  %9093 = vmatmul.bf16.vlgmr.msrb.gmra.mxu3 %v19433_v34  ;;  %v12989_v42 = vld [vmem:[%s25374_s10 + $0x8e0] sm:$0xf0] }
 0x476   : > { %9137 = vmatpush.bf16.msra.mxu3 %v15932_v18  ;;  %v15900_v37 = vor.u32 %v17358_v45, %v15899_v17  ;;  %v15611_v10 = vld [vmem:[%s25374_s10 + $0x1d40] sm:$0xf]  ;;  %9125 = vmatpush.bf16.msra.mxu2 %v15644_v32  ;;  %v13280_v18 = vor.u32 %v16698_v5, %v13277_v3  ;;  %v16618_v27 = vld [vmem:[%s25374_s10 + $0x884] sm:$0xf] }
 0x477   : > { %v17286_v14 = vld [vmem:[%s25374_s10 + $0x1d5c] sm:$0xf0]  ;;  %9202 = vmatpush.bf16.msra.mxu0 %v13120_v20  ;;  %9171 = vmatmul.bf16.vlgmr.msra.gmra.mxu1 %v18984_v41  ;;  %v12992_v20 = vor.u32 %v16626_v55, %v12989_v42  ;;  %v12605_v40 = vld [vmem:[%s25374_s10 + $0x5e0] sm:$0xf0] }
 0x478   : > { %v15867_v63 = vld [vmem:[%s25374_s10 + $0x1f40] sm:$0xf]  ;;  %v15612_v12 = vor.u32 %v17286_v14, %v15611_v10  ;;  %9215 = vmatpush.bf16.msrb.mxu1 %v13376_v6  ;;  %9158 = vmatmul.bf16.vlgmr.msrb.gmra.mxu0 %v18972_v44  ;;  %v16682_v14 = vld [vmem:[%s25374_s10 + $0xa84] sm:$0xf] }
 0x479   : > { %v17350_v19 = vld [vmem:[%s25374_s10 + $0x1f5c] sm:$0xf0]  ;;  %v13216_v57 = vor.u32 %v16682_v14, %v13213_v54  ;;  %v16674_v13 = vld [vmem:[%s25374_s10 + $0xa44] sm:$0xf] }
 0x47a   : > { %9138 = vmatpush.bf16.msra.mxu3 %v15900_v37  ;;  %v15868_v52 = vor.u32 %v17350_v19, %v15867_v63  ;;  %v15579_v58 = vld [vmem:[%s25374_s10 + $0x1d00] sm:$0xf]  ;;  %9126 = vmatpush.bf16.msra.mxu2 %v15612_v12  ;;  %v12960_v19 = vor.u32 %v16618_v27, %v12957_v4  ;;  %v16610_v12 = vld [vmem:[%s25374_s10 + $0x844] sm:$0xf] }
 0x47b   : > { %v17278_v31 = vld [vmem:[%s25374_s10 + $0x1d1c] sm:$0xf0]  ;;  %9203 = vmatpush.bf16.msra.mxu0 %v13088_v53  ;;  %v16594_v28 = vld [vmem:[%s25374_s10 + $0x7c4] sm:$0xf] }
 0x47c   : > { %v15835_v47 = vld [vmem:[%s25374_s10 + $0x1f00] sm:$0xf]  ;;  %v15580_v51 = vor.u32 %v17278_v31, %v15579_v58  ;;  %9216 = vmatpush.bf16.msrb.mxu1 %v13344_v22  ;;  %v16530_v31 = vld [vmem:[%s25374_s10 + $0x5c4] sm:$0xf] }
 0x47d   : > { %v17342_v24 = vld [vmem:[%s25374_s10 + $0x1f1c] sm:$0xf0]  ;;  %v16602_v5 = vld [vmem:[%s25374_s10 + $0x804] sm:$0xf] }
 0x47e   : > { %9139 = vmatpush.bf16.msra.mxu3 %v15868_v52  ;;  %v15836_v29 = vor.u32 %v17342_v24, %v15835_v47  ;;  %v15547_v59 = vld [vmem:[%s25374_s10 + $0x1cc0] sm:$0xf]  ;;  %9127 = vmatpush.bf16.msra.mxu2 %v15580_v51  ;;  %v13181_v47 = vld [vmem:[%s25374_s10 + $0xa60] sm:$0xf0]  ;;  %v12928_v24 = vor.u32 %v16610_v12, %v12925_v2 }
 0x47f   : > { %v17270_v25 = vld [vmem:[%s25374_s10 + $0x1cdc] sm:$0xf0]  ;;  %9204 = vmatpush.bf16.msra.mxu0 %v13056_v7  ;;  %v12893_v3 = vld [vmem:[%s25374_s10 + $0x820] sm:$0xf0] }
 0x480   : > { %v15803_v46 = vld [vmem:[%s25374_s10 + $0x1ec0] sm:$0xf]  ;;  %v15548_v50 = vor.u32 %v17270_v25, %v15547_v59  ;;  %9217 = vmatpush.bf16.msrb.mxu1 %v13312_v11  ;;  %v12861_v11 = vld [vmem:[%s25374_s10 + $0x7e0] sm:$0xf0]  ;;  %v13184_v59 = vor.u32 %v16674_v13, %v13181_v47  ;;  %v2760_v25 = vrot.slane %v19183_v62, 6 }
 0x481   : > { %v17334_v1 = vld [vmem:[%s25374_s10 + $0x1edc] sm:$0xf0]  ;;  %v16522_v55 = vld [vmem:[%s25374_s10 + $0x584] sm:$0xf]  ;;  %v12864_v42 = vor.u32 %v16594_v28, %v12861_v11 }
 0x482   : > { %9140 = vmatpush.bf16.msra.mxu3 %v15836_v29  ;;  %v15804_v49 = vor.u32 %v17334_v1, %v15803_v46  ;;  %v15515_v8 = vld [vmem:[%s25374_s10 + $0x1c80] sm:$0xf]  ;;  %9128 = vmatpush.bf16.msra.mxu2 %v15548_v50  ;;  %v12608_v29 = vor.u32 %v16530_v31, %v12605_v40  ;;  %v2762_v46 = vrot.slane %v19183_v62, 7  ;;  %v14141_v50 = vld [vmem:[%s25374_s10 + $0x11e0] sm:$0xf0]  ;;  %v19620_v16 = vpack.c.bf16 %v2760_v25, %v2760_v25 }
 0x483   : > { %v17262_v15 = vld [vmem:[%s25374_s10 + $0x1c9c] sm:$0xf0]  ;;  %9205 = vmatpush.bf16.msra.mxu0 %v13024_v43  ;;  %v16914_v43 = vld [vmem:[%s25374_s10 + $0x11c4] sm:$0xf] }
 0x484   : > { %v15771_v17 = vld [vmem:[%s25374_s10 + $0x1e80] sm:$0xf]  ;;  %v15516_v32 = vor.u32 %v17262_v15, %v15515_v8  ;;  %9218 = vmatpush.bf16.msrb.mxu1 %v13280_v18  ;;  %v12573_v18 = vld [vmem:[%s25374_s10 + $0x5a0] sm:$0xf0]  ;;  %v12896_v8 = vor.u32 %v16602_v5, %v12893_v3 }
 0x485   : > { %v17326_v45 = vld [vmem:[%s25374_s10 + $0x1e9c] sm:$0xf0]  ;;  %v16666_v62 = vld [vmem:[%s25374_s10 + $0xa04] sm:$0xf] }
 0x486   : > { %9141 = vmatpush.bf16.msra.mxu3 %v15804_v49  ;;  %v15772_v6 = vor.u32 %v17326_v45, %v15771_v17  ;;  %v15483_v37 = vld [vmem:[%s25374_s10 + $0x1c40] sm:$0xf]  ;;  %9129 = vmatpush.bf16.msra.mxu2 %v15516_v32  ;;  %v13149_v49 = vld [vmem:[%s25374_s10 + $0xa20] sm:$0xf0]  ;;  %v14144_v17 = vor.u32 %v16914_v43, %v14141_v50  ;;  %v12576_v32 = vor.u32 %v16522_v55, %v12573_v18 }
 0x487   : > { %v17254_v10 = vld [vmem:[%s25374_s10 + $0x1c5c] sm:$0xf0]  ;;  %9206 = vmatpush.bf16.msra.mxu0 %v12992_v20  ;;  %v16978_v15 = vld [vmem:[%s25374_s10 + $0x13c4] sm:$0xf]  ;;  %v13152_v27 = vor.u32 %v16666_v62, %v13149_v49 }
 0x488   : > { %v15739_v48 = vld [vmem:[%s25374_s10 + $0x1e40] sm:$0xf]  ;;  %v15484_v53 = vor.u32 %v17254_v10, %v15483_v37  ;;  %9219 = vmatpush.bf16.msrb.mxu1 %v13248_v61  ;;  %v14397_v38 = vld [vmem:[%s25374_s10 + $0x13e0] sm:$0xf0] }
 0x489   : > { %v17318_v63 = vld [vmem:[%s25374_s10 + $0x1e5c] sm:$0xf0]  ;;  %v16586_v45 = vld [vmem:[%s25374_s10 + $0x784] sm:$0xf]  ;;  %v14400_v37 = vor.u32 %v16978_v15, %v14397_v38 }
 0x48a   : > { %9142 = vmatpush.bf16.msra.mxu3 %v15772_v6  ;;  %v15740_v22 = vor.u32 %v17318_v63, %v15739_v48  ;;  %v15451_v52 = vld [vmem:[%s25374_s10 + $0x1c00] sm:$0xf]  ;;  %9130 = vmatpush.bf16.msra.mxu2 %v15484_v53  ;;  %v12829_v20 = vld [vmem:[%s25374_s10 + $0x7a0] sm:$0xf0]  ;;  %v19635_v6 = vpack.c.bf16 %v2762_v46, %v2762_v46 }
 0x48b   : > { %v17246_v58 = vld [vmem:[%s25374_s10 + $0x1c1c] sm:$0xf0]  ;;  %9207 = vmatpush.bf16.msra.mxu0 %v12960_v19  ;;  %v16906_v4 = vld [vmem:[%s25374_s10 + $0x1184] sm:$0xf]  ;;  %v12832_v54 = vor.u32 %v16586_v45, %v12829_v20 }
 0x48c   : > { %v15707_v7 = vld [vmem:[%s25374_s10 + $0x1e00] sm:$0xf]  ;;  %v15452_v21 = vor.u32 %v17246_v58, %v15451_v52  ;;  %9220 = vmatpush.bf16.msrb.mxu1 %v13216_v57  ;;  %v14109_v61 = vld [vmem:[%s25374_s10 + $0x11a0] sm:$0xf0] }
 0x48d   : > { %v17310_v51 = vld [vmem:[%s25374_s10 + $0x1e1c] sm:$0xf0]  ;;  %v16514_v10 = vld [vmem:[%s25374_s10 + $0x544] sm:$0xf]  ;;  %v14112_v19 = vor.u32 %v16906_v4, %v14109_v61 }
 0x48e   : > { %9143 = vmatpush.bf16.msra.mxu3 %v15740_v22  ;;  %v15708_v1 = vor.u32 %v17310_v51, %v15707_v7  ;;  %9131 = vmatpush.bf16.msra.mxu2 %v15452_v21  ;;  %v12541_v14 = vld [vmem:[%s25374_s10 + $0x560] sm:$0xf0] }
 0x48f   : > { %9208 = vmatpush.bf16.msra.mxu0 %v12928_v24  ;;  %v16970_v48 = vld [vmem:[%s25374_s10 + $0x1384] sm:$0xf]  ;;  %v12544_v2 = vor.u32 %v16514_v10, %v12541_v14 }
 0x490   : > { %9221 = vmatpush.bf16.msrb.mxu1 %v13184_v59  ;;  %v14365_v63 = vld [vmem:[%s25374_s10 + $0x13a0] sm:$0xf0] }
 0x491   : > { %9132 = vmatmul.bf16.vlgmr.msra.gmra.mxu2 %v19620_v16  ;;  %v16578_v53 = vld [vmem:[%s25374_s10 + $0x744] sm:$0xf]  ;;  %v14368_v52 = vor.u32 %v16970_v48, %v14365_v63 }
 0x492   : > { %9176 = vmatpush.bf16.msrb.mxu2 %v12608_v29  ;;  %9144 = vmatpush.bf16.msra.mxu3 %v15708_v1  ;;  %v12797_v12 = vld [vmem:[%s25374_s10 + $0x760] sm:$0xf0] }
 0x493   : > { %9209 = vmatpush.bf16.msra.mxu0 %v12896_v8  ;;  %v16898_v57 = vld [vmem:[%s25374_s10 + $0x1144] sm:$0xf]  ;;  %v12800_v40 = vor.u32 %v16578_v53, %v12797_v12 }
 0x494   : > { %9222 = vmatpush.bf16.msrb.mxu1 %v13152_v27  ;;  %v14077_v22 = vld [vmem:[%s25374_s10 + $0x1160] sm:$0xf0] }
 0x495   : > { %9145 = vmatmul.bf16.vlgmr.msra.gmra.mxu3 %v19635_v6  ;;  %v16506_v58 = vld [vmem:[%s25374_s10 + $0x504] sm:$0xf]  ;;  %v14080_v24 = vor.u32 %v16898_v57, %v14077_v22 }
 0x496   : > { %9189 = vmatpush.bf16.msrb.mxu3 %v12864_v42  ;;  %9177 = vmatpush.bf16.msrb.mxu2 %v12576_v32  ;;  %v12509_v31 = vld [vmem:[%s25374_s10 + $0x520] sm:$0xf0] }
 0x497   : > { %9254 = vmatpush.bf16.msrb.mxu0 %v14144_v17  ;;  %v16962_v13 = vld [vmem:[%s25374_s10 + $0x1344] sm:$0xf]  ;;  %9223 = vmatmul.bf16.vlgmr.msrb.gmra.mxu1 %v18994_v36  ;;  %v12512_v21 = vor.u32 %v16506_v58, %v12509_v31 }
 0x498   : > { %9210 = vmatmul.bf16.vlgmr.msra.gmra.mxu0 %v18992_v39  ;;  %9267 = vmatpush.bf16.msra.mxu1 %v14400_v37  ;;  %v14333_v47 = vld [vmem:[%s25374_s10 + $0x1360] sm:$0xf0] }
 0x499   : > { %v16570_v7 = vld [vmem:[%s25374_s10 + $0x704] sm:$0xf]  ;;  %v14336_v29 = vor.u32 %v16962_v13, %v14333_v47 }
 0x49a   : > { %9190 = vmatpush.bf16.msrb.mxu3 %v12832_v54  ;;  %v12765_v51 = vld [vmem:[%s25374_s10 + $0x720] sm:$0xf0]  ;;  %9178 = vmatpush.bf16.msrb.mxu2 %v12544_v2 }
 0x49b   : > { %9255 = vmatpush.bf16.msrb.mxu0 %v14112_v19  ;;  %v16890_v28 = vld [vmem:[%s25374_s10 + $0x1104] sm:$0xf]  ;;  %v12768_v5 = vor.u32 %v16570_v7, %v12765_v51 }
 0x49c   : > { %v14045_v11 = vld [vmem:[%s25374_s10 + $0x1120] sm:$0xf0]  ;;  %9268 = vmatpush.bf16.msra.mxu1 %v14368_v52 }
 0x49d   : > { %v16498_v59 = vld [vmem:[%s25374_s10 + $0x4c4] sm:$0xf]  ;;  %v14048_v1 = vor.u32 %v16890_v28, %v14045_v11 }
 0x49e   : > { %v12477_v25 = vld [vmem:[%s25374_s10 + $0x4e0] sm:$0xf0]  ;;  %9191 = vmatpush.bf16.msrb.mxu3 %v12800_v40  ;;  %9179 = vmatpush.bf16.msrb.mxu2 %v12512_v21 }
 0x49f   : > { %v16954_v3 = vld [vmem:[%s25374_s10 + $0x1304] sm:$0xf]  ;;  %9256 = vmatpush.bf16.msrb.mxu0 %v14080_v24  ;;  %v12480_v55 = vor.u32 %v16498_v59, %v12477_v25 }
 0x4a0   : > { %v14301_v46 = vld [vmem:[%s25374_s10 + $0x1320] sm:$0xf0]  ;;  %9269 = vmatpush.bf16.msra.mxu1 %v14336_v29 }
 0x4a1   : > { %v16562_v43 = vld [vmem:[%s25374_s10 + $0x6c4] sm:$0xf]  ;;  %v14304_v62 = vor.u32 %v16954_v3, %v14301_v46 }
 0x4a2   : > { %v12733_v50 = vld [vmem:[%s25374_s10 + $0x6e0] sm:$0xf0]  ;;  %9192 = vmatpush.bf16.msrb.mxu3 %v12768_v5  ;;  %9180 = vmatpush.bf16.msrb.mxu2 %v12480_v55 }
 0x4a3   : > { %v16882_v42 = vld [vmem:[%s25374_s10 + $0x10c4] sm:$0xf]  ;;  %v12736_v15 = vor.u32 %v16562_v43, %v12733_v50  ;;  %9257 = vmatpush.bf16.msrb.mxu0 %v14048_v1 }
 0x4a4   : > { %v14013_v18 = vld [vmem:[%s25374_s10 + $0x10e0] sm:$0xf0]  ;;  %9270 = vmatpush.bf16.msra.mxu1 %v14304_v62 }
 0x4a5   : > { %v16490_v49 = vld [vmem:[%s25374_s10 + $0x484] sm:$0xf]  ;;  %v14016_v45 = vor.u32 %v16882_v42, %v14013_v18 }
 0x4a6   : > { %v12445_v8 = vld [vmem:[%s25374_s10 + $0x4a0] sm:$0xf0]  ;;  %9193 = vmatpush.bf16.msrb.mxu3 %v12736_v15 }
 0x4a7   : > { %v16946_v38 = vld [vmem:[%s25374_s10 + $0x12c4] sm:$0xf]  ;;  %v12448_v27 = vor.u32 %v16490_v49, %v12445_v8  ;;  %9258 = vmatpush.bf16.msrb.mxu0 %v14016_v45 }
 0x4a8   : > { %v14269_v17 = vld [vmem:[%s25374_s10 + $0x12e0] sm:$0xf0] }
 0x4a9   : > { %v16554_v20 = vld [vmem:[%s25374_s10 + $0x684] sm:$0xf]  ;;  %v14272_v37 = vor.u32 %v16946_v38, %v14269_v17  ;;  %9181 = vmatpush.bf16.msrb.mxu2 %v12448_v27 }
 0x4aa   : > { %v12701_v32 = vld [vmem:[%s25374_s10 + $0x6a0] sm:$0xf0] }
 0x4ab   : > { %v16874_v4 = vld [vmem:[%s25374_s10 + $0x1084] sm:$0xf]  ;;  %v12704_v54 = vor.u32 %v16554_v20, %v12701_v32  ;;  %9271 = vmatpush.bf16.msra.mxu1 %v14272_v37 }
 0x4ac   : > { %v13981_v61 = vld [vmem:[%s25374_s10 + $0x10a0] sm:$0xf0] }
 0x4ad   : > { %v16482_v10 = vld [vmem:[%s25374_s10 + $0x444] sm:$0xf]  ;;  %v13984_v19 = vor.u32 %v16874_v4, %v13981_v61  ;;  %9194 = vmatpush.bf16.msrb.mxu3 %v12704_v54 }
 0x4ae   : > { %v12413_v14 = vld [vmem:[%s25374_s10 + $0x460] sm:$0xf0] }
 0x4af   : > { %v16938_v48 = vld [vmem:[%s25374_s10 + $0x1284] sm:$0xf]  ;;  %v12416_v2 = vor.u32 %v16482_v10, %v12413_v14  ;;  %9259 = vmatpush.bf16.msrb.mxu0 %v13984_v19 }
 0x4b0   : > { %v14237_v63 = vld [vmem:[%s25374_s10 + $0x12a0] sm:$0xf0] }
 0x4b1   : > { %v16546_v53 = vld [vmem:[%s25374_s10 + $0x644] sm:$0xf]  ;;  %v14240_v52 = vor.u32 %v16938_v48, %v14237_v63  ;;  %9182 = vmatpush.bf16.msrb.mxu2 %v12416_v2 }
 0x4b2   : > { %v12669_v12 = vld [vmem:[%s25374_s10 + $0x660] sm:$0xf0] }
 0x4b3   : > { %v16866_v57 = vld [vmem:[%s25374_s10 + $0x1044] sm:$0xf]  ;;  %v12672_v13 = vor.u32 %v16546_v53, %v12669_v12  ;;  %9272 = vmatpush.bf16.msra.mxu1 %v14240_v52 }
 0x4b4   : > { %v13949_v22 = vld [vmem:[%s25374_s10 + $0x1060] sm:$0xf0] }
 0x4b5   : > { %v16474_v58 = vld [vmem:[%s25374_s10 + $0x404] sm:$0xf]  ;;  %v13952_v51 = vor.u32 %v16866_v57, %v13949_v22  ;;  %9195 = vmatpush.bf16.msrb.mxu3 %v12672_v13 }
 0x4b6   : > { %v12381_v31 = vld [vmem:[%s25374_s10 + $0x420] sm:$0xf0] }
 0x4b7   : > { %v16786_v40 = vld [vmem:[%s25374_s10 + $0xdc4] sm:$0xf]  ;;  %v12384_v11 = vor.u32 %v16474_v58, %v12381_v31  ;;  %9260 = vmatpush.bf16.msrb.mxu0 %v13952_v51  ;;  %v19879_v51 = vpop.f32.mrf.mxu1 }
 0x4b8   : > { %v13629_v47 = vld [vmem:[%s25374_s10 + $0xde0] sm:$0xf0] }
 0x4b9   : > { %v16930_v24 = vld [vmem:[%s25374_s10 + $0x1244] sm:$0xf]  ;;  %v13632_v25 = vor.u32 %v16786_v40, %v13629_v47  ;;  %9183 = vmatpush.bf16.msrb.mxu2 %v12384_v11 }
 0x4ba   : > { %v14205_v7 = vld [vmem:[%s25374_s10 + $0x1260] sm:$0xf0] }
 0x4bb   : > { %v16538_v21 = vld [vmem:[%s25374_s10 + $0x604] sm:$0xf]  ;;  %v14208_v5 = vor.u32 %v16930_v24, %v14205_v7  ;;  %v19877_v7 = vpop.f32.mrf.mxu0 }
 0x4bc   : > { %v12637_v28 = vld [vmem:[%s25374_s10 + $0x620] sm:$0xf0]  ;;  %9184 = vmatmul.bf16.vlgmr.msrb.gmra.mxu2 %v19089_v30 }
 0x4bd   : > { %v16850_v29 = vld [vmem:[%s25374_s10 + $0xfc4] sm:$0xf]  ;;  %v12640_v1 = vor.u32 %v16538_v21, %v12637_v28  ;;  %9228 = vmatpush.bf16.msra.mxu2 %v13632_v25  ;;  %9273 = vmatpush.bf16.msra.mxu1 %v14208_v5 }
 0x4be   : > { %v13885_v59 = vld [vmem:[%s25374_s10 + $0xfe0] sm:$0xf0] }
 0x4bf   : > { %v16858_v3 = vld [vmem:[%s25374_s10 + $0x1004] sm:$0xf]  ;;  %v13888_v42 = vor.u32 %v16850_v29, %v13885_v59  ;;  %9196 = vmatpush.bf16.msrb.mxu3 %v12640_v1 }
 0x4c0   : > { %v13917_v46 = vld [vmem:[%s25374_s10 + $0x1020] sm:$0xf0] }
 0x4c1   : > { %v17170_v43 = vld [vmem:[%s25374_s10 + $0x19c4] sm:$0xf]  ;;  %v13920_v8 = vor.u32 %v16858_v3, %v13917_v46 }
 0x4c2   : > { %v15165_v50 = vld [vmem:[%s25374_s10 + $0x19e0] sm:$0xf0]  ;;  %9197 = vmatmul.bf16.vlgmr.msrb.gmra.mxu3 %v19097_v33 }
 0x4c3   : > { %v16778_v55 = vld [vmem:[%s25374_s10 + $0xd84] sm:$0xf]  ;;  %v15168_v17 = vor.u32 %v17170_v43, %v15165_v50  ;;  %9241 = vmatpush.bf16.msra.mxu3 %v13888_v42  ;;  %9261 = vmatpush.bf16.msrb.mxu0 %v13920_v8  ;;  %v8951_v50 = vpop.f32.mrf.mxu2 }
 0x4c4   : > { %v13597_v18 = vld [vmem:[%s25374_s10 + $0xda0] sm:$0xf0] }
 0x4c5   : > { %v16922_v62 = vld [vmem:[%s25374_s10 + $0x1204] sm:$0xf]  ;;  %v13600_v32 = vor.u32 %v16778_v55, %v13597_v18 }
 0x4c6   : > { %v14173_v49 = vld [vmem:[%s25374_s10 + $0x1220] sm:$0xf0]  ;;  %9262 = vmatmul.bf16.vlgmr.msrb.gmra.mxu0 %v19202_v56 }
 0x4c7   : > { %v17234_v15 = vld [vmem:[%s25374_s10 + $0x1bc4] sm:$0xf]  ;;  %v14176_v27 = vor.u32 %v16922_v62, %v14173_v49  ;;  %9306 = vmatpush.bf16.msra.mxu0 %v15168_v17  ;;  %9229 = vmatpush.bf16.msra.mxu2 %v13600_v32 }
 0x4c8   : > { %v15421_v38 = vld [vmem:[%s25374_s10 + $0x1be0] sm:$0xf0] }
 0x4c9   : > { %v16842_v45 = vld [vmem:[%s25374_s10 + $0xf84] sm:$0xf]  ;;  %v15424_v37 = vor.u32 %v17234_v15, %v15421_v38  ;;  %9274 = vmatpush.bf16.msra.mxu1 %v14176_v27  ;;  %v8964_v38 = vpop.f32.mrf.mxu3 }
 0x4ca   : > { %v13853_v20 = vld [vmem:[%s25374_s10 + $0xfa0] sm:$0xf0] }
 0x4cb   : > { %v17162_v4 = vld [vmem:[%s25374_s10 + $0x1984] sm:$0xf]  ;;  %v13856_v54 = vor.u32 %v16842_v45, %v13853_v20 }
 0x4cc   : > { %v15133_v61 = vld [vmem:[%s25374_s10 + $0x19a0] sm:$0xf0]  ;;  %9275 = vmatmul.bf16.vlgmr.msra.gmra.mxu1 %v19217_v35 }
 0x4cd   : > { %v16770_v10 = vld [vmem:[%s25374_s10 + $0xd44] sm:$0xf]  ;;  %v15136_v19 = vor.u32 %v17162_v4, %v15133_v61  ;;  %9319 = vmatpush.bf16.msrb.mxu1 %v15424_v37  ;;  %9242 = vmatpush.bf16.msra.mxu3 %v13856_v54  ;;  %v9018_v54 = vpop.f32.mrf.mxu1 }
 0x4ce   : > { %v13565_v14 = vld [vmem:[%s25374_s10 + $0xd60] sm:$0xf0] }
 0x4cf   : > { %v17226_v48 = vld [vmem:[%s25374_s10 + $0x1b84] sm:$0xf]  ;;  %v13568_v2 = vor.u32 %v16770_v10, %v13565_v14  ;;  %9307 = vmatpush.bf16.msra.mxu0 %v15136_v19  ;;  %v9005_v14 = vpop.f32.mrf.mxu0 }
 0x4d0   : > { %v15389_v63 = vld [vmem:[%s25374_s10 + $0x1ba0] sm:$0xf0] }
 0x4d1   : > { %v16834_v53 = vld [vmem:[%s25374_s10 + $0xf44] sm:$0xf]  ;;  %v15392_v58 = vor.u32 %v17226_v48, %v15389_v63  ;;  %9230 = vmatpush.bf16.msra.mxu2 %v13568_v2 }
 0x4d2   : > { %v13821_v12 = vld [vmem:[%s25374_s10 + $0xf60] sm:$0xf0] }
 0x4d3   : > { %v17154_v57 = vld [vmem:[%s25374_s10 + $0x1944] sm:$0xf]  ;;  %v13824_v13 = vor.u32 %v16834_v53, %v13821_v12  ;;  %9320 = vmatpush.bf16.msrb.mxu1 %v15392_v58 }
 0x4d4   : > { %v15101_v22 = vld [vmem:[%s25374_s10 + $0x1960] sm:$0xf0] }
 0x4d5   : > { %v19861_v52 = vld [vmem:[%s25375_s11] sm:$0xff]  ;;  %v15104_v21 = vor.u32 %v17154_v57, %v15101_v22  ;;  %9243 = vmatpush.bf16.msra.mxu3 %v13824_v13 }
 0x4d6   : > { %v16762_v31 = vld [vmem:[%s25374_s10 + $0xd04] sm:$0xf]  ;;  %v8926_v29 = vperm.slane %v19861_v52, 0 }
 0x4d7   : > { %v13533_v40 = vld [vmem:[%s25374_s10 + $0xd20] sm:$0xf0]  ;;  %9308 = vmatpush.bf16.msra.mxu0 %v15104_v21 }
 0x4d8   : > { %v17218_v47 = vld [vmem:[%s25374_s10 + $0x1b44] sm:$0xf]  ;;  %v13536_v59 = vor.u32 %v16762_v31, %v13533_v40  ;;  %v8952_v18 = vadd.f32 %v8951_v50, %v8926_v29  ;;  %v8953_v40 = vpop.f32.mrf.mxu2  ;;  %v8966_v29 = vpop.f32.mrf.mxu3 }
 0x4d9   : > { %v15357_v24 = vld [vmem:[%s25374_s10 + $0x1b60] sm:$0xf0] }
 0x4da   : > { %v16826_v28 = vld [vmem:[%s25374_s10 + $0xf04] sm:$0xf]  ;;  %v15360_v3 = vor.u32 %v17218_v47, %v15357_v24  ;;  %9231 = vmatpush.bf16.msra.mxu2 %v13536_v59  ;;  %v19918_v20 = vadd.f32 %v8964_v38, %v8952_v18 }
 0x4db   : > { %v13789_v11 = vld [vmem:[%s25374_s10 + $0xf20] sm:$0xf0] }
 0x4dc   : > { %v17146_v25 = vld [vmem:[%s25374_s10 + $0x1904] sm:$0xf]  ;;  %v13792_v43 = vor.u32 %v16826_v28, %v13789_v11  ;;  %9321 = vmatpush.bf16.msrb.mxu1 %v15360_v3 }
 0x4dd   : > { %v15069_v5 = vld [vmem:[%s25374_s10 + $0x1920] sm:$0xf0] }
 0x4de   : > { %v16754_v46 = vld [vmem:[%s25374_s10 + $0xcc4] sm:$0xf]  ;;  %v15072_v62 = vor.u32 %v17146_v25, %v15069_v5  ;;  %9244 = vmatpush.bf16.msra.mxu3 %v13792_v43 }
 0x4df   : > { %v13501_v1 = vld [vmem:[%s25374_s10 + $0xce0] sm:$0xf0] }
 0x4e0   : > { %v17210_v55 = vld [vmem:[%s25374_s10 + $0x1b04] sm:$0xf]  ;;  %v13504_v15 = vor.u32 %v16754_v46, %v13501_v1  ;;  %9309 = vmatpush.bf16.msra.mxu0 %v15072_v62  ;;  %v8977_v14 = vpop.f32.mrf.mxu2 }
 0x4e1   : > { %v15325_v42 = vld [vmem:[%s25374_s10 + $0x1b20] sm:$0xf0] }
 0x4e2   : > { %v16818_v49 = vld [vmem:[%s25374_s10 + $0xec4] sm:$0xf]  ;;  %v15328_v32 = vor.u32 %v17210_v55, %v15325_v42  ;;  %9232 = vmatpush.bf16.msra.mxu2 %v13504_v15 }
 0x4e3   : > { %v13757_v8 = vld [vmem:[%s25374_s10 + $0xee0] sm:$0xf0] }
 0x4e4   : > { %v17138_v17 = vld [vmem:[%s25374_s10 + $0x18c4] sm:$0xf]  ;;  %v13760_v61 = vor.u32 %v16818_v49, %v13757_v8  ;;  %9322 = vmatpush.bf16.msrb.mxu1 %v15328_v32 }
 0x4e5   : > { %v15037_v45 = vld [vmem:[%s25374_s10 + $0x18e0] sm:$0xf0] }
 0x4e6   : > { %v16746_v27 = vld [vmem:[%s25374_s10 + $0xc84] sm:$0xf]  ;;  %v15040_v48 = vor.u32 %v17138_v17, %v15037_v45  ;;  %9245 = vmatpush.bf16.msra.mxu3 %v13760_v61  ;;  %v12099_v61 = vld [vmem:[%s25374_s10 + $0x1c8] sm:$0xf] }
 0x4e7   : > { %v13469_v4 = vld [vmem:[%s25374_s10 + $0xca0] sm:$0xf0] }
 0x4e8   : > { %v17202_v37 = vld [vmem:[%s25374_s10 + $0x1ac4] sm:$0xf]  ;;  %v13472_v53 = vor.u32 %v16746_v27, %v13469_v4  ;;  %9310 = vmatpush.bf16.msra.mxu0 %v15040_v48 }
 0x4e9   : > { %v15293_v10 = vld [vmem:[%s25374_s10 + $0x1ae0] sm:$0xf0] }
 0x4ea   : > { %v16810_v63 = vld [vmem:[%s25374_s10 + $0xe84] sm:$0xf]  ;;  %v15296_v57 = vor.u32 %v17202_v37, %v15293_v10  ;;  %9233 = vmatpush.bf16.msra.mxu2 %v13472_v53  ;;  %v16407_v37 = vld [vmem:[%s25374_s10 + $0x1e4] sm:$0xf0]  ;;  %v8978_v53 = vadd.f32 %v8977_v14, %v19918_v20 }
 0x4eb   : > { %v13725_v19 = vld [vmem:[%s25374_s10 + $0xea0] sm:$0xf0] }
 0x4ec   : > { %v17130_v12 = vld [vmem:[%s25374_s10 + $0x1884] sm:$0xf]  ;;  %v13728_v31 = vor.u32 %v16810_v63, %v13725_v19  ;;  %9323 = vmatpush.bf16.msrb.mxu1 %v15296_v57  ;;  %v12355_v57 = vld [vmem:[%s25374_s10 + $0x3c8] sm:$0xf] }
 0x4ed   : > { %v15005_v2 = vld [vmem:[%s25374_s10 + $0x18a0] sm:$0xf0] }
 0x4ee   : > { %v16738_v22 = vld [vmem:[%s25374_s10 + $0xc44] sm:$0xf]  ;;  %v15008_v24 = vor.u32 %v17130_v12, %v15005_v2  ;;  %9246 = vmatpush.bf16.msra.mxu3 %v13728_v31  ;;  %v8990_v2 = vpop.f32.mrf.mxu3 }
 0x4ef   : > { %v13437_v58 = vld [vmem:[%s25374_s10 + $0xc60] sm:$0xf0]  ;;  %v8991_v40 = vadd.f32 %v8990_v2, %v8978_v53  ;;  %v12259_v53 = vld [vmem:[%s25374_s10 + $0x308] sm:$0xf] }
 0x4f0   : > { %v17194_v13 = vld [vmem:[%s25374_s10 + $0x1a84] sm:$0xf]  ;;  %v13440_v11 = vor.u32 %v16738_v22, %v13437_v58  ;;  %9311 = vmatpush.bf16.msra.mxu0 %v15008_v24  ;;  %v16471_v22 = vld [vmem:[%s25374_s10 + $0x3e4] sm:$0xf0]  ;;  %v12100_v58 = vor.u32 %v16407_v37, %v12099_v61 }
 0x4f1   : > { %v15261_v47 = vld [vmem:[%s25374_s10 + $0x1aa0] sm:$0xf0]  ;;  %v12067_v24 = vld [vmem:[%s25374_s10 + $0x188] sm:$0xf] }
 0x4f2   : > { %v16802_v21 = vld [vmem:[%s25374_s10 + $0xe44] sm:$0xf]  ;;  %v15264_v5 = vor.u32 %v17194_v13, %v15261_v47  ;;  %9234 = vmatpush.bf16.msra.mxu2 %v13440_v11  ;;  %v12003_v37 = vld [vmem:[%s25374_s10 + $0x108] sm:$0xf] }
 0x4f3   : > { %v13693_v28 = vld [vmem:[%s25374_s10 + $0xe60] sm:$0xf0] }
 0x4f4   : > { %v17122_v59 = vld [vmem:[%s25374_s10 + $0x1844] sm:$0xf]  ;;  %v13696_v43 = vor.u32 %v16802_v21, %v13693_v28  ;;  %9324 = vmatpush.bf16.msrb.mxu1 %v15264_v5  ;;  %v16399_v21 = vld [vmem:[%s25374_s10 + $0x1a4] sm:$0xf0]  ;;  %v12356_v28 = vor.u32 %v16471_v22, %v12355_v57 }
 0x4f5   : > { %v14973_v25 = vld [vmem:[%s25374_s10 + $0x1860] sm:$0xf0]  ;;  %v12323_v5 = vld [vmem:[%s25374_s10 + $0x388] sm:$0xf] }
 0x4f6   : > { %v16730_v3 = vld [vmem:[%s25374_s10 + $0xc04] sm:$0xf]  ;;  %v14976_v18 = vor.u32 %v17122_v59, %v14973_v25  ;;  %9247 = vmatpush.bf16.msra.mxu3 %v13696_v43  ;;  %v9004_v59 = vadd.f32 %v19877_v7, %v8991_v40 }
 0x4f7   : > { %v13405_v46 = vld [vmem:[%s25374_s10 + $0xc20] sm:$0xf0] }
 0x4f8   : > { %v17042_v1 = vld [vmem:[%s25374_s10 + $0x15c4] sm:$0xf]  ;;  %v13408_v8 = vor.u32 %v16730_v3, %v13405_v46  ;;  %9312 = vmatpush.bf16.msra.mxu0 %v14976_v18  ;;  %v16463_v3 = vld [vmem:[%s25374_s10 + $0x3a4] sm:$0xf0]  ;;  %v12068_v46 = vor.u32 %v16399_v21, %v12067_v24 }
 0x4f9   : > { %v14653_v50 = vld [vmem:[%s25374_s10 + $0x15e0] sm:$0xf0]  ;;  %v12324_v18 = vor.u32 %v16463_v3, %v12323_v5 }
 0x4fa   : > { %v17186_v55 = vld [vmem:[%s25374_s10 + $0x1a44] sm:$0xf]  ;;  %v14656_v17 = vor.u32 %v17042_v1, %v14653_v50  ;;  %9235 = vmatpush.bf16.msra.mxu2 %v13408_v8  ;;  %v12035_v50 = vld [vmem:[%s25374_s10 + $0x148] sm:$0xf] }
 0x4fb   : > { %v15229_v42 = vld [vmem:[%s25374_s10 + $0x1a60] sm:$0xf0] }
 0x4fc   : > { %v16794_v62 = vld [vmem:[%s25374_s10 + $0xe04] sm:$0xf]  ;;  %v15232_v45 = vor.u32 %v17186_v55, %v15229_v42  ;;  %v16391_v55 = vld [vmem:[%s25374_s10 + $0x164] sm:$0xf0]  ;;  %v9017_v42 = vadd.f32 %v19879_v51, %v9004_v59 }
 0x4fd   : > { %v13661_v49 = vld [vmem:[%s25374_s10 + $0xe20] sm:$0xf0]  ;;  %9236 = vmatmul.bf16.vlgmr.msra.gmra.mxu2 %v19212_v26  ;;  %v12291_v51 = vld [vmem:[%s25374_s10 + $0x348] sm:$0xf] }
 0x4fe   : > { %v17106_v15 = vld [vmem:[%s25374_s10 + $0x17c4] sm:$0xf]  ;;  %v13664_v4 = vor.u32 %v16794_v62, %v13661_v49  ;;  %9280 = vmatpush.bf16.msrb.mxu2 %v14656_v17  ;;  %9325 = vmatpush.bf16.msrb.mxu1 %v15232_v45  ;;  %v8979_v62 = vpop.f32.mrf.mxu2  ;;  %v16455_v17 = vld [vmem:[%s25374_s10 + $0x364] sm:$0xf0]  ;;  %v12036_v45 = vor.u32 %v16391_v55, %v12035_v50 }
 0x4ff   : > { %v14909_v38 = vld [vmem:[%s25374_s10 + $0x17e0] sm:$0xf0]  ;;  %v12292_v14 = vor.u32 %v16455_v17, %v12291_v51 }
 0x500   : > { %v17114_v32 = vld [vmem:[%s25374_s10 + $0x1804] sm:$0xf]  ;;  %v14912_v54 = vor.u32 %v17106_v15, %v14909_v38  ;;  %9248 = vmatpush.bf16.msra.mxu3 %v13664_v4  ;;  %v8992_v38 = vpop.f32.mrf.mxu3  ;;  %v9055_v4 = vpop.f32.mrf.mxu0 }
 0x501   : > { %v14941_v27 = vld [vmem:[%s25374_s10 + $0x1820] sm:$0xf0] }
 0x502   : > { %v17034_v10 = vld [vmem:[%s25374_s10 + $0x1584] sm:$0xf]  ;;  %v14944_v12 = vor.u32 %v17114_v32, %v14941_v27 }
 0x503   : > { %v14621_v48 = vld [vmem:[%s25374_s10 + $0x15a0] sm:$0xf0]  ;;  %9249 = vmatmul.bf16.vlgmr.msra.gmra.mxu3 %v19233_v9 }
 0x504   : > { %v17178_v63 = vld [vmem:[%s25374_s10 + $0x1a04] sm:$0xf]  ;;  %v14624_v13 = vor.u32 %v17034_v10, %v14621_v48  ;;  %9293 = vmatpush.bf16.msrb.mxu3 %v14912_v54  ;;  %9313 = vmatpush.bf16.msra.mxu0 %v14944_v12  ;;  %v16383_v10 = vld [vmem:[%s25374_s10 + $0x124] sm:$0xf0] }
 0x505   : > { %v15197_v19 = vld [vmem:[%s25374_s10 + $0x1a20] sm:$0xf0]  ;;  %v16447_v12 = vld [vmem:[%s25374_s10 + $0x324] sm:$0xf0]  ;;  %v12004_v2 = vor.u32 %v16383_v10, %v12003_v37 }
 0x506   : > { %v17098_v31 = vld [vmem:[%s25374_s10 + $0x1784] sm:$0xf]  ;;  %v15200_v47 = vor.u32 %v17178_v63, %v15197_v19  ;;  %9281 = vmatpush.bf16.msrb.mxu2 %v14624_v13  ;;  %v9068_v63 = vpop.f32.mrf.mxu1  ;;  %v12260_v40 = vor.u32 %v16447_v12, %v12259_v53  ;;  %v9029_v13 = vpop.f32.mrf.mxu2  ;;  %v12163_v12 = vld [vmem:[%s25374_s10 + $0x248] sm:$0xf] }
 0x507   : > { %v14877_v20 = vld [vmem:[%s25374_s10 + $0x17a0] sm:$0xf0]  ;;  %9314 = vmatmul.bf16.vlgmr.msra.gmra.mxu0 %v19323_v60  ;;  %v9030_v21 = vadd.f32 %v9029_v13, %v9017_v42 }
 0x508   : > { %v17026_v11 = vld [vmem:[%s25374_s10 + $0x1544] sm:$0xf]  ;;  %v14880_v25 = vor.u32 %v17098_v31, %v14877_v20  ;;  %9358 = vmatpush.bf16.msrb.mxu0 %v12100_v58  ;;  %9326 = vmatpush.bf16.msrb.mxu1 %v15200_v47  ;;  %v11971_v31 = vld [vmem:[%s25374_s10 + $0xc8] sm:$0xf]  ;;  %v9042_v3 = vpop.f32.mrf.mxu3 }
 0x509   : > { %v14589_v29 = vld [vmem:[%s25374_s10 + $0x1560] sm:$0xf0]  ;;  %v16375_v20 = vld [vmem:[%s25374_s10 + $0xe4] sm:$0xf0]  ;;  %v9043_v50 = vadd.f32 %v9042_v3, %v9030_v21 }
 0x50a   : > { %v17090_v1 = vld [vmem:[%s25374_s10 + $0x1744] sm:$0xf]  ;;  %v14592_v43 = vor.u32 %v17026_v11, %v14589_v29  ;;  %9294 = vmatpush.bf16.msrb.mxu3 %v14880_v25  ;;  %v12227_v11 = vld [vmem:[%s25374_s10 + $0x2c8] sm:$0xf]  ;;  %v11972_v59 = vor.u32 %v16375_v20, %v11971_v31 }
 0x50b   : > { %v14845_v7 = vld [vmem:[%s25374_s10 + $0x1760] sm:$0xf0]  ;;  %9327 = vmatmul.bf16.vlgmr.msrb.gmra.mxu1 %v19338_v23  ;;  %v16439_v29 = vld [vmem:[%s25374_s10 + $0x2e4] sm:$0xf0]  ;;  %v9056_v38 = vadd.f32 %v9055_v4, %v9043_v50 }
 0x50c   : > { %9371 = vmatpush.bf16.msra.mxu1 %v12356_v28  ;;  %v17018_v49 = vld [vmem:[%s25374_s10 + $0x1504] sm:$0xf]  ;;  %v14848_v15 = vor.u32 %v17090_v1, %v14845_v7  ;;  %9359 = vmatpush.bf16.msrb.mxu0 %v12068_v46  ;;  %v9057_v46 = vpop.f32.mrf.mxu0  ;;  %v11939_v7 = vld [vmem:[%s25374_s10 + $0x88] sm:$0xf]  ;;  %v12228_v55 = vor.u32 %v16439_v29, %v12227_v11 }
 0x50d   : > { %v14557_v8 = vld [vmem:[%s25374_s10 + $0x1520] sm:$0xf0]  ;;  %9282 = vmatpush.bf16.msrb.mxu2 %v14592_v43  ;;  %v16367_v43 = vld [vmem:[%s25374_s10 + $0xa4] sm:$0xf0] }
 0x50e   : > { %v17082_v32 = vld [vmem:[%s25374_s10 + $0x1704] sm:$0xf]  ;;  %v14560_v61 = vor.u32 %v17018_v49, %v14557_v8  ;;  %9295 = vmatpush.bf16.msrb.mxu3 %v14848_v15  ;;  %v9070_v62 = vpop.f32.mrf.mxu1  ;;  %v12195_v8 = vld [vmem:[%s25374_s10 + $0x288] sm:$0xf]  ;;  %v11940_v51 = vor.u32 %v16367_v43, %v11939_v7  ;;  %v9031_v37 = vpop.f32.mrf.mxu2 }
 0x50f   : > { %v14813_v27 = vld [vmem:[%s25374_s10 + $0x1720] sm:$0xf0]  ;;  %v16431_v15 = vld [vmem:[%s25374_s10 + $0x2a4] sm:$0xf0] }
 0x510   : > { %9372 = vmatpush.bf16.msra.mxu1 %v12324_v18  ;;  %v17010_v54 = vld [vmem:[%s25374_s10 + $0x14c4] sm:$0xf]  ;;  %v14816_v19 = vor.u32 %v17082_v32, %v14813_v27  ;;  %9360 = vmatpush.bf16.msrb.mxu0 %v12036_v45  ;;  %v11907_v27 = vld [vmem:[%s25374_s10 + $0x48] sm:$0xf]  ;;  %v12196_v4 = vor.u32 %v16431_v15, %v12195_v8 }
 0x511   : > { %v14525_v48 = vld [vmem:[%s25374_s10 + $0x14e0] sm:$0xf0]  ;;  %9283 = vmatpush.bf16.msrb.mxu2 %v14560_v61  ;;  %v16359_v61 = vld [vmem:[%s25374_s10 + $0x64] sm:$0xf0] }
 0x512   : > { %v17074_v57 = vld [vmem:[%s25374_s10 + $0x16c4] sm:$0xf]  ;;  %v14528_v58 = vor.u32 %v17010_v54, %v14525_v48  ;;  %9296 = vmatpush.bf16.msrb.mxu3 %v14816_v19  ;;  %v20176_v48 = vadd.f32 %v9068_v63, %v9056_v38  ;;  %v11875_v21 = vld [vmem:[%s25374_s10 + $0x8] sm:$0xf] }
 0x513   : > { %v14781_v22 = vld [vmem:[%s25374_s10 + $0x16e0] sm:$0xf0]  ;;  %v16415_v7 = vld [vmem:[%s25374_s10 + $0x224] sm:$0xf0] }
 0x514   : > { %9373 = vmatpush.bf16.msra.mxu1 %v12292_v14  ;;  %v17002_v47 = vld [vmem:[%s25374_s10 + $0x1484] sm:$0xf]  ;;  %v14784_v28 = vor.u32 %v17074_v57, %v14781_v22  ;;  %9361 = vmatpush.bf16.msrb.mxu0 %v12004_v2  ;;  %v16423_v2 = vld [vmem:[%s25374_s10 + $0x264] sm:$0xf0]  ;;  %v11908_v57 = vor.u32 %v16359_v61, %v11907_v27  ;;  %v20193_v31 = vpop.f32.mrf.mxu0 }
 0x515   : > { %v14493_v24 = vld [vmem:[%s25374_s10 + $0x14a0] sm:$0xf0]  ;;  %9284 = vmatpush.bf16.msrb.mxu2 %v14528_v58  ;;  %v9044_v58 = vpop.f32.mrf.mxu3  ;;  %v13379_v50 = vld [vmem:[%s25374_s10 + $0xbc8] sm:$0xf] }
 0x516   : > { %v17066_v25 = vld [vmem:[%s25374_s10 + $0x1684] sm:$0xf]  ;;  %v14496_v1 = vor.u32 %v17002_v47, %v14493_v24  ;;  %9297 = vmatpush.bf16.msrb.mxu3 %v14784_v28  ;;  %v12164_v24 = vor.u32 %v16423_v2, %v12163_v12  ;;  %v16351_v28 = vld [vmem:[%s25374_s10 + $0x24] sm:$0xf0]  ;;  %v20207_v11 = vpop.f32.mrf.mxu1 }
 0x517   : > { %v14749_v5 = vld [vmem:[%s25374_s10 + $0x16a0] sm:$0xf0]  ;;  %v11876_v43 = vor.u32 %v16351_v28, %v11875_v21  ;;  %v13091_v15 = vld [vmem:[%s25374_s10 + $0x988] sm:$0xf]  ;;  %v8927_v21 = vperm.slane %v19861_v52, 1 }
 0x518   : > { %9374 = vmatpush.bf16.msra.mxu1 %v12260_v40  ;;  %v16994_v42 = vld [vmem:[%s25374_s10 + $0x1444] sm:$0xf]  ;;  %v14752_v49 = vor.u32 %v17066_v25, %v14749_v5  ;;  %9362 = vmatpush.bf16.msrb.mxu0 %v11972_v59  ;;  %v13123_v59 = vld [vmem:[%s25374_s10 + $0x9c8] sm:$0xf] }
 0x519   : > { %v14461_v18 = vld [vmem:[%s25374_s10 + $0x1460] sm:$0xf0]  ;;  %9285 = vmatpush.bf16.msrb.mxu2 %v14496_v1  ;;  %v16663_v25 = vld [vmem:[%s25374_s10 + $0x9e4] sm:$0xf0] }
 0x51a   : > { %v17058_v17 = vld [vmem:[%s25374_s10 + $0x1644] sm:$0xf]  ;;  %v14464_v32 = vor.u32 %v16994_v42, %v14461_v18  ;;  %9298 = vmatpush.bf16.msrb.mxu3 %v14752_v49  ;;  %v12131_v1 = vld [vmem:[%s25374_s10 + $0x208] sm:$0xf]  ;;  %v13124_v42 = vor.u32 %v16663_v25, %v13123_v59 }
 0x51b   : > { %v14717_v45 = vld [vmem:[%s25374_s10 + $0x1660] sm:$0xf0]  ;;  %v12132_v8 = vor.u32 %v16415_v7, %v12131_v1  ;;  %v16655_v38 = vld [vmem:[%s25374_s10 + $0x9a4] sm:$0xf0] }
 0x51c   : > { %9375 = vmatpush.bf16.msra.mxu1 %v12228_v55  ;;  %v16986_v10 = vld [vmem:[%s25374_s10 + $0x1404] sm:$0xf]  ;;  %v14720_v19 = vor.u32 %v17058_v17, %v14717_v45  ;;  %9363 = vmatpush.bf16.msrb.mxu0 %v11940_v51  ;;  %v16727_v55 = vld [vmem:[%s25374_s10 + $0xbe4] sm:$0xf0]  ;;  %v9109_v27 = vpop.f32.mrf.mxu0  ;;  %v13092_v37 = vor.u32 %v16655_v38, %v13091_v15 }
 0x51d   : > { %v14429_v14 = vld [vmem:[%s25374_s10 + $0x1420] sm:$0xf0]  ;;  %9286 = vmatpush.bf16.msrb.mxu2 %v14464_v32  ;;  %v13380_v51 = vor.u32 %v16727_v55, %v13379_v50  ;;  %v13347_v61 = vld [vmem:[%s25374_s10 + $0xb88] sm:$0xf]  ;;  %v9094_v27 = vpop.f32.mrf.mxu3 }
 0x51e   : > { %v17298_v54 = vld [vmem:[%s25374_s10 + $0x1dc4] sm:$0xf]  ;;  %v14432_v20 = vor.u32 %v16986_v10, %v14429_v14  ;;  %9299 = vmatpush.bf16.msrb.mxu3 %v14720_v19  ;;  %v9122_v19 = vpop.f32.mrf.mxu1  ;;  %v16647_v12 = vld [vmem:[%s25374_s10 + $0x964] sm:$0xf0] }
 0x51f   : > { %v15677_v53 = vld [vmem:[%s25374_s10 + $0x1de0] sm:$0xf0]  ;;  %v13315_v58 = vld [vmem:[%s25374_s10 + $0xb48] sm:$0xf] }
 0x520   : > { %v17050_v63 = vld [vmem:[%s25374_s10 + $0x1604] sm:$0xf]  ;;  %9376 = vmatpush.bf16.msra.mxu1 %v12196_v4  ;;  %v15680_v47 = vor.u32 %v17298_v54, %v15677_v53  ;;  %9364 = vmatpush.bf16.msrb.mxu0 %v11908_v57  ;;  %v16719_v4 = vld [vmem:[%s25374_s10 + $0xba4] sm:$0xf0] }
 0x521   : > { %v14685_v22 = vld [vmem:[%s25374_s10 + $0x1620] sm:$0xf0]  ;;  %9287 = vmatpush.bf16.msrb.mxu2 %v14432_v20  ;;  %v13059_v53 = vld [vmem:[%s25374_s10 + $0x948] sm:$0xf]  ;;  %v13348_v2 = vor.u32 %v16719_v4, %v13347_v61 }
 0x522   : > { %v17362_v40 = vld [vmem:[%s25374_s10 + $0x1fc4] sm:$0xf]  ;;  %v14688_v29 = vor.u32 %v17050_v63, %v14685_v22  ;;  %v16711_v20 = vld [vmem:[%s25374_s10 + $0xb64] sm:$0xf0] }
 0x523   : > { %v15933_v13 = vld [vmem:[%s25374_s10 + $0x1fe0] sm:$0xf0]  ;;  %v13027_v28 = vld [vmem:[%s25374_s10 + $0x908] sm:$0xf]  ;;  %v13316_v59 = vor.u32 %v16711_v20, %v13315_v58 }
 0x524   : > { %v17290_v5 = vld [vmem:[%s25374_s10 + $0x1d84] sm:$0xf]  ;;  %v15936_v3 = vor.u32 %v17362_v40, %v15933_v13  ;;  %9377 = vmatpush.bf16.msra.mxu1 %v12164_v24  ;;  %9300 = vmatpush.bf16.msrb.mxu3 %v14688_v29  ;;  %v13060_v40 = vor.u32 %v16647_v12, %v13059_v53  ;;  %v16639_v29 = vld [vmem:[%s25374_s10 + $0x924] sm:$0xf0]  ;;  %v9159_v1 = vpop.f32.mrf.mxu0 }
 0x525   : > { %v15645_v46 = vld [vmem:[%s25374_s10 + $0x1da0] sm:$0xf0]  ;;  %9332 = vmatpush.bf16.msra.mxu2 %v15680_v47  ;;  %9365 = vmatpush.bf16.msrb.mxu0 %v11876_v43  ;;  %v13028_v7 = vor.u32 %v16639_v29, %v13027_v28  ;;  %v9160_v55 = vadd.f32 %v9159_v1, %v8927_v21  ;;  %v13251_v61 = vld [vmem:[%s25374_s10 + $0xac8] sm:$0xf]  ;;  %v9096_v1 = vpop.f32.mrf.mxu3 }
 0x526   : > { %v17354_v18 = vld [vmem:[%s25374_s10 + $0x1f84] sm:$0xf]  ;;  %v15648_v49 = vor.u32 %v17290_v5, %v15645_v46  ;;  %9288 = vmatmul.bf16.vlgmr.msrb.gmra.mxu2 %v19424_v0  ;;  %v16703_v46 = vld [vmem:[%s25374_s10 + $0xb24] sm:$0xf0] }
 0x527   : > { %v15901_v62 = vld [vmem:[%s25374_s10 + $0x1fa0] sm:$0xf0]  ;;  %9301 = vmatmul.bf16.vlgmr.msrb.gmra.mxu3 %v19433_v34  ;;  %v12963_v19 = vld [vmem:[%s25374_s10 + $0x888] sm:$0xf] }
 0x528   : > { %9345 = vmatpush.bf16.msra.mxu3 %v15936_v3  ;;  %v17282_v17 = vld [vmem:[%s25374_s10 + $0x1d44] sm:$0xf]  ;;  %v15904_v32 = vor.u32 %v17354_v18, %v15901_v62  ;;  %9378 = vmatpush.bf16.msra.mxu1 %v12132_v8  ;;  %v13283_v3 = vld [vmem:[%s25374_s10 + $0xb08] sm:$0xf]  ;;  %v9081_v18 = vpop.f32.mrf.mxu2  ;;  %v9172_v62 = vpop.f32.mrf.mxu1 }
 0x529   : > { %v15613_v45 = vld [vmem:[%s25374_s10 + $0x1d60] sm:$0xf0]  ;;  %9410 = vmatpush.bf16.msra.mxu0 %v13124_v42  ;;  %9333 = vmatpush.bf16.msra.mxu2 %v15648_v49  ;;  %v12995_v49 = vld [vmem:[%s25374_s10 + $0x8c8] sm:$0xf]  ;;  %v9082_v15 = vadd.f32 %v9081_v18, %v20176_v48  ;;  %v13284_v38 = vor.u32 %v16703_v46, %v13283_v3 }
 0x52a   : > { %v17346_v10 = vld [vmem:[%s25374_s10 + $0x1f44] sm:$0xf]  ;;  %v15616_v54 = vor.u32 %v17282_v17, %v15613_v45  ;;  %9366 = vmatmul.bf16.vlgmr.msrb.gmra.mxu0 %v18972_v44  ;;  %v16631_v8 = vld [vmem:[%s25374_s10 + $0x8e4] sm:$0xf0]  ;;  %v20329_v45 = vadd.f32 %v9172_v62, %v9160_v55 }
 0x52b   : > { %v15869_v14 = vld [vmem:[%s25374_s10 + $0x1f60] sm:$0xf0]  ;;  %9379 = vmatmul.bf16.vlgmr.msra.gmra.mxu1 %v18984_v41  ;;  %v16695_v48 = vld [vmem:[%s25374_s10 + $0xae4] sm:$0xf0]  ;;  %v9095_v4 = vadd.f32 %v9094_v27, %v9082_v15 }
 0x52c   : > { %9423 = vmatpush.bf16.msrb.mxu1 %v13380_v51  ;;  %v17274_v57 = vld [vmem:[%s25374_s10 + $0x1d04] sm:$0xf]  ;;  %9346 = vmatpush.bf16.msra.mxu3 %v15904_v32  ;;  %v15872_v22 = vor.u32 %v17346_v10, %v15869_v14  ;;  %v16623_v53 = vld [vmem:[%s25374_s10 + $0x8a4] sm:$0xf0] }
 0x52d   : > { %v15581_v63 = vld [vmem:[%s25374_s10 + $0x1d20] sm:$0xf0]  ;;  %9411 = vmatpush.bf16.msra.mxu0 %v13092_v37  ;;  %9334 = vmatpush.bf16.msra.mxu2 %v15616_v54  ;;  %v12996_v37 = vor.u32 %v16631_v8, %v12995_v49  ;;  %v9108_v12 = vadd.f32 %v20193_v31, %v9095_v4  ;;  %v13219_v58 = vld [vmem:[%s25374_s10 + $0xa88] sm:$0xf]  ;;  %v9161_v31 = vpop.f32.mrf.mxu0 }
 0x52e   : > { %v17338_v13 = vld [vmem:[%s25374_s10 + $0x1f04] sm:$0xf]  ;;  %v15584_v24 = vor.u32 %v17274_v57, %v15581_v63  ;;  %v16687_v20 = vld [vmem:[%s25374_s10 + $0xaa4] sm:$0xf0] }
 0x52f   : > { %v15837_v47 = vld [vmem:[%s25374_s10 + $0x1f20] sm:$0xf0]  ;;  %v12611_v3 = vld [vmem:[%s25374_s10 + $0x5c8] sm:$0xf] }
 0x530   : > { %9424 = vmatpush.bf16.msrb.mxu1 %v13348_v2  ;;  %v17266_v25 = vld [vmem:[%s25374_s10 + $0x1cc4] sm:$0xf]  ;;  %9347 = vmatpush.bf16.msra.mxu3 %v15872_v22  ;;  %v15840_v52 = vor.u32 %v17338_v13, %v15837_v47  ;;  %v13252_v2 = vor.u32 %v16695_v48, %v13251_v61  ;;  %v9083_v28 = vpop.f32.mrf.mxu2  ;;  %v9174_v29 = vpop.f32.mrf.mxu1  ;;  %v12867_v49 = vld [vmem:[%s25374_s10 + $0x7c8] sm:$0xf] }
 0x531   : > { %v15549_v5 = vld [vmem:[%s25374_s10 + $0x1ce0] sm:$0xf0]  ;;  %9412 = vmatpush.bf16.msra.mxu0 %v13060_v40  ;;  %9335 = vmatpush.bf16.msra.mxu2 %v15584_v24  ;;  %v12964_v40 = vor.u32 %v16623_v53, %v12963_v19  ;;  %v20369_v24 = vadd.f32 %v20207_v11, %v9108_v12  ;;  %v16599_v8 = vld [vmem:[%s25374_s10 + $0x7e4] sm:$0xf0] }
 0x532   : > { %v17330_v43 = vld [vmem:[%s25374_s10 + $0x1ec4] sm:$0xf]  ;;  %v15552_v42 = vor.u32 %v17266_v25, %v15549_v5  ;;  %v16615_v25 = vld [vmem:[%s25374_s10 + $0x864] sm:$0xf0]  ;;  %v13220_v5 = vor.u32 %v16687_v20, %v13219_v58  ;;  %v12868_v4 = vor.u32 %v16599_v8, %v12867_v49 }
 0x533   : > { %v15805_v50 = vld [vmem:[%s25374_s10 + $0x1ee0] sm:$0xf0]  ;;  %v14147_v27 = vld [vmem:[%s25374_s10 + $0x11c8] sm:$0xf] }
 0x534   : > { %9425 = vmatpush.bf16.msrb.mxu1 %v13316_v59  ;;  %v17258_v51 = vld [vmem:[%s25374_s10 + $0x1c84] sm:$0xf]  ;;  %9348 = vmatpush.bf16.msra.mxu3 %v15840_v52  ;;  %v15808_v32 = vor.u32 %v17330_v43, %v15805_v50  ;;  %v12931_v59 = vld [vmem:[%s25374_s10 + $0x848] sm:$0xf] }
 0x535   : > { %v15517_v17 = vld [vmem:[%s25374_s10 + $0x1ca0] sm:$0xf0]  ;;  %9413 = vmatpush.bf16.msra.mxu0 %v13028_v7  ;;  %9336 = vmatpush.bf16.msra.mxu2 %v15552_v42  ;;  %v16535_v7 = vld [vmem:[%s25374_s10 + $0x5e4] sm:$0xf0]  ;;  %v12932_v55 = vor.u32 %v16615_v25, %v12931_v59 }
 0x536   : > { %v17322_v10 = vld [vmem:[%s25374_s10 + $0x1e84] sm:$0xf]  ;;  %v15520_v54 = vor.u32 %v17258_v51, %v15517_v17  ;;  %v13187_v43 = vld [vmem:[%s25374_s10 + $0xa48] sm:$0xf]  ;;  %v12612_v15 = vor.u32 %v16535_v7, %v12611_v3 }
 0x537   : > { %v15773_v14 = vld [vmem:[%s25374_s10 + $0x1ea0] sm:$0xf0]  ;;  %v16679_v50 = vld [vmem:[%s25374_s10 + $0xa64] sm:$0xf0] }
 0x538   : > { %9426 = vmatpush.bf16.msrb.mxu1 %v13284_v38  ;;  %v17250_v57 = vld [vmem:[%s25374_s10 + $0x1c44] sm:$0xf]  ;;  %9349 = vmatpush.bf16.msra.mxu3 %v15808_v32  ;;  %v15776_v22 = vor.u32 %v17322_v10, %v15773_v14  ;;  %v13188_v38 = vor.u32 %v16679_v50, %v13187_v43  ;;  %v12899_v51 = vld [vmem:[%s25374_s10 + $0x808] sm:$0xf] }
 0x539   : > { %v15485_v63 = vld [vmem:[%s25374_s10 + $0x1c60] sm:$0xf0]  ;;  %9414 = vmatpush.bf16.msra.mxu0 %v12996_v37  ;;  %9337 = vmatpush.bf16.msra.mxu2 %v15520_v54  ;;  %v16607_v17 = vld [vmem:[%s25374_s10 + $0x824] sm:$0xf0] }
 0x53a   : > { %v17314_v13 = vld [vmem:[%s25374_s10 + $0x1e44] sm:$0xf]  ;;  %v15488_v21 = vor.u32 %v17250_v57, %v15485_v63  ;;  %v16919_v61 = vld [vmem:[%s25374_s10 + $0x11e4] sm:$0xf0]  ;;  %v12900_v54 = vor.u32 %v16607_v17, %v12899_v51  ;;  %v20507_v17 = vpop.f32.mrf.mxu0 }
 0x53b   : > { %v15741_v47 = vld [vmem:[%s25374_s10 + $0x1e60] sm:$0xf0]  ;;  %v12579_v48 = vld [vmem:[%s25374_s10 + $0x588] sm:$0xf]  ;;  %v14148_v12 = vor.u32 %v16919_v61, %v14147_v27 }
 0x53c   : > { %9427 = vmatpush.bf16.msrb.mxu1 %v13252_v2  ;;  %v17242_v52 = vld [vmem:[%s25374_s10 + $0x1c04] sm:$0xf]  ;;  %9350 = vmatpush.bf16.msra.mxu3 %v15776_v22  ;;  %v15744_v46 = vor.u32 %v17314_v13, %v15741_v47  ;;  %v16527_v37 = vld [vmem:[%s25374_s10 + $0x5a4] sm:$0xf0] }
 0x53d   : > { %v15453_v11 = vld [vmem:[%s25374_s10 + $0x1c20] sm:$0xf0]  ;;  %9415 = vmatpush.bf16.msra.mxu0 %v12964_v40  ;;  %9338 = vmatpush.bf16.msra.mxu2 %v15488_v21  ;;  %v13155_v10 = vld [vmem:[%s25374_s10 + $0xa08] sm:$0xf]  ;;  %v12580_v63 = vor.u32 %v16527_v37, %v12579_v48 }
 0x53e   : > { %v17306_v42 = vld [vmem:[%s25374_s10 + $0x1e04] sm:$0xf]  ;;  %v15456_v62 = vor.u32 %v17242_v52, %v15453_v11  ;;  %v16671_v14 = vld [vmem:[%s25374_s10 + $0xa24] sm:$0xf0] }
 0x53f   : > { %v15709_v18 = vld [vmem:[%s25374_s10 + $0x1e20] sm:$0xf0]  ;;  %v14403_v19 = vld [vmem:[%s25374_s10 + $0x13c8] sm:$0xf]  ;;  %v13156_v22 = vor.u32 %v16671_v14, %v13155_v10  ;;  %v20521_v10 = vpop.f32.mrf.mxu1 }
 0x540   : > { %9428 = vmatpush.bf16.msrb.mxu1 %v13220_v5  ;;  %9351 = vmatpush.bf16.msra.mxu3 %v15744_v46  ;;  %v15712_v32 = vor.u32 %v17306_v42, %v15709_v18  ;;  %v16983_v53 = vld [vmem:[%s25374_s10 + $0x13e4] sm:$0xf0] }
 0x541   : > { %9416 = vmatpush.bf16.msra.mxu0 %v12932_v55  ;;  %9339 = vmatpush.bf16.msra.mxu2 %v15456_v62  ;;  %v12835_v2 = vld [vmem:[%s25374_s10 + $0x788] sm:$0xf]  ;;  %v14404_v31 = vor.u32 %v16983_v53, %v14403_v19 }
 0x542   : > { %v16591_v57 = vld [vmem:[%s25374_s10 + $0x7a4] sm:$0xf0] }
 0x543   : > { %v14115_v58 = vld [vmem:[%s25374_s10 + $0x1188] sm:$0xf]  ;;  %v12836_v47 = vor.u32 %v16591_v57, %v12835_v2 }
 0x544   : > { %9429 = vmatpush.bf16.msrb.mxu1 %v13188_v38  ;;  %9352 = vmatpush.bf16.msra.mxu3 %v15712_v32  ;;  %v16911_v20 = vld [vmem:[%s25374_s10 + $0x11a4] sm:$0xf0] }
 0x545   : > { %9384 = vmatpush.bf16.msrb.mxu2 %v12612_v15  ;;  %v12547_v40 = vld [vmem:[%s25374_s10 + $0x548] sm:$0xf]  ;;  %9417 = vmatpush.bf16.msra.mxu0 %v12900_v54  ;;  %v14116_v29 = vor.u32 %v16911_v20, %v14115_v58  ;;  %v9133_v54 = vpop.f32.mrf.mxu2  ;;  %v9146_v58 = vpop.f32.mrf.mxu3 }
 0x546   : > { %9340 = vmatmul.bf16.vlgmr.msra.gmra.mxu2 %v19620_v16  ;;  %v16519_v13 = vld [vmem:[%s25374_s10 + $0x564] sm:$0xf0] }
 0x547   : > { %v14371_v21 = vld [vmem:[%s25374_s10 + $0x1388] sm:$0xf]  ;;  %9353 = vmatmul.bf16.vlgmr.msra.gmra.mxu3 %v19635_v6  ;;  %v12548_v5 = vor.u32 %v16519_v13, %v12547_v40 }
 0x548   : > { %9397 = vmatpush.bf16.msrb.mxu3 %v12868_v4  ;;  %v16975_v28 = vld [vmem:[%s25374_s10 + $0x13a4] sm:$0xf0]  ;;  %9430 = vmatpush.bf16.msrb.mxu1 %v13156_v22 }
 0x549   : > { %9462 = vmatpush.bf16.msrb.mxu0 %v14148_v12  ;;  %v12803_v59 = vld [vmem:[%s25374_s10 + $0x748] sm:$0xf]  ;;  %9385 = vmatpush.bf16.msrb.mxu2 %v12580_v63  ;;  %v14372_v3 = vor.u32 %v16975_v28, %v14371_v21  ;;  %v9134_v12 = vadd.f32 %v9133_v54, %v20369_v24 }
 0x54a   : > { %v16583_v25 = vld [vmem:[%s25374_s10 + $0x764] sm:$0xf0]  ;;  %9418 = vmatmul.bf16.vlgmr.msra.gmra.mxu0 %v18992_v39 }
 0x54b   : > { %v14083_v52 = vld [vmem:[%s25374_s10 + $0x1148] sm:$0xf]  ;;  %v12804_v7 = vor.u32 %v16583_v25, %v12803_v59  ;;  %9431 = vmatmul.bf16.vlgmr.msrb.gmra.mxu1 %v18994_v36 }
 0x54c   : > { %v16903_v11 = vld [vmem:[%s25374_s10 + $0x1164] sm:$0xf0]  ;;  %9475 = vmatpush.bf16.msra.mxu1 %v14404_v31  ;;  %9398 = vmatpush.bf16.msrb.mxu3 %v12836_v47  ;;  %v20542_v31 = vadd.f32 %v9146_v58, %v9134_v12 }
 0x54d   : > { %v12515_v46 = vld [vmem:[%s25374_s10 + $0x508] sm:$0xf]  ;;  %9463 = vmatpush.bf16.msrb.mxu0 %v14116_v29  ;;  %v14084_v55 = vor.u32 %v16903_v11, %v14083_v52  ;;  %9386 = vmatpush.bf16.msrb.mxu2 %v12548_v5  ;;  %v9213_v52 = vpop.f32.mrf.mxu0 }
 0x54e   : > { %v16511_v1 = vld [vmem:[%s25374_s10 + $0x524] sm:$0xf0] }
 0x54f   : > { %v14339_v43 = vld [vmem:[%s25374_s10 + $0x1348] sm:$0xf]  ;;  %v12516_v62 = vor.u32 %v16511_v1, %v12515_v46 }
 0x550   : > { %v16967_v50 = vld [vmem:[%s25374_s10 + $0x1364] sm:$0xf0]  ;;  %9476 = vmatpush.bf16.msra.mxu1 %v14372_v3  ;;  %9399 = vmatpush.bf16.msrb.mxu3 %v12804_v7 }
 0x551   : > { %v12771_v42 = vld [vmem:[%s25374_s10 + $0x708] sm:$0xf]  ;;  %v14340_v15 = vor.u32 %v16967_v50, %v14339_v43  ;;  %9464 = vmatpush.bf16.msrb.mxu0 %v14084_v55  ;;  %9387 = vmatpush.bf16.msrb.mxu2 %v12516_v62  ;;  %v9226_v50 = vpop.f32.mrf.mxu1 }
 0x552   : > { %v16575_v18 = vld [vmem:[%s25374_s10 + $0x724] sm:$0xf0] }
 0x553   : > { %v14051_v49 = vld [vmem:[%s25374_s10 + $0x1108] sm:$0xf]  ;;  %v12772_v32 = vor.u32 %v16575_v18, %v12771_v42  ;;  %v9135_v42 = vpop.f32.mrf.mxu2 }
 0x554   : > { %v16895_v8 = vld [vmem:[%s25374_s10 + $0x1124] sm:$0xf0]  ;;  %9477 = vmatpush.bf16.msra.mxu1 %v14340_v15 }
 0x555   : > { %v12483_v38 = vld [vmem:[%s25374_s10 + $0x4c8] sm:$0xf]  ;;  %v14052_v48 = vor.u32 %v16895_v8, %v14051_v49  ;;  %9400 = vmatpush.bf16.msrb.mxu3 %v12772_v32  ;;  %v9148_v32 = vpop.f32.mrf.mxu3 }
 0x556   : > { %v16503_v51 = vld [vmem:[%s25374_s10 + $0x4e4] sm:$0xf0] }
 0x557   : > { %v14307_v27 = vld [vmem:[%s25374_s10 + $0x1308] sm:$0xf]  ;;  %v12484_v14 = vor.u32 %v16503_v51, %v12483_v38  ;;  %9465 = vmatpush.bf16.msrb.mxu0 %v14052_v48 }
 0x558   : > { %v16959_v61 = vld [vmem:[%s25374_s10 + $0x1324] sm:$0xf0] }
 0x559   : > { %v12739_v4 = vld [vmem:[%s25374_s10 + $0x6c8] sm:$0xf]  ;;  %v14308_v2 = vor.u32 %v16959_v61, %v14307_v27  ;;  %9388 = vmatpush.bf16.msrb.mxu2 %v12484_v14 }
 0x55a   : > { %v16567_v37 = vld [vmem:[%s25374_s10 + $0x6e4] sm:$0xf0] }
 0x55b   : > { %v14019_v19 = vld [vmem:[%s25374_s10 + $0x10c8] sm:$0xf]  ;;  %v12740_v22 = vor.u32 %v16567_v37, %v12739_v4  ;;  %9478 = vmatpush.bf16.msra.mxu1 %v14308_v2 }
 0x55c   : > { %v16887_v53 = vld [vmem:[%s25374_s10 + $0x10e4] sm:$0xf0] }
 0x55d   : > { %v12451_v57 = vld [vmem:[%s25374_s10 + $0x488] sm:$0xf]  ;;  %v14020_v40 = vor.u32 %v16887_v53, %v14019_v19  ;;  %9401 = vmatpush.bf16.msrb.mxu3 %v12740_v22 }
 0x55e   : > { %v16495_v63 = vld [vmem:[%s25374_s10 + $0x4a4] sm:$0xf0] }
 0x55f   : > { %v14275_v20 = vld [vmem:[%s25374_s10 + $0x12c8] sm:$0xf]  ;;  %v12452_v21 = vor.u32 %v16495_v63, %v12451_v57  ;;  %9466 = vmatpush.bf16.msrb.mxu0 %v14020_v40 }
 0x560   : > { %v16951_v24 = vld [vmem:[%s25374_s10 + $0x12e4] sm:$0xf0] }
 0x561   : > { %v12707_v13 = vld [vmem:[%s25374_s10 + $0x688] sm:$0xf]  ;;  %v14276_v59 = vor.u32 %v16951_v24, %v14275_v20  ;;  %9389 = vmatpush.bf16.msrb.mxu2 %v12452_v21 }
 0x562   : > { %v16559_v47 = vld [vmem:[%s25374_s10 + $0x6a4] sm:$0xf0] }
 0x563   : > { %v13987_v28 = vld [vmem:[%s25374_s10 + $0x1088] sm:$0xf]  ;;  %v12708_v11 = vor.u32 %v16559_v47, %v12707_v13  ;;  %9479 = vmatpush.bf16.msra.mxu1 %v14276_v59 }
 0x564   : > { %v16879_v29 = vld [vmem:[%s25374_s10 + $0x10a4] sm:$0xf0] }
 0x565   : > { %v12419_v25 = vld [vmem:[%s25374_s10 + $0x448] sm:$0xf]  ;;  %v13988_v1 = vor.u32 %v16879_v29, %v13987_v28  ;;  %9402 = vmatpush.bf16.msrb.mxu3 %v12708_v11 }
 0x566   : > { %v16487_v5 = vld [vmem:[%s25374_s10 + $0x464] sm:$0xf0] }
 0x567   : > { %v14243_v3 = vld [vmem:[%s25374_s10 + $0x1288] sm:$0xf]  ;;  %v12420_v55 = vor.u32 %v16487_v5, %v12419_v25  ;;  %9467 = vmatpush.bf16.msrb.mxu0 %v13988_v1 }
 0x568   : > { %v16943_v46 = vld [vmem:[%s25374_s10 + $0x12a4] sm:$0xf0] }
 0x569   : > { %v12675_v7 = vld [vmem:[%s25374_s10 + $0x648] sm:$0xf]  ;;  %v14244_v49 = vor.u32 %v16943_v46, %v14243_v3  ;;  %9390 = vmatpush.bf16.msrb.mxu2 %v12420_v55 }
 0x56a   : > { %v16551_v43 = vld [vmem:[%s25374_s10 + $0x664] sm:$0xf0] }
 0x56b   : > { %v13955_v18 = vld [vmem:[%s25374_s10 + $0x1048] sm:$0xf]  ;;  %v12676_v51 = vor.u32 %v16551_v43, %v12675_v7  ;;  %9480 = vmatpush.bf16.msra.mxu1 %v14244_v49 }
 0x56c   : > { %v16871_v62 = vld [vmem:[%s25374_s10 + $0x1064] sm:$0xf0] }
 0x56d   : > { %v12387_v8 = vld [vmem:[%s25374_s10 + $0x408] sm:$0xf]  ;;  %v13956_v4 = vor.u32 %v16871_v62, %v13955_v18  ;;  %9403 = vmatpush.bf16.msrb.mxu3 %v12676_v51 }
 0x56e   : > { %v16479_v15 = vld [vmem:[%s25374_s10 + $0x424] sm:$0xf0] }
 0x56f   : > { %v13635_v38 = vld [vmem:[%s25374_s10 + $0xdc8] sm:$0xf]  ;;  %v12388_v54 = vor.u32 %v16479_v15, %v12387_v8  ;;  %9468 = vmatpush.bf16.msrb.mxu0 %v13956_v4 }
 0x570   : > { %v16791_v27 = vld [vmem:[%s25374_s10 + $0xde4] sm:$0xf0] }
 0x571   : > { %v14211_v61 = vld [vmem:[%s25374_s10 + $0x1248] sm:$0xf]  ;;  %v13636_v12 = vor.u32 %v16791_v27, %v13635_v38  ;;  %9391 = vmatpush.bf16.msrb.mxu2 %v12388_v54 }
 0x572   : > { %v16935_v48 = vld [vmem:[%s25374_s10 + $0x1264] sm:$0xf0] }
 0x573   : > { %v12643_v37 = vld [vmem:[%s25374_s10 + $0x608] sm:$0xf]  ;;  %v14212_v2 = vor.u32 %v16935_v48, %v14211_v61 }
 0x574   : > { %v16543_v14 = vld [vmem:[%s25374_s10 + $0x624] sm:$0xf0]  ;;  %9392 = vmatmul.bf16.vlgmr.msrb.gmra.mxu2 %v19089_v30 }
 0x575   : > { %v13891_v19 = vld [vmem:[%s25374_s10 + $0xfc8] sm:$0xf]  ;;  %v12644_v22 = vor.u32 %v16543_v14, %v12643_v37  ;;  %9436 = vmatpush.bf16.msra.mxu2 %v13636_v12  ;;  %9481 = vmatpush.bf16.msra.mxu1 %v14212_v2 }
 0x576   : > { %v16855_v53 = vld [vmem:[%s25374_s10 + $0xfe4] sm:$0xf0] }
 0x577   : > { %v13923_v57 = vld [vmem:[%s25374_s10 + $0x1008] sm:$0xf]  ;;  %v13892_v40 = vor.u32 %v16855_v53, %v13891_v19  ;;  %9404 = vmatpush.bf16.msrb.mxu3 %v12644_v22 }
 0x578   : > { %v16863_v63 = vld [vmem:[%s25374_s10 + $0x1024] sm:$0xf0] }
 0x579   : > { %v15171_v58 = vld [vmem:[%s25374_s10 + $0x19c8] sm:$0xf]  ;;  %v13924_v28 = vor.u32 %v16863_v63, %v13923_v57 }
 0x57a   : > { %v17175_v20 = vld [vmem:[%s25374_s10 + $0x19e4] sm:$0xf0]  ;;  %9405 = vmatmul.bf16.vlgmr.msrb.gmra.mxu3 %v19097_v33 }
 0x57b   : > { %v13603_v24 = vld [vmem:[%s25374_s10 + $0xd88] sm:$0xf]  ;;  %v15172_v25 = vor.u32 %v17175_v20, %v15171_v58  ;;  %9449 = vmatpush.bf16.msra.mxu3 %v13892_v40  ;;  %9469 = vmatpush.bf16.msrb.mxu0 %v13924_v28  ;;  %v20710_v58 = vpop.f32.mrf.mxu0  ;;  %v20724_v28 = vpop.f32.mrf.mxu1 }
 0x57c   : > { %v16783_v13 = vld [vmem:[%s25374_s10 + $0xda4] sm:$0xf0] }
 0x57d   : > { %v14179_v47 = vld [vmem:[%s25374_s10 + $0x1208] sm:$0xf]  ;;  %v13604_v11 = vor.u32 %v16783_v13, %v13603_v24 }
 0x57e   : > { %v16927_v21 = vld [vmem:[%s25374_s10 + $0x1224] sm:$0xf0]  ;;  %9470 = vmatmul.bf16.vlgmr.msrb.gmra.mxu0 %v19202_v56 }
 0x57f   : > { %v15427_v29 = vld [vmem:[%s25374_s10 + $0x1bc8] sm:$0xf]  ;;  %v14180_v3 = vor.u32 %v16927_v21, %v14179_v47  ;;  %9514 = vmatpush.bf16.msra.mxu0 %v15172_v25  ;;  %9437 = vmatpush.bf16.msra.mxu2 %v13604_v11 }
 0x580   : > { %v17239_v59 = vld [vmem:[%s25374_s10 + $0x1be4] sm:$0xf0] }
 0x581   : > { %v13859_v5 = vld [vmem:[%s25374_s10 + $0xf88] sm:$0xf]  ;;  %v15428_v7 = vor.u32 %v17239_v59, %v15427_v29  ;;  %9482 = vmatpush.bf16.msra.mxu1 %v14180_v3  ;;  %v9185_v59 = vpop.f32.mrf.mxu2 }
 0x582   : > { %v16847_v52 = vld [vmem:[%s25374_s10 + $0xfa4] sm:$0xf0] }
 0x583   : > { %v15139_v46 = vld [vmem:[%s25374_s10 + $0x1988] sm:$0xf]  ;;  %v13860_v55 = vor.u32 %v16847_v52, %v13859_v5  ;;  %v9186_v52 = vadd.f32 %v9185_v59, %v20329_v45 }
 0x584   : > { %v17167_v1 = vld [vmem:[%s25374_s10 + $0x19a4] sm:$0xf0]  ;;  %9483 = vmatmul.bf16.vlgmr.msra.gmra.mxu1 %v19217_v35 }
 0x585   : > { %v13571_v43 = vld [vmem:[%s25374_s10 + $0xd48] sm:$0xf]  ;;  %v15140_v62 = vor.u32 %v17167_v1, %v15139_v46  ;;  %9527 = vmatpush.bf16.msrb.mxu1 %v15428_v7  ;;  %9450 = vmatpush.bf16.msra.mxu3 %v13860_v55  ;;  %v9198_v7 = vpop.f32.mrf.mxu3 }
 0x586   : > { %v16775_v50 = vld [vmem:[%s25374_s10 + $0xd64] sm:$0xf0] }
 0x587   : > { %v15395_v42 = vld [vmem:[%s25374_s10 + $0x1b88] sm:$0xf]  ;;  %v13572_v15 = vor.u32 %v16775_v50, %v13571_v43  ;;  %9515 = vmatpush.bf16.msra.mxu0 %v15140_v62  ;;  %v9199_v50 = vadd.f32 %v9198_v7, %v9186_v52 }
 0x588   : > { %v17231_v18 = vld [vmem:[%s25374_s10 + $0x1ba4] sm:$0xf0] }
 0x589   : > { %v13827_v49 = vld [vmem:[%s25374_s10 + $0xf48] sm:$0xf]  ;;  %v15396_v32 = vor.u32 %v17231_v18, %v15395_v42  ;;  %9438 = vmatpush.bf16.msra.mxu2 %v13572_v15  ;;  %v9212_v15 = vadd.f32 %v20507_v17, %v9199_v50  ;;  %v12101_v50 = vld [vmem:[%s25374_s10 + $0x1e8] sm:$0xf0] }
 0x58a   : > { %v16839_v8 = vld [vmem:[%s25374_s10 + $0xf64] sm:$0xf0] }
 0x58b   : > { %v15107_v38 = vld [vmem:[%s25374_s10 + $0x1948] sm:$0xf]  ;;  %v13828_v48 = vor.u32 %v16839_v8, %v13827_v49  ;;  %9528 = vmatpush.bf16.msrb.mxu1 %v15396_v32 }
 0x58c   : > { %v17159_v51 = vld [vmem:[%s25374_s10 + $0x1964] sm:$0xf0] }
 0x58d   : > { %v13539_v27 = vld [vmem:[%s25374_s10 + $0xd08] sm:$0xf]  ;;  %v15108_v14 = vor.u32 %v17159_v51, %v15107_v38  ;;  %9451 = vmatpush.bf16.msra.mxu3 %v13828_v48 }
 0x58e   : > { %v16767_v61 = vld [vmem:[%s25374_s10 + $0xd24] sm:$0xf0] }
 0x58f   : > { %v15363_v4 = vld [vmem:[%s25374_s10 + $0x1b48] sm:$0xf]  ;;  %v13540_v53 = vor.u32 %v16767_v61, %v13539_v27  ;;  %9516 = vmatpush.bf16.msra.mxu0 %v15108_v14  ;;  %v9265_v27 = vpop.f32.mrf.mxu0 }
 0x590   : > { %v17223_v37 = vld [vmem:[%s25374_s10 + $0x1b64] sm:$0xf0] }
 0x591   : > { %v13795_v54 = vld [vmem:[%s25374_s10 + $0xf08] sm:$0xf]  ;;  %v15364_v57 = vor.u32 %v17223_v37, %v15363_v4  ;;  %9439 = vmatpush.bf16.msra.mxu2 %v13540_v53 }
 0x592   : > { %v16831_v19 = vld [vmem:[%s25374_s10 + $0xf24] sm:$0xf0] }
 0x593   : > { %v15075_v12 = vld [vmem:[%s25374_s10 + $0x1908] sm:$0xf]  ;;  %v13796_v20 = vor.u32 %v16831_v19, %v13795_v54  ;;  %9529 = vmatpush.bf16.msrb.mxu1 %v15364_v57  ;;  %v20777_v54 = vadd.f32 %v20521_v10, %v9212_v15  ;;  %v9278_v19 = vpop.f32.mrf.mxu1  ;;  %v16467_v15 = vld [vmem:[%s25374_s10 + $0x3cc] sm:$0xf] }
 0x594   : > { %v17151_v2 = vld [vmem:[%s25374_s10 + $0x1924] sm:$0xf0] }
 0x595   : > { %v13507_v63 = vld [vmem:[%s25374_s10 + $0xcc8] sm:$0xf]  ;;  %v15076_v13 = vor.u32 %v17151_v2, %v15075_v12  ;;  %9452 = vmatpush.bf16.msra.mxu3 %v13796_v20  ;;  %v9187_v12 = vpop.f32.mrf.mxu2 }
 0x596   : > { %v16759_v22 = vld [vmem:[%s25374_s10 + $0xce4] sm:$0xf0]  ;;  %v16459_v12 = vld [vmem:[%s25374_s10 + $0x38c] sm:$0xf] }
 0x597   : > { %v15331_v24 = vld [vmem:[%s25374_s10 + $0x1b08] sm:$0xf]  ;;  %v13508_v29 = vor.u32 %v16759_v22, %v13507_v63  ;;  %9517 = vmatpush.bf16.msra.mxu0 %v15076_v13 }
 0x598   : > { %v17215_v40 = vld [vmem:[%s25374_s10 + $0x1b24] sm:$0xf0] }
 0x599   : > { %v13763_v47 = vld [vmem:[%s25374_s10 + $0xec8] sm:$0xf]  ;;  %v15332_v11 = vor.u32 %v17215_v40, %v15331_v24  ;;  %9440 = vmatpush.bf16.msra.mxu2 %v13508_v29  ;;  %v9200_v40 = vpop.f32.mrf.mxu3 }
 0x59a   : > { %v16823_v21 = vld [vmem:[%s25374_s10 + $0xee4] sm:$0xf0] }
 0x59b   : > { %v15043_v25 = vld [vmem:[%s25374_s10 + $0x18c8] sm:$0xf]  ;;  %v13764_v1 = vor.u32 %v16823_v21, %v13763_v47  ;;  %9530 = vmatpush.bf16.msrb.mxu1 %v15332_v11 }
 0x59c   : > { %v17143_v5 = vld [vmem:[%s25374_s10 + $0x18e4] sm:$0xf0] }
 0x59d   : > { %v13475_v3 = vld [vmem:[%s25374_s10 + $0xc88] sm:$0xf]  ;;  %v15044_v55 = vor.u32 %v17143_v5, %v15043_v25  ;;  %9453 = vmatpush.bf16.msra.mxu3 %v13764_v1 }
 0x59e   : > { %v16751_v46 = vld [vmem:[%s25374_s10 + $0xca4] sm:$0xf0] }
 0x59f   : > { %v15299_v43 = vld [vmem:[%s25374_s10 + $0x1ac8] sm:$0xf]  ;;  %v13476_v62 = vor.u32 %v16751_v46, %v13475_v3  ;;  %9518 = vmatpush.bf16.msra.mxu0 %v15044_v55 }
 0x5a0   : > { %v17207_v45 = vld [vmem:[%s25374_s10 + $0x1ae4] sm:$0xf0] }
 0x5a1   : > { %v13731_v42 = vld [vmem:[%s25374_s10 + $0xe88] sm:$0xf]  ;;  %v15300_v38 = vor.u32 %v17207_v45, %v15299_v43  ;;  %9441 = vmatpush.bf16.msra.mxu2 %v13476_v62  ;;  %v16403_v45 = vld [vmem:[%s25374_s10 + $0x1cc] sm:$0xf] }
 0x5a2   : > { %v16815_v18 = vld [vmem:[%s25374_s10 + $0xea4] sm:$0xf0] }
 0x5a3   : > { %v15011_v49 = vld [vmem:[%s25374_s10 + $0x1888] sm:$0xf]  ;;  %v13732_v61 = vor.u32 %v16815_v18, %v13731_v42  ;;  %9531 = vmatpush.bf16.msrb.mxu1 %v15300_v38  ;;  %v12357_v38 = vld [vmem:[%s25374_s10 + $0x3e8] sm:$0xf0] }
 0x5a4   : > { %v17135_v8 = vld [vmem:[%s25374_s10 + $0x18a4] sm:$0xf0] }
 0x5a5   : > { %v13443_v51 = vld [vmem:[%s25374_s10 + $0xc48] sm:$0xf]  ;;  %v15012_v4 = vor.u32 %v17135_v8, %v15011_v49  ;;  %9454 = vmatpush.bf16.msra.mxu3 %v13732_v61 }
 0x5a6   : > { %v16743_v32 = vld [vmem:[%s25374_s10 + $0xc64] sm:$0xf0] }
 0x5a7   : > { %v15267_v48 = vld [vmem:[%s25374_s10 + $0x1a88] sm:$0xf]  ;;  %v13444_v53 = vor.u32 %v16743_v32, %v13443_v51  ;;  %9519 = vmatpush.bf16.msra.mxu0 %v15012_v4  ;;  %v12104_v51 = vor.u32 %v16403_v45, %v12101_v50  ;;  %v12069_v4 = vld [vmem:[%s25374_s10 + $0x1a8] sm:$0xf0]  ;;  %v20915_v45 = vpop.f32.mrf.mxu0 }
 0x5a8   : > { %v17199_v17 = vld [vmem:[%s25374_s10 + $0x1aa4] sm:$0xf0] }
 0x5a9   : > { %v13699_v37 = vld [vmem:[%s25374_s10 + $0xe48] sm:$0xf]  ;;  %v15268_v63 = vor.u32 %v17199_v17, %v15267_v48  ;;  %9442 = vmatpush.bf16.msra.mxu2 %v13444_v53  ;;  %v16395_v17 = vld [vmem:[%s25374_s10 + $0x18c] sm:$0xf] }
 0x5aa   : > { %v16807_v14 = vld [vmem:[%s25374_s10 + $0xe64] sm:$0xf0] }
 0x5ab   : > { %v14979_v2 = vld [vmem:[%s25374_s10 + $0x1848] sm:$0xf]  ;;  %v13700_v24 = vor.u32 %v16807_v14, %v13699_v37  ;;  %9532 = vmatpush.bf16.msrb.mxu1 %v15268_v63  ;;  %v12360_v37 = vor.u32 %v16467_v15, %v12357_v38  ;;  %v9237_v38 = vpop.f32.mrf.mxu2 }
 0x5ac   : > { %v17127_v57 = vld [vmem:[%s25374_s10 + $0x1864] sm:$0xf0] }
 0x5ad   : > { %v13411_v22 = vld [vmem:[%s25374_s10 + $0xc08] sm:$0xf]  ;;  %v14980_v29 = vor.u32 %v17127_v57, %v14979_v2  ;;  %9455 = vmatpush.bf16.msra.mxu3 %v13700_v24  ;;  %v12325_v2 = vld [vmem:[%s25374_s10 + $0x3a8] sm:$0xf0]  ;;  %v12072_v57 = vor.u32 %v16395_v17, %v12069_v4 }
 0x5ae   : > { %v16735_v10 = vld [vmem:[%s25374_s10 + $0xc24] sm:$0xf0]  ;;  %v12037_v24 = vld [vmem:[%s25374_s10 + $0x168] sm:$0xf0]  ;;  %v12328_v40 = vor.u32 %v16459_v12, %v12325_v2 }
 0x5af   : > { %v14659_v20 = vld [vmem:[%s25374_s10 + $0x15c8] sm:$0xf]  ;;  %v13412_v5 = vor.u32 %v16735_v10, %v13411_v22  ;;  %9520 = vmatpush.bf16.msra.mxu0 %v14980_v29  ;;  %v16451_v29 = vld [vmem:[%s25374_s10 + $0x34c] sm:$0xf] }
 0x5b0   : > { %v17047_v13 = vld [vmem:[%s25374_s10 + $0x15e4] sm:$0xf0] }
 0x5b1   : > { %v15235_v47 = vld [vmem:[%s25374_s10 + $0x1a48] sm:$0xf]  ;;  %v14660_v3 = vor.u32 %v17047_v13, %v14659_v20  ;;  %9443 = vmatpush.bf16.msra.mxu2 %v13412_v5  ;;  %v16387_v20 = vld [vmem:[%s25374_s10 + $0x14c] sm:$0xf] }
 0x5b2   : > { %v17191_v21 = vld [vmem:[%s25374_s10 + $0x1a64] sm:$0xf0] }
 0x5b3   : > { %v13667_v59 = vld [vmem:[%s25374_s10 + $0xe08] sm:$0xf]  ;;  %v15236_v46 = vor.u32 %v17191_v21, %v15235_v47 }
 0x5b4   : > { %v16799_v25 = vld [vmem:[%s25374_s10 + $0xe24] sm:$0xf0]  ;;  %9444 = vmatmul.bf16.vlgmr.msra.gmra.mxu2 %v19212_v26 }
 0x5b5   : > { %v14915_v52 = vld [vmem:[%s25374_s10 + $0x17c8] sm:$0xf]  ;;  %v13668_v43 = vor.u32 %v16799_v25, %v13667_v59  ;;  %9488 = vmatpush.bf16.msrb.mxu2 %v14660_v3  ;;  %9533 = vmatpush.bf16.msrb.mxu1 %v15236_v46  ;;  %v12293_v59 = vld [vmem:[%s25374_s10 + $0x368] sm:$0xf0]  ;;  %v12040_v25 = vor.u32 %v16387_v20, %v12037_v24 }
 0x5b6   : > { %v17111_v11 = vld [vmem:[%s25374_s10 + $0x17e4] sm:$0xf0]  ;;  %v16379_v3 = vld [vmem:[%s25374_s10 + $0x10c] sm:$0xf] }
 0x5b7   : > { %v14947_v1 = vld [vmem:[%s25374_s10 + $0x1808] sm:$0xf]  ;;  %v14916_v42 = vor.u32 %v17111_v11, %v14915_v52  ;;  %9456 = vmatpush.bf16.msra.mxu3 %v13668_v43  ;;  %v12005_v46 = vld [vmem:[%s25374_s10 + $0x128] sm:$0xf0] }
 0x5b8   : > { %v17119_v7 = vld [vmem:[%s25374_s10 + $0x1824] sm:$0xf0] }
 0x5b9   : > { %v14627_v55 = vld [vmem:[%s25374_s10 + $0x1588] sm:$0xf]  ;;  %v14948_v8 = vor.u32 %v17119_v7, %v14947_v1  ;;  %v12296_v1 = vor.u32 %v16451_v29, %v12293_v59 }
 0x5ba   : > { %v17039_v18 = vld [vmem:[%s25374_s10 + $0x15a4] sm:$0xf0]  ;;  %9457 = vmatmul.bf16.vlgmr.msra.gmra.mxu3 %v19233_v9 }
 0x5bb   : > { %v15203_v62 = vld [vmem:[%s25374_s10 + $0x1a08] sm:$0xf]  ;;  %v14628_v61 = vor.u32 %v17039_v18, %v14627_v55  ;;  %9501 = vmatpush.bf16.msrb.mxu3 %v14916_v42  ;;  %9521 = vmatpush.bf16.msra.mxu0 %v14948_v8  ;;  %v16443_v55 = vld [vmem:[%s25374_s10 + $0x30c] sm:$0xf]  ;;  %v12008_v18 = vor.u32 %v16379_v3, %v12005_v46  ;;  %v20929_v8 = vpop.f32.mrf.mxu1  ;;  %v9239_v3 = vpop.f32.mrf.mxu2 }
 0x5bc   : > { %v17183_v49 = vld [vmem:[%s25374_s10 + $0x1a24] sm:$0xf0]  ;;  %v12261_v42 = vld [vmem:[%s25374_s10 + $0x328] sm:$0xf0] }
 0x5bd   : > { %v14883_v32 = vld [vmem:[%s25374_s10 + $0x1788] sm:$0xf]  ;;  %v15204_v48 = vor.u32 %v17183_v49, %v15203_v62  ;;  %9489 = vmatpush.bf16.msrb.mxu2 %v14628_v61  ;;  %v12264_v61 = vor.u32 %v16443_v55, %v12261_v42  ;;  %v16355_v46 = vld [vmem:[%s25374_s10 + $0x4c] sm:$0xf] }
 0x5be   : > { %v17103_v27 = vld [vmem:[%s25374_s10 + $0x17a4] sm:$0xf0]  ;;  %9522 = vmatmul.bf16.vlgmr.msra.gmra.mxu0 %v19323_v60  ;;  %v16715_v3 = vld [vmem:[%s25374_s10 + $0xb8c] sm:$0xf] }
 0x5bf   : > { %v14595_v14 = vld [vmem:[%s25374_s10 + $0x1548] sm:$0xf]  ;;  %v14884_v53 = vor.u32 %v17103_v27, %v14883_v32  ;;  %9566 = vmatpush.bf16.msrb.mxu0 %v12104_v51  ;;  %9534 = vmatpush.bf16.msrb.mxu1 %v15204_v48  ;;  %v16371_v51 = vld [vmem:[%s25374_s10 + $0xcc] sm:$0xf]  ;;  %v9238_v27 = vadd.f32 %v9237_v38, %v20777_v54 }
 0x5c0   : > { %v17031_v19 = vld [vmem:[%s25374_s10 + $0x1564] sm:$0xf0]  ;;  %v11973_v32 = vld [vmem:[%s25374_s10 + $0xe8] sm:$0xf0] }
 0x5c1   : > { %v14851_v63 = vld [vmem:[%s25374_s10 + $0x1748] sm:$0xf]  ;;  %v14596_v10 = vor.u32 %v17031_v19, %v14595_v14  ;;  %9502 = vmatpush.bf16.msrb.mxu3 %v14884_v53  ;;  %v16435_v14 = vld [vmem:[%s25374_s10 + $0x2cc] sm:$0xf]  ;;  %v11976_v53 = vor.u32 %v16371_v51, %v11973_v32 }
 0x5c2   : > { %v17095_v22 = vld [vmem:[%s25374_s10 + $0x1764] sm:$0xf0]  ;;  %9535 = vmatmul.bf16.vlgmr.msrb.gmra.mxu1 %v19338_v23  ;;  %v12229_v54 = vld [vmem:[%s25374_s10 + $0x2e8] sm:$0xf0] }
 0x5c3   : > { %9579 = vmatpush.bf16.msra.mxu1 %v12360_v37  ;;  %v14563_v13 = vld [vmem:[%s25374_s10 + $0x1508] sm:$0xf]  ;;  %v14852_v21 = vor.u32 %v17095_v22, %v14851_v63  ;;  %9567 = vmatpush.bf16.msrb.mxu0 %v12072_v57  ;;  %v9250_v37 = vpop.f32.mrf.mxu3  ;;  %v16363_v63 = vld [vmem:[%s25374_s10 + $0x8c] sm:$0xf]  ;;  %v12232_v20 = vor.u32 %v16435_v14, %v12229_v54 }
 0x5c4   : > { %v17023_v47 = vld [vmem:[%s25374_s10 + $0x1524] sm:$0xf0]  ;;  %9490 = vmatpush.bf16.msrb.mxu2 %v14596_v10  ;;  %v9251_v19 = vadd.f32 %v9250_v37, %v9238_v27  ;;  %v11941_v22 = vld [vmem:[%s25374_s10 + $0xa8] sm:$0xf0] }
 0x5c5   : > { %v14819_v5 = vld [vmem:[%s25374_s10 + $0x1708] sm:$0xf]  ;;  %v14564_v11 = vor.u32 %v17023_v47, %v14563_v13  ;;  %9503 = vmatpush.bf16.msrb.mxu3 %v14852_v21  ;;  %v9317_v13 = vpop.f32.mrf.mxu0  ;;  %v16427_v21 = vld [vmem:[%s25374_s10 + $0x28c] sm:$0xf]  ;;  %v11944_v29 = vor.u32 %v16363_v63, %v11941_v22 }
 0x5c6   : > { %v17087_v52 = vld [vmem:[%s25374_s10 + $0x1724] sm:$0xf0]  ;;  %v9264_v10 = vadd.f32 %v20710_v58, %v9251_v19  ;;  %v12197_v58 = vld [vmem:[%s25374_s10 + $0x2a8] sm:$0xf0] }
 0x5c7   : > { %9580 = vmatpush.bf16.msra.mxu1 %v12328_v40  ;;  %v14531_v7 = vld [vmem:[%s25374_s10 + $0x14c8] sm:$0xf]  ;;  %v14820_v50 = vor.u32 %v17087_v52, %v14819_v5  ;;  %9568 = vmatpush.bf16.msrb.mxu0 %v12040_v25  ;;  %v9330_v52 = vpop.f32.mrf.mxu1  ;;  %v11877_v37 = vld [vmem:[%s25374_s10 + $0x28] sm:$0xf0] }
 0x5c8   : > { %v17015_v43 = vld [vmem:[%s25374_s10 + $0x14e4] sm:$0xf0]  ;;  %9491 = vmatpush.bf16.msrb.mxu2 %v14564_v11  ;;  %v20982_v5 = vadd.f32 %v20724_v28, %v9264_v10  ;;  %v16659_v54 = vld [vmem:[%s25374_s10 + $0x9cc] sm:$0xf] }
 0x5c9   : > { %v14787_v62 = vld [vmem:[%s25374_s10 + $0x16c8] sm:$0xf]  ;;  %v14532_v15 = vor.u32 %v17015_v43, %v14531_v7  ;;  %9504 = vmatpush.bf16.msrb.mxu3 %v14820_v50  ;;  %v12200_v7 = vor.u32 %v16427_v21, %v12197_v58  ;;  %v13125_v19 = vld [vmem:[%s25374_s10 + $0x9e8] sm:$0xf0] }
 0x5ca   : > { %v17079_v49 = vld [vmem:[%s25374_s10 + $0x16e4] sm:$0xf0]  ;;  %v12133_v63 = vld [vmem:[%s25374_s10 + $0x228] sm:$0xf0] }
 0x5cb   : > { %9581 = vmatpush.bf16.msra.mxu1 %v12296_v1  ;;  %v14499_v48 = vld [vmem:[%s25374_s10 + $0x1488] sm:$0xf]  ;;  %v14788_v4 = vor.u32 %v17079_v49, %v14787_v62  ;;  %9569 = vmatpush.bf16.msrb.mxu0 %v12008_v18  ;;  %v11909_v1 = vld [vmem:[%s25374_s10 + $0x68] sm:$0xf0]  ;;  %v9252_v42 = vpop.f32.mrf.mxu3 }
 0x5cc   : > { %v17007_v17 = vld [vmem:[%s25374_s10 + $0x14a4] sm:$0xf0]  ;;  %9492 = vmatpush.bf16.msrb.mxu2 %v14532_v15  ;;  %v16419_v62 = vld [vmem:[%s25374_s10 + $0x24c] sm:$0xf]  ;;  %v11912_v15 = vor.u32 %v16355_v46, %v11909_v1 }
 0x5cd   : > { %v14755_v12 = vld [vmem:[%s25374_s10 + $0x1688] sm:$0xf]  ;;  %v14500_v57 = vor.u32 %v17007_v17, %v14499_v48  ;;  %9505 = vmatpush.bf16.msrb.mxu3 %v14788_v4  ;;  %v12165_v49 = vld [vmem:[%s25374_s10 + $0x268] sm:$0xf0] }
 0x5ce   : > { %v17071_v2 = vld [vmem:[%s25374_s10 + $0x16a4] sm:$0xf0]  ;;  %v12168_v17 = vor.u32 %v16419_v62, %v12165_v49  ;;  %v16347_v4 = vld [vmem:[%s25374_s10 + $0xc] sm:$0xf] }
 0x5cf   : > { %9582 = vmatpush.bf16.msra.mxu1 %v12264_v61  ;;  %v14467_v24 = vld [vmem:[%s25374_s10 + $0x1448] sm:$0xf]  ;;  %v14756_v47 = vor.u32 %v17071_v2, %v14755_v12  ;;  %9570 = vmatpush.bf16.msrb.mxu0 %v11976_v53  ;;  %v11880_v22 = vor.u32 %v16347_v4, %v11877_v37  ;;  %v16723_v10 = vld [vmem:[%s25374_s10 + $0xbcc] sm:$0xf] }
 0x5d0   : > { %v16999_v40 = vld [vmem:[%s25374_s10 + $0x1464] sm:$0xf0]  ;;  %9493 = vmatpush.bf16.msrb.mxu2 %v14500_v57  ;;  %v16411_v57 = vld [vmem:[%s25374_s10 + $0x20c] sm:$0xf] }
 0x5d1   : > { %v14723_v59 = vld [vmem:[%s25374_s10 + $0x1648] sm:$0xf]  ;;  %v14468_v11 = vor.u32 %v16999_v40, %v14467_v24  ;;  %9506 = vmatpush.bf16.msrb.mxu3 %v14756_v47  ;;  %v13128_v24 = vor.u32 %v16659_v54, %v13125_v19  ;;  %v12136_v21 = vor.u32 %v16411_v57, %v12133_v63  ;;  %v16651_v58 = vld [vmem:[%s25374_s10 + $0x98c] sm:$0xf] }
 0x5d2   : > { %v17063_v25 = vld [vmem:[%s25374_s10 + $0x1664] sm:$0xf0]  ;;  %v13349_v46 = vld [vmem:[%s25374_s10 + $0xba8] sm:$0xf0] }
 0x5d3   : > { %9583 = vmatpush.bf16.msra.mxu1 %v12232_v20  ;;  %v14435_v43 = vld [vmem:[%s25374_s10 + $0x1408] sm:$0xf]  ;;  %v14724_v55 = vor.u32 %v17063_v25, %v14723_v59  ;;  %9571 = vmatpush.bf16.msrb.mxu0 %v11944_v29  ;;  %v13381_v20 = vld [vmem:[%s25374_s10 + $0xbe8] sm:$0xf0]  ;;  %v13352_v42 = vor.u32 %v16715_v3, %v13349_v46  ;;  %v9302_v3 = vpop.f32.mrf.mxu3 }
 0x5d4   : > { %v16991_v28 = vld [vmem:[%s25374_s10 + $0x1424] sm:$0xf0]  ;;  %9494 = vmatpush.bf16.msrb.mxu2 %v14468_v11  ;;  %v13093_v29 = vld [vmem:[%s25374_s10 + $0x9a8] sm:$0xf0]  ;;  %v13384_v59 = vor.u32 %v16723_v10, %v13381_v20 }
 0x5d5   : > { %v15683_v50 = vld [vmem:[%s25374_s10 + $0x1dc8] sm:$0xf]  ;;  %v14436_v32 = vor.u32 %v16991_v28, %v14435_v43  ;;  %9507 = vmatpush.bf16.msrb.mxu3 %v14724_v55  ;;  %v13096_v1 = vor.u32 %v16651_v58, %v13093_v29  ;;  %v13061_v55 = vld [vmem:[%s25374_s10 + $0x968] sm:$0xf0] }
 0x5d6   : > { %v17303_v18 = vld [vmem:[%s25374_s10 + $0x1de4] sm:$0xf0]  ;;  %v16635_v4 = vld [vmem:[%s25374_s10 + $0x90c] sm:$0xf] }
 0x5d7   : > { %v14691_v38 = vld [vmem:[%s25374_s10 + $0x1608] sm:$0xf]  ;;  %9584 = vmatpush.bf16.msra.mxu1 %v12200_v7  ;;  %v15684_v48 = vor.u32 %v17303_v18, %v15683_v50  ;;  %9572 = vmatpush.bf16.msrb.mxu0 %v11912_v15  ;;  %v16643_v50 = vld [vmem:[%s25374_s10 + $0x94c] sm:$0xf] }
 0x5d8   : > { %v17055_v51 = vld [vmem:[%s25374_s10 + $0x1624] sm:$0xf0]  ;;  %9495 = vmatpush.bf16.msrb.mxu2 %v14436_v32  ;;  %v16707_v15 = vld [vmem:[%s25374_s10 + $0xb4c] sm:$0xf]  ;;  %v17585_v32 = vld [vmem:[%s25375_s11] sm:$0xff] }
 0x5d9   : > { %v15939_v27 = vld [vmem:[%s25374_s10 + $0x1fc8] sm:$0xf]  ;;  %v14692_v14 = vor.u32 %v17055_v51, %v14691_v38  ;;  %v13317_v38 = vld [vmem:[%s25374_s10 + $0xb68] sm:$0xf0]  ;;  %v13064_v51 = vor.u32 %v16643_v50, %v13061_v55 }
 0x5da   : > { %v17367_v61 = vld [vmem:[%s25374_s10 + $0x1fe4] sm:$0xf0]  ;;  %v13029_v37 = vld [vmem:[%s25374_s10 + $0x928] sm:$0xf0] }
 0x5db   : > { %v15651_v53 = vld [vmem:[%s25374_s10 + $0x1d88] sm:$0xf]  ;;  %v15940_v12 = vor.u32 %v17367_v61, %v15939_v27  ;;  %9585 = vmatpush.bf16.msra.mxu1 %v12168_v17  ;;  %9508 = vmatpush.bf16.msrb.mxu3 %v14692_v14  ;;  %v8928_v27 = vperm.slane %v17585_v32, 2  ;;  %v13320_v14 = vor.u32 %v16707_v15, %v13317_v38  ;;  %v13285_v57 = vld [vmem:[%s25374_s10 + $0xb28] sm:$0xf0] }
 0x5dc   : > { %v17295_v2 = vld [vmem:[%s25374_s10 + $0x1da4] sm:$0xf0]  ;;  %9540 = vmatpush.bf16.msra.mxu2 %v15684_v48  ;;  %9573 = vmatpush.bf16.msrb.mxu0 %v11880_v22  ;;  %v13032_v22 = vor.u32 %v16635_v4, %v13029_v37  ;;  %v16691_v46 = vld [vmem:[%s25374_s10 + $0xacc] sm:$0xf] }
 0x5dd   : > { %v15907_v40 = vld [vmem:[%s25374_s10 + $0x1f88] sm:$0xf]  ;;  %v15652_v47 = vor.u32 %v17295_v2, %v15651_v53  ;;  %9496 = vmatmul.bf16.vlgmr.msrb.gmra.mxu2 %v19424_v0  ;;  %v9367_v53 = vpop.f32.mrf.mxu0  ;;  %v16699_v2 = vld [vmem:[%s25374_s10 + $0xb0c] sm:$0xf] }
 0x5de   : > { %v17359_v13 = vld [vmem:[%s25374_s10 + $0x1fa4] sm:$0xf0]  ;;  %9509 = vmatmul.bf16.vlgmr.msrb.gmra.mxu3 %v19433_v34  ;;  %v9368_v63 = vadd.f32 %v9367_v53, %v8928_v27  ;;  %v16619_v55 = vld [vmem:[%s25374_s10 + $0x88c] sm:$0xf] }
 0x5df   : > { %9553 = vmatpush.bf16.msra.mxu3 %v15940_v12  ;;  %v15619_v25 = vld [vmem:[%s25374_s10 + $0x1d48] sm:$0xf]  ;;  %v15908_v11 = vor.u32 %v17359_v13, %v15907_v40  ;;  %9586 = vmatpush.bf16.msra.mxu1 %v12136_v21  ;;  %v9289_v13 = vpop.f32.mrf.mxu2  ;;  %v12997_v21 = vld [vmem:[%s25374_s10 + $0x8e8] sm:$0xf0] }
 0x5e0   : > { %v17287_v52 = vld [vmem:[%s25374_s10 + $0x1d64] sm:$0xf0]  ;;  %9618 = vmatpush.bf16.msra.mxu0 %v13128_v24  ;;  %9541 = vmatpush.bf16.msra.mxu2 %v15652_v47  ;;  %v9380_v24 = vpop.f32.mrf.mxu1  ;;  %v16627_v47 = vld [vmem:[%s25374_s10 + $0x8cc] sm:$0xf]  ;;  %v9290_v29 = vadd.f32 %v9289_v13, %v20982_v5 }
 0x5e1   : > { %v15875_v7 = vld [vmem:[%s25374_s10 + $0x1f48] sm:$0xf]  ;;  %v15620_v28 = vor.u32 %v17287_v52, %v15619_v25  ;;  %9574 = vmatmul.bf16.vlgmr.msrb.gmra.mxu0 %v18972_v44  ;;  %v21141_v58 = vadd.f32 %v9380_v24, %v9368_v63  ;;  %v13253_v5 = vld [vmem:[%s25374_s10 + $0xae8] sm:$0xf0]  ;;  %v9304_v63 = vpop.f32.mrf.mxu3 }
 0x5e2   : > { %v17351_v43 = vld [vmem:[%s25374_s10 + $0x1f64] sm:$0xf0]  ;;  %9587 = vmatmul.bf16.vlgmr.msra.gmra.mxu1 %v18984_v41  ;;  %v16683_v32 = vld [vmem:[%s25374_s10 + $0xa8c] sm:$0xf] }
 0x5e3   : > { %9631 = vmatpush.bf16.msrb.mxu1 %v13384_v59  ;;  %v15587_v18 = vld [vmem:[%s25374_s10 + $0x1d08] sm:$0xf]  ;;  %9554 = vmatpush.bf16.msra.mxu3 %v15908_v11  ;;  %v15876_v49 = vor.u32 %v17351_v43, %v15875_v7  ;;  %v13288_v59 = vor.u32 %v16699_v2, %v13285_v57  ;;  %v13000_v7 = vor.u32 %v16627_v47, %v12997_v21  ;;  %v16531_v2 = vld [vmem:[%s25374_s10 + $0x5cc] sm:$0xf] }
 0x5e4   : > { %v17279_v62 = vld [vmem:[%s25374_s10 + $0x1d24] sm:$0xf0]  ;;  %9619 = vmatpush.bf16.msra.mxu0 %v13096_v1  ;;  %9542 = vmatpush.bf16.msra.mxu2 %v15620_v28  ;;  %v9303_v1 = vadd.f32 %v9302_v3, %v9290_v29  ;;  %v16595_v21 = vld [vmem:[%s25374_s10 + $0x7cc] sm:$0xf] }
 0x5e5   : > { %v15843_v61 = vld [vmem:[%s25374_s10 + $0x1f08] sm:$0xf]  ;;  %v15588_v17 = vor.u32 %v17279_v62, %v15587_v18  ;;  %v13256_v62 = vor.u32 %v16691_v46, %v13253_v5  ;;  %v9369_v38 = vpop.f32.mrf.mxu0  ;;  %v12869_v29 = vld [vmem:[%s25374_s10 + $0x7e8] sm:$0xf0] }
 0x5e6   : > { %v17343_v48 = vld [vmem:[%s25374_s10 + $0x1f24] sm:$0xf0]  ;;  %v9316_v18 = vadd.f32 %v20915_v45, %v9303_v1  ;;  %v13221_v45 = vld [vmem:[%s25374_s10 + $0xaa8] sm:$0xf0] }
 0x5e7   : > { %9632 = vmatpush.bf16.msrb.mxu1 %v13352_v42  ;;  %v15555_v54 = vld [vmem:[%s25374_s10 + $0x1cc8] sm:$0xf]  ;;  %9555 = vmatpush.bf16.msra.mxu3 %v15876_v49  ;;  %v15844_v12 = vor.u32 %v17343_v48, %v15843_v61  ;;  %v12965_v42 = vld [vmem:[%s25374_s10 + $0x8a8] sm:$0xf0]  ;;  %v13224_v53 = vor.u32 %v16683_v32, %v13221_v45 }
 0x5e8   : > { %v17271_v19 = vld [vmem:[%s25374_s10 + $0x1ce4] sm:$0xf0]  ;;  %9620 = vmatpush.bf16.msra.mxu0 %v13064_v51  ;;  %9543 = vmatpush.bf16.msra.mxu2 %v15588_v17  ;;  %v12968_v27 = vor.u32 %v16619_v55, %v12965_v42  ;;  %v21188_v17 = vadd.f32 %v20929_v8, %v9316_v18  ;;  %v9382_v4 = vpop.f32.mrf.mxu1  ;;  %v16915_v46 = vld [vmem:[%s25374_s10 + $0x11cc] sm:$0xf] }
 0x5e9   : > { %v15811_v10 = vld [vmem:[%s25374_s10 + $0x1ec8] sm:$0xf]  ;;  %v15556_v40 = vor.u32 %v17271_v19, %v15555_v54  ;;  %v16611_v54 = vld [vmem:[%s25374_s10 + $0x84c] sm:$0xf] }
 0x5ea   : > { %v17335_v20 = vld [vmem:[%s25374_s10 + $0x1ee4] sm:$0xf0]  ;;  %v12933_v19 = vld [vmem:[%s25374_s10 + $0x868] sm:$0xf0] }
 0x5eb   : > { %9633 = vmatpush.bf16.msrb.mxu1 %v13320_v14  ;;  %v15523_v25 = vld [vmem:[%s25374_s10 + $0x1c88] sm:$0xf]  ;;  %9556 = vmatpush.bf16.msra.mxu3 %v15844_v12  ;;  %v15812_v11 = vor.u32 %v17335_v20, %v15811_v10  ;;  %v9291_v14 = vpop.f32.mrf.mxu2  ;;  %v16675_v10 = vld [vmem:[%s25374_s10 + $0xa4c] sm:$0xf]  ;;  %v12936_v24 = vor.u32 %v16611_v54, %v12933_v19 }
 0x5ec   : > { %v17263_v52 = vld [vmem:[%s25374_s10 + $0x1ca4] sm:$0xf0]  ;;  %9621 = vmatpush.bf16.msra.mxu0 %v13032_v22  ;;  %9544 = vmatpush.bf16.msra.mxu2 %v15556_v40  ;;  %v12613_v22 = vld [vmem:[%s25374_s10 + $0x5e8] sm:$0xf0] }
 0x5ed   : > { %v15779_v43 = vld [vmem:[%s25374_s10 + $0x1e88] sm:$0xf]  ;;  %v15524_v50 = vor.u32 %v17263_v52, %v15523_v25  ;;  %v13189_v20 = vld [vmem:[%s25374_s10 + $0xa68] sm:$0xf0] }
 0x5ee   : > { %v17327_v28 = vld [vmem:[%s25374_s10 + $0x1ea4] sm:$0xf0]  ;;  %v13192_v25 = vor.u32 %v16675_v10, %v13189_v20  ;;  %v16603_v52 = vld [vmem:[%s25374_s10 + $0x80c] sm:$0xf] }
 0x5ef   : > { %9634 = vmatpush.bf16.msrb.mxu1 %v13288_v59  ;;  %v15491_v49 = vld [vmem:[%s25374_s10 + $0x1c48] sm:$0xf]  ;;  %9557 = vmatpush.bf16.msra.mxu3 %v15812_v11  ;;  %v15780_v51 = vor.u32 %v17327_v28, %v15779_v43  ;;  %v12616_v59 = vor.u32 %v16531_v2, %v12613_v22  ;;  %v12901_v11 = vld [vmem:[%s25374_s10 + $0x828] sm:$0xf0] }
 0x5f0   : > { %v17255_v15 = vld [vmem:[%s25374_s10 + $0x1c64] sm:$0xf0]  ;;  %9622 = vmatpush.bf16.msra.mxu0 %v13000_v7  ;;  %9545 = vmatpush.bf16.msra.mxu2 %v15524_v50  ;;  %v14149_v5 = vld [vmem:[%s25374_s10 + $0x11e8] sm:$0xf0]  ;;  %v12872_v7 = vor.u32 %v16595_v21, %v12869_v29  ;;  %v12904_v55 = vor.u32 %v16603_v52, %v12901_v11 }
 0x5f1   : > { %v15747_v61 = vld [vmem:[%s25374_s10 + $0x1e48] sm:$0xf]  ;;  %v15492_v37 = vor.u32 %v17255_v15, %v15491_v49  ;;  %v16523_v1 = vld [vmem:[%s25374_s10 + $0x58c] sm:$0xf] }
 0x5f2   : > { %v17319_v48 = vld [vmem:[%s25374_s10 + $0x1e64] sm:$0xf0]  ;;  %v12581_v43 = vld [vmem:[%s25374_s10 + $0x5a8] sm:$0xf0] }
 0x5f3   : > { %9635 = vmatpush.bf16.msrb.mxu1 %v13256_v62  ;;  %v15459_v12 = vld [vmem:[%s25374_s10 + $0x1c08] sm:$0xf]  ;;  %9558 = vmatpush.bf16.msra.mxu3 %v15780_v51  ;;  %v15748_v57 = vor.u32 %v17319_v48, %v15747_v61  ;;  %v16667_v28 = vld [vmem:[%s25374_s10 + $0xa0c] sm:$0xf]  ;;  %v14152_v62 = vor.u32 %v16915_v46, %v14149_v5  ;;  %v12584_v38 = vor.u32 %v16523_v1, %v12581_v43 }
 0x5f4   : > { %v17247_v8 = vld [vmem:[%s25374_s10 + $0x1c24] sm:$0xf0]  ;;  %9623 = vmatpush.bf16.msra.mxu0 %v12968_v27  ;;  %9546 = vmatpush.bf16.msra.mxu2 %v15492_v37  ;;  %v13157_v50 = vld [vmem:[%s25374_s10 + $0xa28] sm:$0xf0] }
 0x5f5   : > { %v15715_v40 = vld [vmem:[%s25374_s10 + $0x1e08] sm:$0xf]  ;;  %v15460_v47 = vor.u32 %v17247_v8, %v15459_v12  ;;  %v16979_v42 = vld [vmem:[%s25374_s10 + $0x13cc] sm:$0xf]  ;;  %v13160_v51 = vor.u32 %v16667_v28, %v13157_v50  ;;  %v21340_v50 = vpop.f32.mrf.mxu1 }
 0x5f6   : > { %v17311_v13 = vld [vmem:[%s25374_s10 + $0x1e24] sm:$0xf0]  ;;  %v14405_v18 = vld [vmem:[%s25374_s10 + $0x13e8] sm:$0xf0] }
 0x5f7   : > { %9636 = vmatpush.bf16.msrb.mxu1 %v13224_v53  ;;  %9559 = vmatpush.bf16.msra.mxu3 %v15748_v57  ;;  %v15716_v3 = vor.u32 %v17311_v13, %v15715_v40  ;;  %v16587_v49 = vld [vmem:[%s25374_s10 + $0x78c] sm:$0xf]  ;;  %v14408_v27 = vor.u32 %v16979_v42, %v14405_v18  ;;  %v9341_v42 = vpop.f32.mrf.mxu2 }
 0x5f8   : > { %9624 = vmatpush.bf16.msra.mxu0 %v12936_v24  ;;  %9547 = vmatpush.bf16.msra.mxu2 %v15460_v47  ;;  %v12837_v15 = vld [vmem:[%s25374_s10 + $0x7a8] sm:$0xf0] }
 0x5f9   : > { %v16907_v32 = vld [vmem:[%s25374_s10 + $0x118c] sm:$0xf]  ;;  %v12840_v4 = vor.u32 %v16587_v49, %v12837_v15  ;;  %v9342_v49 = vadd.f32 %v9341_v42, %v21188_v17 }
 0x5fa   : > { %v14117_v45 = vld [vmem:[%s25374_s10 + $0x11a8] sm:$0xf0] }
 0x5fb   : > { %9637 = vmatpush.bf16.msrb.mxu1 %v13192_v25  ;;  %9560 = vmatpush.bf16.msra.mxu3 %v15716_v3  ;;  %v16515_v61 = vld [vmem:[%s25374_s10 + $0x54c] sm:$0xf]  ;;  %v14120_v54 = vor.u32 %v16907_v32, %v14117_v45  ;;  %v21326_v3 = vpop.f32.mrf.mxu0  ;;  %v9354_v45 = vpop.f32.mrf.mxu3 }
 0x5fc   : > { %9592 = vmatpush.bf16.msrb.mxu2 %v12616_v59  ;;  %v12549_v48 = vld [vmem:[%s25374_s10 + $0x568] sm:$0xf0]  ;;  %9625 = vmatpush.bf16.msra.mxu0 %v12904_v55 }
 0x5fd   : > { %9548 = vmatmul.bf16.vlgmr.msra.gmra.mxu2 %v19620_v16  ;;  %v16971_v37 = vld [vmem:[%s25374_s10 + $0x138c] sm:$0xf]  ;;  %v12552_v12 = vor.u32 %v16515_v61, %v12549_v48  ;;  %v21361_v61 = vadd.f32 %v9354_v45, %v9342_v49 }
 0x5fe   : > { %v14373_v14 = vld [vmem:[%s25374_s10 + $0x13a8] sm:$0xf0]  ;;  %9561 = vmatmul.bf16.vlgmr.msra.gmra.mxu3 %v19635_v6 }
 0x5ff   : > { %9605 = vmatpush.bf16.msrb.mxu3 %v12872_v7  ;;  %v16579_v19 = vld [vmem:[%s25374_s10 + $0x74c] sm:$0xf]  ;;  %9638 = vmatpush.bf16.msrb.mxu1 %v13160_v51  ;;  %v14376_v57 = vor.u32 %v16971_v37, %v14373_v14 }
 0x600   : > { %9670 = vmatpush.bf16.msrb.mxu0 %v14152_v62  ;;  %v12805_v53 = vld [vmem:[%s25374_s10 + $0x768] sm:$0xf0]  ;;  %9593 = vmatpush.bf16.msrb.mxu2 %v12584_v38 }
 0x601   : > { %v16899_v8 = vld [vmem:[%s25374_s10 + $0x114c] sm:$0xf]  ;;  %9626 = vmatmul.bf16.vlgmr.msra.gmra.mxu0 %v18992_v39  ;;  %v12808_v10 = vor.u32 %v16579_v19, %v12805_v53 }
 0x602   : > { %v14085_v2 = vld [vmem:[%s25374_s10 + $0x1168] sm:$0xf0]  ;;  %9639 = vmatmul.bf16.vlgmr.msrb.gmra.mxu1 %v18994_v36 }
 0x603   : > { %9683 = vmatpush.bf16.msra.mxu1 %v14408_v27  ;;  %v16507_v63 = vld [vmem:[%s25374_s10 + $0x50c] sm:$0xf]  ;;  %9606 = vmatpush.bf16.msrb.mxu3 %v12840_v4  ;;  %v14088_v40 = vor.u32 %v16899_v8, %v14085_v2  ;;  %v9421_v2 = vpop.f32.mrf.mxu0 }
 0x604   : > { %v12517_v22 = vld [vmem:[%s25374_s10 + $0x528] sm:$0xf0]  ;;  %9671 = vmatpush.bf16.msrb.mxu0 %v14120_v54  ;;  %9594 = vmatpush.bf16.msrb.mxu2 %v12552_v12 }
 0x605   : > { %v16963_v20 = vld [vmem:[%s25374_s10 + $0x134c] sm:$0xf]  ;;  %v12520_v21 = vor.u32 %v16507_v63, %v12517_v22 }
 0x606   : > { %v14341_v24 = vld [vmem:[%s25374_s10 + $0x1368] sm:$0xf0] }
 0x607   : > { %v16571_v13 = vld [vmem:[%s25374_s10 + $0x70c] sm:$0xf]  ;;  %9684 = vmatpush.bf16.msra.mxu1 %v14376_v57  ;;  %v14344_v25 = vor.u32 %v16963_v20, %v14341_v24  ;;  %9607 = vmatpush.bf16.msrb.mxu3 %v12808_v10 }
 0x608   : > { %v12773_v47 = vld [vmem:[%s25374_s10 + $0x728] sm:$0xf0]  ;;  %9672 = vmatpush.bf16.msrb.mxu0 %v14088_v40  ;;  %9595 = vmatpush.bf16.msrb.mxu2 %v12520_v21  ;;  %v9434_v40 = vpop.f32.mrf.mxu1 }
 0x609   : > { %v16891_v29 = vld [vmem:[%s25374_s10 + $0x110c] sm:$0xf]  ;;  %v12776_v46 = vor.u32 %v16571_v13, %v12773_v47  ;;  %v9343_v47 = vpop.f32.mrf.mxu2 }
 0x60a   : > { %v14053_v59 = vld [vmem:[%s25374_s10 + $0x1128] sm:$0xf0] }
 0x60b   : > { %v16499_v52 = vld [vmem:[%s25374_s10 + $0x4cc] sm:$0xf]  ;;  %v14056_v7 = vor.u32 %v16891_v29, %v14053_v59  ;;  %9685 = vmatpush.bf16.msra.mxu1 %v14344_v25  ;;  %9608 = vmatpush.bf16.msrb.mxu3 %v12776_v46 }
 0x60c   : > { %v12485_v11 = vld [vmem:[%s25374_s10 + $0x4e8] sm:$0xf0] }
 0x60d   : > { %v16955_v5 = vld [vmem:[%s25374_s10 + $0x130c] sm:$0xf]  ;;  %v12488_v55 = vor.u32 %v16499_v52, %v12485_v11  ;;  %9673 = vmatpush.bf16.msrb.mxu0 %v14056_v7 }
 0x60e   : > { %v14309_v1 = vld [vmem:[%s25374_s10 + $0x1328] sm:$0xf0] }
 0x60f   : > { %v16563_v43 = vld [vmem:[%s25374_s10 + $0x6cc] sm:$0xf]  ;;  %v14312_v15 = vor.u32 %v16955_v5, %v14309_v1  ;;  %9596 = vmatpush.bf16.msrb.mxu2 %v12488_v55  ;;  %v9356_v5 = vpop.f32.mrf.mxu3 }
 0x610   : > { %v12741_v28 = vld [vmem:[%s25374_s10 + $0x6e8] sm:$0xf0] }
 0x611   : > { %v16883_v18 = vld [vmem:[%s25374_s10 + $0x10cc] sm:$0xf]  ;;  %v12744_v32 = vor.u32 %v16563_v43, %v12741_v28  ;;  %9686 = vmatpush.bf16.msra.mxu1 %v14312_v15 }
 0x612   : > { %v14021_v62 = vld [vmem:[%s25374_s10 + $0x10e8] sm:$0xf0] }
 0x613   : > { %v16491_v38 = vld [vmem:[%s25374_s10 + $0x48c] sm:$0xf]  ;;  %v14024_v48 = vor.u32 %v16883_v18, %v14021_v62  ;;  %9609 = vmatpush.bf16.msrb.mxu3 %v12744_v32 }
 0x614   : > { %v12453_v51 = vld [vmem:[%s25374_s10 + $0x4a8] sm:$0xf0] }
 0x615   : > { %v16947_v27 = vld [vmem:[%s25374_s10 + $0x12cc] sm:$0xf]  ;;  %v12456_v14 = vor.u32 %v16491_v38, %v12453_v51  ;;  %9674 = vmatpush.bf16.msrb.mxu0 %v14024_v48 }
 0x616   : > { %v14277_v17 = vld [vmem:[%s25374_s10 + $0x12e8] sm:$0xf0] }
 0x617   : > { %v16555_v4 = vld [vmem:[%s25374_s10 + $0x68c] sm:$0xf]  ;;  %v14280_v53 = vor.u32 %v16947_v27, %v14277_v17  ;;  %9597 = vmatpush.bf16.msrb.mxu2 %v12456_v14 }
 0x618   : > { %v12709_v37 = vld [vmem:[%s25374_s10 + $0x6a8] sm:$0xf0] }
 0x619   : > { %v16875_v54 = vld [vmem:[%s25374_s10 + $0x108c] sm:$0xf]  ;;  %v12712_v57 = vor.u32 %v16555_v4, %v12709_v37  ;;  %9687 = vmatpush.bf16.msra.mxu1 %v14280_v53 }
 0x61a   : > { %v13989_v19 = vld [vmem:[%s25374_s10 + $0x10a8] sm:$0xf0] }
 0x61b   : > { %v16483_v12 = vld [vmem:[%s25374_s10 + $0x44c] sm:$0xf]  ;;  %v13992_v10 = vor.u32 %v16875_v54, %v13989_v19  ;;  %9610 = vmatpush.bf16.msrb.mxu3 %v12712_v57 }
 0x61c   : > { %v12421_v8 = vld [vmem:[%s25374_s10 + $0x468] sm:$0xf0] }
 0x61d   : > { %v16939_v63 = vld [vmem:[%s25374_s10 + $0x128c] sm:$0xf]  ;;  %v12424_v13 = vor.u32 %v16483_v12, %v12421_v8  ;;  %9675 = vmatpush.bf16.msrb.mxu0 %v13992_v10 }
 0x61e   : > { %v14245_v22 = vld [vmem:[%s25374_s10 + $0x12a8] sm:$0xf0] }
 0x61f   : > { %v16547_v20 = vld [vmem:[%s25374_s10 + $0x64c] sm:$0xf]  ;;  %v14248_v59 = vor.u32 %v16939_v63, %v14245_v22  ;;  %9598 = vmatpush.bf16.msrb.mxu2 %v12424_v13 }
 0x620   : > { %v12677_v24 = vld [vmem:[%s25374_s10 + $0x668] sm:$0xf0] }
 0x621   : > { %v16867_v21 = vld [vmem:[%s25374_s10 + $0x104c] sm:$0xf]  ;;  %v12680_v46 = vor.u32 %v16547_v20, %v12677_v24  ;;  %9688 = vmatpush.bf16.msra.mxu1 %v14248_v59 }
 0x622   : > { %v13957_v29 = vld [vmem:[%s25374_s10 + $0x1068] sm:$0xf0] }
 0x623   : > { %v16475_v25 = vld [vmem:[%s25374_s10 + $0x40c] sm:$0xf]  ;;  %v13960_v28 = vor.u32 %v16867_v21, %v13957_v29  ;;  %9611 = vmatpush.bf16.msrb.mxu3 %v12680_v46 }
 0x624   : > { %v12389_v52 = vld [vmem:[%s25374_s10 + $0x428] sm:$0xf0] }
 0x625   : > { %v16787_v11 = vld [vmem:[%s25374_s10 + $0xdcc] sm:$0xf]  ;;  %v12392_v18 = vor.u32 %v16475_v25, %v12389_v52  ;;  %9676 = vmatpush.bf16.msrb.mxu0 %v13960_v28 }
 0x626   : > { %v13637_v1 = vld [vmem:[%s25374_s10 + $0xde8] sm:$0xf0] }
 0x627   : > { %v16931_v7 = vld [vmem:[%s25374_s10 + $0x124c] sm:$0xf]  ;;  %v13640_v15 = vor.u32 %v16787_v11, %v13637_v1  ;;  %9599 = vmatpush.bf16.msrb.mxu2 %v12392_v18 }
 0x628   : > { %v14213_v43 = vld [vmem:[%s25374_s10 + $0x1268] sm:$0xf0] }
 0x629   : > { %v16539_v55 = vld [vmem:[%s25374_s10 + $0x60c] sm:$0xf]  ;;  %v14216_v38 = vor.u32 %v16931_v7, %v14213_v43 }
 0x62a   : > { %v12645_v42 = vld [vmem:[%s25374_s10 + $0x628] sm:$0xf0]  ;;  %9600 = vmatmul.bf16.vlgmr.msrb.gmra.mxu2 %v19089_v30 }
 0x62b   : > { %v16851_v62 = vld [vmem:[%s25374_s10 + $0xfcc] sm:$0xf]  ;;  %v12648_v45 = vor.u32 %v16539_v55, %v12645_v42  ;;  %9644 = vmatpush.bf16.msra.mxu2 %v13640_v15  ;;  %9689 = vmatpush.bf16.msra.mxu1 %v14216_v38 }
 0x62c   : > { %v13893_v49 = vld [vmem:[%s25374_s10 + $0xfe8] sm:$0xf0] }
 0x62d   : > { %v16859_v51 = vld [vmem:[%s25374_s10 + $0x100c] sm:$0xf]  ;;  %v13896_v4 = vor.u32 %v16851_v62, %v13893_v49  ;;  %9612 = vmatpush.bf16.msrb.mxu3 %v12648_v45 }
 0x62e   : > { %v13925_v32 = vld [vmem:[%s25374_s10 + $0x1028] sm:$0xf0] }
 0x62f   : > { %v17171_v27 = vld [vmem:[%s25374_s10 + $0x19cc] sm:$0xf]  ;;  %v13928_v19 = vor.u32 %v16859_v51, %v13925_v32 }
 0x630   : > { %v15173_v17 = vld [vmem:[%s25374_s10 + $0x19e8] sm:$0xf0]  ;;  %9613 = vmatmul.bf16.vlgmr.msrb.gmra.mxu3 %v19097_v33 }
 0x631   : > { %v16779_v48 = vld [vmem:[%s25374_s10 + $0xd8c] sm:$0xf]  ;;  %v15176_v8 = vor.u32 %v17171_v27, %v15173_v17  ;;  %9657 = vmatpush.bf16.msra.mxu3 %v13896_v4  ;;  %9677 = vmatpush.bf16.msrb.mxu0 %v13928_v19  ;;  %v21529_v17 = vpop.f32.mrf.mxu0 }
 0x632   : > { %v13605_v37 = vld [vmem:[%s25374_s10 + $0xda8] sm:$0xf0] }
 0x633   : > { %v16923_v14 = vld [vmem:[%s25374_s10 + $0x120c] sm:$0xf]  ;;  %v13608_v63 = vor.u32 %v16779_v48, %v13605_v37 }
 0x634   : > { %v14181_v54 = vld [vmem:[%s25374_s10 + $0x1228] sm:$0xf0]  ;;  %9678 = vmatmul.bf16.vlgmr.msrb.gmra.mxu0 %v19202_v56 }
 0x635   : > { %v17235_v53 = vld [vmem:[%s25374_s10 + $0x1bcc] sm:$0xf]  ;;  %v14184_v22 = vor.u32 %v16923_v14, %v14181_v54  ;;  %9722 = vmatpush.bf16.msra.mxu0 %v15176_v8  ;;  %9645 = vmatpush.bf16.msra.mxu2 %v13608_v63  ;;  %v9393_v8 = vpop.f32.mrf.mxu2 }
 0x636   : > { %v15429_v12 = vld [vmem:[%s25374_s10 + $0x1be8] sm:$0xf0]  ;;  %v9394_v63 = vadd.f32 %v9393_v8, %v21141_v58 }
 0x637   : > { %v16843_v2 = vld [vmem:[%s25374_s10 + $0xf8c] sm:$0xf]  ;;  %v15432_v24 = vor.u32 %v17235_v53, %v15429_v12  ;;  %9690 = vmatpush.bf16.msra.mxu1 %v14184_v22  ;;  %v21543_v53 = vpop.f32.mrf.mxu1 }
 0x638   : > { %v13861_v57 = vld [vmem:[%s25374_s10 + $0xfa8] sm:$0xf0] }
 0x639   : > { %v17163_v10 = vld [vmem:[%s25374_s10 + $0x198c] sm:$0xf]  ;;  %v13864_v47 = vor.u32 %v16843_v2, %v13861_v57 }
 0x63a   : > { %v15141_v20 = vld [vmem:[%s25374_s10 + $0x19a8] sm:$0xf0]  ;;  %9691 = vmatmul.bf16.vlgmr.msra.gmra.mxu1 %v19217_v35 }
 0x63b   : > { %v16771_v40 = vld [vmem:[%s25374_s10 + $0xd4c] sm:$0xf]  ;;  %v15144_v59 = vor.u32 %v17163_v10, %v15141_v20  ;;  %9735 = vmatpush.bf16.msrb.mxu1 %v15432_v24  ;;  %9658 = vmatpush.bf16.msra.mxu3 %v13864_v47 }
 0x63c   : > { %v13573_v13 = vld [vmem:[%s25374_s10 + $0xd68] sm:$0xf0] }
 0x63d   : > { %v17227_v21 = vld [vmem:[%s25374_s10 + $0x1b8c] sm:$0xf]  ;;  %v13576_v11 = vor.u32 %v16771_v40, %v13573_v13  ;;  %9723 = vmatpush.bf16.msra.mxu0 %v15144_v59  ;;  %v9406_v40 = vpop.f32.mrf.mxu3 }
 0x63e   : > { %v15397_v29 = vld [vmem:[%s25374_s10 + $0x1ba8] sm:$0xf0]  ;;  %v9407_v47 = vadd.f32 %v9406_v40, %v9394_v63 }
 0x63f   : > { %v16835_v25 = vld [vmem:[%s25374_s10 + $0xf4c] sm:$0xf]  ;;  %v15400_v1 = vor.u32 %v17227_v21, %v15397_v29  ;;  %9646 = vmatpush.bf16.msra.mxu2 %v13576_v11 }
 0x640   : > { %v13829_v52 = vld [vmem:[%s25374_s10 + $0xf68] sm:$0xf0] }
 0x641   : > { %v17155_v46 = vld [vmem:[%s25374_s10 + $0x194c] sm:$0xf]  ;;  %v13832_v28 = vor.u32 %v16835_v25, %v13829_v52  ;;  %9736 = vmatpush.bf16.msrb.mxu1 %v15400_v1 }
 0x642   : > { %v15109_v5 = vld [vmem:[%s25374_s10 + $0x1968] sm:$0xf0] }
 0x643   : > { %v16763_v7 = vld [vmem:[%s25374_s10 + $0xd0c] sm:$0xf]  ;;  %v15112_v18 = vor.u32 %v17155_v46, %v15109_v5  ;;  %9659 = vmatpush.bf16.msra.mxu3 %v13832_v28  ;;  %v9420_v46 = vadd.f32 %v21326_v3, %v9407_v47  ;;  %v12107_v47 = vld [vmem:[%s25374_s10 + $0x1d0] sm:$0xf] }
 0x644   : > { %v13541_v43 = vld [vmem:[%s25374_s10 + $0xd28] sm:$0xf0] }
 0x645   : > { %v17219_v55 = vld [vmem:[%s25374_s10 + $0x1b4c] sm:$0xf]  ;;  %v13544_v15 = vor.u32 %v16763_v7, %v13541_v43  ;;  %9724 = vmatpush.bf16.msra.mxu0 %v15112_v18  ;;  %v9473_v43 = vpop.f32.mrf.mxu0 }
 0x646   : > { %v15365_v42 = vld [vmem:[%s25374_s10 + $0x1b68] sm:$0xf0] }
 0x647   : > { %v16827_v62 = vld [vmem:[%s25374_s10 + $0xf0c] sm:$0xf]  ;;  %v15368_v32 = vor.u32 %v17219_v55, %v15365_v42  ;;  %9647 = vmatpush.bf16.msra.mxu2 %v13544_v15  ;;  %v9486_v15 = vpop.f32.mrf.mxu1 }
 0x648   : > { %v13797_v49 = vld [vmem:[%s25374_s10 + $0xf28] sm:$0xf0] }
 0x649   : > { %v17147_v38 = vld [vmem:[%s25374_s10 + $0x190c] sm:$0xf]  ;;  %v13800_v48 = vor.u32 %v16827_v62, %v13797_v49  ;;  %9737 = vmatpush.bf16.msrb.mxu1 %v15368_v32  ;;  %v21596_v49 = vadd.f32 %v21340_v50, %v9420_v46 }
 0x64a   : > { %v15077_v51 = vld [vmem:[%s25374_s10 + $0x1928] sm:$0xf0] }
 0x64b   : > { %v16755_v45 = vld [vmem:[%s25374_s10 + $0xccc] sm:$0xf]  ;;  %v15080_v14 = vor.u32 %v17147_v38, %v15077_v51  ;;  %9660 = vmatpush.bf16.msra.mxu3 %v13800_v48  ;;  %v9395_v51 = vpop.f32.mrf.mxu2 }
 0x64c   : > { %v13509_v27 = vld [vmem:[%s25374_s10 + $0xce8] sm:$0xf0] }
 0x64d   : > { %v17211_v4 = vld [vmem:[%s25374_s10 + $0x1b0c] sm:$0xf]  ;;  %v13512_v12 = vor.u32 %v16755_v45, %v13509_v27  ;;  %9725 = vmatpush.bf16.msra.mxu0 %v15080_v14  ;;  %v9408_v14 = vpop.f32.mrf.mxu3 }
 0x64e   : > { %v15333_v37 = vld [vmem:[%s25374_s10 + $0x1b28] sm:$0xf0]  ;;  %v16392_v14 = vld [vmem:[%s25374_s10 + $0x16c] sm:$0xf0] }
 0x64f   : > { %v16819_v54 = vld [vmem:[%s25374_s10 + $0xecc] sm:$0xf]  ;;  %v15336_v22 = vor.u32 %v17211_v4, %v15333_v37  ;;  %9648 = vmatpush.bf16.msra.mxu2 %v13512_v12 }
 0x650   : > { %v13765_v19 = vld [vmem:[%s25374_s10 + $0xee8] sm:$0xf0] }
 0x651   : > { %v17139_v2 = vld [vmem:[%s25374_s10 + $0x18cc] sm:$0xf]  ;;  %v13768_v24 = vor.u32 %v16819_v54, %v13765_v19  ;;  %9738 = vmatpush.bf16.msrb.mxu1 %v15336_v22 }
 0x652   : > { %v15045_v57 = vld [vmem:[%s25374_s10 + $0x18e8] sm:$0xf0] }
 0x653   : > { %v16747_v10 = vld [vmem:[%s25374_s10 + $0xc8c] sm:$0xf]  ;;  %v15048_v21 = vor.u32 %v17139_v2, %v15045_v57  ;;  %9661 = vmatpush.bf16.msra.mxu3 %v13768_v24 }
 0x654   : > { %v13477_v20 = vld [vmem:[%s25374_s10 + $0xca8] sm:$0xf0] }
 0x655   : > { %v17203_v13 = vld [vmem:[%s25374_s10 + $0x1acc] sm:$0xf]  ;;  %v13480_v25 = vor.u32 %v16747_v10, %v13477_v20  ;;  %9726 = vmatpush.bf16.msra.mxu0 %v15048_v21  ;;  %v16408_v21 = vld [vmem:[%s25374_s10 + $0x1ec] sm:$0xf0] }
 0x656   : > { %v15301_v58 = vld [vmem:[%s25374_s10 + $0x1ae8] sm:$0xf0] }
 0x657   : > { %v16811_v29 = vld [vmem:[%s25374_s10 + $0xe8c] sm:$0xf]  ;;  %v15304_v5 = vor.u32 %v17203_v13, %v15301_v58  ;;  %9649 = vmatpush.bf16.msra.mxu2 %v13480_v25 }
 0x658   : > { %v13733_v59 = vld [vmem:[%s25374_s10 + $0xea8] sm:$0xf0] }
 0x659   : > { %v17131_v52 = vld [vmem:[%s25374_s10 + $0x188c] sm:$0xf]  ;;  %v13736_v28 = vor.u32 %v16811_v29, %v13733_v59  ;;  %9739 = vmatpush.bf16.msrb.mxu1 %v15304_v5  ;;  %v12363_v5 = vld [vmem:[%s25374_s10 + $0x3d0] sm:$0xf] }
 0x65a   : > { %v15013_v11 = vld [vmem:[%s25374_s10 + $0x18a8] sm:$0xf0] }
 0x65b   : > { %v16739_v1 = vld [vmem:[%s25374_s10 + $0xc4c] sm:$0xf]  ;;  %v15016_v42 = vor.u32 %v17131_v52, %v15013_v11  ;;  %9662 = vmatpush.bf16.msra.mxu3 %v13736_v28 }
 0x65c   : > { %v13445_v7 = vld [vmem:[%s25374_s10 + $0xc68] sm:$0xf0] }
 0x65d   : > { %v17195_v55 = vld [vmem:[%s25374_s10 + $0x1a8c] sm:$0xf]  ;;  %v13448_v38 = vor.u32 %v16739_v1, %v13445_v7  ;;  %9727 = vmatpush.bf16.msra.mxu0 %v15016_v42  ;;  %v16472_v1 = vld [vmem:[%s25374_s10 + $0x3ec] sm:$0xf0]  ;;  %v12108_v7 = vor.u32 %v16408_v21, %v12107_v47  ;;  %v21734_v21 = vpop.f32.mrf.mxu0 }
 0x65e   : > { %v15269_v3 = vld [vmem:[%s25374_s10 + $0x1aa8] sm:$0xf0]  ;;  %v12075_v42 = vld [vmem:[%s25374_s10 + $0x190] sm:$0xf] }
 0x65f   : > { %v16803_v18 = vld [vmem:[%s25374_s10 + $0xe4c] sm:$0xf]  ;;  %v15272_v27 = vor.u32 %v17195_v55, %v15269_v3  ;;  %9650 = vmatpush.bf16.msra.mxu2 %v13448_v38 }
 0x660   : > { %v13701_v62 = vld [vmem:[%s25374_s10 + $0xe68] sm:$0xf0] }
 0x661   : > { %v17123_v32 = vld [vmem:[%s25374_s10 + $0x184c] sm:$0xf]  ;;  %v13704_v37 = vor.u32 %v16803_v18, %v13701_v62  ;;  %9740 = vmatpush.bf16.msrb.mxu1 %v15272_v27  ;;  %v16400_v18 = vld [vmem:[%s25374_s10 + $0x1ac] sm:$0xf0]  ;;  %v12364_v62 = vor.u32 %v16472_v1, %v12363_v5  ;;  %v21748_v5 = vpop.f32.mrf.mxu1 }
 0x662   : > { %v14981_v45 = vld [vmem:[%s25374_s10 + $0x1868] sm:$0xf0]  ;;  %v12076_v27 = vor.u32 %v16400_v18, %v12075_v42 }
 0x663   : > { %v16731_v48 = vld [vmem:[%s25374_s10 + $0xc0c] sm:$0xf]  ;;  %v14984_v8 = vor.u32 %v17123_v32, %v14981_v45  ;;  %9663 = vmatpush.bf16.msra.mxu3 %v13704_v37  ;;  %v12331_v32 = vld [vmem:[%s25374_s10 + $0x390] sm:$0xf] }
 0x664   : > { %v13413_v50 = vld [vmem:[%s25374_s10 + $0xc28] sm:$0xf0]  ;;  %v16464_v45 = vld [vmem:[%s25374_s10 + $0x3ac] sm:$0xf0] }
 0x665   : > { %v17043_v4 = vld [vmem:[%s25374_s10 + $0x15cc] sm:$0xf]  ;;  %v13416_v63 = vor.u32 %v16731_v48, %v13413_v50  ;;  %9728 = vmatpush.bf16.msra.mxu0 %v14984_v8  ;;  %v12043_v37 = vld [vmem:[%s25374_s10 + $0x150] sm:$0xf] }
 0x666   : > { %v14661_v54 = vld [vmem:[%s25374_s10 + $0x15e8] sm:$0xf0] }
 0x667   : > { %v17187_v19 = vld [vmem:[%s25374_s10 + $0x1a4c] sm:$0xf]  ;;  %v14664_v20 = vor.u32 %v17043_v4, %v14661_v54  ;;  %9651 = vmatpush.bf16.msra.mxu2 %v13416_v63  ;;  %v12332_v54 = vor.u32 %v16464_v45, %v12331_v32  ;;  %v12044_v63 = vor.u32 %v16392_v14, %v12043_v37 }
 0x668   : > { %v15237_v12 = vld [vmem:[%s25374_s10 + $0x1a68] sm:$0xf0] }
 0x669   : > { %v16795_v2 = vld [vmem:[%s25374_s10 + $0xe0c] sm:$0xf]  ;;  %v15240_v24 = vor.u32 %v17187_v19, %v15237_v12 }
 0x66a   : > { %v13669_v57 = vld [vmem:[%s25374_s10 + $0xe28] sm:$0xf0]  ;;  %9652 = vmatmul.bf16.vlgmr.msra.gmra.mxu2 %v19212_v26 }
 0x66b   : > { %v17107_v22 = vld [vmem:[%s25374_s10 + $0x17cc] sm:$0xf]  ;;  %v13672_v58 = vor.u32 %v16795_v2, %v13669_v57  ;;  %9696 = vmatpush.bf16.msrb.mxu2 %v14664_v20  ;;  %9741 = vmatpush.bf16.msrb.mxu1 %v15240_v24  ;;  %v12299_v2 = vld [vmem:[%s25374_s10 + $0x350] sm:$0xf] }
 0x66c   : > { %v14917_v10 = vld [vmem:[%s25374_s10 + $0x17e8] sm:$0xf0]  ;;  %v16456_v57 = vld [vmem:[%s25374_s10 + $0x36c] sm:$0xf0] }
 0x66d   : > { %v17115_v40 = vld [vmem:[%s25374_s10 + $0x180c] sm:$0xf]  ;;  %v14920_v59 = vor.u32 %v17107_v22, %v14917_v10  ;;  %9664 = vmatpush.bf16.msra.mxu3 %v13672_v58  ;;  %v12011_v24 = vld [vmem:[%s25374_s10 + $0x110] sm:$0xf] }
 0x66e   : > { %v14949_v13 = vld [vmem:[%s25374_s10 + $0x1828] sm:$0xf0] }
 0x66f   : > { %v17035_v29 = vld [vmem:[%s25374_s10 + $0x158c] sm:$0xf]  ;;  %v14952_v46 = vor.u32 %v17115_v40, %v14949_v13  ;;  %v16384_v40 = vld [vmem:[%s25374_s10 + $0x12c] sm:$0xf0]  ;;  %v12300_v13 = vor.u32 %v16456_v57, %v12299_v2 }
 0x670   : > { %v14629_v25 = vld [vmem:[%s25374_s10 + $0x15a8] sm:$0xf0]  ;;  %9665 = vmatmul.bf16.vlgmr.msra.gmra.mxu3 %v19233_v9  ;;  %v12203_v2 = vld [vmem:[%s25374_s10 + $0x290] sm:$0xf] }
 0x671   : > { %v17179_v52 = vld [vmem:[%s25374_s10 + $0x1a0c] sm:$0xf]  ;;  %v14632_v55 = vor.u32 %v17035_v29, %v14629_v25  ;;  %9709 = vmatpush.bf16.msrb.mxu3 %v14920_v59  ;;  %9729 = vmatpush.bf16.msra.mxu0 %v14952_v46  ;;  %v12267_v59 = vld [vmem:[%s25374_s10 + $0x310] sm:$0xf] }
 0x672   : > { %v15205_v11 = vld [vmem:[%s25374_s10 + $0x1a28] sm:$0xf0]  ;;  %v16448_v25 = vld [vmem:[%s25374_s10 + $0x32c] sm:$0xf0] }
 0x673   : > { %v17099_v43 = vld [vmem:[%s25374_s10 + $0x178c] sm:$0xf]  ;;  %v15208_v3 = vor.u32 %v17179_v52, %v15205_v11  ;;  %9697 = vmatpush.bf16.msrb.mxu2 %v14632_v55  ;;  %v12012_v52 = vor.u32 %v16384_v40, %v12011_v24 }
 0x674   : > { %v14885_v28 = vld [vmem:[%s25374_s10 + $0x17a8] sm:$0xf0]  ;;  %9730 = vmatmul.bf16.vlgmr.msra.gmra.mxu0 %v19323_v60 }
 0x675   : > { %v17027_v15 = vld [vmem:[%s25374_s10 + $0x154c] sm:$0xf]  ;;  %v14888_v51 = vor.u32 %v17099_v43, %v14885_v28  ;;  %9774 = vmatpush.bf16.msrb.mxu0 %v12108_v7  ;;  %9742 = vmatpush.bf16.msrb.mxu1 %v15208_v3  ;;  %v9445_v7 = vpop.f32.mrf.mxu2  ;;  %v11979_v43 = vld [vmem:[%s25374_s10 + $0xd0] sm:$0xf]  ;;  %v12268_v3 = vor.u32 %v16448_v25, %v12267_v59 }
 0x676   : > { %v14597_v38 = vld [vmem:[%s25374_s10 + $0x1568] sm:$0xf0]  ;;  %v16376_v28 = vld [vmem:[%s25374_s10 + $0xec] sm:$0xf0]  ;;  %v9446_v55 = vadd.f32 %v9445_v7, %v21596_v49 }
 0x677   : > { %v17091_v48 = vld [vmem:[%s25374_s10 + $0x174c] sm:$0xf]  ;;  %v14600_v4 = vor.u32 %v17027_v15, %v14597_v38  ;;  %9710 = vmatpush.bf16.msrb.mxu3 %v14888_v51  ;;  %v9458_v15 = vpop.f32.mrf.mxu3  ;;  %v12235_v38 = vld [vmem:[%s25374_s10 + $0x2d0] sm:$0xf]  ;;  %v11980_v32 = vor.u32 %v16376_v28, %v11979_v43 }
 0x678   : > { %v14853_v50 = vld [vmem:[%s25374_s10 + $0x1768] sm:$0xf0]  ;;  %9743 = vmatmul.bf16.vlgmr.msrb.gmra.mxu1 %v19338_v23  ;;  %v16440_v49 = vld [vmem:[%s25374_s10 + $0x2ec] sm:$0xf0]  ;;  %v9459_v51 = vadd.f32 %v9458_v15, %v9446_v55 }
 0x679   : > { %9787 = vmatpush.bf16.msra.mxu1 %v12364_v62  ;;  %v17019_v19 = vld [vmem:[%s25374_s10 + $0x150c] sm:$0xf]  ;;  %v14856_v8 = vor.u32 %v17091_v48, %v14853_v50  ;;  %9775 = vmatpush.bf16.msrb.mxu0 %v12076_v27  ;;  %v11947_v50 = vld [vmem:[%s25374_s10 + $0x90] sm:$0xf]  ;;  %v12236_v14 = vor.u32 %v16440_v49, %v12235_v38 }
 0x67a   : > { %v14565_v12 = vld [vmem:[%s25374_s10 + $0x1528] sm:$0xf0]  ;;  %9698 = vmatpush.bf16.msrb.mxu2 %v14600_v4  ;;  %v16368_v4 = vld [vmem:[%s25374_s10 + $0xac] sm:$0xf0]  ;;  %v9472_v37 = vadd.f32 %v21529_v17, %v9459_v51 }
 0x67b   : > { %v17083_v22 = vld [vmem:[%s25374_s10 + $0x170c] sm:$0xf]  ;;  %v14568_v20 = vor.u32 %v17019_v19, %v14565_v12  ;;  %9711 = vmatpush.bf16.msrb.mxu3 %v14856_v8  ;;  %v9525_v12 = vpop.f32.mrf.mxu0  ;;  %v16432_v17 = vld [vmem:[%s25374_s10 + $0x2ac] sm:$0xf0]  ;;  %v11948_v57 = vor.u32 %v16368_v4, %v11947_v50 }
 0x67c   : > { %v14821_v10 = vld [vmem:[%s25374_s10 + $0x1728] sm:$0xf0]  ;;  %v11883_v15 = vld [vmem:[%s25374_s10 + $0x10] sm:$0xf] }
 0x67d   : > { %9788 = vmatpush.bf16.msra.mxu1 %v12332_v54  ;;  %v17011_v58 = vld [vmem:[%s25374_s10 + $0x14cc] sm:$0xf]  ;;  %v14824_v29 = vor.u32 %v17083_v22, %v14821_v10  ;;  %9776 = vmatpush.bf16.msrb.mxu0 %v12044_v63  ;;  %v21801_v10 = vadd.f32 %v21543_v53, %v9472_v37  ;;  %v9447_v40 = vpop.f32.mrf.mxu2  ;;  %v16352_v38 = vld [vmem:[%s25374_s10 + $0x2c] sm:$0xf0] }
 0x67e   : > { %v14533_v47 = vld [vmem:[%s25374_s10 + $0x14e8] sm:$0xf0]  ;;  %9699 = vmatpush.bf16.msrb.mxu2 %v14568_v20  ;;  %v9538_v20 = vpop.f32.mrf.mxu1  ;;  %v13131_v51 = vld [vmem:[%s25374_s10 + $0x9d0] sm:$0xf]  ;;  %v11884_v37 = vor.u32 %v16352_v38, %v11883_v15 }
 0x67f   : > { %v17075_v11 = vld [vmem:[%s25374_s10 + $0x16cc] sm:$0xf]  ;;  %v14536_v1 = vor.u32 %v17011_v58, %v14533_v47  ;;  %9712 = vmatpush.bf16.msrb.mxu3 %v14824_v29  ;;  %v16360_v58 = vld [vmem:[%s25374_s10 + $0x6c] sm:$0xf0]  ;;  %v12204_v47 = vor.u32 %v16432_v17, %v12203_v2 }
 0x680   : > { %v14789_v46 = vld [vmem:[%s25374_s10 + $0x16e8] sm:$0xf0]  ;;  %v12139_v50 = vld [vmem:[%s25374_s10 + $0x210] sm:$0xf] }
 0x681   : > { %9789 = vmatpush.bf16.msra.mxu1 %v12300_v13  ;;  %v17003_v42 = vld [vmem:[%s25374_s10 + $0x148c] sm:$0xf]  ;;  %v14792_v62 = vor.u32 %v17075_v11, %v14789_v46  ;;  %9777 = vmatpush.bf16.msrb.mxu0 %v12012_v52  ;;  %v11915_v13 = vld [vmem:[%s25374_s10 + $0x50] sm:$0xf]  ;;  %v9460_v52 = vpop.f32.mrf.mxu3 }
 0x682   : > { %v14501_v18 = vld [vmem:[%s25374_s10 + $0x14a8] sm:$0xf0]  ;;  %9700 = vmatpush.bf16.msrb.mxu2 %v14536_v1  ;;  %v12171_v46 = vld [vmem:[%s25374_s10 + $0x250] sm:$0xf]  ;;  %v11916_v7 = vor.u32 %v16360_v58, %v11915_v13 }
 0x683   : > { %v17067_v45 = vld [vmem:[%s25374_s10 + $0x168c] sm:$0xf]  ;;  %v14504_v48 = vor.u32 %v17003_v42, %v14501_v18  ;;  %9713 = vmatpush.bf16.msrb.mxu3 %v14792_v62  ;;  %v16424_v1 = vld [vmem:[%s25374_s10 + $0x26c] sm:$0xf0] }
 0x684   : > { %v14757_v27 = vld [vmem:[%s25374_s10 + $0x16a8] sm:$0xf0]  ;;  %v12172_v62 = vor.u32 %v16424_v1, %v12171_v46  ;;  %v16416_v4 = vld [vmem:[%s25374_s10 + $0x22c] sm:$0xf0] }
 0x685   : > { %9790 = vmatpush.bf16.msra.mxu1 %v12268_v3  ;;  %v16995_v54 = vld [vmem:[%s25374_s10 + $0x144c] sm:$0xf]  ;;  %v14760_v8 = vor.u32 %v17067_v45, %v14757_v27  ;;  %9778 = vmatpush.bf16.msrb.mxu0 %v11980_v32  ;;  %v16664_v32 = vld [vmem:[%s25374_s10 + $0x9ec] sm:$0xf0]  ;;  %v12140_v17 = vor.u32 %v16416_v4, %v12139_v50 }
 0x686   : > { %v14469_v19 = vld [vmem:[%s25374_s10 + $0x1468] sm:$0xf0]  ;;  %9701 = vmatpush.bf16.msrb.mxu2 %v14504_v48  ;;  %v13355_v13 = vld [vmem:[%s25374_s10 + $0xb90] sm:$0xf] }
 0x687   : > { %v17059_v63 = vld [vmem:[%s25374_s10 + $0x164c] sm:$0xf]  ;;  %v14472_v24 = vor.u32 %v16995_v54, %v14469_v19  ;;  %9714 = vmatpush.bf16.msrb.mxu3 %v14760_v8  ;;  %v16728_v54 = vld [vmem:[%s25374_s10 + $0xbec] sm:$0xf0]  ;;  %v13132_v19 = vor.u32 %v16664_v32, %v13131_v51 }
 0x688   : > { %v14725_v22 = vld [vmem:[%s25374_s10 + $0x1668] sm:$0xf0]  ;;  %v16720_v58 = vld [vmem:[%s25374_s10 + $0xbac] sm:$0xf0] }
 0x689   : > { %9791 = vmatpush.bf16.msra.mxu1 %v12236_v14  ;;  %v16987_v29 = vld [vmem:[%s25374_s10 + $0x140c] sm:$0xf]  ;;  %v14728_v25 = vor.u32 %v17059_v63, %v14725_v22  ;;  %9779 = vmatpush.bf16.msrb.mxu0 %v11948_v57  ;;  %v13387_v14 = vld [vmem:[%s25374_s10 + $0xbd0] sm:$0xf] }
 0x68a   : > { %v14437_v53 = vld [vmem:[%s25374_s10 + $0x1428] sm:$0xf0]  ;;  %9702 = vmatpush.bf16.msrb.mxu2 %v14472_v24  ;;  %v13099_v57 = vld [vmem:[%s25374_s10 + $0x990] sm:$0xf]  ;;  %v13388_v22 = vor.u32 %v16728_v54, %v13387_v14 }
 0x68b   : > { %v17299_v59 = vld [vmem:[%s25374_s10 + $0x1dcc] sm:$0xf]  ;;  %v14440_v55 = vor.u32 %v16987_v29, %v14437_v53  ;;  %9715 = vmatpush.bf16.msrb.mxu3 %v14728_v25  ;;  %v16656_v63 = vld [vmem:[%s25374_s10 + $0x9ac] sm:$0xf0] }
 0x68c   : > { %v15685_v11 = vld [vmem:[%s25374_s10 + $0x1de8] sm:$0xf0]  ;;  %v13067_v25 = vld [vmem:[%s25374_s10 + $0x950] sm:$0xf] }
 0x68d   : > { %v17051_v43 = vld [vmem:[%s25374_s10 + $0x160c] sm:$0xf]  ;;  %9792 = vmatpush.bf16.msra.mxu1 %v12204_v47  ;;  %v15688_v18 = vor.u32 %v17299_v59, %v15685_v11  ;;  %9780 = vmatpush.bf16.msrb.mxu0 %v11916_v7  ;;  %v13100_v47 = vor.u32 %v16656_v63, %v13099_v57  ;;  %v16648_v52 = vld [vmem:[%s25374_s10 + $0x96c] sm:$0xf0]  ;;  %v13356_v11 = vor.u32 %v16720_v58, %v13355_v13  ;;  %v9510_v58 = vpop.f32.mrf.mxu3 }
 0x68e   : > { %v14693_v28 = vld [vmem:[%s25374_s10 + $0x1628] sm:$0xf0]  ;;  %9703 = vmatpush.bf16.msrb.mxu2 %v14440_v55  ;;  %v13068_v55 = vor.u32 %v16648_v52, %v13067_v25  ;;  %v13035_v38 = vld [vmem:[%s25374_s10 + $0x910] sm:$0xf] }
 0x68f   : > { %v17363_v3 = vld [vmem:[%s25374_s10 + $0x1fcc] sm:$0xf]  ;;  %v14696_v49 = vor.u32 %v17051_v43, %v14693_v28  ;;  %v13323_v43 = vld [vmem:[%s25374_s10 + $0xb50] sm:$0xf] }
 0x690   : > { %v15941_v42 = vld [vmem:[%s25374_s10 + $0x1fe8] sm:$0xf0]  ;;  %v16712_v28 = vld [vmem:[%s25374_s10 + $0xb6c] sm:$0xf0] }
 0x691   : > { %v17291_v45 = vld [vmem:[%s25374_s10 + $0x1d8c] sm:$0xf]  ;;  %v15944_v27 = vor.u32 %v17363_v3, %v15941_v42  ;;  %9793 = vmatpush.bf16.msra.mxu1 %v12172_v62  ;;  %9716 = vmatpush.bf16.msrb.mxu3 %v14696_v49  ;;  %v17586_v3 = vld [vmem:[%s25375_s11] sm:$0xff]  ;;  %v16640_v49 = vld [vmem:[%s25374_s10 + $0x92c] sm:$0xf0]  ;;  %v13324_v51 = vor.u32 %v16712_v28, %v13323_v43 }
 0x692   : > { %v15653_v48 = vld [vmem:[%s25374_s10 + $0x1da8] sm:$0xf0]  ;;  %9748 = vmatpush.bf16.msra.mxu2 %v15688_v18  ;;  %9781 = vmatpush.bf16.msrb.mxu0 %v11884_v37  ;;  %v8929_v42 = vperm.slane %v17586_v3, 3  ;;  %v13291_v50 = vld [vmem:[%s25374_s10 + $0xb10] sm:$0xf]  ;;  %v13036_v14 = vor.u32 %v16640_v49, %v13035_v38 }
 0x693   : > { %v17355_v12 = vld [vmem:[%s25374_s10 + $0x1f8c] sm:$0xf]  ;;  %v15656_v2 = vor.u32 %v17291_v45, %v15653_v48  ;;  %9704 = vmatmul.bf16.vlgmr.msrb.gmra.mxu2 %v19424_v0  ;;  %v16704_v4 = vld [vmem:[%s25374_s10 + $0xb2c] sm:$0xf0] }
 0x694   : > { %v15909_v8 = vld [vmem:[%s25374_s10 + $0x1fa8] sm:$0xf0]  ;;  %9717 = vmatmul.bf16.vlgmr.msrb.gmra.mxu3 %v19433_v34  ;;  %v16632_v57 = vld [vmem:[%s25374_s10 + $0x8ec] sm:$0xf0] }
 0x695   : > { %9761 = vmatpush.bf16.msra.mxu3 %v15944_v27  ;;  %v17283_v20 = vld [vmem:[%s25374_s10 + $0x1d4c] sm:$0xf]  ;;  %v15912_v40 = vor.u32 %v17355_v12, %v15909_v8  ;;  %9794 = vmatpush.bf16.msra.mxu1 %v12140_v17  ;;  %v9575_v27 = vpop.f32.mrf.mxu0  ;;  %v9588_v12 = vpop.f32.mrf.mxu1  ;;  %v13003_v17 = vld [vmem:[%s25374_s10 + $0x8d0] sm:$0xf] }
 0x696   : > { %v15621_v24 = vld [vmem:[%s25374_s10 + $0x1d68] sm:$0xf0]  ;;  %9826 = vmatpush.bf16.msra.mxu0 %v13132_v19  ;;  %9749 = vmatpush.bf16.msra.mxu2 %v15656_v2  ;;  %v9576_v37 = vadd.f32 %v9575_v27, %v8929_v42  ;;  %v9497_v2 = vpop.f32.mrf.mxu2  ;;  %v13227_v42 = vld [vmem:[%s25374_s10 + $0xa90] sm:$0xf] }
 0x697   : > { %v17347_v29 = vld [vmem:[%s25374_s10 + $0x1f4c] sm:$0xf]  ;;  %v15624_v59 = vor.u32 %v17283_v20, %v15621_v24  ;;  %9782 = vmatmul.bf16.vlgmr.msrb.gmra.mxu0 %v18972_v44  ;;  %v13292_v20 = vor.u32 %v16704_v4, %v13291_v50  ;;  %v16616_v27 = vld [vmem:[%s25374_s10 + $0x86c] sm:$0xf0] }
 0x698   : > { %v15877_v53 = vld [vmem:[%s25374_s10 + $0x1f68] sm:$0xf0]  ;;  %9795 = vmatmul.bf16.vlgmr.msra.gmra.mxu1 %v18984_v41  ;;  %v21960_v63 = vadd.f32 %v9588_v12, %v9576_v37  ;;  %v12619_v4 = vld [vmem:[%s25374_s10 + $0x5d0] sm:$0xf] }
 0x699   : > { %9839 = vmatpush.bf16.msrb.mxu1 %v13388_v22  ;;  %v17275_v46 = vld [vmem:[%s25374_s10 + $0x1d0c] sm:$0xf]  ;;  %9762 = vmatpush.bf16.msra.mxu3 %v15912_v40  ;;  %v15880_v7 = vor.u32 %v17347_v29, %v15877_v53  ;;  %v9498_v22 = vadd.f32 %v9497_v2, %v21801_v10  ;;  %v16696_v10 = vld [vmem:[%s25374_s10 + $0xaec] sm:$0xf0]  ;;  %v13004_v53 = vor.u32 %v16632_v57, %v13003_v17 }
 0x69a   : > { %v15589_v1 = vld [vmem:[%s25374_s10 + $0x1d28] sm:$0xf0]  ;;  %9827 = vmatpush.bf16.msra.mxu0 %v13100_v47  ;;  %9750 = vmatpush.bf16.msra.mxu2 %v15624_v59  ;;  %v13259_v47 = vld [vmem:[%s25374_s10 + $0xad0] sm:$0xf] }
 0x69b   : > { %v17339_v18 = vld [vmem:[%s25374_s10 + $0x1f0c] sm:$0xf]  ;;  %v15592_v15 = vor.u32 %v17275_v46, %v15589_v1  ;;  %v9511_v29 = vadd.f32 %v9510_v58, %v9498_v22  ;;  %v16624_v46 = vld [vmem:[%s25374_s10 + $0x8ac] sm:$0xf0] }
 0x69c   : > { %v15845_v62 = vld [vmem:[%s25374_s10 + $0x1f28] sm:$0xf0]  ;;  %v16680_v12 = vld [vmem:[%s25374_s10 + $0xa6c] sm:$0xf0] }
 0x69d   : > { %9840 = vmatpush.bf16.msrb.mxu1 %v13356_v11  ;;  %v17267_v32 = vld [vmem:[%s25374_s10 + $0x1ccc] sm:$0xf]  ;;  %9763 = vmatpush.bf16.msra.mxu3 %v15880_v7  ;;  %v15848_v48 = vor.u32 %v17339_v18, %v15845_v62  ;;  %v12971_v11 = vld [vmem:[%s25374_s10 + $0x890] sm:$0xf]  ;;  %v9524_v1 = vadd.f32 %v21734_v21, %v9511_v29  ;;  %v13260_v7 = vor.u32 %v16696_v10, %v13259_v47  ;;  %v9590_v49 = vpop.f32.mrf.mxu1 }
 0x69e   : > { %v15557_v45 = vld [vmem:[%s25374_s10 + $0x1ce8] sm:$0xf0]  ;;  %9828 = vmatpush.bf16.msra.mxu0 %v13068_v55  ;;  %9751 = vmatpush.bf16.msra.mxu2 %v15592_v15  ;;  %v9577_v55 = vpop.f32.mrf.mxu0  ;;  %v16688_v21 = vld [vmem:[%s25374_s10 + $0xaac] sm:$0xf0]  ;;  %v12972_v18 = vor.u32 %v16624_v46, %v12971_v11 }
 0x69f   : > { %v17331_v54 = vld [vmem:[%s25374_s10 + $0x1ecc] sm:$0xf]  ;;  %v15560_v8 = vor.u32 %v17267_v32, %v15557_v45  ;;  %v22007_v38 = vadd.f32 %v21748_v5, %v9524_v1  ;;  %v9499_v32 = vpop.f32.mrf.mxu2  ;;  %v12939_v45 = vld [vmem:[%s25374_s10 + $0x850] sm:$0xf] }
 0x6a0   : > { %v15813_v19 = vld [vmem:[%s25374_s10 + $0x1ee8] sm:$0xf0]  ;;  %v12875_v22 = vld [vmem:[%s25374_s10 + $0x7d0] sm:$0xf] }
 0x6a1   : > { %9841 = vmatpush.bf16.msrb.mxu1 %v13324_v51  ;;  %v17259_v24 = vld [vmem:[%s25374_s10 + $0x1c8c] sm:$0xf]  ;;  %9764 = vmatpush.bf16.msra.mxu3 %v15848_v48  ;;  %v15816_v13 = vor.u32 %v17331_v54, %v15813_v19  ;;  %v13228_v48 = vor.u32 %v16688_v21, %v13227_v42  ;;  %v16536_v54 = vld [vmem:[%s25374_s10 + $0x5ec] sm:$0xf0] }
 0x6a2   : > { %v15525_v40 = vld [vmem:[%s25374_s10 + $0x1ca8] sm:$0xf0]  ;;  %9829 = vmatpush.bf16.msra.mxu0 %v13036_v14  ;;  %9752 = vmatpush.bf16.msra.mxu2 %v15560_v8  ;;  %v9512_v14 = vpop.f32.mrf.mxu3  ;;  %v13195_v19 = vld [vmem:[%s25374_s10 + $0xa50] sm:$0xf]  ;;  %v12940_v8 = vor.u32 %v16616_v27, %v12939_v45 }
 0x6a3   : > { %v17323_v59 = vld [vmem:[%s25374_s10 + $0x1e8c] sm:$0xf]  ;;  %v15528_v52 = vor.u32 %v17259_v24, %v15525_v40  ;;  %v12620_v24 = vor.u32 %v16536_v54, %v12619_v4  ;;  %v13196_v40 = vor.u32 %v16680_v12, %v13195_v19  ;;  %v16608_v58 = vld [vmem:[%s25374_s10 + $0x82c] sm:$0xf0] }
 0x6a4   : > { %v15781_v25 = vld [vmem:[%s25374_s10 + $0x1ea8] sm:$0xf0]  ;;  %v14155_v10 = vld [vmem:[%s25374_s10 + $0x11d0] sm:$0xf] }
 0x6a5   : > { %9842 = vmatpush.bf16.msrb.mxu1 %v13292_v20  ;;  %v17251_v43 = vld [vmem:[%s25374_s10 + $0x1c4c] sm:$0xf]  ;;  %9765 = vmatpush.bf16.msra.mxu3 %v15816_v13  ;;  %v15784_v3 = vor.u32 %v17323_v59, %v15781_v25  ;;  %v16600_v20 = vld [vmem:[%s25374_s10 + $0x7ec] sm:$0xf0] }
 0x6a6   : > { %v15493_v28 = vld [vmem:[%s25374_s10 + $0x1c68] sm:$0xf0]  ;;  %9830 = vmatpush.bf16.msra.mxu0 %v13004_v53  ;;  %9753 = vmatpush.bf16.msra.mxu2 %v15528_v52  ;;  %v12907_v13 = vld [vmem:[%s25374_s10 + $0x810] sm:$0xf]  ;;  %v12876_v59 = vor.u32 %v16600_v20, %v12875_v22 }
 0x6a7   : > { %v17315_v62 = vld [vmem:[%s25374_s10 + $0x1e4c] sm:$0xf]  ;;  %v15496_v51 = vor.u32 %v17251_v43, %v15493_v28  ;;  %v16920_v29 = vld [vmem:[%s25374_s10 + $0x11ec] sm:$0xf0]  ;;  %v12908_v46 = vor.u32 %v16608_v58, %v12907_v13 }
 0x6a8   : > { %v15749_v15 = vld [vmem:[%s25374_s10 + $0x1e68] sm:$0xf0]  ;;  %v12587_v53 = vld [vmem:[%s25374_s10 + $0x590] sm:$0xf]  ;;  %v14156_v43 = vor.u32 %v16920_v29, %v14155_v10  ;;  %v22145_v10 = vpop.f32.mrf.mxu0 }
 0x6a9   : > { %9843 = vmatpush.bf16.msrb.mxu1 %v13260_v7  ;;  %v17243_v50 = vld [vmem:[%s25374_s10 + $0x1c0c] sm:$0xf]  ;;  %9766 = vmatpush.bf16.msra.mxu3 %v15784_v3  ;;  %v15752_v37 = vor.u32 %v17315_v62, %v15749_v15  ;;  %v16528_v25 = vld [vmem:[%s25374_s10 + $0x5ac] sm:$0xf0] }
 0x6aa   : > { %v15461_v5 = vld [vmem:[%s25374_s10 + $0x1c28] sm:$0xf0]  ;;  %9831 = vmatpush.bf16.msra.mxu0 %v12972_v18  ;;  %9754 = vmatpush.bf16.msra.mxu2 %v15496_v51  ;;  %v13163_v52 = vld [vmem:[%s25374_s10 + $0xa10] sm:$0xf]  ;;  %v12588_v3 = vor.u32 %v16528_v25, %v12587_v53 }
 0x6ab   : > { %v17307_v2 = vld [vmem:[%s25374_s10 + $0x1e0c] sm:$0xf]  ;;  %v15464_v57 = vor.u32 %v17243_v50, %v15461_v5  ;;  %v16672_v11 = vld [vmem:[%s25374_s10 + $0xa2c] sm:$0xf0] }
 0x6ac   : > { %v15717_v17 = vld [vmem:[%s25374_s10 + $0x1e28] sm:$0xf0]  ;;  %v14411_v1 = vld [vmem:[%s25374_s10 + $0x13d0] sm:$0xf]  ;;  %v13164_v42 = vor.u32 %v16672_v11, %v13163_v52 }
 0x6ad   : > { %9844 = vmatpush.bf16.msrb.mxu1 %v13228_v48  ;;  %9767 = vmatpush.bf16.msra.mxu3 %v15752_v37  ;;  %v15720_v47 = vor.u32 %v17307_v2, %v15717_v17  ;;  %v16984_v7 = vld [vmem:[%s25374_s10 + $0x13ec] sm:$0xf0] }
 0x6ae   : > { %9832 = vmatpush.bf16.msra.mxu0 %v12940_v8  ;;  %9755 = vmatpush.bf16.msra.mxu2 %v15464_v57  ;;  %v12843_v28 = vld [vmem:[%s25374_s10 + $0x790] sm:$0xf]  ;;  %v14412_v62 = vor.u32 %v16984_v7, %v14411_v1  ;;  %v9549_v7 = vpop.f32.mrf.mxu2 }
 0x6af   : > { %v16592_v55 = vld [vmem:[%s25374_s10 + $0x7ac] sm:$0xf0] }
 0x6b0   : > { %v14123_v21 = vld [vmem:[%s25374_s10 + $0x1190] sm:$0xf]  ;;  %v12844_v51 = vor.u32 %v16592_v55, %v12843_v28  ;;  %v9550_v55 = vadd.f32 %v9549_v7, %v22007_v38 }
 0x6b1   : > { %9845 = vmatpush.bf16.msrb.mxu1 %v13196_v40  ;;  %9768 = vmatpush.bf16.msra.mxu3 %v15720_v47  ;;  %v16912_v18 = vld [vmem:[%s25374_s10 + $0x11ac] sm:$0xf0] }
 0x6b2   : > { %9800 = vmatpush.bf16.msrb.mxu2 %v12620_v24  ;;  %v12555_v15 = vld [vmem:[%s25374_s10 + $0x550] sm:$0xf]  ;;  %9833 = vmatpush.bf16.msra.mxu0 %v12908_v46  ;;  %v14124_v27 = vor.u32 %v16912_v18, %v14123_v21  ;;  %v22159_v46 = vpop.f32.mrf.mxu1 }
 0x6b3   : > { %9756 = vmatmul.bf16.vlgmr.msra.gmra.mxu2 %v19620_v16  ;;  %v16520_v49 = vld [vmem:[%s25374_s10 + $0x56c] sm:$0xf0] }
 0x6b4   : > { %v14379_v32 = vld [vmem:[%s25374_s10 + $0x1390] sm:$0xf]  ;;  %9769 = vmatmul.bf16.vlgmr.msra.gmra.mxu3 %v19635_v6  ;;  %v12556_v5 = vor.u32 %v16520_v49, %v12555_v15 }
 0x6b5   : > { %9813 = vmatpush.bf16.msrb.mxu3 %v12876_v59  ;;  %v16976_v45 = vld [vmem:[%s25374_s10 + $0x13ac] sm:$0xf0]  ;;  %9846 = vmatpush.bf16.msrb.mxu1 %v13164_v42 }
 0x6b6   : > { %9878 = vmatpush.bf16.msrb.mxu0 %v14156_v43  ;;  %v12811_v48 = vld [vmem:[%s25374_s10 + $0x750] sm:$0xf]  ;;  %9801 = vmatpush.bf16.msrb.mxu2 %v12588_v3  ;;  %v14380_v14 = vor.u32 %v16976_v45, %v14379_v32 }
 0x6b7   : > { %v16584_v50 = vld [vmem:[%s25374_s10 + $0x76c] sm:$0xf0]  ;;  %9834 = vmatmul.bf16.vlgmr.msra.gmra.mxu0 %v18992_v39 }
 0x6b8   : > { %v14091_v4 = vld [vmem:[%s25374_s10 + $0x1150] sm:$0xf]  ;;  %v12812_v12 = vor.u32 %v16584_v50, %v12811_v48  ;;  %9847 = vmatmul.bf16.vlgmr.msrb.gmra.mxu1 %v18994_v36 }
 0x6b9   : > { %v16904_v37 = vld [vmem:[%s25374_s10 + $0x116c] sm:$0xf0]  ;;  %9891 = vmatpush.bf16.msra.mxu1 %v14412_v62  ;;  %9814 = vmatpush.bf16.msrb.mxu3 %v12844_v51  ;;  %v9562_v62 = vpop.f32.mrf.mxu3 }
 0x6ba   : > { %v12523_v54 = vld [vmem:[%s25374_s10 + $0x510] sm:$0xf]  ;;  %9879 = vmatpush.bf16.msrb.mxu0 %v14124_v27  ;;  %v14092_v17 = vor.u32 %v16904_v37, %v14091_v4  ;;  %9802 = vmatpush.bf16.msrb.mxu2 %v12556_v5  ;;  %v22180_v49 = vadd.f32 %v9562_v62, %v9550_v55 }
 0x6bb   : > { %v16512_v19 = vld [vmem:[%s25374_s10 + $0x52c] sm:$0xf0] }
 0x6bc   : > { %v14347_v8 = vld [vmem:[%s25374_s10 + $0x1350] sm:$0xf]  ;;  %v12524_v20 = vor.u32 %v16512_v19, %v12523_v54 }
 0x6bd   : > { %v16968_v2 = vld [vmem:[%s25374_s10 + $0x136c] sm:$0xf0]  ;;  %9892 = vmatpush.bf16.msra.mxu1 %v14380_v14  ;;  %9815 = vmatpush.bf16.msrb.mxu3 %v12812_v12  ;;  %v9629_v14 = vpop.f32.mrf.mxu0 }
 0x6be   : > { %v12779_v57 = vld [vmem:[%s25374_s10 + $0x710] sm:$0xf]  ;;  %v14348_v13 = vor.u32 %v16968_v2, %v14347_v8  ;;  %9880 = vmatpush.bf16.msrb.mxu0 %v14092_v17  ;;  %9803 = vmatpush.bf16.msrb.mxu2 %v12524_v20  ;;  %v9551_v20 = vpop.f32.mrf.mxu2 }
 0x6bf   : > { %v16576_v22 = vld [vmem:[%s25374_s10 + $0x72c] sm:$0xf0] }
 0x6c0   : > { %v14059_v24 = vld [vmem:[%s25374_s10 + $0x1110] sm:$0xf]  ;;  %v12780_v29 = vor.u32 %v16576_v22, %v12779_v57  ;;  %v9642_v57 = vpop.f32.mrf.mxu1 }
 0x6c1   : > { %v16896_v40 = vld [vmem:[%s25374_s10 + $0x112c] sm:$0xf0]  ;;  %9893 = vmatpush.bf16.msra.mxu1 %v14348_v13 }
 0x6c2   : > { %v12491_v58 = vld [vmem:[%s25374_s10 + $0x4d0] sm:$0xf]  ;;  %v14060_v25 = vor.u32 %v16896_v40, %v14059_v24  ;;  %9816 = vmatpush.bf16.msrb.mxu3 %v12780_v29 }
 0x6c3   : > { %v16504_v47 = vld [vmem:[%s25374_s10 + $0x4ec] sm:$0xf0] }
 0x6c4   : > { %v14315_v53 = vld [vmem:[%s25374_s10 + $0x1310] sm:$0xf]  ;;  %v12492_v1 = vor.u32 %v16504_v47, %v12491_v58  ;;  %9881 = vmatpush.bf16.msrb.mxu0 %v14060_v25 }
 0x6c5   : > { %v16960_v59 = vld [vmem:[%s25374_s10 + $0x132c] sm:$0xf0] }
 0x6c6   : > { %v12747_v52 = vld [vmem:[%s25374_s10 + $0x6d0] sm:$0xf]  ;;  %v14316_v3 = vor.u32 %v16960_v59, %v14315_v53  ;;  %9804 = vmatpush.bf16.msrb.mxu2 %v12492_v1  ;;  %v9564_v59 = vpop.f32.mrf.mxu3 }
 0x6c7   : > { %v16568_v11 = vld [vmem:[%s25374_s10 + $0x6ec] sm:$0xf0] }
 0x6c8   : > { %v14027_v43 = vld [vmem:[%s25374_s10 + $0x10d0] sm:$0xf]  ;;  %v12748_v18 = vor.u32 %v16568_v11, %v12747_v52  ;;  %9894 = vmatpush.bf16.msra.mxu1 %v14316_v3 }
 0x6c9   : > { %v16888_v28 = vld [vmem:[%s25374_s10 + $0x10ec] sm:$0xf0] }
 0x6ca   : > { %v12459_v42 = vld [vmem:[%s25374_s10 + $0x490] sm:$0xf]  ;;  %v14028_v51 = vor.u32 %v16888_v28, %v14027_v43  ;;  %9817 = vmatpush.bf16.msrb.mxu3 %v12748_v18 }
 0x6cb   : > { %v16496_v21 = vld [vmem:[%s25374_s10 + $0x4ac] sm:$0xf0] }
 0x6cc   : > { %v14283_v15 = vld [vmem:[%s25374_s10 + $0x12d0] sm:$0xf]  ;;  %v12460_v27 = vor.u32 %v16496_v21, %v12459_v42  ;;  %9882 = vmatpush.bf16.msrb.mxu0 %v14028_v51 }
 0x6cd   : > { %v16952_v38 = vld [vmem:[%s25374_s10 + $0x12ec] sm:$0xf0] }
 0x6ce   : > { %v12715_v32 = vld [vmem:[%s25374_s10 + $0x690] sm:$0xf]  ;;  %v14284_v5 = vor.u32 %v16952_v38, %v14283_v15  ;;  %9805 = vmatpush.bf16.msrb.mxu2 %v12460_v27 }
 0x6cf   : > { %v16560_v45 = vld [vmem:[%s25374_s10 + $0x6ac] sm:$0xf0] }
 0x6d0   : > { %v13995_v48 = vld [vmem:[%s25374_s10 + $0x1090] sm:$0xf]  ;;  %v12716_v54 = vor.u32 %v16560_v45, %v12715_v32  ;;  %9895 = vmatpush.bf16.msra.mxu1 %v14284_v5 }
 0x6d1   : > { %v16880_v50 = vld [vmem:[%s25374_s10 + $0x10ac] sm:$0xf0] }
 0x6d2   : > { %v12427_v4 = vld [vmem:[%s25374_s10 + $0x450] sm:$0xf]  ;;  %v13996_v8 = vor.u32 %v16880_v50, %v13995_v48  ;;  %9818 = vmatpush.bf16.msrb.mxu3 %v12716_v54 }
 0x6d3   : > { %v16488_v37 = vld [vmem:[%s25374_s10 + $0x46c] sm:$0xf0] }
 0x6d4   : > { %v14251_v19 = vld [vmem:[%s25374_s10 + $0x1290] sm:$0xf]  ;;  %v12428_v22 = vor.u32 %v16488_v37, %v12427_v4  ;;  %9883 = vmatpush.bf16.msrb.mxu0 %v13996_v8 }
 0x6d5   : > { %v16944_v12 = vld [vmem:[%s25374_s10 + $0x12ac] sm:$0xf0] }
 0x6d6   : > { %v12683_v2 = vld [vmem:[%s25374_s10 + $0x650] sm:$0xf]  ;;  %v14252_v13 = vor.u32 %v16944_v12, %v14251_v19  ;;  %9806 = vmatpush.bf16.msrb.mxu2 %v12428_v22 }
 0x6d7   : > { %v16552_v17 = vld [vmem:[%s25374_s10 + $0x66c] sm:$0xf0] }
 0x6d8   : > { %v13963_v24 = vld [vmem:[%s25374_s10 + $0x1050] sm:$0xf]  ;;  %v12684_v53 = vor.u32 %v16552_v17, %v12683_v2  ;;  %9896 = vmatpush.bf16.msra.mxu1 %v14252_v13 }
 0x6d9   : > { %v16872_v40 = vld [vmem:[%s25374_s10 + $0x106c] sm:$0xf0] }
 0x6da   : > { %v12395_v58 = vld [vmem:[%s25374_s10 + $0x410] sm:$0xf]  ;;  %v13964_v1 = vor.u32 %v16872_v40, %v13963_v24  ;;  %9819 = vmatpush.bf16.msrb.mxu3 %v12684_v53 }
 0x6db   : > { %v16480_v47 = vld [vmem:[%s25374_s10 + $0x42c] sm:$0xf0] }
 0x6dc   : > { %v13643_v29 = vld [vmem:[%s25374_s10 + $0xdd0] sm:$0xf]  ;;  %v12396_v28 = vor.u32 %v16480_v47, %v12395_v58  ;;  %9884 = vmatpush.bf16.msrb.mxu0 %v13964_v1 }
 0x6dd   : > { %v16792_v25 = vld [vmem:[%s25374_s10 + $0xdec] sm:$0xf0] }
 0x6de   : > { %v14219_v52 = vld [vmem:[%s25374_s10 + $0x1250] sm:$0xf]  ;;  %v13644_v42 = vor.u32 %v16792_v25, %v13643_v29  ;;  %9807 = vmatpush.bf16.msrb.mxu2 %v12396_v28 }
 0x6df   : > { %v16936_v11 = vld [vmem:[%s25374_s10 + $0x126c] sm:$0xf0] }
 0x6e0   : > { %v12651_v7 = vld [vmem:[%s25374_s10 + $0x610] sm:$0xf]  ;;  %v14220_v21 = vor.u32 %v16936_v11, %v14219_v52 }
 0x6e1   : > { %v16544_v43 = vld [vmem:[%s25374_s10 + $0x62c] sm:$0xf0]  ;;  %9808 = vmatmul.bf16.vlgmr.msrb.gmra.mxu2 %v19089_v30 }
 0x6e2   : > { %v13899_v55 = vld [vmem:[%s25374_s10 + $0xfd0] sm:$0xf]  ;;  %v12652_v15 = vor.u32 %v16544_v43, %v12651_v7  ;;  %9852 = vmatpush.bf16.msra.mxu2 %v13644_v42  ;;  %9897 = vmatpush.bf16.msra.mxu1 %v14220_v21 }
 0x6e3   : > { %v16856_v3 = vld [vmem:[%s25374_s10 + $0xfec] sm:$0xf0] }
 0x6e4   : > { %v13931_v18 = vld [vmem:[%s25374_s10 + $0x1010] sm:$0xf]  ;;  %v13900_v45 = vor.u32 %v16856_v3, %v13899_v55  ;;  %9820 = vmatpush.bf16.msrb.mxu3 %v12652_v15 }
 0x6e5   : > { %v16864_v62 = vld [vmem:[%s25374_s10 + $0x102c] sm:$0xf0] }
 0x6e6   : > { %v15179_v38 = vld [vmem:[%s25374_s10 + $0x19d0] sm:$0xf]  ;;  %v13932_v5 = vor.u32 %v16864_v62, %v13931_v18 }
 0x6e7   : > { %v17176_v51 = vld [vmem:[%s25374_s10 + $0x19ec] sm:$0xf0]  ;;  %9821 = vmatmul.bf16.vlgmr.msrb.gmra.mxu3 %v19097_v33 }
 0x6e8   : > { %v13611_v32 = vld [vmem:[%s25374_s10 + $0xd90] sm:$0xf]  ;;  %v15180_v14 = vor.u32 %v17176_v51, %v15179_v38  ;;  %9865 = vmatpush.bf16.msra.mxu3 %v13900_v45  ;;  %9885 = vmatpush.bf16.msrb.mxu0 %v13932_v5 }
 0x6e9   : > { %v16784_v27 = vld [vmem:[%s25374_s10 + $0xdac] sm:$0xf0] }
 0x6ea   : > { %v14187_v48 = vld [vmem:[%s25374_s10 + $0x1210] sm:$0xf]  ;;  %v13612_v12 = vor.u32 %v16784_v27, %v13611_v32  ;;  %v22348_v32 = vpop.f32.mrf.mxu0 }
 0x6eb   : > { %v16928_v50 = vld [vmem:[%s25374_s10 + $0x122c] sm:$0xf0]  ;;  %9886 = vmatmul.bf16.vlgmr.msrb.gmra.mxu0 %v19202_v56 }
 0x6ec   : > { %v15435_v4 = vld [vmem:[%s25374_s10 + $0x1bd0] sm:$0xf]  ;;  %v14188_v8 = vor.u32 %v16928_v50, %v14187_v48  ;;  %9930 = vmatpush.bf16.msra.mxu0 %v15180_v14  ;;  %9853 = vmatpush.bf16.msra.mxu2 %v13612_v12 }
 0x6ed   : > { %v17240_v37 = vld [vmem:[%s25374_s10 + $0x1bec] sm:$0xf0] }
 0x6ee   : > { %v13867_v54 = vld [vmem:[%s25374_s10 + $0xf90] sm:$0xf]  ;;  %v15436_v57 = vor.u32 %v17240_v37, %v15435_v4  ;;  %9898 = vmatpush.bf16.msra.mxu1 %v14188_v8  ;;  %v22362_v37 = vpop.f32.mrf.mxu1 }
 0x6ef   : > { %v16848_v19 = vld [vmem:[%s25374_s10 + $0xfac] sm:$0xf0] }
 0x6f0   : > { %v15147_v2 = vld [vmem:[%s25374_s10 + $0x1990] sm:$0xf]  ;;  %v13868_v24 = vor.u32 %v16848_v19, %v13867_v54  ;;  %v9601_v54 = vpop.f32.mrf.mxu2 }
 0x6f1   : > { %v17168_v17 = vld [vmem:[%s25374_s10 + $0x19ac] sm:$0xf0]  ;;  %9899 = vmatmul.bf16.vlgmr.msra.gmra.mxu1 %v19217_v35  ;;  %v9602_v8 = vadd.f32 %v9601_v54, %v21960_v63 }
 0x6f2   : > { %v13579_v22 = vld [vmem:[%s25374_s10 + $0xd50] sm:$0xf]  ;;  %v15148_v58 = vor.u32 %v17168_v17, %v15147_v2  ;;  %9943 = vmatpush.bf16.msrb.mxu1 %v15436_v57  ;;  %9866 = vmatpush.bf16.msra.mxu3 %v13868_v24 }
 0x6f3   : > { %v16776_v20 = vld [vmem:[%s25374_s10 + $0xd6c] sm:$0xf0] }
 0x6f4   : > { %v15403_v40 = vld [vmem:[%s25374_s10 + $0x1b90] sm:$0xf]  ;;  %v13580_v53 = vor.u32 %v16776_v20, %v13579_v22  ;;  %9931 = vmatpush.bf16.msra.mxu0 %v15148_v58  ;;  %v9614_v20 = vpop.f32.mrf.mxu3 }
 0x6f5   : > { %v17232_v13 = vld [vmem:[%s25374_s10 + $0x1bac] sm:$0xf0] }
 0x6f6   : > { %v13835_v47 = vld [vmem:[%s25374_s10 + $0xf50] sm:$0xf]  ;;  %v15404_v52 = vor.u32 %v17232_v13, %v15403_v40  ;;  %9854 = vmatpush.bf16.msra.mxu2 %v13580_v53  ;;  %v9615_v40 = vadd.f32 %v9614_v20, %v9602_v8 }
 0x6f7   : > { %v16840_v29 = vld [vmem:[%s25374_s10 + $0xf6c] sm:$0xf0] }
 0x6f8   : > { %v15115_v59 = vld [vmem:[%s25374_s10 + $0x1950] sm:$0xf]  ;;  %v13836_v7 = vor.u32 %v16840_v29, %v13835_v47  ;;  %9944 = vmatpush.bf16.msrb.mxu1 %v15404_v52 }
 0x6f9   : > { %v17160_v25 = vld [vmem:[%s25374_s10 + $0x196c] sm:$0xf0] }
 0x6fa   : > { %v13547_v11 = vld [vmem:[%s25374_s10 + $0xd10] sm:$0xf]  ;;  %v15116_v55 = vor.u32 %v17160_v25, %v15115_v59  ;;  %9867 = vmatpush.bf16.msra.mxu3 %v13836_v7  ;;  %v9628_v25 = vadd.f32 %v22145_v10, %v9615_v40  ;;  %v9681_v7 = vpop.f32.mrf.mxu0 }
 0x6fb   : > { %v16768_v1 = vld [vmem:[%s25374_s10 + $0xd2c] sm:$0xf0] }
 0x6fc   : > { %v15371_v43 = vld [vmem:[%s25374_s10 + $0x1b50] sm:$0xf]  ;;  %v13548_v21 = vor.u32 %v16768_v1, %v13547_v11  ;;  %9932 = vmatpush.bf16.msra.mxu0 %v15116_v55 }
 0x6fd   : > { %v17224_v28 = vld [vmem:[%s25374_s10 + $0x1b6c] sm:$0xf0] }
 0x6fe   : > { %v13803_v3 = vld [vmem:[%s25374_s10 + $0xf10] sm:$0xf]  ;;  %v15372_v15 = vor.u32 %v17224_v28, %v15371_v43  ;;  %9855 = vmatpush.bf16.msra.mxu2 %v13548_v21  ;;  %v22415_v21 = vadd.f32 %v22159_v46, %v9628_v25 }
 0x6ff   : > { %v16832_v42 = vld [vmem:[%s25374_s10 + $0xf2c] sm:$0xf0] }
 0x700   : > { %v15083_v18 = vld [vmem:[%s25374_s10 + $0x1910] sm:$0xf]  ;;  %v13804_v45 = vor.u32 %v16832_v42, %v13803_v3  ;;  %9945 = vmatpush.bf16.msrb.mxu1 %v15372_v15  ;;  %v9603_v15 = vpop.f32.mrf.mxu2 }
 0x701   : > { %v17152_v62 = vld [vmem:[%s25374_s10 + $0x192c] sm:$0xf0] }
 0x702   : > { %v13515_v38 = vld [vmem:[%s25374_s10 + $0xcd0] sm:$0xf]  ;;  %v15084_v50 = vor.u32 %v17152_v62, %v15083_v18  ;;  %9868 = vmatpush.bf16.msra.mxu3 %v13804_v45  ;;  %v9694_v18 = vpop.f32.mrf.mxu1 }
 0x703   : > { %v16760_v51 = vld [vmem:[%s25374_s10 + $0xcec] sm:$0xf0] }
 0x704   : > { %v15339_v27 = vld [vmem:[%s25374_s10 + $0x1b10] sm:$0xf]  ;;  %v13516_v14 = vor.u32 %v16760_v51, %v13515_v38  ;;  %9933 = vmatpush.bf16.msra.mxu0 %v15084_v50 }
 0x705   : > { %v17216_v48 = vld [vmem:[%s25374_s10 + $0x1b2c] sm:$0xf0] }
 0x706   : > { %v13771_v5 = vld [vmem:[%s25374_s10 + $0xed0] sm:$0xf]  ;;  %v15340_v2 = vor.u32 %v17216_v48, %v15339_v27  ;;  %9856 = vmatpush.bf16.msra.mxu2 %v13516_v14 }
 0x707   : > { %v16824_v4 = vld [vmem:[%s25374_s10 + $0xeec] sm:$0xf0] }
 0x708   : > { %v15051_v19 = vld [vmem:[%s25374_s10 + $0x18d0] sm:$0xf]  ;;  %v13772_v22 = vor.u32 %v16824_v4, %v13771_v5  ;;  %9946 = vmatpush.bf16.msrb.mxu1 %v15340_v2  ;;  %v9616_v5 = vpop.f32.mrf.mxu3 }
 0x709   : > { %v17144_v12 = vld [vmem:[%s25374_s10 + $0x18ec] sm:$0xf0]  ;;  %v16388_v5 = vld [vmem:[%s25374_s10 + $0x154] sm:$0xf] }
 0x70a   : > { %v13483_v17 = vld [vmem:[%s25374_s10 + $0xc90] sm:$0xf]  ;;  %v15052_v13 = vor.u32 %v17144_v12, %v15051_v19  ;;  %9869 = vmatpush.bf16.msra.mxu3 %v13772_v22 }
 0x70b   : > { %v16752_v57 = vld [vmem:[%s25374_s10 + $0xcac] sm:$0xf0] }
 0x70c   : > { %v15307_v24 = vld [vmem:[%s25374_s10 + $0x1ad0] sm:$0xf]  ;;  %v13484_v29 = vor.u32 %v16752_v57, %v13483_v17  ;;  %9934 = vmatpush.bf16.msra.mxu0 %v15052_v13  ;;  %v16404_v13 = vld [vmem:[%s25374_s10 + $0x1d4] sm:$0xf] }
 0x70d   : > { %v17208_v63 = vld [vmem:[%s25374_s10 + $0x1aec] sm:$0xf0] }
 0x70e   : > { %v13739_v58 = vld [vmem:[%s25374_s10 + $0xe90] sm:$0xf]  ;;  %v15308_v52 = vor.u32 %v17208_v63, %v15307_v24  ;;  %9857 = vmatpush.bf16.msra.mxu2 %v13484_v29 }
 0x70f   : > { %v16816_v47 = vld [vmem:[%s25374_s10 + $0xeac] sm:$0xf0] }
 0x710   : > { %v15019_v53 = vld [vmem:[%s25374_s10 + $0x1890] sm:$0xf]  ;;  %v13740_v43 = vor.u32 %v16816_v47, %v13739_v58  ;;  %9947 = vmatpush.bf16.msrb.mxu1 %v15308_v52  ;;  %v12109_v58 = vld [vmem:[%s25374_s10 + $0x1f0] sm:$0xf0] }
 0x711   : > { %v17136_v59 = vld [vmem:[%s25374_s10 + $0x18ac] sm:$0xf0]  ;;  %v12112_v7 = vor.u32 %v16404_v13, %v12109_v58 }
 0x712   : > { %v13451_v11 = vld [vmem:[%s25374_s10 + $0xc50] sm:$0xf]  ;;  %v15020_v55 = vor.u32 %v17136_v59, %v15019_v53  ;;  %9870 = vmatpush.bf16.msra.mxu3 %v13740_v43 }
 0x713   : > { %v16744_v1 = vld [vmem:[%s25374_s10 + $0xc6c] sm:$0xf0] }
 0x714   : > { %v15275_v28 = vld [vmem:[%s25374_s10 + $0x1a90] sm:$0xf]  ;;  %v13452_v62 = vor.u32 %v16744_v1, %v13451_v11  ;;  %9935 = vmatpush.bf16.msra.mxu0 %v15020_v55  ;;  %v16468_v11 = vld [vmem:[%s25374_s10 + $0x3d4] sm:$0xf] }
 0x715   : > { %v17200_v10 = vld [vmem:[%s25374_s10 + $0x1aac] sm:$0xf0]  ;;  %v12365_v1 = vld [vmem:[%s25374_s10 + $0x3f0] sm:$0xf0] }
 0x716   : > { %v13707_v3 = vld [vmem:[%s25374_s10 + $0xe50] sm:$0xf]  ;;  %v15276_v45 = vor.u32 %v17200_v10, %v15275_v28  ;;  %9858 = vmatpush.bf16.msra.mxu2 %v13452_v62  ;;  %v12368_v18 = vor.u32 %v16468_v11, %v12365_v1  ;;  %v22567_v1 = vpop.f32.mrf.mxu1 }
 0x717   : > { %v16808_v42 = vld [vmem:[%s25374_s10 + $0xe6c] sm:$0xf0] }
 0x718   : > { %v14987_v38 = vld [vmem:[%s25374_s10 + $0x1850] sm:$0xf]  ;;  %v13708_v50 = vor.u32 %v16808_v42, %v13707_v3  ;;  %9948 = vmatpush.bf16.msrb.mxu1 %v15276_v45  ;;  %v16396_v3 = vld [vmem:[%s25374_s10 + $0x194] sm:$0xf] }
 0x719   : > { %v17128_v51 = vld [vmem:[%s25374_s10 + $0x186c] sm:$0xf0]  ;;  %v12077_v42 = vld [vmem:[%s25374_s10 + $0x1b0] sm:$0xf0] }
 0x71a   : > { %v13419_v27 = vld [vmem:[%s25374_s10 + $0xc10] sm:$0xf]  ;;  %v14988_v19 = vor.u32 %v17128_v51, %v14987_v38  ;;  %9871 = vmatpush.bf16.msra.mxu3 %v13708_v50  ;;  %v16460_v51 = vld [vmem:[%s25374_s10 + $0x394] sm:$0xf] }
 0x71b   : > { %v16736_v46 = vld [vmem:[%s25374_s10 + $0xc2c] sm:$0xf0]  ;;  %v12333_v45 = vld [vmem:[%s25374_s10 + $0x3b0] sm:$0xf0] }
 0x71c   : > { %v14667_v48 = vld [vmem:[%s25374_s10 + $0x15d0] sm:$0xf]  ;;  %v13420_v2 = vor.u32 %v16736_v46, %v13419_v27  ;;  %9936 = vmatpush.bf16.msra.mxu0 %v14988_v19  ;;  %v12080_v27 = vor.u32 %v16396_v3, %v12077_v42 }
 0x71d   : > { %v17048_v4 = vld [vmem:[%s25374_s10 + $0x15ec] sm:$0xf0] }
 0x71e   : > { %v15243_v14 = vld [vmem:[%s25374_s10 + $0x1a50] sm:$0xf]  ;;  %v14668_v22 = vor.u32 %v17048_v4, %v14667_v48  ;;  %9859 = vmatpush.bf16.msra.mxu2 %v13420_v2  ;;  %v12045_v4 = vld [vmem:[%s25374_s10 + $0x170] sm:$0xf0] }
 0x71f   : > { %v17192_v54 = vld [vmem:[%s25374_s10 + $0x1a6c] sm:$0xf0]  ;;  %v12301_v2 = vld [vmem:[%s25374_s10 + $0x370] sm:$0xf0] }
 0x720   : > { %v13675_v12 = vld [vmem:[%s25374_s10 + $0xe10] sm:$0xf]  ;;  %v15244_v20 = vor.u32 %v17192_v54, %v15243_v14  ;;  %v12336_v14 = vor.u32 %v16460_v51, %v12333_v45 }
 0x721   : > { %v16800_v8 = vld [vmem:[%s25374_s10 + $0xe2c] sm:$0xf0]  ;;  %9860 = vmatmul.bf16.vlgmr.msra.gmra.mxu2 %v19212_v26 }
 0x722   : > { %v14923_v17 = vld [vmem:[%s25374_s10 + $0x17d0] sm:$0xf]  ;;  %v13676_v40 = vor.u32 %v16800_v8, %v13675_v12  ;;  %9904 = vmatpush.bf16.msrb.mxu2 %v14668_v22  ;;  %9949 = vmatpush.bf16.msrb.mxu1 %v15244_v20  ;;  %v16452_v8 = vld [vmem:[%s25374_s10 + $0x354] sm:$0xf] }
 0x723   : > { %v17112_v57 = vld [vmem:[%s25374_s10 + $0x17ec] sm:$0xf0] }
 0x724   : > { %v14955_v24 = vld [vmem:[%s25374_s10 + $0x1810] sm:$0xf]  ;;  %v14924_v29 = vor.u32 %v17112_v57, %v14923_v17  ;;  %9872 = vmatpush.bf16.msra.mxu3 %v13676_v40  ;;  %v12048_v17 = vor.u32 %v16388_v5, %v12045_v4  ;;  %v12304_v40 = vor.u32 %v16452_v8, %v12301_v2  ;;  %v11949_v5 = vld [vmem:[%s25374_s10 + $0xb0] sm:$0xf0] }
 0x725   : > { %v17120_v63 = vld [vmem:[%s25374_s10 + $0x182c] sm:$0xf0]  ;;  %v16428_v2 = vld [vmem:[%s25374_s10 + $0x294] sm:$0xf] }
 0x726   : > { %v14635_v47 = vld [vmem:[%s25374_s10 + $0x1590] sm:$0xf]  ;;  %v14956_v52 = vor.u32 %v17120_v63, %v14955_v24  ;;  %v16380_v24 = vld [vmem:[%s25374_s10 + $0x114] sm:$0xf] }
 0x727   : > { %v17040_v53 = vld [vmem:[%s25374_s10 + $0x15ac] sm:$0xf0]  ;;  %9873 = vmatmul.bf16.vlgmr.msra.gmra.mxu3 %v19233_v9  ;;  %v12013_v63 = vld [vmem:[%s25374_s10 + $0x130] sm:$0xf0] }
 0x728   : > { %v15211_v59 = vld [vmem:[%s25374_s10 + $0x1a10] sm:$0xf]  ;;  %v14636_v10 = vor.u32 %v17040_v53, %v14635_v47  ;;  %9917 = vmatpush.bf16.msrb.mxu3 %v14924_v29  ;;  %9937 = vmatpush.bf16.msra.mxu0 %v14956_v52  ;;  %v22553_v47 = vpop.f32.mrf.mxu0  ;;  %v16444_v53 = vld [vmem:[%s25374_s10 + $0x314] sm:$0xf] }
 0x729   : > { %v17184_v25 = vld [vmem:[%s25374_s10 + $0x1a2c] sm:$0xf0] }
 0x72a   : > { %v14891_v43 = vld [vmem:[%s25374_s10 + $0x1790] sm:$0xf]  ;;  %v15212_v55 = vor.u32 %v17184_v25, %v15211_v59  ;;  %9905 = vmatpush.bf16.msrb.mxu2 %v14636_v10  ;;  %v12269_v59 = vld [vmem:[%s25374_s10 + $0x330] sm:$0xf0]  ;;  %v12016_v25 = vor.u32 %v16380_v24, %v12013_v63  ;;  %v9746_v24 = vpop.f32.mrf.mxu1 }
 0x72b   : > { %v17104_v28 = vld [vmem:[%s25374_s10 + $0x17ac] sm:$0xf0]  ;;  %9938 = vmatmul.bf16.vlgmr.msra.gmra.mxu0 %v19323_v60  ;;  %v11981_v10 = vld [vmem:[%s25374_s10 + $0xf0] sm:$0xf0]  ;;  %v12272_v3 = vor.u32 %v16444_v53, %v12269_v59 }
 0x72c   : > { %v14603_v62 = vld [vmem:[%s25374_s10 + $0x1550] sm:$0xf]  ;;  %v14892_v38 = vor.u32 %v17104_v28, %v14891_v43  ;;  %9982 = vmatpush.bf16.msrb.mxu0 %v12112_v7  ;;  %9950 = vmatpush.bf16.msrb.mxu1 %v15212_v55  ;;  %v9653_v43 = vpop.f32.mrf.mxu2  ;;  %v16372_v28 = vld [vmem:[%s25374_s10 + $0xd4] sm:$0xf] }
 0x72d   : > { %v17032_v15 = vld [vmem:[%s25374_s10 + $0x156c] sm:$0xf0]  ;;  %v9654_v55 = vadd.f32 %v9653_v43, %v22415_v21  ;;  %v12237_v21 = vld [vmem:[%s25374_s10 + $0x2f0] sm:$0xf0]  ;;  %v11984_v45 = vor.u32 %v16372_v28, %v11981_v10 }
 0x72e   : > { %v14859_v46 = vld [vmem:[%s25374_s10 + $0x1750] sm:$0xf]  ;;  %v14604_v50 = vor.u32 %v17032_v15, %v14603_v62  ;;  %9918 = vmatpush.bf16.msrb.mxu3 %v14892_v38  ;;  %v9666_v15 = vpop.f32.mrf.mxu3  ;;  %v16436_v38 = vld [vmem:[%s25374_s10 + $0x2d4] sm:$0xf] }
 0x72f   : > { %v17096_v48 = vld [vmem:[%s25374_s10 + $0x176c] sm:$0xf0]  ;;  %9951 = vmatmul.bf16.vlgmr.msrb.gmra.mxu1 %v19338_v23  ;;  %v9667_v51 = vadd.f32 %v9666_v15, %v9654_v55  ;;  %v12173_v43 = vld [vmem:[%s25374_s10 + $0x270] sm:$0xf0] }
 0x730   : > { %9995 = vmatpush.bf16.msra.mxu1 %v12368_v18  ;;  %v14571_v54 = vld [vmem:[%s25374_s10 + $0x1510] sm:$0xf]  ;;  %v14860_v12 = vor.u32 %v17096_v48, %v14859_v46  ;;  %9983 = vmatpush.bf16.msrb.mxu0 %v12080_v27 }
 0x731   : > { %v17024_v19 = vld [vmem:[%s25374_s10 + $0x152c] sm:$0xf0]  ;;  %9906 = vmatpush.bf16.msrb.mxu2 %v14604_v50  ;;  %v16364_v50 = vld [vmem:[%s25374_s10 + $0x94] sm:$0xf]  ;;  %v9680_v4 = vadd.f32 %v22348_v32, %v9667_v51 }
 0x732   : > { %v14827_v57 = vld [vmem:[%s25374_s10 + $0x1710] sm:$0xf]  ;;  %v14572_v20 = vor.u32 %v17024_v19, %v14571_v54  ;;  %9919 = vmatpush.bf16.msrb.mxu3 %v14860_v12  ;;  %v9733_v12 = vpop.f32.mrf.mxu0  ;;  %v12205_v32 = vld [vmem:[%s25374_s10 + $0x2b0] sm:$0xf0] }
 0x733   : > { %v17088_v22 = vld [vmem:[%s25374_s10 + $0x172c] sm:$0xf0] }
 0x734   : > { %9996 = vmatpush.bf16.msra.mxu1 %v12336_v14  ;;  %v14539_v13 = vld [vmem:[%s25374_s10 + $0x14d0] sm:$0xf]  ;;  %v14828_v29 = vor.u32 %v17088_v22, %v14827_v57  ;;  %9984 = vmatpush.bf16.msrb.mxu0 %v12048_v17  ;;  %v12240_v14 = vor.u32 %v16436_v38, %v12237_v21  ;;  %v11952_v17 = vor.u32 %v16364_v50, %v11949_v5  ;;  %v16348_v38 = vld [vmem:[%s25374_s10 + $0x14] sm:$0xf] }
 0x735   : > { %v17016_v58 = vld [vmem:[%s25374_s10 + $0x14ec] sm:$0xf0]  ;;  %9907 = vmatpush.bf16.msrb.mxu2 %v14572_v20  ;;  %v22620_v20 = vadd.f32 %v22362_v37, %v9680_v4  ;;  %v11885_v21 = vld [vmem:[%s25374_s10 + $0x30] sm:$0xf0] }
 0x736   : > { %v14795_v52 = vld [vmem:[%s25374_s10 + $0x16d0] sm:$0xf]  ;;  %v14540_v7 = vor.u32 %v17016_v58, %v14539_v13  ;;  %9920 = vmatpush.bf16.msrb.mxu3 %v14828_v29  ;;  %v16356_v13 = vld [vmem:[%s25374_s10 + $0x54] sm:$0xf]  ;;  %v12208_v29 = vor.u32 %v16428_v2, %v12205_v32 }
 0x737   : > { %v17080_v11 = vld [vmem:[%s25374_s10 + $0x16ec] sm:$0xf0]  ;;  %v11917_v58 = vld [vmem:[%s25374_s10 + $0x70] sm:$0xf0] }
 0x738   : > { %9997 = vmatpush.bf16.msra.mxu1 %v12304_v40  ;;  %v14507_v42 = vld [vmem:[%s25374_s10 + $0x1490] sm:$0xf]  ;;  %v14796_v62 = vor.u32 %v17080_v11, %v14795_v52  ;;  %9985 = vmatpush.bf16.msrb.mxu0 %v12016_v25  ;;  %v9655_v40 = vpop.f32.mrf.mxu2  ;;  %v9668_v52 = vpop.f32.mrf.mxu3  ;;  %v11920_v28 = vor.u32 %v16356_v13, %v11917_v58  ;;  %v16412_v5 = vld [vmem:[%s25374_s10 + $0x214] sm:$0xf] }
 0x739   : > { %v17008_v18 = vld [vmem:[%s25374_s10 + $0x14ac] sm:$0xf0]  ;;  %9908 = vmatpush.bf16.msrb.mxu2 %v14540_v7  ;;  %v16420_v7 = vld [vmem:[%s25374_s10 + $0x254] sm:$0xf] }
 0x73a   : > { %v14763_v27 = vld [vmem:[%s25374_s10 + $0x1690] sm:$0xf]  ;;  %v14508_v48 = vor.u32 %v17008_v18, %v14507_v42  ;;  %9921 = vmatpush.bf16.msrb.mxu3 %v14796_v62  ;;  %v12176_v15 = vor.u32 %v16420_v7, %v12173_v43  ;;  %v12141_v4 = vld [vmem:[%s25374_s10 + $0x230] sm:$0xf0] }
 0x73b   : > { %v17072_v46 = vld [vmem:[%s25374_s10 + $0x16ac] sm:$0xf0]  ;;  %v16716_v58 = vld [vmem:[%s25374_s10 + $0xb94] sm:$0xf] }
 0x73c   : > { %9998 = vmatpush.bf16.msra.mxu1 %v12272_v3  ;;  %v14475_v54 = vld [vmem:[%s25374_s10 + $0x1450] sm:$0xf]  ;;  %v14764_v8 = vor.u32 %v17072_v46, %v14763_v27  ;;  %9986 = vmatpush.bf16.msrb.mxu0 %v11984_v45  ;;  %v16660_v45 = vld [vmem:[%s25374_s10 + $0x9d4] sm:$0xf] }
 0x73d   : > { %v17000_v19 = vld [vmem:[%s25374_s10 + $0x146c] sm:$0xf0]  ;;  %9909 = vmatpush.bf16.msrb.mxu2 %v14508_v48  ;;  %v13133_v27 = vld [vmem:[%s25374_s10 + $0x9f0] sm:$0xf0] }
 0x73e   : > { %v14731_v57 = vld [vmem:[%s25374_s10 + $0x1650] sm:$0xf]  ;;  %v14476_v63 = vor.u32 %v17000_v19, %v14475_v54  ;;  %9922 = vmatpush.bf16.msrb.mxu3 %v14764_v8  ;;  %v16724_v54 = vld [vmem:[%s25374_s10 + $0xbd4] sm:$0xf]  ;;  %v13136_v12 = vor.u32 %v16660_v45, %v13133_v27 }
 0x73f   : > { %v17064_v22 = vld [vmem:[%s25374_s10 + $0x166c] sm:$0xf0]  ;;  %v13389_v19 = vld [vmem:[%s25374_s10 + $0xbf0] sm:$0xf0] }
 0x740   : > { %9999 = vmatpush.bf16.msra.mxu1 %v12240_v14  ;;  %v14443_v53 = vld [vmem:[%s25374_s10 + $0x1410] sm:$0xf]  ;;  %v14732_v25 = vor.u32 %v17064_v22, %v14731_v57  ;;  %9987 = vmatpush.bf16.msrb.mxu0 %v11952_v17  ;;  %v11888_v14 = vor.u32 %v16348_v38, %v11885_v21  ;;  %v12144_v17 = vor.u32 %v16412_v5, %v12141_v4  ;;  %v16652_v57 = vld [vmem:[%s25374_s10 + $0x994] sm:$0xf] }
 0x741   : > { %v16992_v37 = vld [vmem:[%s25374_s10 + $0x142c] sm:$0xf0]  ;;  %9910 = vmatpush.bf16.msrb.mxu2 %v14476_v63  ;;  %v13101_v22 = vld [vmem:[%s25374_s10 + $0x9b0] sm:$0xf0]  ;;  %v13392_v24 = vor.u32 %v16724_v54, %v13389_v19 }
 0x742   : > { %v15691_v59 = vld [vmem:[%s25374_s10 + $0x1dd0] sm:$0xf]  ;;  %v14444_v3 = vor.u32 %v16992_v37, %v14443_v53  ;;  %9923 = vmatpush.bf16.msrb.mxu3 %v14732_v25  ;;  %v13104_v53 = vor.u32 %v16652_v57, %v13101_v22  ;;  %v16644_v52 = vld [vmem:[%s25374_s10 + $0x954] sm:$0xf] }
 0x743   : > { %v17304_v11 = vld [vmem:[%s25374_s10 + $0x1dec] sm:$0xf0]  ;;  %v13037_v45 = vld [vmem:[%s25374_s10 + $0x930] sm:$0xf0] }
 0x744   : > { %v14699_v10 = vld [vmem:[%s25374_s10 + $0x1610] sm:$0xf]  ;;  %10000 = vmatpush.bf16.msra.mxu1 %v12208_v29  ;;  %v15692_v62 = vor.u32 %v17304_v11, %v15691_v59  ;;  %9988 = vmatpush.bf16.msrb.mxu0 %v11920_v28  ;;  %v13357_v29 = vld [vmem:[%s25374_s10 + $0xbb0] sm:$0xf0] }
 0x745   : > { %v17056_v55 = vld [vmem:[%s25374_s10 + $0x162c] sm:$0xf0]  ;;  %9911 = vmatpush.bf16.msrb.mxu2 %v14444_v3  ;;  %v13069_v11 = vld [vmem:[%s25374_s10 + $0x970] sm:$0xf0]  ;;  %v13360_v7 = vor.u32 %v16716_v58, %v13357_v29 }
 0x746   : > { %v15947_v42 = vld [vmem:[%s25374_s10 + $0x1fd0] sm:$0xf]  ;;  %v14700_v51 = vor.u32 %v17056_v55, %v14699_v10  ;;  %v16708_v55 = vld [vmem:[%s25374_s10 + $0xb54] sm:$0xf] }
 0x747   : > { %v17368_v18 = vld [vmem:[%s25374_s10 + $0x1fec] sm:$0xf0]  ;;  %v13325_v3 = vld [vmem:[%s25374_s10 + $0xb70] sm:$0xf0] }
 0x748   : > { %v15659_v46 = vld [vmem:[%s25374_s10 + $0x1d90] sm:$0xf]  ;;  %v15948_v48 = vor.u32 %v17368_v18, %v15947_v42  ;;  %10001 = vmatpush.bf16.msra.mxu1 %v12176_v15  ;;  %9924 = vmatpush.bf16.msrb.mxu3 %v14700_v51  ;;  %v13072_v42 = vor.u32 %v16644_v52, %v13069_v11  ;;  %v17587_v18 = vld [vmem:[%s25375_s11] sm:$0xff]  ;;  %v16636_v51 = vld [vmem:[%s25374_s10 + $0x914] sm:$0xf]  ;;  %v13328_v27 = vor.u32 %v16708_v55, %v13325_v3 }
 0x749   : > { %v17296_v50 = vld [vmem:[%s25374_s10 + $0x1dac] sm:$0xf0]  ;;  %9956 = vmatpush.bf16.msra.mxu2 %v15692_v62  ;;  %9989 = vmatpush.bf16.msrb.mxu0 %v11888_v14  ;;  %v8930_v62 = vperm.slane %v17587_v18, 4  ;;  %v16700_v4 = vld [vmem:[%s25374_s10 + $0xb14] sm:$0xf]  ;;  %v13040_v19 = vor.u32 %v16636_v51, %v13037_v45 }
 0x74a   : > { %v15915_v8 = vld [vmem:[%s25374_s10 + $0x1f90] sm:$0xf]  ;;  %v15660_v32 = vor.u32 %v17296_v50, %v15659_v46  ;;  %9912 = vmatmul.bf16.vlgmr.msrb.gmra.mxu2 %v19424_v0  ;;  %v9783_v50 = vpop.f32.mrf.mxu0  ;;  %v13293_v14 = vld [vmem:[%s25374_s10 + $0xb30] sm:$0xf0] }
 0x74b   : > { %v17360_v2 = vld [vmem:[%s25374_s10 + $0x1fac] sm:$0xf0]  ;;  %9925 = vmatmul.bf16.vlgmr.msrb.gmra.mxu3 %v19433_v34  ;;  %v9784_v54 = vadd.f32 %v9783_v50, %v8930_v62  ;;  %v16628_v57 = vld [vmem:[%s25374_s10 + $0x8d4] sm:$0xf] }
 0x74c   : > { %9969 = vmatpush.bf16.msra.mxu3 %v15948_v48  ;;  %v15627_v63 = vld [vmem:[%s25374_s10 + $0x1d50] sm:$0xf]  ;;  %v15916_v13 = vor.u32 %v17360_v2, %v15915_v8  ;;  %10002 = vmatpush.bf16.msra.mxu1 %v12144_v17  ;;  %v9796_v2 = vpop.f32.mrf.mxu1  ;;  %v9705_v17 = vpop.f32.mrf.mxu2  ;;  %v13005_v22 = vld [vmem:[%s25374_s10 + $0x8f0] sm:$0xf0] }
 0x74d   : > { %v17288_v40 = vld [vmem:[%s25374_s10 + $0x1d6c] sm:$0xf0]  ;;  %10034 = vmatpush.bf16.msra.mxu0 %v13136_v12  ;;  %9957 = vmatpush.bf16.msra.mxu2 %v15660_v32  ;;  %v16612_v50 = vld [vmem:[%s25374_s10 + $0x854] sm:$0xf] }
 0x74e   : > { %v15883_v37 = vld [vmem:[%s25374_s10 + $0x1f50] sm:$0xf]  ;;  %v15628_v25 = vor.u32 %v17288_v40, %v15627_v63  ;;  %9990 = vmatmul.bf16.vlgmr.msrb.gmra.mxu0 %v18972_v44  ;;  %v9706_v63 = vadd.f32 %v9705_v17, %v22620_v20  ;;  %v13296_v40 = vor.u32 %v16700_v4, %v13293_v14  ;;  %v13261_v20 = vld [vmem:[%s25374_s10 + $0xaf0] sm:$0xf0] }
 0x74f   : > { %v17352_v59 = vld [vmem:[%s25374_s10 + $0x1f6c] sm:$0xf0]  ;;  %10003 = vmatmul.bf16.vlgmr.msra.gmra.mxu1 %v18984_v41 }
 0x750   : > { %10047 = vmatpush.bf16.msrb.mxu1 %v13392_v24  ;;  %v15595_v43 = vld [vmem:[%s25374_s10 + $0x1d10] sm:$0xf]  ;;  %9970 = vmatpush.bf16.msra.mxu3 %v15916_v13  ;;  %v15884_v10 = vor.u32 %v17352_v59, %v15883_v37  ;;  %v22779_v24 = vadd.f32 %v9796_v2, %v9784_v54  ;;  %v16692_v37 = vld [vmem:[%s25374_s10 + $0xad4] sm:$0xf] }
 0x751   : > { %v17280_v28 = vld [vmem:[%s25374_s10 + $0x1d2c] sm:$0xf0]  ;;  %10035 = vmatpush.bf16.msra.mxu0 %v13104_v53  ;;  %9958 = vmatpush.bf16.msra.mxu2 %v15628_v25  ;;  %v9718_v53 = vpop.f32.mrf.mxu3  ;;  %v13008_v25 = vor.u32 %v16628_v57, %v13005_v22  ;;  %v13264_v55 = vor.u32 %v16692_v37, %v13261_v20  ;;  %v16532_v54 = vld [vmem:[%s25374_s10 + $0x5d4] sm:$0xf] }
 0x752   : > { %v15851_v15 = vld [vmem:[%s25374_s10 + $0x1f10] sm:$0xf]  ;;  %v15596_v21 = vor.u32 %v17280_v28, %v15595_v43  ;;  %v9719_v59 = vadd.f32 %v9718_v53, %v9706_v63  ;;  %v16620_v43 = vld [vmem:[%s25374_s10 + $0x894] sm:$0xf]  ;;  %v9785_v18 = vpop.f32.mrf.mxu0 }
 0x753   : > { %v17344_v38 = vld [vmem:[%s25374_s10 + $0x1f2c] sm:$0xf0]  ;;  %v12973_v28 = vld [vmem:[%s25374_s10 + $0x8b0] sm:$0xf0] }
 0x754   : > { %10048 = vmatpush.bf16.msrb.mxu1 %v13360_v7  ;;  %v15563_v46 = vld [vmem:[%s25374_s10 + $0x1cd0] sm:$0xf]  ;;  %9971 = vmatpush.bf16.msra.mxu3 %v15884_v10  ;;  %v15852_v5 = vor.u32 %v17344_v38, %v15851_v15  ;;  %v9732_v10 = vadd.f32 %v22553_v47, %v9719_v59  ;;  %v16684_v15 = vld [vmem:[%s25374_s10 + $0xa94] sm:$0xf]  ;;  %v12976_v38 = vor.u32 %v16620_v43, %v12973_v28 }
 0x755   : > { %v17272_v48 = vld [vmem:[%s25374_s10 + $0x1cec] sm:$0xf0]  ;;  %10036 = vmatpush.bf16.msra.mxu0 %v13072_v42  ;;  %9959 = vmatpush.bf16.msra.mxu2 %v15596_v21  ;;  %v13229_v47 = vld [vmem:[%s25374_s10 + $0xab0] sm:$0xf0] }
 0x756   : > { %v15819_v12 = vld [vmem:[%s25374_s10 + $0x1ed0] sm:$0xf]  ;;  %v15564_v32 = vor.u32 %v17272_v48, %v15563_v46  ;;  %v22826_v45 = vadd.f32 %v22567_v1, %v9732_v10  ;;  %v9707_v48 = vpop.f32.mrf.mxu2  ;;  %v13232_v4 = vor.u32 %v16684_v15, %v13229_v47  ;;  %v16676_v2 = vld [vmem:[%s25374_s10 + $0xa54] sm:$0xf] }
 0x757   : > { %v17336_v8 = vld [vmem:[%s25374_s10 + $0x1eec] sm:$0xf0]  ;;  %v16604_v53 = vld [vmem:[%s25374_s10 + $0x814] sm:$0xf] }
 0x758   : > { %10049 = vmatpush.bf16.msrb.mxu1 %v13328_v27  ;;  %v15531_v13 = vld [vmem:[%s25374_s10 + $0x1c90] sm:$0xf]  ;;  %9972 = vmatpush.bf16.msra.mxu3 %v15852_v5  ;;  %v15820_v29 = vor.u32 %v17336_v8, %v15819_v12  ;;  %v9798_v27 = vpop.f32.mrf.mxu1  ;;  %v12941_v5 = vld [vmem:[%s25374_s10 + $0x870] sm:$0xf0] }
 0x759   : > { %v17264_v58 = vld [vmem:[%s25374_s10 + $0x1cac] sm:$0xf0]  ;;  %10037 = vmatpush.bf16.msra.mxu0 %v13040_v19  ;;  %9960 = vmatpush.bf16.msra.mxu2 %v15564_v32  ;;  %v9720_v12 = vpop.f32.mrf.mxu3  ;;  %v12621_v8 = vld [vmem:[%s25374_s10 + $0x5f0] sm:$0xf0]  ;;  %v12944_v17 = vor.u32 %v16612_v50, %v12941_v5 }
 0x75a   : > { %v15787_v52 = vld [vmem:[%s25374_s10 + $0x1e90] sm:$0xf]  ;;  %v15532_v7 = vor.u32 %v17264_v58, %v15531_v13  ;;  %v13197_v32 = vld [vmem:[%s25374_s10 + $0xa70] sm:$0xf0]  ;;  %v12624_v58 = vor.u32 %v16532_v54, %v12621_v8 }
 0x75b   : > { %v17328_v11 = vld [vmem:[%s25374_s10 + $0x1eac] sm:$0xf0]  ;;  %v12877_v13 = vld [vmem:[%s25374_s10 + $0x7f0] sm:$0xf0] }
 0x75c   : > { %10050 = vmatpush.bf16.msrb.mxu1 %v13296_v40  ;;  %v15499_v3 = vld [vmem:[%s25374_s10 + $0x1c50] sm:$0xf]  ;;  %9973 = vmatpush.bf16.msra.mxu3 %v15820_v29  ;;  %v15788_v62 = vor.u32 %v17328_v11, %v15787_v52  ;;  %v16596_v40 = vld [vmem:[%s25374_s10 + $0x7d4] sm:$0xf]  ;;  %v13200_v29 = vor.u32 %v16676_v2, %v13197_v32 }
 0x75d   : > { %v17256_v42 = vld [vmem:[%s25374_s10 + $0x1c6c] sm:$0xf0]  ;;  %10038 = vmatpush.bf16.msra.mxu0 %v13008_v25  ;;  %9961 = vmatpush.bf16.msra.mxu2 %v15532_v7  ;;  %v12909_v37 = vld [vmem:[%s25374_s10 + $0x830] sm:$0xf0]  ;;  %v12880_v11 = vor.u32 %v16596_v40, %v12877_v13 }
 0x75e   : > { %v15755_v21 = vld [vmem:[%s25374_s10 + $0x1e50] sm:$0xf]  ;;  %v15500_v46 = vor.u32 %v17256_v42, %v15499_v3  ;;  %v16916_v59 = vld [vmem:[%s25374_s10 + $0x11d4] sm:$0xf]  ;;  %v12912_v10 = vor.u32 %v16604_v53, %v12909_v37 }
 0x75f   : > { %v17320_v51 = vld [vmem:[%s25374_s10 + $0x1e6c] sm:$0xf0]  ;;  %v14157_v25 = vld [vmem:[%s25374_s10 + $0x11f0] sm:$0xf0] }
 0x760   : > { %10051 = vmatpush.bf16.msrb.mxu1 %v13264_v55  ;;  %v15467_v14 = vld [vmem:[%s25374_s10 + $0x1c10] sm:$0xf]  ;;  %9974 = vmatpush.bf16.msra.mxu3 %v15788_v62  ;;  %v15756_v19 = vor.u32 %v17320_v51, %v15755_v21  ;;  %v16524_v52 = vld [vmem:[%s25374_s10 + $0x594] sm:$0xf]  ;;  %v14160_v42 = vor.u32 %v16916_v59, %v14157_v25  ;;  %v22964_v25 = vpop.f32.mrf.mxu0 }
 0x761   : > { %v17248_v1 = vld [vmem:[%s25374_s10 + $0x1c2c] sm:$0xf0]  ;;  %10039 = vmatpush.bf16.msra.mxu0 %v12976_v38  ;;  %9962 = vmatpush.bf16.msra.mxu2 %v15500_v46  ;;  %v12589_v7 = vld [vmem:[%s25374_s10 + $0x5b0] sm:$0xf0] }
 0x762   : > { %v15723_v57 = vld [vmem:[%s25374_s10 + $0x1e10] sm:$0xf]  ;;  %v15468_v63 = vor.u32 %v17248_v1, %v15467_v14  ;;  %v16668_v43 = vld [vmem:[%s25374_s10 + $0xa14] sm:$0xf]  ;;  %v12592_v15 = vor.u32 %v16524_v52, %v12589_v7 }
 0x763   : > { %v17312_v22 = vld [vmem:[%s25374_s10 + $0x1e2c] sm:$0xf0]  ;;  %v13165_v28 = vld [vmem:[%s25374_s10 + $0xa30] sm:$0xf0] }
 0x764   : > { %10052 = vmatpush.bf16.msrb.mxu1 %v13232_v4  ;;  %9975 = vmatpush.bf16.msra.mxu3 %v15756_v19  ;;  %v15724_v20 = vor.u32 %v17312_v22, %v15723_v57  ;;  %v16980_v55 = vld [vmem:[%s25374_s10 + $0x13d4] sm:$0xf]  ;;  %v13168_v47 = vor.u32 %v16668_v43, %v13165_v28 }
 0x765   : > { %10040 = vmatpush.bf16.msra.mxu0 %v12944_v17  ;;  %9963 = vmatpush.bf16.msra.mxu2 %v15468_v63  ;;  %v14413_v3 = vld [vmem:[%s25374_s10 + $0x13f0] sm:$0xf0] }
 0x766   : > { %v16588_v18 = vld [vmem:[%s25374_s10 + $0x794] sm:$0xf]  ;;  %v14416_v51 = vor.u32 %v16980_v55, %v14413_v3  ;;  %v22978_v55 = vpop.f32.mrf.mxu1 }
 0x767   : > { %v12845_v62 = vld [vmem:[%s25374_s10 + $0x7b0] sm:$0xf0] }
 0x768   : > { %10053 = vmatpush.bf16.msrb.mxu1 %v13200_v29  ;;  %9976 = vmatpush.bf16.msra.mxu3 %v15724_v20  ;;  %v16908_v38 = vld [vmem:[%s25374_s10 + $0x1194] sm:$0xf]  ;;  %v12848_v48 = vor.u32 %v16588_v18, %v12845_v62 }
 0x769   : > { %10008 = vmatpush.bf16.msrb.mxu2 %v12624_v58  ;;  %v14125_v21 = vld [vmem:[%s25374_s10 + $0x11b0] sm:$0xf0]  ;;  %10041 = vmatpush.bf16.msra.mxu0 %v12912_v10 }
 0x76a   : > { %9964 = vmatmul.bf16.vlgmr.msra.gmra.mxu2 %v19620_v16  ;;  %v16516_v27 = vld [vmem:[%s25374_s10 + $0x554] sm:$0xf]  ;;  %v14128_v4 = vor.u32 %v16908_v38, %v14125_v21 }
 0x76b   : > { %v12557_v46 = vld [vmem:[%s25374_s10 + $0x570] sm:$0xf0]  ;;  %9977 = vmatmul.bf16.vlgmr.msra.gmra.mxu3 %v19635_v6 }
 0x76c   : > { %10021 = vmatpush.bf16.msrb.mxu3 %v12880_v11  ;;  %v16972_v50 = vld [vmem:[%s25374_s10 + $0x1394] sm:$0xf]  ;;  %10054 = vmatpush.bf16.msrb.mxu1 %v13168_v47  ;;  %v12560_v54 = vor.u32 %v16516_v27, %v12557_v46  ;;  %v9770_v27 = vpop.f32.mrf.mxu3 }
 0x76d   : > { %v14381_v5 = vld [vmem:[%s25374_s10 + $0x13b0] sm:$0xf0]  ;;  %10086 = vmatpush.bf16.msrb.mxu0 %v14160_v42  ;;  %10009 = vmatpush.bf16.msrb.mxu2 %v12592_v15  ;;  %v9757_v42 = vpop.f32.mrf.mxu2 }
 0x76e   : > { %v16580_v14 = vld [vmem:[%s25374_s10 + $0x754] sm:$0xf]  ;;  %10042 = vmatmul.bf16.vlgmr.msra.gmra.mxu0 %v18992_v39  ;;  %v14384_v8 = vor.u32 %v16972_v50, %v14381_v5  ;;  %v9758_v15 = vadd.f32 %v9757_v42, %v22826_v45 }
 0x76f   : > { %v12813_v1 = vld [vmem:[%s25374_s10 + $0x770] sm:$0xf0]  ;;  %10055 = vmatmul.bf16.vlgmr.msrb.gmra.mxu1 %v18994_v36 }
 0x770   : > { %v16900_v19 = vld [vmem:[%s25374_s10 + $0x1154] sm:$0xf]  ;;  %10099 = vmatpush.bf16.msra.mxu1 %v14416_v51  ;;  %10022 = vmatpush.bf16.msrb.mxu3 %v12848_v48  ;;  %v12816_v17 = vor.u32 %v16580_v14, %v12813_v1  ;;  %v22999_v48 = vadd.f32 %v9770_v27, %v9758_v15 }
 0x771   : > { %v14093_v12 = vld [vmem:[%s25374_s10 + $0x1170] sm:$0xf0]  ;;  %10087 = vmatpush.bf16.msrb.mxu0 %v14128_v4  ;;  %10010 = vmatpush.bf16.msrb.mxu2 %v12560_v54 }
 0x772   : > { %v16508_v2 = vld [vmem:[%s25374_s10 + $0x514] sm:$0xf]  ;;  %v14096_v63 = vor.u32 %v16900_v19, %v14093_v12 }
 0x773   : > { %v12525_v32 = vld [vmem:[%s25374_s10 + $0x530] sm:$0xf0] }
 0x774   : > { %v16964_v57 = vld [vmem:[%s25374_s10 + $0x1354] sm:$0xf]  ;;  %v12528_v58 = vor.u32 %v16508_v2, %v12525_v32  ;;  %10100 = vmatpush.bf16.msra.mxu1 %v14384_v8  ;;  %10023 = vmatpush.bf16.msrb.mxu3 %v12816_v17  ;;  %v9837_v2 = vpop.f32.mrf.mxu0 }
 0x775   : > { %v14349_v22 = vld [vmem:[%s25374_s10 + $0x1370] sm:$0xf0]  ;;  %10088 = vmatpush.bf16.msrb.mxu0 %v14096_v63 }
 0x776   : > { %v16572_v40 = vld [vmem:[%s25374_s10 + $0x714] sm:$0xf]  ;;  %v14352_v37 = vor.u32 %v16964_v57, %v14349_v22  ;;  %10011 = vmatpush.bf16.msrb.mxu2 %v12528_v58 }
 0x777   : > { %v12781_v13 = vld [vmem:[%s25374_s10 + $0x730] sm:$0xf0] }
 0x778   : > { %v16892_v29 = vld [vmem:[%s25374_s10 + $0x1114] sm:$0xf]  ;;  %v12784_v52 = vor.u32 %v16572_v40, %v12781_v13  ;;  %10101 = vmatpush.bf16.msra.mxu1 %v14352_v37  ;;  %v9850_v13 = vpop.f32.mrf.mxu1 }
 0x779   : > { %v14061_v53 = vld [vmem:[%s25374_s10 + $0x1130] sm:$0xf0] }
 0x77a   : > { %v16500_v20 = vld [vmem:[%s25374_s10 + $0x4d4] sm:$0xf]  ;;  %v14064_v43 = vor.u32 %v16892_v29, %v14061_v53  ;;  %10024 = vmatpush.bf16.msrb.mxu3 %v12784_v52  ;;  %v9759_v29 = vpop.f32.mrf.mxu2 }
 0x77b   : > { %v12493_v59 = vld [vmem:[%s25374_s10 + $0x4f0] sm:$0xf0] }
 0x77c   : > { %v16956_v11 = vld [vmem:[%s25374_s10 + $0x1314] sm:$0xf]  ;;  %v12496_v3 = vor.u32 %v16500_v20, %v12493_v59  ;;  %10089 = vmatpush.bf16.msrb.mxu0 %v14064_v43  ;;  %v9772_v43 = vpop.f32.mrf.mxu3 }
 0x77d   : > { %v14317_v7 = vld [vmem:[%s25374_s10 + $0x1330] sm:$0xf0] }
 0x77e   : > { %v16564_v28 = vld [vmem:[%s25374_s10 + $0x6d4] sm:$0xf]  ;;  %v14320_v47 = vor.u32 %v16956_v11, %v14317_v7  ;;  %10012 = vmatpush.bf16.msrb.mxu2 %v12496_v3 }
 0x77f   : > { %v12749_v10 = vld [vmem:[%s25374_s10 + $0x6f0] sm:$0xf0] }
 0x780   : > { %v16884_v18 = vld [vmem:[%s25374_s10 + $0x10d4] sm:$0xf]  ;;  %v12752_v51 = vor.u32 %v16564_v28, %v12749_v10  ;;  %10102 = vmatpush.bf16.msra.mxu1 %v14320_v47 }
 0x781   : > { %v14029_v62 = vld [vmem:[%s25374_s10 + $0x10f0] sm:$0xf0] }
 0x782   : > { %v16492_v38 = vld [vmem:[%s25374_s10 + $0x494] sm:$0xf]  ;;  %v14032_v50 = vor.u32 %v16884_v18, %v14029_v62  ;;  %10025 = vmatpush.bf16.msrb.mxu3 %v12752_v51 }
 0x783   : > { %v12461_v21 = vld [vmem:[%s25374_s10 + $0x4b0] sm:$0xf0] }
 0x784   : > { %v16948_v46 = vld [vmem:[%s25374_s10 + $0x12d4] sm:$0xf]  ;;  %v12464_v14 = vor.u32 %v16492_v38, %v12461_v21  ;;  %10090 = vmatpush.bf16.msrb.mxu0 %v14032_v50 }
 0x785   : > { %v14285_v45 = vld [vmem:[%s25374_s10 + $0x12f0] sm:$0xf0] }
 0x786   : > { %v16556_v5 = vld [vmem:[%s25374_s10 + $0x694] sm:$0xf]  ;;  %v14288_v19 = vor.u32 %v16948_v46, %v14285_v45  ;;  %10013 = vmatpush.bf16.msrb.mxu2 %v12464_v14 }
 0x787   : > { %v12717_v4 = vld [vmem:[%s25374_s10 + $0x6b0] sm:$0xf0] }
 0x788   : > { %v16876_v1 = vld [vmem:[%s25374_s10 + $0x1094] sm:$0xf]  ;;  %v12720_v32 = vor.u32 %v16556_v5, %v12717_v4  ;;  %10103 = vmatpush.bf16.msra.mxu1 %v14288_v19 }
 0x789   : > { %v13997_v54 = vld [vmem:[%s25374_s10 + $0x10b0] sm:$0xf0] }
 0x78a   : > { %v16484_v12 = vld [vmem:[%s25374_s10 + $0x454] sm:$0xf]  ;;  %v14000_v22 = vor.u32 %v16876_v1, %v13997_v54  ;;  %10026 = vmatpush.bf16.msrb.mxu3 %v12720_v32 }
 0x78b   : > { %v12429_v8 = vld [vmem:[%s25374_s10 + $0x470] sm:$0xf0] }
 0x78c   : > { %v16940_v17 = vld [vmem:[%s25374_s10 + $0x1294] sm:$0xf]  ;;  %v12432_v58 = vor.u32 %v16484_v12, %v12429_v8  ;;  %10091 = vmatpush.bf16.msrb.mxu0 %v14000_v22 }
 0x78d   : > { %v14253_v57 = vld [vmem:[%s25374_s10 + $0x12b0] sm:$0xf0] }
 0x78e   : > { %v16548_v63 = vld [vmem:[%s25374_s10 + $0x654] sm:$0xf]  ;;  %v14256_v20 = vor.u32 %v16940_v17, %v14253_v57  ;;  %10014 = vmatpush.bf16.msrb.mxu2 %v12432_v58 }
 0x78f   : > { %v12685_v40 = vld [vmem:[%s25374_s10 + $0x670] sm:$0xf0] }
 0x790   : > { %v16868_v53 = vld [vmem:[%s25374_s10 + $0x1054] sm:$0xf]  ;;  %v12688_v7 = vor.u32 %v16548_v63, %v12685_v40  ;;  %10104 = vmatpush.bf16.msra.mxu1 %v14256_v20 }
 0x791   : > { %v13965_v37 = vld [vmem:[%s25374_s10 + $0x1070] sm:$0xf0] }
 0x792   : > { %v16476_v59 = vld [vmem:[%s25374_s10 + $0x414] sm:$0xf]  ;;  %v13968_v42 = vor.u32 %v16868_v53, %v13965_v37  ;;  %10027 = vmatpush.bf16.msrb.mxu3 %v12688_v7 }
 0x793   : > { %v12397_v52 = vld [vmem:[%s25374_s10 + $0x430] sm:$0xf0] }
 0x794   : > { %v16788_v11 = vld [vmem:[%s25374_s10 + $0xdd4] sm:$0xf]  ;;  %v12400_v15 = vor.u32 %v16476_v59, %v12397_v52  ;;  %10092 = vmatpush.bf16.msrb.mxu0 %v13968_v42 }
 0x795   : > { %v13645_v28 = vld [vmem:[%s25374_s10 + $0xdf0] sm:$0xf0] }
 0x796   : > { %v16932_v10 = vld [vmem:[%s25374_s10 + $0x1254] sm:$0xf]  ;;  %v13648_v21 = vor.u32 %v16788_v11, %v13645_v28  ;;  %10015 = vmatpush.bf16.msrb.mxu2 %v12400_v15 }
 0x797   : > { %v14221_v3 = vld [vmem:[%s25374_s10 + $0x1270] sm:$0xf0] }
 0x798   : > { %v16540_v18 = vld [vmem:[%s25374_s10 + $0x614] sm:$0xf]  ;;  %v14224_v51 = vor.u32 %v16932_v10, %v14221_v3 }
 0x799   : > { %v12653_v62 = vld [vmem:[%s25374_s10 + $0x630] sm:$0xf0]  ;;  %10016 = vmatmul.bf16.vlgmr.msrb.gmra.mxu2 %v19089_v30 }
 0x79a   : > { %v16852_v47 = vld [vmem:[%s25374_s10 + $0xfd4] sm:$0xf]  ;;  %v12656_v45 = vor.u32 %v16540_v18, %v12653_v62  ;;  %10060 = vmatpush.bf16.msra.mxu2 %v13648_v21  ;;  %10105 = vmatpush.bf16.msra.mxu1 %v14224_v51 }
 0x79b   : > { %v13901_v38 = vld [vmem:[%s25374_s10 + $0xff0] sm:$0xf0] }
 0x79c   : > { %v16860_v27 = vld [vmem:[%s25374_s10 + $0x1014] sm:$0xf]  ;;  %v13904_v14 = vor.u32 %v16852_v47, %v13901_v38  ;;  %10028 = vmatpush.bf16.msrb.mxu3 %v12656_v45 }
 0x79d   : > { %v13933_v46 = vld [vmem:[%s25374_s10 + $0x1030] sm:$0xf0] }
 0x79e   : > { %v17172_v50 = vld [vmem:[%s25374_s10 + $0x19d4] sm:$0xf]  ;;  %v13936_v12 = vor.u32 %v16860_v27, %v13933_v46 }
 0x79f   : > { %v15181_v5 = vld [vmem:[%s25374_s10 + $0x19f0] sm:$0xf0]  ;;  %10029 = vmatmul.bf16.vlgmr.msrb.gmra.mxu3 %v19097_v33 }
 0x7a0   : > { %v16780_v4 = vld [vmem:[%s25374_s10 + $0xd94] sm:$0xf]  ;;  %v15184_v32 = vor.u32 %v17172_v50, %v15181_v5  ;;  %10073 = vmatpush.bf16.msra.mxu3 %v13904_v14  ;;  %10093 = vmatpush.bf16.msrb.mxu0 %v13936_v12  ;;  %v23167_v14 = vpop.f32.mrf.mxu0 }
 0x7a1   : > { %v13613_v1 = vld [vmem:[%s25374_s10 + $0xdb0] sm:$0xf0] }
 0x7a2   : > { %v16924_v54 = vld [vmem:[%s25374_s10 + $0x1214] sm:$0xf]  ;;  %v13616_v22 = vor.u32 %v16780_v4, %v13613_v1 }
 0x7a3   : > { %v14189_v19 = vld [vmem:[%s25374_s10 + $0x1230] sm:$0xf0]  ;;  %10094 = vmatmul.bf16.vlgmr.msrb.gmra.mxu0 %v19202_v56 }
 0x7a4   : > { %v17236_v8 = vld [vmem:[%s25374_s10 + $0x1bd4] sm:$0xf]  ;;  %v14192_v63 = vor.u32 %v16924_v54, %v14189_v19  ;;  %10138 = vmatpush.bf16.msra.mxu0 %v15184_v32  ;;  %10061 = vmatpush.bf16.msra.mxu2 %v13616_v22  ;;  %v23181_v32 = vpop.f32.mrf.mxu1 }
 0x7a5   : > { %v15437_v2 = vld [vmem:[%s25374_s10 + $0x1bf0] sm:$0xf0] }
 0x7a6   : > { %v16844_v17 = vld [vmem:[%s25374_s10 + $0xf94] sm:$0xf]  ;;  %v15440_v58 = vor.u32 %v17236_v8, %v15437_v2  ;;  %10106 = vmatpush.bf16.msra.mxu1 %v14192_v63 }
 0x7a7   : > { %v13869_v57 = vld [vmem:[%s25374_s10 + $0xfb0] sm:$0xf0] }
 0x7a8   : > { %v17164_v40 = vld [vmem:[%s25374_s10 + $0x1994] sm:$0xf]  ;;  %v13872_v37 = vor.u32 %v16844_v17, %v13869_v57  ;;  %v9809_v57 = vpop.f32.mrf.mxu2 }
 0x7a9   : > { %v15149_v13 = vld [vmem:[%s25374_s10 + $0x19b0] sm:$0xf0]  ;;  %10107 = vmatmul.bf16.vlgmr.msra.gmra.mxu1 %v19217_v35 }
 0x7aa   : > { %v16772_v29 = vld [vmem:[%s25374_s10 + $0xd54] sm:$0xf]  ;;  %v15152_v52 = vor.u32 %v17164_v40, %v15149_v13  ;;  %10151 = vmatpush.bf16.msrb.mxu1 %v15440_v58  ;;  %10074 = vmatpush.bf16.msra.mxu3 %v13872_v37  ;;  %v9810_v40 = vadd.f32 %v9809_v57, %v22779_v24  ;;  %v9822_v37 = vpop.f32.mrf.mxu3 }
 0x7ab   : > { %v13581_v53 = vld [vmem:[%s25374_s10 + $0xd70] sm:$0xf0] }
 0x7ac   : > { %v17228_v20 = vld [vmem:[%s25374_s10 + $0x1b94] sm:$0xf]  ;;  %v13584_v43 = vor.u32 %v16772_v29, %v13581_v53  ;;  %10139 = vmatpush.bf16.msra.mxu0 %v15152_v52 }
 0x7ad   : > { %v15405_v59 = vld [vmem:[%s25374_s10 + $0x1bb0] sm:$0xf0] }
 0x7ae   : > { %v16836_v11 = vld [vmem:[%s25374_s10 + $0xf54] sm:$0xf]  ;;  %v15408_v3 = vor.u32 %v17228_v20, %v15405_v59  ;;  %10062 = vmatpush.bf16.msra.mxu2 %v13584_v43  ;;  %v9823_v59 = vadd.f32 %v9822_v37, %v9810_v40 }
 0x7af   : > { %v13837_v7 = vld [vmem:[%s25374_s10 + $0xf70] sm:$0xf0] }
 0x7b0   : > { %v17156_v28 = vld [vmem:[%s25374_s10 + $0x1954] sm:$0xf]  ;;  %v13840_v62 = vor.u32 %v16836_v11, %v13837_v7  ;;  %10152 = vmatpush.bf16.msrb.mxu1 %v15408_v3  ;;  %v9836_v3 = vadd.f32 %v22964_v25, %v9823_v59 }
 0x7b1   : > { %v15117_v10 = vld [vmem:[%s25374_s10 + $0x1970] sm:$0xf0] }
 0x7b2   : > { %v16764_v42 = vld [vmem:[%s25374_s10 + $0xd14] sm:$0xf]  ;;  %v15120_v38 = vor.u32 %v17156_v28, %v15117_v10  ;;  %10075 = vmatpush.bf16.msra.mxu3 %v13840_v62 }
 0x7b3   : > { %v13549_v18 = vld [vmem:[%s25374_s10 + $0xd30] sm:$0xf0] }
 0x7b4   : > { %v17220_v15 = vld [vmem:[%s25374_s10 + $0x1b54] sm:$0xf]  ;;  %v13552_v27 = vor.u32 %v16764_v42, %v13549_v18  ;;  %10140 = vmatpush.bf16.msra.mxu0 %v15120_v38 }
 0x7b5   : > { %v15373_v47 = vld [vmem:[%s25374_s10 + $0x1b70] sm:$0xf0] }
 0x7b6   : > { %v16828_v21 = vld [vmem:[%s25374_s10 + $0xf14] sm:$0xf]  ;;  %v15376_v50 = vor.u32 %v17220_v15, %v15373_v47  ;;  %10063 = vmatpush.bf16.msra.mxu2 %v13552_v27  ;;  %v9889_v15 = vpop.f32.mrf.mxu0 }
 0x7b7   : > { %v13805_v51 = vld [vmem:[%s25374_s10 + $0xf30] sm:$0xf0]  ;;  %v16473_v15 = vld [vmem:[%s25374_s10 + $0x3f4] sm:$0xf0] }
 0x7b8   : > { %v17148_v46 = vld [vmem:[%s25374_s10 + $0x1914] sm:$0xf]  ;;  %v13808_v1 = vor.u32 %v16828_v21, %v13805_v51  ;;  %10153 = vmatpush.bf16.msrb.mxu1 %v15376_v50 }
 0x7b9   : > { %v15085_v45 = vld [vmem:[%s25374_s10 + $0x1930] sm:$0xf0] }
 0x7ba   : > { %v16756_v5 = vld [vmem:[%s25374_s10 + $0xcd4] sm:$0xf]  ;;  %v15088_v12 = vor.u32 %v17148_v46, %v15085_v45  ;;  %10076 = vmatpush.bf16.msra.mxu3 %v13808_v1  ;;  %v23234_v46 = vadd.f32 %v22978_v55, %v9836_v3  ;;  %v9902_v45 = vpop.f32.mrf.mxu1 }
 0x7bb   : > { %v13517_v4 = vld [vmem:[%s25374_s10 + $0xcf0] sm:$0xf0]  ;;  %v16401_v45 = vld [vmem:[%s25374_s10 + $0x1b4] sm:$0xf0] }
 0x7bc   : > { %v17212_v54 = vld [vmem:[%s25374_s10 + $0x1b14] sm:$0xf]  ;;  %v13520_v17 = vor.u32 %v16756_v5, %v13517_v4  ;;  %10141 = vmatpush.bf16.msra.mxu0 %v15088_v12  ;;  %v9811_v5 = vpop.f32.mrf.mxu2 }
 0x7bd   : > { %v15341_v19 = vld [vmem:[%s25374_s10 + $0x1b30] sm:$0xf0] }
 0x7be   : > { %v16820_v8 = vld [vmem:[%s25374_s10 + $0xed4] sm:$0xf]  ;;  %v15344_v13 = vor.u32 %v17212_v54, %v15341_v19  ;;  %10064 = vmatpush.bf16.msra.mxu2 %v13520_v17 }
 0x7bf   : > { %v13773_v2 = vld [vmem:[%s25374_s10 + $0xef0] sm:$0xf0] }
 0x7c0   : > { %v17140_v22 = vld [vmem:[%s25374_s10 + $0x18d4] sm:$0xf]  ;;  %v13776_v53 = vor.u32 %v16820_v8, %v13773_v2  ;;  %10154 = vmatpush.bf16.msrb.mxu1 %v15344_v13  ;;  %v9824_v2 = vpop.f32.mrf.mxu3 }
 0x7c1   : > { %v15053_v63 = vld [vmem:[%s25374_s10 + $0x18f0] sm:$0xf0] }
 0x7c2   : > { %v16748_v58 = vld [vmem:[%s25374_s10 + $0xc94] sm:$0xf]  ;;  %v15056_v52 = vor.u32 %v17140_v22, %v15053_v63  ;;  %10077 = vmatpush.bf16.msra.mxu3 %v13776_v53 }
 0x7c3   : > { %v13485_v29 = vld [vmem:[%s25374_s10 + $0xcb0] sm:$0xf0] }
 0x7c4   : > { %v17204_v20 = vld [vmem:[%s25374_s10 + $0x1ad4] sm:$0xf]  ;;  %v13488_v43 = vor.u32 %v16748_v58, %v13485_v29  ;;  %10142 = vmatpush.bf16.msra.mxu0 %v15056_v52 }
 0x7c5   : > { %v15309_v24 = vld [vmem:[%s25374_s10 + $0x1af0] sm:$0xf0] }
 0x7c6   : > { %v16812_v11 = vld [vmem:[%s25374_s10 + $0xe94] sm:$0xf]  ;;  %v15312_v42 = vor.u32 %v17204_v20, %v15309_v24  ;;  %10065 = vmatpush.bf16.msra.mxu2 %v13488_v43 }
 0x7c7   : > { %v13741_v7 = vld [vmem:[%s25374_s10 + $0xeb0] sm:$0xf0] }
 0x7c8   : > { %v17132_v28 = vld [vmem:[%s25374_s10 + $0x1894] sm:$0xf]  ;;  %v13744_v47 = vor.u32 %v16812_v11, %v13741_v7  ;;  %10155 = vmatpush.bf16.msrb.mxu1 %v15312_v42  ;;  %v12115_v11 = vld [vmem:[%s25374_s10 + $0x1d8] sm:$0xf] }
 0x7c9   : > { %v15021_v10 = vld [vmem:[%s25374_s10 + $0x18b0] sm:$0xf0]  ;;  %v16409_v7 = vld [vmem:[%s25374_s10 + $0x1f4] sm:$0xf0] }
 0x7ca   : > { %v16740_v18 = vld [vmem:[%s25374_s10 + $0xc54] sm:$0xf]  ;;  %v15024_v21 = vor.u32 %v17132_v28, %v15021_v10  ;;  %10078 = vmatpush.bf16.msra.mxu3 %v13744_v47  ;;  %v12116_v47 = vor.u32 %v16409_v7, %v12115_v11 }
 0x7cb   : > { %v13453_v62 = vld [vmem:[%s25374_s10 + $0xc70] sm:$0xf0] }
 0x7cc   : > { %v17196_v38 = vld [vmem:[%s25374_s10 + $0x1a94] sm:$0xf]  ;;  %v13456_v50 = vor.u32 %v16740_v18, %v13453_v62  ;;  %10143 = vmatpush.bf16.msra.mxu0 %v15024_v21  ;;  %v12371_v62 = vld [vmem:[%s25374_s10 + $0x3d8] sm:$0xf] }
 0x7cd   : > { %v15277_v25 = vld [vmem:[%s25374_s10 + $0x1ab0] sm:$0xf0] }
 0x7ce   : > { %v16804_v51 = vld [vmem:[%s25374_s10 + $0xe54] sm:$0xf]  ;;  %v15280_v54 = vor.u32 %v17196_v38, %v15277_v25  ;;  %10066 = vmatpush.bf16.msra.mxu2 %v13456_v50  ;;  %v12372_v50 = vor.u32 %v16473_v15, %v12371_v62 }
 0x7cf   : > { %v13709_v27 = vld [vmem:[%s25374_s10 + $0xe70] sm:$0xf0] }
 0x7d0   : > { %v17124_v4 = vld [vmem:[%s25374_s10 + $0x1854] sm:$0xf]  ;;  %v13712_v8 = vor.u32 %v16804_v51, %v13709_v27  ;;  %10156 = vmatpush.bf16.msrb.mxu1 %v15280_v54  ;;  %v12083_v27 = vld [vmem:[%s25374_s10 + $0x198] sm:$0xf] }
 0x7d1   : > { %v14989_v1 = vld [vmem:[%s25374_s10 + $0x1870] sm:$0xf0]  ;;  %v12339_v54 = vld [vmem:[%s25374_s10 + $0x398] sm:$0xf] }
 0x7d2   : > { %v16732_v19 = vld [vmem:[%s25374_s10 + $0xc14] sm:$0xf]  ;;  %v14992_v63 = vor.u32 %v17124_v4, %v14989_v1  ;;  %10079 = vmatpush.bf16.msra.mxu3 %v13712_v8 }
 0x7d3   : > { %v13421_v55 = vld [vmem:[%s25374_s10 + $0xc30] sm:$0xf0] }
 0x7d4   : > { %v17044_v12 = vld [vmem:[%s25374_s10 + $0x15d4] sm:$0xf]  ;;  %v13424_v58 = vor.u32 %v16732_v19, %v13421_v55  ;;  %10144 = vmatpush.bf16.msra.mxu0 %v14992_v63  ;;  %v16465_v19 = vld [vmem:[%s25374_s10 + $0x3b4] sm:$0xf0]  ;;  %v12084_v55 = vor.u32 %v16401_v45, %v12083_v27 }
 0x7d5   : > { %v14669_v17 = vld [vmem:[%s25374_s10 + $0x15f0] sm:$0xf0] }
 0x7d6   : > { %v17188_v57 = vld [vmem:[%s25374_s10 + $0x1a54] sm:$0xf]  ;;  %v14672_v37 = vor.u32 %v17044_v12, %v14669_v17  ;;  %10067 = vmatpush.bf16.msra.mxu2 %v13424_v58  ;;  %v12051_v17 = vld [vmem:[%s25374_s10 + $0x158] sm:$0xf] }
 0x7d7   : > { %v15245_v22 = vld [vmem:[%s25374_s10 + $0x1a70] sm:$0xf0]  ;;  %v12307_v58 = vld [vmem:[%s25374_s10 + $0x358] sm:$0xf] }
 0x7d8   : > { %v16796_v40 = vld [vmem:[%s25374_s10 + $0xe14] sm:$0xf]  ;;  %v15248_v20 = vor.u32 %v17188_v57, %v15245_v22  ;;  %v16393_v57 = vld [vmem:[%s25374_s10 + $0x174] sm:$0xf0]  ;;  %v12340_v22 = vor.u32 %v16465_v19, %v12339_v54 }
 0x7d9   : > { %v13677_v13 = vld [vmem:[%s25374_s10 + $0xe30] sm:$0xf0]  ;;  %10068 = vmatmul.bf16.vlgmr.msra.gmra.mxu2 %v19212_v26  ;;  %v12243_v54 = vld [vmem:[%s25374_s10 + $0x2d8] sm:$0xf] }
 0x7da   : > { %v17108_v29 = vld [vmem:[%s25374_s10 + $0x17d4] sm:$0xf]  ;;  %v13680_v52 = vor.u32 %v16796_v40, %v13677_v13  ;;  %10112 = vmatpush.bf16.msrb.mxu2 %v14672_v37  ;;  %10157 = vmatpush.bf16.msrb.mxu1 %v15248_v20 }
 0x7db   : > { %v14925_v53 = vld [vmem:[%s25374_s10 + $0x17f0] sm:$0xf0] }
 0x7dc   : > { %v17116_v24 = vld [vmem:[%s25374_s10 + $0x1814] sm:$0xf]  ;;  %v14928_v28 = vor.u32 %v17108_v29, %v14925_v53  ;;  %10080 = vmatpush.bf16.msra.mxu3 %v13680_v52  ;;  %v16457_v29 = vld [vmem:[%s25374_s10 + $0x374] sm:$0xf0]  ;;  %v12052_v53 = vor.u32 %v16393_v57, %v12051_v17 }
 0x7dd   : > { %v14957_v59 = vld [vmem:[%s25374_s10 + $0x1830] sm:$0xf0]  ;;  %v16385_v52 = vld [vmem:[%s25374_s10 + $0x134] sm:$0xf0]  ;;  %v12308_v11 = vor.u32 %v16457_v29, %v12307_v58 }
 0x7de   : > { %v17036_v43 = vld [vmem:[%s25374_s10 + $0x1594] sm:$0xf]  ;;  %v14960_v18 = vor.u32 %v17116_v24, %v14957_v59  ;;  %v12019_v59 = vld [vmem:[%s25374_s10 + $0x118] sm:$0xf] }
 0x7df   : > { %v14637_v10 = vld [vmem:[%s25374_s10 + $0x15b0] sm:$0xf0]  ;;  %10081 = vmatmul.bf16.vlgmr.msra.gmra.mxu3 %v19233_v9  ;;  %v11955_v17 = vld [vmem:[%s25374_s10 + $0x98] sm:$0xf] }
 0x7e0   : > { %v17180_v3 = vld [vmem:[%s25374_s10 + $0x1a14] sm:$0xf]  ;;  %v14640_v21 = vor.u32 %v17036_v43, %v14637_v10  ;;  %10125 = vmatpush.bf16.msrb.mxu3 %v14928_v28  ;;  %10145 = vmatpush.bf16.msra.mxu0 %v14960_v18  ;;  %v23372_v28 = vpop.f32.mrf.mxu0  ;;  %v12020_v18 = vor.u32 %v16385_v52, %v12019_v59  ;;  %v16369_v57 = vld [vmem:[%s25374_s10 + $0xb4] sm:$0xf0] }
 0x7e1   : > { %v15213_v42 = vld [vmem:[%s25374_s10 + $0x1a30] sm:$0xf0] }
 0x7e2   : > { %v17100_v38 = vld [vmem:[%s25374_s10 + $0x1794] sm:$0xf]  ;;  %v15216_v51 = vor.u32 %v17180_v3, %v15213_v42  ;;  %10113 = vmatpush.bf16.msrb.mxu2 %v14640_v21  ;;  %v12275_v3 = vld [vmem:[%s25374_s10 + $0x318] sm:$0xf] }
 0x7e3   : > { %v14893_v25 = vld [vmem:[%s25374_s10 + $0x17b0] sm:$0xf0]  ;;  %10146 = vmatmul.bf16.vlgmr.msra.gmra.mxu0 %v19323_v60  ;;  %v16449_v42 = vld [vmem:[%s25374_s10 + $0x334] sm:$0xf0] }
 0x7e4   : > { %v17028_v5 = vld [vmem:[%s25374_s10 + $0x1554] sm:$0xf]  ;;  %v14896_v1 = vor.u32 %v17100_v38, %v14893_v25  ;;  %10190 = vmatpush.bf16.msrb.mxu0 %v12116_v47  ;;  %10158 = vmatpush.bf16.msrb.mxu1 %v15216_v51  ;;  %v23386_v47 = vpop.f32.mrf.mxu1  ;;  %v9861_v25 = vpop.f32.mrf.mxu2  ;;  %v11987_v21 = vld [vmem:[%s25374_s10 + $0xd8] sm:$0xf]  ;;  %v12276_v45 = vor.u32 %v16449_v42, %v12275_v3 }
 0x7e5   : > { %v14605_v4 = vld [vmem:[%s25374_s10 + $0x1570] sm:$0xf0]  ;;  %v16377_v51 = vld [vmem:[%s25374_s10 + $0xf4] sm:$0xf0]  ;;  %v9862_v27 = vadd.f32 %v9861_v25, %v23234_v46 }
 0x7e6   : > { %v17092_v12 = vld [vmem:[%s25374_s10 + $0x1754] sm:$0xf]  ;;  %v14608_v2 = vor.u32 %v17028_v5, %v14605_v4  ;;  %10126 = vmatpush.bf16.msrb.mxu3 %v14896_v1  ;;  %v9874_v1 = vpop.f32.mrf.mxu3  ;;  %v16441_v46 = vld [vmem:[%s25374_s10 + $0x2f4] sm:$0xf0] }
 0x7e7   : > { %v14861_v8 = vld [vmem:[%s25374_s10 + $0x1770] sm:$0xf0]  ;;  %10159 = vmatmul.bf16.vlgmr.msrb.gmra.mxu1 %v19338_v23  ;;  %v9875_v19 = vadd.f32 %v9874_v1, %v9862_v27  ;;  %v12179_v25 = vld [vmem:[%s25374_s10 + $0x258] sm:$0xf] }
 0x7e8   : > { %10203 = vmatpush.bf16.msra.mxu1 %v12372_v50  ;;  %v17020_v63 = vld [vmem:[%s25374_s10 + $0x1514] sm:$0xf]  ;;  %v14864_v13 = vor.u32 %v17092_v12, %v14861_v8  ;;  %10191 = vmatpush.bf16.msrb.mxu0 %v12084_v55  ;;  %v11988_v55 = vor.u32 %v16377_v51, %v11987_v21  ;;  %v9941_v58 = vpop.f32.mrf.mxu0  ;;  %v16425_v21 = vld [vmem:[%s25374_s10 + $0x274] sm:$0xf0] }
 0x7e9   : > { %v14573_v40 = vld [vmem:[%s25374_s10 + $0x1530] sm:$0xf0]  ;;  %10114 = vmatpush.bf16.msrb.mxu2 %v14608_v2  ;;  %v16729_v58 = vld [vmem:[%s25374_s10 + $0xbf4] sm:$0xf0] }
 0x7ea   : > { %v17084_v37 = vld [vmem:[%s25374_s10 + $0x1714] sm:$0xf]  ;;  %v14576_v24 = vor.u32 %v17020_v63, %v14573_v40  ;;  %10127 = vmatpush.bf16.msrb.mxu3 %v14864_v13  ;;  %v12244_v63 = vor.u32 %v16441_v46, %v12243_v54  ;;  %v12180_v54 = vor.u32 %v16425_v21, %v12179_v25  ;;  %v11891_v46 = vld [vmem:[%s25374_s10 + $0x18] sm:$0xf] }
 0x7eb   : > { %v14829_v20 = vld [vmem:[%s25374_s10 + $0x1730] sm:$0xf0]  ;;  %v16649_v25 = vld [vmem:[%s25374_s10 + $0x974] sm:$0xf0] }
 0x7ec   : > { %10204 = vmatpush.bf16.msra.mxu1 %v12340_v22  ;;  %v17012_v7 = vld [vmem:[%s25374_s10 + $0x14d4] sm:$0xf]  ;;  %v14832_v10 = vor.u32 %v17084_v37, %v14829_v20  ;;  %10192 = vmatpush.bf16.msrb.mxu0 %v12052_v53  ;;  %v9888_v22 = vadd.f32 %v23167_v14, %v9875_v19  ;;  %v12211_v53 = vld [vmem:[%s25374_s10 + $0x298] sm:$0xf]  ;;  %v11956_v37 = vor.u32 %v16369_v57, %v11955_v17  ;;  %v9954_v52 = vpop.f32.mrf.mxu1 }
 0x7ed   : > { %v14541_v43 = vld [vmem:[%s25374_s10 + $0x14f0] sm:$0xf0]  ;;  %10115 = vmatpush.bf16.msrb.mxu2 %v14576_v24  ;;  %v16433_v14 = vld [vmem:[%s25374_s10 + $0x2b4] sm:$0xf0] }
 0x7ee   : > { %v17076_v62 = vld [vmem:[%s25374_s10 + $0x16d4] sm:$0xf]  ;;  %v14544_v38 = vor.u32 %v17012_v7, %v14541_v43  ;;  %10128 = vmatpush.bf16.msrb.mxu3 %v14832_v10  ;;  %v23439_v59 = vadd.f32 %v23181_v32, %v9888_v22  ;;  %v9863_v7 = vpop.f32.mrf.mxu2  ;;  %v11923_v43 = vld [vmem:[%s25374_s10 + $0x58] sm:$0xf]  ;;  %v12212_v3 = vor.u32 %v16433_v14, %v12211_v53 }
 0x7ef   : > { %v14797_v15 = vld [vmem:[%s25374_s10 + $0x16f0] sm:$0xf0]  ;;  %v16361_v10 = vld [vmem:[%s25374_s10 + $0x74] sm:$0xf0] }
 0x7f0   : > { %10205 = vmatpush.bf16.msra.mxu1 %v12308_v11  ;;  %v17004_v50 = vld [vmem:[%s25374_s10 + $0x1494] sm:$0xf]  ;;  %v14800_v4 = vor.u32 %v17076_v62, %v14797_v15  ;;  %10193 = vmatpush.bf16.msrb.mxu0 %v12020_v18  ;;  %v9876_v15 = vpop.f32.mrf.mxu3  ;;  %v11924_v51 = vor.u32 %v16361_v10, %v11923_v43  ;;  %v16353_v19 = vld [vmem:[%s25374_s10 + $0x34] sm:$0xf0] }
 0x7f1   : > { %v14509_v5 = vld [vmem:[%s25374_s10 + $0x14b0] sm:$0xf0]  ;;  %10116 = vmatpush.bf16.msrb.mxu2 %v14544_v38  ;;  %v12147_v22 = vld [vmem:[%s25374_s10 + $0x218] sm:$0xf] }
 0x7f2   : > { %v17068_v12 = vld [vmem:[%s25374_s10 + $0x1694] sm:$0xf]  ;;  %v14512_v2 = vor.u32 %v17004_v50, %v14509_v5  ;;  %10129 = vmatpush.bf16.msrb.mxu3 %v14800_v4  ;;  %v16657_v52 = vld [vmem:[%s25374_s10 + $0x9b4] sm:$0xf0] }
 0x7f3   : > { %v14765_v8 = vld [vmem:[%s25374_s10 + $0x16b0] sm:$0xf0] }
 0x7f4   : > { %10206 = vmatpush.bf16.msra.mxu1 %v12276_v45  ;;  %v16996_v40 = vld [vmem:[%s25374_s10 + $0x1454] sm:$0xf]  ;;  %v14768_v29 = vor.u32 %v17068_v12, %v14765_v8  ;;  %10194 = vmatpush.bf16.msrb.mxu0 %v11988_v55  ;;  %v13139_v12 = vld [vmem:[%s25374_s10 + $0x9d8] sm:$0xf] }
 0x7f5   : > { %v14477_v13 = vld [vmem:[%s25374_s10 + $0x1470] sm:$0xf0]  ;;  %10117 = vmatpush.bf16.msrb.mxu2 %v14512_v2  ;;  %v16665_v8 = vld [vmem:[%s25374_s10 + $0x9f4] sm:$0xf0] }
 0x7f6   : > { %v17060_v20 = vld [vmem:[%s25374_s10 + $0x1654] sm:$0xf]  ;;  %v14480_v11 = vor.u32 %v16996_v40, %v14477_v13  ;;  %10130 = vmatpush.bf16.msrb.mxu3 %v14768_v29  ;;  %v11892_v40 = vor.u32 %v16353_v19, %v11891_v46  ;;  %v13395_v13 = vld [vmem:[%s25374_s10 + $0xbd8] sm:$0xf]  ;;  %v13140_v29 = vor.u32 %v16665_v8, %v13139_v12 }
 0x7f7   : > { %v14733_v24 = vld [vmem:[%s25374_s10 + $0x1670] sm:$0xf0]  ;;  %v13043_v12 = vld [vmem:[%s25374_s10 + $0x918] sm:$0xf] }
 0x7f8   : > { %10207 = vmatpush.bf16.msra.mxu1 %v12244_v63  ;;  %v16988_v42 = vld [vmem:[%s25374_s10 + $0x1414] sm:$0xf]  ;;  %v14736_v62 = vor.u32 %v17060_v20, %v14733_v24  ;;  %10195 = vmatpush.bf16.msrb.mxu0 %v11956_v37  ;;  %v16417_v63 = vld [vmem:[%s25374_s10 + $0x234] sm:$0xf0] }
 0x7f9   : > { %v14445_v32 = vld [vmem:[%s25374_s10 + $0x1430] sm:$0xf0]  ;;  %10118 = vmatpush.bf16.msrb.mxu2 %v14480_v11  ;;  %v12148_v20 = vor.u32 %v16417_v63, %v12147_v22  ;;  %v13107_v24 = vld [vmem:[%s25374_s10 + $0x998] sm:$0xf]  ;;  %v13396_v11 = vor.u32 %v16729_v58, %v13395_v13  ;;  %v9991_v22 = vpop.f32.mrf.mxu0 }
 0x7fa   : > { %v17300_v18 = vld [vmem:[%s25374_s10 + $0x1dd4] sm:$0xf]  ;;  %v14448_v50 = vor.u32 %v16988_v42, %v14445_v32  ;;  %10131 = vmatpush.bf16.msrb.mxu3 %v14736_v62  ;;  %v16721_v42 = vld [vmem:[%s25374_s10 + $0xbb4] sm:$0xf0]  ;;  %v13108_v32 = vor.u32 %v16657_v52, %v13107_v24  ;;  %v9913_v24 = vpop.f32.mrf.mxu2 }
 0x7fb   : > { %v15693_v38 = vld [vmem:[%s25374_s10 + $0x1df0] sm:$0xf0]  ;;  %v16641_v8 = vld [vmem:[%s25374_s10 + $0x934] sm:$0xf0] }
 0x7fc   : > { %v17052_v27 = vld [vmem:[%s25374_s10 + $0x1614] sm:$0xf]  ;;  %10208 = vmatpush.bf16.msra.mxu1 %v12212_v3  ;;  %v15696_v1 = vor.u32 %v17300_v18, %v15693_v38  ;;  %10196 = vmatpush.bf16.msrb.mxu0 %v11924_v51  ;;  %v13363_v3 = vld [vmem:[%s25374_s10 + $0xb98] sm:$0xf] }
 0x7fd   : > { %v14701_v45 = vld [vmem:[%s25374_s10 + $0x1630] sm:$0xf0]  ;;  %10119 = vmatpush.bf16.msrb.mxu2 %v14448_v50  ;;  %v13075_v38 = vld [vmem:[%s25374_s10 + $0x958] sm:$0xf]  ;;  %v13364_v21 = vor.u32 %v16721_v42, %v13363_v3 }
 0x7fe   : > { %v17364_v5 = vld [vmem:[%s25374_s10 + $0x1fd4] sm:$0xf]  ;;  %v14704_v55 = vor.u32 %v17052_v27, %v14701_v45  ;;  %v13331_v50 = vld [vmem:[%s25374_s10 + $0xb58] sm:$0xf] }
 0x7ff   : > { %v15949_v4 = vld [vmem:[%s25374_s10 + $0x1ff0] sm:$0xf0]  ;;  %v16705_v13 = vld [vmem:[%s25374_s10 + $0xb34] sm:$0xf0] }
 0x800   : > { %v17292_v2 = vld [vmem:[%s25374_s10 + $0x1d94] sm:$0xf]  ;;  %v15952_v17 = vor.u32 %v17364_v5, %v15949_v4  ;;  %10209 = vmatpush.bf16.msra.mxu1 %v12180_v54  ;;  %10132 = vmatpush.bf16.msrb.mxu3 %v14704_v55  ;;  %v16713_v5 = vld [vmem:[%s25374_s10 + $0xb74] sm:$0xf0]  ;;  %v13076_v4 = vor.u32 %v16649_v25, %v13075_v38 }
 0x801   : > { %v15661_v57 = vld [vmem:[%s25374_s10 + $0x1db0] sm:$0xf0]  ;;  %10164 = vmatpush.bf16.msra.mxu2 %v15696_v1  ;;  %10197 = vmatpush.bf16.msrb.mxu0 %v11892_v40  ;;  %v17588_v1 = vld [vmem:[%s25375_s11] sm:$0xff]  ;;  %v13299_v40 = vld [vmem:[%s25374_s10 + $0xb18] sm:$0xf] }
 0x802   : > { %v17356_v53 = vld [vmem:[%s25374_s10 + $0x1f94] sm:$0xf]  ;;  %v15664_v37 = vor.u32 %v17292_v2, %v15661_v57  ;;  %10120 = vmatmul.bf16.vlgmr.msrb.gmra.mxu2 %v19424_v0  ;;  %v8931_v54 = vperm.slane %v17588_v1, 5  ;;  %v13332_v2 = vor.u32 %v16713_v5, %v13331_v50  ;;  %v13011_v52 = vld [vmem:[%s25374_s10 + $0x8d8] sm:$0xf] }
 0x803   : > { %v15917_v14 = vld [vmem:[%s25374_s10 + $0x1fb0] sm:$0xf0]  ;;  %10133 = vmatmul.bf16.vlgmr.msrb.gmra.mxu3 %v19433_v34 }
 0x804   : > { %10177 = vmatpush.bf16.msra.mxu3 %v15952_v17  ;;  %v17284_v7 = vld [vmem:[%s25374_s10 + $0x1d54] sm:$0xf]  ;;  %v15920_v10 = vor.u32 %v17356_v53, %v15917_v14  ;;  %10210 = vmatpush.bf16.msra.mxu1 %v12148_v20  ;;  %v9992_v58 = vadd.f32 %v9991_v22, %v8931_v54  ;;  %v9993_v54 = vpop.f32.mrf.mxu0  ;;  %v9915_v22 = vpop.f32.mrf.mxu2 }
 0x805   : > { %v15629_v43 = vld [vmem:[%s25374_s10 + $0x1d70] sm:$0xf0]  ;;  %10242 = vmatpush.bf16.msra.mxu0 %v13140_v29  ;;  %10165 = vmatpush.bf16.msra.mxu2 %v15664_v37  ;;  %v13044_v29 = vor.u32 %v16641_v8, %v13043_v12  ;;  %v10004_v37 = vpop.f32.mrf.mxu1  ;;  %v16521_v22 = vld [vmem:[%s25374_s10 + $0x574] sm:$0xf0] }
 0x806   : > { %v17348_v18 = vld [vmem:[%s25374_s10 + $0x1f54] sm:$0xf]  ;;  %v15632_v15 = vor.u32 %v17284_v7, %v15629_v43  ;;  %10198 = vmatmul.bf16.vlgmr.msrb.gmra.mxu0 %v18972_v44  ;;  %v23598_v7 = vadd.f32 %v10004_v37, %v9992_v58  ;;  %v9914_v43 = vadd.f32 %v9913_v24, %v23439_v59  ;;  %v16697_v59 = vld [vmem:[%s25374_s10 + $0xaf4] sm:$0xf0] }
 0x807   : > { %v15885_v62 = vld [vmem:[%s25374_s10 + $0x1f70] sm:$0xf0]  ;;  %10211 = vmatmul.bf16.vlgmr.msra.gmra.mxu1 %v18984_v41  ;;  %v16537_v37 = vld [vmem:[%s25374_s10 + $0x5f4] sm:$0xf0] }
 0x808   : > { %10255 = vmatpush.bf16.msrb.mxu1 %v13396_v11  ;;  %v17276_v51 = vld [vmem:[%s25374_s10 + $0x1d14] sm:$0xf]  ;;  %10178 = vmatpush.bf16.msra.mxu3 %v15920_v10  ;;  %v15888_v45 = vor.u32 %v17348_v18, %v15885_v62  ;;  %v16633_v11 = vld [vmem:[%s25374_s10 + $0x8f4] sm:$0xf0]  ;;  %v13300_v10 = vor.u32 %v16705_v13, %v13299_v40  ;;  %v9926_v18 = vpop.f32.mrf.mxu3 }
 0x809   : > { %v15597_v27 = vld [vmem:[%s25374_s10 + $0x1d30] sm:$0xf0]  ;;  %10243 = vmatpush.bf16.msra.mxu0 %v13108_v32  ;;  %10166 = vmatpush.bf16.msra.mxu2 %v15632_v15  ;;  %v13267_v62 = vld [vmem:[%s25374_s10 + $0xad8] sm:$0xf]  ;;  %v9927_v15 = vadd.f32 %v9926_v18, %v9914_v43  ;;  %v13012_v38 = vor.u32 %v16633_v11, %v13011_v52 }
 0x80a   : > { %v17340_v46 = vld [vmem:[%s25374_s10 + $0x1f14] sm:$0xf]  ;;  %v15600_v55 = vor.u32 %v17276_v51, %v15597_v27  ;;  %v12979_v27 = vld [vmem:[%s25374_s10 + $0x898] sm:$0xf]  ;;  %v13268_v5 = vor.u32 %v16697_v59, %v13267_v62 }
 0x80b   : > { %v15853_v19 = vld [vmem:[%s25374_s10 + $0x1f30] sm:$0xf0]  ;;  %v9940_v50 = vadd.f32 %v23372_v28, %v9927_v15  ;;  %v16689_v28 = vld [vmem:[%s25374_s10 + $0xab4] sm:$0xf0] }
 0x80c   : > { %10256 = vmatpush.bf16.msrb.mxu1 %v13364_v21  ;;  %v17268_v17 = vld [vmem:[%s25374_s10 + $0x1cd4] sm:$0xf]  ;;  %10179 = vmatpush.bf16.msra.mxu3 %v15888_v45  ;;  %v15856_v63 = vor.u32 %v17340_v46, %v15853_v19  ;;  %v16625_v45 = vld [vmem:[%s25374_s10 + $0x8b4] sm:$0xf0] }
 0x80d   : > { %v15565_v57 = vld [vmem:[%s25374_s10 + $0x1cf0] sm:$0xf0]  ;;  %10244 = vmatpush.bf16.msra.mxu0 %v13076_v4  ;;  %10167 = vmatpush.bf16.msra.mxu2 %v15600_v55  ;;  %v13235_v19 = vld [vmem:[%s25374_s10 + $0xa98] sm:$0xf]  ;;  %v12980_v55 = vor.u32 %v16625_v45, %v12979_v27 }
 0x80e   : > { %v17332_v53 = vld [vmem:[%s25374_s10 + $0x1ed4] sm:$0xf]  ;;  %v15568_v20 = vor.u32 %v17268_v17, %v15565_v57  ;;  %v10006_v17 = vpop.f32.mrf.mxu1  ;;  %v16617_v40 = vld [vmem:[%s25374_s10 + $0x874] sm:$0xf0]  ;;  %v13236_v13 = vor.u32 %v16689_v28, %v13235_v19 }
 0x80f   : > { %v15821_v14 = vld [vmem:[%s25374_s10 + $0x1ef0] sm:$0xf0]  ;;  %v16681_v24 = vld [vmem:[%s25374_s10 + $0xa74] sm:$0xf0] }
 0x810   : > { %10257 = vmatpush.bf16.msrb.mxu1 %v13332_v2  ;;  %v17260_v3 = vld [vmem:[%s25374_s10 + $0x1c94] sm:$0xf]  ;;  %10180 = vmatpush.bf16.msra.mxu3 %v15856_v63  ;;  %v15824_v32 = vor.u32 %v17332_v53, %v15821_v14  ;;  %v23645_v2 = vadd.f32 %v23386_v47, %v9940_v50  ;;  %v12947_v63 = vld [vmem:[%s25374_s10 + $0x858] sm:$0xf]  ;;  %v9928_v14 = vpop.f32.mrf.mxu3 }
 0x811   : > { %v15533_v42 = vld [vmem:[%s25374_s10 + $0x1cb0] sm:$0xf0]  ;;  %10245 = vmatpush.bf16.msra.mxu0 %v13044_v29  ;;  %10168 = vmatpush.bf16.msra.mxu2 %v15568_v20  ;;  %v12627_v29 = vld [vmem:[%s25374_s10 + $0x5d8] sm:$0xf]  ;;  %v12948_v52 = vor.u32 %v16617_v40, %v12947_v63 }
 0x812   : > { %v17324_v25 = vld [vmem:[%s25374_s10 + $0x1e94] sm:$0xf]  ;;  %v15536_v51 = vor.u32 %v17260_v3, %v15533_v42  ;;  %v13203_v20 = vld [vmem:[%s25374_s10 + $0xa58] sm:$0xf] }
 0x813   : > { %v15789_v21 = vld [vmem:[%s25374_s10 + $0x1eb0] sm:$0xf0]  ;;  %v12883_v3 = vld [vmem:[%s25374_s10 + $0x7d8] sm:$0xf]  ;;  %v13204_v18 = vor.u32 %v16681_v24, %v13203_v20 }
 0x814   : > { %10258 = vmatpush.bf16.msrb.mxu1 %v13300_v10  ;;  %v17252_v4 = vld [vmem:[%s25374_s10 + $0x1c54] sm:$0xf]  ;;  %10181 = vmatpush.bf16.msra.mxu3 %v15824_v32  ;;  %v15792_v46 = vor.u32 %v17324_v25, %v15789_v21  ;;  %v16601_v42 = vld [vmem:[%s25374_s10 + $0x7f4] sm:$0xf0]  ;;  %v12628_v32 = vor.u32 %v16537_v37, %v12627_v29 }
 0x815   : > { %v15501_v1 = vld [vmem:[%s25374_s10 + $0x1c70] sm:$0xf0]  ;;  %10246 = vmatpush.bf16.msra.mxu0 %v13012_v38  ;;  %10169 = vmatpush.bf16.msra.mxu2 %v15536_v51  ;;  %v12915_v62 = vld [vmem:[%s25374_s10 + $0x818] sm:$0xf]  ;;  %v12884_v51 = vor.u32 %v16601_v42, %v12883_v3 }
 0x816   : > { %v17316_v12 = vld [vmem:[%s25374_s10 + $0x1e54] sm:$0xf]  ;;  %v15504_v57 = vor.u32 %v17252_v4, %v15501_v1  ;;  %v16609_v59 = vld [vmem:[%s25374_s10 + $0x834] sm:$0xf0] }
 0x817   : > { %v15757_v8 = vld [vmem:[%s25374_s10 + $0x1e70] sm:$0xf0]  ;;  %v14163_v38 = vld [vmem:[%s25374_s10 + $0x11d8] sm:$0xf] }
 0x818   : > { %10259 = vmatpush.bf16.msrb.mxu1 %v13268_v5  ;;  %v17244_v58 = vld [vmem:[%s25374_s10 + $0x1c14] sm:$0xf]  ;;  %10182 = vmatpush.bf16.msra.mxu3 %v15792_v46  ;;  %v15760_v53 = vor.u32 %v17316_v12, %v15757_v8  ;;  %v16921_v25 = vld [vmem:[%s25374_s10 + $0x11f4] sm:$0xf0]  ;;  %v12916_v5 = vor.u32 %v16609_v59, %v12915_v62 }
 0x819   : > { %v15469_v47 = vld [vmem:[%s25374_s10 + $0x1c30] sm:$0xf0]  ;;  %10247 = vmatpush.bf16.msra.mxu0 %v12980_v55  ;;  %10170 = vmatpush.bf16.msra.mxu2 %v15504_v57  ;;  %v12595_v21 = vld [vmem:[%s25374_s10 + $0x598] sm:$0xf]  ;;  %v14164_v54 = vor.u32 %v16921_v25, %v14163_v38 }
 0x81a   : > { %v17308_v11 = vld [vmem:[%s25374_s10 + $0x1e14] sm:$0xf]  ;;  %v15472_v10 = vor.u32 %v17244_v58, %v15469_v47  ;;  %v16529_v27 = vld [vmem:[%s25374_s10 + $0x5b4] sm:$0xf0] }
 0x81b   : > { %v15725_v43 = vld [vmem:[%s25374_s10 + $0x1e30] sm:$0xf0]  ;;  %v13171_v45 = vld [vmem:[%s25374_s10 + $0xa18] sm:$0xf]  ;;  %v12596_v28 = vor.u32 %v16529_v27, %v12595_v21  ;;  %v23783_v21 = vpop.f32.mrf.mxu0 }
 0x81c   : > { %10260 = vmatpush.bf16.msrb.mxu1 %v13236_v13  ;;  %10183 = vmatpush.bf16.msra.mxu3 %v15760_v53  ;;  %v15728_v15 = vor.u32 %v17308_v11, %v15725_v43  ;;  %v16673_v50 = vld [vmem:[%s25374_s10 + $0xa34] sm:$0xf0] }
 0x81d   : > { %10248 = vmatpush.bf16.msra.mxu0 %v12948_v52  ;;  %10171 = vmatpush.bf16.msra.mxu2 %v15472_v10  ;;  %v14419_v4 = vld [vmem:[%s25374_s10 + $0x13d8] sm:$0xf]  ;;  %v13172_v55 = vor.u32 %v16673_v50, %v13171_v45 }
 0x81e   : > { %v16985_v1 = vld [vmem:[%s25374_s10 + $0x13f4] sm:$0xf0] }
 0x81f   : > { %v12851_v46 = vld [vmem:[%s25374_s10 + $0x798] sm:$0xf]  ;;  %v14420_v17 = vor.u32 %v16985_v1, %v14419_v4  ;;  %v23797_v1 = vpop.f32.mrf.mxu1 }
 0x820   : > { %10261 = vmatpush.bf16.msrb.mxu1 %v13204_v18  ;;  %v16593_v19 = vld [vmem:[%s25374_s10 + $0x7b4] sm:$0xf0]  ;;  %10184 = vmatpush.bf16.msra.mxu3 %v15728_v15 }
 0x821   : > { %10216 = vmatpush.bf16.msrb.mxu2 %v12628_v32  ;;  %v14131_v12 = vld [vmem:[%s25374_s10 + $0x1198] sm:$0xf]  ;;  %10249 = vmatpush.bf16.msra.mxu0 %v12916_v5  ;;  %v12852_v63 = vor.u32 %v16593_v19, %v12851_v46  ;;  %v9965_v46 = vpop.f32.mrf.mxu2 }
 0x822   : > { %v16913_v8 = vld [vmem:[%s25374_s10 + $0x11b4] sm:$0xf0]  ;;  %10172 = vmatmul.bf16.vlgmr.msra.gmra.mxu2 %v19620_v16 }
 0x823   : > { %v12563_v57 = vld [vmem:[%s25374_s10 + $0x558] sm:$0xf]  ;;  %10185 = vmatmul.bf16.vlgmr.msra.gmra.mxu3 %v19635_v6  ;;  %v14132_v58 = vor.u32 %v16913_v8, %v14131_v12 }
 0x824   : > { %10229 = vmatpush.bf16.msrb.mxu3 %v12884_v51  ;;  %v14387_v40 = vld [vmem:[%s25374_s10 + $0x1398] sm:$0xf]  ;;  %10262 = vmatpush.bf16.msrb.mxu1 %v13172_v55  ;;  %v12564_v53 = vor.u32 %v16521_v22, %v12563_v57  ;;  %v9966_v55 = vadd.f32 %v9965_v46, %v23645_v2  ;;  %v9978_v22 = vpop.f32.mrf.mxu3 }
 0x825   : > { %v16977_v13 = vld [vmem:[%s25374_s10 + $0x13b4] sm:$0xf0]  ;;  %10294 = vmatpush.bf16.msrb.mxu0 %v14164_v54  ;;  %10217 = vmatpush.bf16.msrb.mxu2 %v12596_v28 }
 0x826   : > { %v12819_v47 = vld [vmem:[%s25374_s10 + $0x758] sm:$0xf]  ;;  %10250 = vmatmul.bf16.vlgmr.msra.gmra.mxu0 %v18992_v39  ;;  %v14388_v20 = vor.u32 %v16977_v13, %v14387_v40  ;;  %v23818_v40 = vadd.f32 %v9978_v22, %v9966_v55 }
 0x827   : > { %v16585_v29 = vld [vmem:[%s25374_s10 + $0x774] sm:$0xf0]  ;;  %10263 = vmatmul.bf16.vlgmr.msrb.gmra.mxu1 %v18994_v36 }
 0x828   : > { %v14099_v14 = vld [vmem:[%s25374_s10 + $0x1158] sm:$0xf]  ;;  %10307 = vmatpush.bf16.msra.mxu1 %v14420_v17  ;;  %10230 = vmatpush.bf16.msrb.mxu3 %v12852_v63  ;;  %v12820_v11 = vor.u32 %v16585_v29, %v12819_v47 }
 0x829   : > { %v16905_v37 = vld [vmem:[%s25374_s10 + $0x1174] sm:$0xf0]  ;;  %10295 = vmatpush.bf16.msrb.mxu0 %v14132_v58  ;;  %10218 = vmatpush.bf16.msrb.mxu2 %v12564_v53 }
 0x82a   : > { %v12531_v24 = vld [vmem:[%s25374_s10 + $0x518] sm:$0xf]  ;;  %v14100_v3 = vor.u32 %v16905_v37, %v14099_v14 }
 0x82b   : > { %v16513_v52 = vld [vmem:[%s25374_s10 + $0x534] sm:$0xf0] }
 0x82c   : > { %v14355_v43 = vld [vmem:[%s25374_s10 + $0x1358] sm:$0xf]  ;;  %v12532_v18 = vor.u32 %v16513_v52, %v12531_v24  ;;  %10308 = vmatpush.bf16.msra.mxu1 %v14388_v20  ;;  %10231 = vmatpush.bf16.msrb.mxu3 %v12820_v11  ;;  %v10045_v52 = vpop.f32.mrf.mxu0 }
 0x82d   : > { %v16969_v10 = vld [vmem:[%s25374_s10 + $0x1374] sm:$0xf0]  ;;  %10296 = vmatpush.bf16.msrb.mxu0 %v14100_v3 }
 0x82e   : > { %v12787_v42 = vld [vmem:[%s25374_s10 + $0x718] sm:$0xf]  ;;  %v14356_v15 = vor.u32 %v16969_v10, %v14355_v43  ;;  %10219 = vmatpush.bf16.msrb.mxu2 %v12532_v18  ;;  %v10058_v18 = vpop.f32.mrf.mxu1 }
 0x82f   : > { %v16577_v32 = vld [vmem:[%s25374_s10 + $0x734] sm:$0xf0] }
 0x830   : > { %v14067_v62 = vld [vmem:[%s25374_s10 + $0x1118] sm:$0xf]  ;;  %v12788_v51 = vor.u32 %v16577_v32, %v12787_v42  ;;  %10309 = vmatpush.bf16.msra.mxu1 %v14356_v15 }
 0x831   : > { %v16897_v59 = vld [vmem:[%s25374_s10 + $0x1134] sm:$0xf0] }
 0x832   : > { %v12499_v38 = vld [vmem:[%s25374_s10 + $0x4d8] sm:$0xf]  ;;  %v14068_v50 = vor.u32 %v16897_v59, %v14067_v62  ;;  %10232 = vmatpush.bf16.msrb.mxu3 %v12788_v51  ;;  %v9967_v59 = vpop.f32.mrf.mxu2 }
 0x833   : > { %v16505_v25 = vld [vmem:[%s25374_s10 + $0x4f4] sm:$0xf0] }
 0x834   : > { %v14323_v27 = vld [vmem:[%s25374_s10 + $0x1318] sm:$0xf]  ;;  %v12500_v54 = vor.u32 %v16505_v25, %v12499_v38  ;;  %10297 = vmatpush.bf16.msrb.mxu0 %v14068_v50 }
 0x835   : > { %v16961_v45 = vld [vmem:[%s25374_s10 + $0x1334] sm:$0xf0] }
 0x836   : > { %v12755_v5 = vld [vmem:[%s25374_s10 + $0x6d8] sm:$0xf]  ;;  %v14324_v12 = vor.u32 %v16961_v45, %v14323_v27  ;;  %10220 = vmatpush.bf16.msrb.mxu2 %v12500_v54 }
 0x837   : > { %v16569_v4 = vld [vmem:[%s25374_s10 + $0x6f4] sm:$0xf0] }
 0x838   : > { %v14035_v19 = vld [vmem:[%s25374_s10 + $0x10d8] sm:$0xf]  ;;  %v12756_v57 = vor.u32 %v16569_v4, %v12755_v5  ;;  %10310 = vmatpush.bf16.msra.mxu1 %v14324_v12  ;;  %v9980_v5 = vpop.f32.mrf.mxu3 }
 0x839   : > { %v16889_v28 = vld [vmem:[%s25374_s10 + $0x10f4] sm:$0xf0] }
 0x83a   : > { %v12467_v8 = vld [vmem:[%s25374_s10 + $0x498] sm:$0xf]  ;;  %v14036_v13 = vor.u32 %v16889_v28, %v14035_v19  ;;  %10233 = vmatpush.bf16.msrb.mxu3 %v12756_v57 }
 0x83b   : > { %v16497_v17 = vld [vmem:[%s25374_s10 + $0x4b4] sm:$0xf0] }
 0x83c   : > { %v14291_v63 = vld [vmem:[%s25374_s10 + $0x12d8] sm:$0xf]  ;;  %v12468_v29 = vor.u32 %v16497_v17, %v12467_v8  ;;  %10298 = vmatpush.bf16.msrb.mxu0 %v14036_v13 }
 0x83d   : > { %v16953_v2 = vld [vmem:[%s25374_s10 + $0x12f4] sm:$0xf0] }
 0x83e   : > { %v12723_v58 = vld [vmem:[%s25374_s10 + $0x698] sm:$0xf]  ;;  %v14292_v37 = vor.u32 %v16953_v2, %v14291_v63  ;;  %10221 = vmatpush.bf16.msrb.mxu2 %v12468_v29 }
 0x83f   : > { %v16561_v47 = vld [vmem:[%s25374_s10 + $0x6b4] sm:$0xf0] }
 0x840   : > { %v14003_v53 = vld [vmem:[%s25374_s10 + $0x1098] sm:$0xf]  ;;  %v12724_v11 = vor.u32 %v16561_v47, %v12723_v58  ;;  %10311 = vmatpush.bf16.msra.mxu1 %v14292_v37 }
 0x841   : > { %v16881_v14 = vld [vmem:[%s25374_s10 + $0x10b4] sm:$0xf0] }
 0x842   : > { %v12435_v20 = vld [vmem:[%s25374_s10 + $0x458] sm:$0xf]  ;;  %v14004_v3 = vor.u32 %v16881_v14, %v14003_v53  ;;  %10234 = vmatpush.bf16.msrb.mxu3 %v12724_v11 }
 0x843   : > { %v16489_v24 = vld [vmem:[%s25374_s10 + $0x474] sm:$0xf0] }
 0x844   : > { %v14259_v43 = vld [vmem:[%s25374_s10 + $0x1298] sm:$0xf]  ;;  %v12436_v62 = vor.u32 %v16489_v24, %v12435_v20  ;;  %10299 = vmatpush.bf16.msrb.mxu0 %v14004_v3 }
 0x845   : > { %v16945_v10 = vld [vmem:[%s25374_s10 + $0x12b4] sm:$0xf0] }
 0x846   : > { %v12691_v42 = vld [vmem:[%s25374_s10 + $0x658] sm:$0xf]  ;;  %v14260_v25 = vor.u32 %v16945_v10, %v14259_v43  ;;  %10222 = vmatpush.bf16.msrb.mxu2 %v12436_v62 }
 0x847   : > { %v16553_v32 = vld [vmem:[%s25374_s10 + $0x674] sm:$0xf0] }
 0x848   : > { %v13971_v15 = vld [vmem:[%s25374_s10 + $0x1058] sm:$0xf]  ;;  %v12692_v50 = vor.u32 %v16553_v32, %v12691_v42  ;;  %10312 = vmatpush.bf16.msra.mxu1 %v14260_v25 }
 0x849   : > { %v16873_v38 = vld [vmem:[%s25374_s10 + $0x1074] sm:$0xf0] }
 0x84a   : > { %v12403_v51 = vld [vmem:[%s25374_s10 + $0x418] sm:$0xf]  ;;  %v13972_v19 = vor.u32 %v16873_v38, %v13971_v15  ;;  %10235 = vmatpush.bf16.msrb.mxu3 %v12692_v50 }
 0x84b   : > { %v16481_v27 = vld [vmem:[%s25374_s10 + $0x434] sm:$0xf0] }
 0x84c   : > { %v13651_v45 = vld [vmem:[%s25374_s10 + $0xdd8] sm:$0xf]  ;;  %v12404_v12 = vor.u32 %v16481_v27, %v12403_v51  ;;  %10300 = vmatpush.bf16.msrb.mxu0 %v13972_v19 }
 0x84d   : > { %v16793_v4 = vld [vmem:[%s25374_s10 + $0xdf4] sm:$0xf0] }
 0x84e   : > { %v14227_v54 = vld [vmem:[%s25374_s10 + $0x1258] sm:$0xf]  ;;  %v13652_v57 = vor.u32 %v16793_v4, %v13651_v45  ;;  %10223 = vmatpush.bf16.msrb.mxu2 %v12404_v12 }
 0x84f   : > { %v16937_v46 = vld [vmem:[%s25374_s10 + $0x1274] sm:$0xf0] }
 0x850   : > { %v12659_v28 = vld [vmem:[%s25374_s10 + $0x618] sm:$0xf]  ;;  %v14228_v22 = vor.u32 %v16937_v46, %v14227_v54 }
 0x851   : > { %v16545_v55 = vld [vmem:[%s25374_s10 + $0x634] sm:$0xf0]  ;;  %10224 = vmatmul.bf16.vlgmr.msrb.gmra.mxu2 %v19089_v30 }
 0x852   : > { %v13907_v8 = vld [vmem:[%s25374_s10 + $0xfd8] sm:$0xf]  ;;  %v12660_v13 = vor.u32 %v16545_v55, %v12659_v28  ;;  %10268 = vmatpush.bf16.msra.mxu2 %v13652_v57  ;;  %10313 = vmatpush.bf16.msra.mxu1 %v14228_v22 }
 0x853   : > { %v16857_v17 = vld [vmem:[%s25374_s10 + $0xff4] sm:$0xf0] }
 0x854   : > { %v13939_v63 = vld [vmem:[%s25374_s10 + $0x1018] sm:$0xf]  ;;  %v13908_v53 = vor.u32 %v16857_v17, %v13907_v8  ;;  %10236 = vmatpush.bf16.msrb.mxu3 %v12660_v13 }
 0x855   : > { %v16865_v2 = vld [vmem:[%s25374_s10 + $0x1034] sm:$0xf0] }
 0x856   : > { %v15187_v58 = vld [vmem:[%s25374_s10 + $0x19d8] sm:$0xf]  ;;  %v13940_v24 = vor.u32 %v16865_v2, %v13939_v63 }
 0x857   : > { %v17177_v47 = vld [vmem:[%s25374_s10 + $0x19f4] sm:$0xf0]  ;;  %10237 = vmatmul.bf16.vlgmr.msrb.gmra.mxu3 %v19097_v33 }
 0x858   : > { %v13619_v29 = vld [vmem:[%s25374_s10 + $0xd98] sm:$0xf]  ;;  %v15188_v43 = vor.u32 %v17177_v47, %v15187_v58  ;;  %10281 = vmatpush.bf16.msra.mxu3 %v13908_v53  ;;  %10301 = vmatpush.bf16.msrb.mxu0 %v13940_v24 }
 0x859   : > { %v16785_v14 = vld [vmem:[%s25374_s10 + $0xdb4] sm:$0xf0] }
 0x85a   : > { %v14195_v37 = vld [vmem:[%s25374_s10 + $0x1218] sm:$0xf]  ;;  %v13620_v42 = vor.u32 %v16785_v14, %v13619_v29  ;;  %v23986_v14 = vpop.f32.mrf.mxu0 }
 0x85b   : > { %v16929_v20 = vld [vmem:[%s25374_s10 + $0x1234] sm:$0xf0]  ;;  %10302 = vmatmul.bf16.vlgmr.msrb.gmra.mxu0 %v19202_v56 }
 0x85c   : > { %v15443_v52 = vld [vmem:[%s25374_s10 + $0x1bd8] sm:$0xf]  ;;  %v14196_v32 = vor.u32 %v16929_v20, %v14195_v37  ;;  %10346 = vmatpush.bf16.msra.mxu0 %v15188_v43  ;;  %10269 = vmatpush.bf16.msra.mxu2 %v13620_v42  ;;  %v10017_v42 = vpop.f32.mrf.mxu2 }
 0x85d   : > { %v17241_v11 = vld [vmem:[%s25374_s10 + $0x1bf4] sm:$0xf0] }
 0x85e   : > { %v13875_v10 = vld [vmem:[%s25374_s10 + $0xf98] sm:$0xf]  ;;  %v15444_v59 = vor.u32 %v17241_v11, %v15443_v52  ;;  %10314 = vmatpush.bf16.msra.mxu1 %v14196_v32 }
 0x85f   : > { %v16849_v3 = vld [vmem:[%s25374_s10 + $0xfb4] sm:$0xf0] }
 0x860   : > { %v15155_v18 = vld [vmem:[%s25374_s10 + $0x1998] sm:$0xf]  ;;  %v13876_v25 = vor.u32 %v16849_v3, %v13875_v10  ;;  %v24000_v10 = vpop.f32.mrf.mxu1 }
 0x861   : > { %v17169_v62 = vld [vmem:[%s25374_s10 + $0x19b4] sm:$0xf0]  ;;  %10315 = vmatmul.bf16.vlgmr.msra.gmra.mxu1 %v19217_v35 }
 0x862   : > { %v13587_v15 = vld [vmem:[%s25374_s10 + $0xd58] sm:$0xf]  ;;  %v15156_v45 = vor.u32 %v17169_v62, %v15155_v18  ;;  %10359 = vmatpush.bf16.msrb.mxu1 %v15444_v59  ;;  %10282 = vmatpush.bf16.msra.mxu3 %v13876_v25  ;;  %v10018_v62 = vadd.f32 %v10017_v42, %v23598_v7 }
 0x863   : > { %v16777_v38 = vld [vmem:[%s25374_s10 + $0xd74] sm:$0xf0] }
 0x864   : > { %v15411_v51 = vld [vmem:[%s25374_s10 + $0x1b98] sm:$0xf]  ;;  %v13588_v4 = vor.u32 %v16777_v38, %v13587_v15  ;;  %10347 = vmatpush.bf16.msra.mxu0 %v15156_v45 }
 0x865   : > { %v17233_v27 = vld [vmem:[%s25374_s10 + $0x1bb4] sm:$0xf0] }
 0x866   : > { %v13843_v50 = vld [vmem:[%s25374_s10 + $0xf58] sm:$0xf]  ;;  %v15412_v19 = vor.u32 %v17233_v27, %v15411_v51  ;;  %10270 = vmatpush.bf16.msra.mxu2 %v13588_v4  ;;  %v10030_v51 = vpop.f32.mrf.mxu3 }
 0x867   : > { %v16841_v5 = vld [vmem:[%s25374_s10 + $0xf74] sm:$0xf0]  ;;  %v10031_v45 = vadd.f32 %v10030_v51, %v10018_v62 }
 0x868   : > { %v15123_v54 = vld [vmem:[%s25374_s10 + $0x1958] sm:$0xf]  ;;  %v13844_v12 = vor.u32 %v16841_v5, %v13843_v50  ;;  %10360 = vmatpush.bf16.msrb.mxu1 %v15412_v19 }
 0x869   : > { %v17161_v46 = vld [vmem:[%s25374_s10 + $0x1974] sm:$0xf0] }
 0x86a   : > { %v13555_v28 = vld [vmem:[%s25374_s10 + $0xd18] sm:$0xf]  ;;  %v15124_v57 = vor.u32 %v17161_v46, %v15123_v54  ;;  %10283 = vmatpush.bf16.msra.mxu3 %v13844_v12 }
 0x86b   : > { %v16769_v55 = vld [vmem:[%s25374_s10 + $0xd34] sm:$0xf0] }
 0x86c   : > { %v15379_v8 = vld [vmem:[%s25374_s10 + $0x1b58] sm:$0xf]  ;;  %v13556_v2 = vor.u32 %v16769_v55, %v13555_v28  ;;  %10348 = vmatpush.bf16.msra.mxu0 %v15124_v57  ;;  %v10044_v28 = vadd.f32 %v23783_v21, %v10031_v45 }
 0x86d   : > { %v17225_v17 = vld [vmem:[%s25374_s10 + $0x1b74] sm:$0xf0] }
 0x86e   : > { %v13811_v22 = vld [vmem:[%s25374_s10 + $0xf18] sm:$0xf]  ;;  %v15380_v47 = vor.u32 %v17225_v17, %v15379_v8  ;;  %10271 = vmatpush.bf16.msra.mxu2 %v13556_v2  ;;  %v10097_v17 = vpop.f32.mrf.mxu0 }
 0x86f   : > { %v16833_v63 = vld [vmem:[%s25374_s10 + $0xf34] sm:$0xf0]  ;;  %v16469_v17 = vld [vmem:[%s25374_s10 + $0x3dc] sm:$0xf] }
 0x870   : > { %v15091_v13 = vld [vmem:[%s25374_s10 + $0x1918] sm:$0xf]  ;;  %v13812_v37 = vor.u32 %v16833_v63, %v13811_v22  ;;  %10361 = vmatpush.bf16.msrb.mxu1 %v15380_v47  ;;  %v10110_v47 = vpop.f32.mrf.mxu1 }
 0x871   : > { %v17153_v58 = vld [vmem:[%s25374_s10 + $0x1934] sm:$0xf0]  ;;  %v16397_v47 = vld [vmem:[%s25374_s10 + $0x19c] sm:$0xf] }
 0x872   : > { %v13523_v29 = vld [vmem:[%s25374_s10 + $0xcd8] sm:$0xf]  ;;  %v15092_v52 = vor.u32 %v17153_v58, %v15091_v13  ;;  %10284 = vmatpush.bf16.msra.mxu3 %v13812_v37  ;;  %v24053_v58 = vadd.f32 %v23797_v1, %v10044_v28 }
 0x873   : > { %v16761_v53 = vld [vmem:[%s25374_s10 + $0xcf4] sm:$0xf0] }
 0x874   : > { %v15347_v20 = vld [vmem:[%s25374_s10 + $0x1b18] sm:$0xf]  ;;  %v13524_v3 = vor.u32 %v16761_v53, %v13523_v29  ;;  %10349 = vmatpush.bf16.msra.mxu0 %v15092_v52  ;;  %v10019_v53 = vpop.f32.mrf.mxu2 }
 0x875   : > { %v17217_v24 = vld [vmem:[%s25374_s10 + $0x1b34] sm:$0xf0] }
 0x876   : > { %v13779_v11 = vld [vmem:[%s25374_s10 + $0xed8] sm:$0xf]  ;;  %v15348_v59 = vor.u32 %v17217_v24, %v15347_v20  ;;  %10272 = vmatpush.bf16.msra.mxu2 %v13524_v3  ;;  %v10032_v3 = vpop.f32.mrf.mxu3 }
 0x877   : > { %v16825_v43 = vld [vmem:[%s25374_s10 + $0xef4] sm:$0xf0] }
 0x878   : > { %v15059_v32 = vld [vmem:[%s25374_s10 + $0x18d8] sm:$0xf]  ;;  %v13780_v25 = vor.u32 %v16825_v43, %v13779_v11  ;;  %10362 = vmatpush.bf16.msrb.mxu1 %v15348_v59 }
 0x879   : > { %v17145_v18 = vld [vmem:[%s25374_s10 + $0x18f4] sm:$0xf0] }
 0x87a   : > { %v13491_v15 = vld [vmem:[%s25374_s10 + $0xc98] sm:$0xf]  ;;  %v15060_v50 = vor.u32 %v17145_v18, %v15059_v32  ;;  %10285 = vmatpush.bf16.msra.mxu3 %v13780_v25 }
 0x87b   : > { %v16753_v38 = vld [vmem:[%s25374_s10 + $0xcb4] sm:$0xf0] }
 0x87c   : > { %v15315_v27 = vld [vmem:[%s25374_s10 + $0x1ad8] sm:$0xf]  ;;  %v13492_v54 = vor.u32 %v16753_v38, %v13491_v15  ;;  %10350 = vmatpush.bf16.msra.mxu0 %v15060_v50 }
 0x87d   : > { %v17209_v7 = vld [vmem:[%s25374_s10 + $0x1af4] sm:$0xf0] }
 0x87e   : > { %v13747_v5 = vld [vmem:[%s25374_s10 + $0xe98] sm:$0xf]  ;;  %v15316_v55 = vor.u32 %v17209_v7, %v15315_v27  ;;  %10273 = vmatpush.bf16.msra.mxu2 %v13492_v54  ;;  %v12117_v54 = vld [vmem:[%s25374_s10 + $0x1f8] sm:$0xf0] }
 0x87f   : > { %v16817_v4 = vld [vmem:[%s25374_s10 + $0xeb4] sm:$0xf0] }
 0x880   : > { %v15027_v46 = vld [vmem:[%s25374_s10 + $0x1898] sm:$0xf]  ;;  %v13748_v57 = vor.u32 %v16817_v4, %v13747_v5  ;;  %10363 = vmatpush.bf16.msrb.mxu1 %v15316_v55  ;;  %v16405_v4 = vld [vmem:[%s25374_s10 + $0x1dc] sm:$0xf] }
 0x881   : > { %v17137_v19 = vld [vmem:[%s25374_s10 + $0x18b4] sm:$0xf0] }
 0x882   : > { %v13459_v12 = vld [vmem:[%s25374_s10 + $0xc58] sm:$0xf]  ;;  %v15028_v63 = vor.u32 %v17137_v19, %v15027_v46  ;;  %10286 = vmatpush.bf16.msra.mxu3 %v13748_v57  ;;  %v12373_v57 = vld [vmem:[%s25374_s10 + $0x3f8] sm:$0xf0] }
 0x883   : > { %v16745_v8 = vld [vmem:[%s25374_s10 + $0xc74] sm:$0xf0]  ;;  %v12376_v53 = vor.u32 %v16469_v17, %v12373_v57 }
 0x884   : > { %v15283_v22 = vld [vmem:[%s25374_s10 + $0x1a98] sm:$0xf]  ;;  %v13460_v29 = vor.u32 %v16745_v8, %v13459_v12  ;;  %10351 = vmatpush.bf16.msra.mxu0 %v15028_v63 }
 0x885   : > { %v17201_v21 = vld [vmem:[%s25374_s10 + $0x1ab4] sm:$0xf0] }
 0x886   : > { %v13715_v2 = vld [vmem:[%s25374_s10 + $0xe58] sm:$0xf]  ;;  %v15284_v24 = vor.u32 %v17201_v21, %v15283_v22  ;;  %10274 = vmatpush.bf16.msra.mxu2 %v13460_v29  ;;  %v12120_v22 = vor.u32 %v16405_v4, %v12117_v54  ;;  %v12085_v29 = vld [vmem:[%s25374_s10 + $0x1b8] sm:$0xf0] }
 0x887   : > { %v16809_v13 = vld [vmem:[%s25374_s10 + $0xe74] sm:$0xf0]  ;;  %v12021_v4 = vld [vmem:[%s25374_s10 + $0x138] sm:$0xf0] }
 0x888   : > { %v14995_v37 = vld [vmem:[%s25374_s10 + $0x1858] sm:$0xf]  ;;  %v13716_v43 = vor.u32 %v16809_v13, %v13715_v2  ;;  %10364 = vmatpush.bf16.msrb.mxu1 %v15284_v24 }
 0x889   : > { %v17129_v20 = vld [vmem:[%s25374_s10 + $0x1874] sm:$0xf0] }
 0x88a   : > { %v13427_v52 = vld [vmem:[%s25374_s10 + $0xc18] sm:$0xf]  ;;  %v14996_v62 = vor.u32 %v17129_v20, %v14995_v37  ;;  %10287 = vmatpush.bf16.msra.mxu3 %v13716_v43 }
 0x88b   : > { %v16737_v1 = vld [vmem:[%s25374_s10 + $0xc34] sm:$0xf0] }
 0x88c   : > { %v14675_v11 = vld [vmem:[%s25374_s10 + $0x15d8] sm:$0xf]  ;;  %v13428_v38 = vor.u32 %v16737_v1, %v13427_v52  ;;  %10352 = vmatpush.bf16.msra.mxu0 %v14996_v62  ;;  %v16461_v52 = vld [vmem:[%s25374_s10 + $0x39c] sm:$0xf] }
 0x88d   : > { %v17049_v42 = vld [vmem:[%s25374_s10 + $0x15f4] sm:$0xf0]  ;;  %v12341_v1 = vld [vmem:[%s25374_s10 + $0x3b8] sm:$0xf0] }
 0x88e   : > { %v15251_v32 = vld [vmem:[%s25374_s10 + $0x1a58] sm:$0xf]  ;;  %v14676_v27 = vor.u32 %v17049_v42, %v14675_v11  ;;  %10275 = vmatpush.bf16.msra.mxu2 %v13428_v38  ;;  %v12088_v11 = vor.u32 %v16397_v47, %v12085_v29  ;;  %v12344_v62 = vor.u32 %v16461_v52, %v12341_v1  ;;  %v11989_v47 = vld [vmem:[%s25374_s10 + $0xf8] sm:$0xf0]  ;;  %v10082_v52 = vpop.f32.mrf.mxu3 }
 0x88f   : > { %v17193_v18 = vld [vmem:[%s25374_s10 + $0x1a74] sm:$0xf0]  ;;  %v16437_v1 = vld [vmem:[%s25374_s10 + $0x2dc] sm:$0xf] }
 0x890   : > { %v13683_v59 = vld [vmem:[%s25374_s10 + $0xe18] sm:$0xf]  ;;  %v15252_v7 = vor.u32 %v17193_v18, %v15251_v32  ;;  %v16389_v32 = vld [vmem:[%s25374_s10 + $0x15c] sm:$0xf] }
 0x891   : > { %v16801_v15 = vld [vmem:[%s25374_s10 + $0xe34] sm:$0xf0]  ;;  %10276 = vmatmul.bf16.vlgmr.msra.gmra.mxu2 %v19212_v26  ;;  %v12053_v18 = vld [vmem:[%s25374_s10 + $0x178] sm:$0xf0] }
 0x892   : > { %v14931_v25 = vld [vmem:[%s25374_s10 + $0x17d8] sm:$0xf]  ;;  %v13684_v5 = vor.u32 %v16801_v15, %v13683_v59  ;;  %10320 = vmatpush.bf16.msrb.mxu2 %v14676_v27  ;;  %10365 = vmatpush.bf16.msrb.mxu1 %v15252_v7  ;;  %v12056_v27 = vor.u32 %v16389_v32, %v12053_v18  ;;  %v16365_v18 = vld [vmem:[%s25374_s10 + $0x9c] sm:$0xf] }
 0x893   : > { %v17113_v51 = vld [vmem:[%s25374_s10 + $0x17f4] sm:$0xf0] }
 0x894   : > { %v14963_v45 = vld [vmem:[%s25374_s10 + $0x1818] sm:$0xf]  ;;  %v14932_v19 = vor.u32 %v17113_v51, %v14931_v25  ;;  %10288 = vmatpush.bf16.msra.mxu3 %v13684_v5  ;;  %v16453_v25 = vld [vmem:[%s25374_s10 + $0x35c] sm:$0xf] }
 0x895   : > { %v17121_v50 = vld [vmem:[%s25374_s10 + $0x1834] sm:$0xf0]  ;;  %v12309_v51 = vld [vmem:[%s25374_s10 + $0x378] sm:$0xf0] }
 0x896   : > { %v14643_v46 = vld [vmem:[%s25374_s10 + $0x1598] sm:$0xf]  ;;  %v14964_v8 = vor.u32 %v17121_v50, %v14963_v45  ;;  %v16381_v5 = vld [vmem:[%s25374_s10 + $0x11c] sm:$0xf]  ;;  %v12312_v54 = vor.u32 %v16453_v25, %v12309_v51 }
 0x897   : > { %v17041_v28 = vld [vmem:[%s25374_s10 + $0x15b4] sm:$0xf0]  ;;  %10289 = vmatmul.bf16.vlgmr.msra.gmra.mxu3 %v19233_v9  ;;  %v12024_v17 = vor.u32 %v16381_v5, %v12021_v4 }
 0x898   : > { %v15219_v55 = vld [vmem:[%s25374_s10 + $0x1a18] sm:$0xf]  ;;  %v14644_v2 = vor.u32 %v17041_v28, %v14643_v46  ;;  %10333 = vmatpush.bf16.msrb.mxu3 %v14932_v19  ;;  %10353 = vmatpush.bf16.msra.mxu0 %v14964_v8  ;;  %v24191_v28 = vpop.f32.mrf.mxu0  ;;  %v12277_v8 = vld [vmem:[%s25374_s10 + $0x338] sm:$0xf0] }
 0x899   : > { %v17185_v12 = vld [vmem:[%s25374_s10 + $0x1a34] sm:$0xf0] }
 0x89a   : > { %v14899_v21 = vld [vmem:[%s25374_s10 + $0x1798] sm:$0xf]  ;;  %v15220_v13 = vor.u32 %v17185_v12, %v15219_v55  ;;  %10321 = vmatpush.bf16.msrb.mxu2 %v14644_v2  ;;  %v16445_v12 = vld [vmem:[%s25374_s10 + $0x31c] sm:$0xf]  ;;  %v10069_v2 = vpop.f32.mrf.mxu2 }
 0x89b   : > { %v17105_v63 = vld [vmem:[%s25374_s10 + $0x17b4] sm:$0xf0]  ;;  %10354 = vmatmul.bf16.vlgmr.msra.gmra.mxu0 %v19323_v60  ;;  %v10070_v29 = vadd.f32 %v10069_v2, %v24053_v58  ;;  %v12245_v58 = vld [vmem:[%s25374_s10 + $0x2f8] sm:$0xf0] }
 0x89c   : > { %v14611_v37 = vld [vmem:[%s25374_s10 + $0x1558] sm:$0xf]  ;;  %v14900_v24 = vor.u32 %v17105_v63, %v14899_v21  ;;  %10398 = vmatpush.bf16.msrb.mxu0 %v12120_v22  ;;  %10366 = vmatpush.bf16.msrb.mxu1 %v15220_v13  ;;  %v24205_v21 = vpop.f32.mrf.mxu1  ;;  %v16373_v13 = vld [vmem:[%s25374_s10 + $0xdc] sm:$0xf] }
 0x89d   : > { %v17033_v20 = vld [vmem:[%s25374_s10 + $0x1574] sm:$0xf0] }
 0x89e   : > { %v14867_v43 = vld [vmem:[%s25374_s10 + $0x1758] sm:$0xf]  ;;  %v14612_v42 = vor.u32 %v17033_v20, %v14611_v37  ;;  %10334 = vmatpush.bf16.msrb.mxu3 %v14900_v24 }
 0x89f   : > { %v17097_v3 = vld [vmem:[%s25374_s10 + $0x1774] sm:$0xf0]  ;;  %10367 = vmatmul.bf16.vlgmr.msrb.gmra.mxu1 %v19338_v23 }
 0x8a0   : > { %10411 = vmatpush.bf16.msra.mxu1 %v12376_v53  ;;  %v14579_v59 = vld [vmem:[%s25374_s10 + $0x1518] sm:$0xf]  ;;  %v14868_v38 = vor.u32 %v17097_v3, %v14867_v43  ;;  %10399 = vmatpush.bf16.msrb.mxu0 %v12088_v11  ;;  %v12280_v53 = vor.u32 %v16445_v12, %v12277_v8  ;;  %v10083_v11 = vadd.f32 %v10082_v52, %v10070_v29  ;;  %v10149_v51 = vpop.f32.mrf.mxu0  ;;  %v11925_v12 = vld [vmem:[%s25374_s10 + $0x78] sm:$0xf0] }
 0x8a1   : > { %v17025_v15 = vld [vmem:[%s25374_s10 + $0x1534] sm:$0xf0]  ;;  %10322 = vmatpush.bf16.msrb.mxu2 %v14612_v42  ;;  %v11992_v43 = vor.u32 %v16373_v13, %v11989_v47  ;;  %v16421_v13 = vld [vmem:[%s25374_s10 + $0x25c] sm:$0xf] }
 0x8a2   : > { %v14835_v7 = vld [vmem:[%s25374_s10 + $0x1718] sm:$0xf]  ;;  %v14580_v50 = vor.u32 %v17025_v15, %v14579_v59  ;;  %10335 = vmatpush.bf16.msrb.mxu3 %v14868_v38  ;;  %v10096_v59 = vadd.f32 %v23986_v14, %v10083_v11  ;;  %v12248_v15 = vor.u32 %v16437_v1, %v12245_v58  ;;  %v12213_v14 = vld [vmem:[%s25374_s10 + $0x2b8] sm:$0xf0] }
 0x8a3   : > { %v17089_v45 = vld [vmem:[%s25374_s10 + $0x1734] sm:$0xf0]  ;;  %v12181_v47 = vld [vmem:[%s25374_s10 + $0x278] sm:$0xf0] }
 0x8a4   : > { %10412 = vmatpush.bf16.msra.mxu1 %v12344_v62  ;;  %v14547_v46 = vld [vmem:[%s25374_s10 + $0x14d8] sm:$0xf]  ;;  %v14836_v55 = vor.u32 %v17089_v45, %v14835_v7  ;;  %10400 = vmatpush.bf16.msrb.mxu0 %v12056_v27  ;;  %v11957_v62 = vld [vmem:[%s25374_s10 + $0xb8] sm:$0xf0]  ;;  %v24258_v4 = vadd.f32 %v24000_v10, %v10096_v59  ;;  %v12184_v58 = vor.u32 %v16421_v13, %v12181_v47 }
 0x8a5   : > { %v17017_v19 = vld [vmem:[%s25374_s10 + $0x14f4] sm:$0xf0]  ;;  %10323 = vmatpush.bf16.msrb.mxu2 %v14580_v50  ;;  %v16429_v7 = vld [vmem:[%s25374_s10 + $0x29c] sm:$0xf]  ;;  %v11960_v45 = vor.u32 %v16365_v18, %v11957_v62 }
 0x8a6   : > { %v14803_v57 = vld [vmem:[%s25374_s10 + $0x16d8] sm:$0xf]  ;;  %v14548_v63 = vor.u32 %v17017_v19, %v14547_v46  ;;  %10336 = vmatpush.bf16.msrb.mxu3 %v14836_v55  ;;  %v10071_v19 = vpop.f32.mrf.mxu2  ;;  %v16357_v55 = vld [vmem:[%s25374_s10 + $0x5c] sm:$0xf]  ;;  %v12216_v8 = vor.u32 %v16429_v7, %v12213_v14 }
 0x8a7   : > { %v17081_v22 = vld [vmem:[%s25374_s10 + $0x16f4] sm:$0xf0]  ;;  %v11928_v29 = vor.u32 %v16357_v55, %v11925_v12  ;;  %v16349_v11 = vld [vmem:[%s25374_s10 + $0x1c] sm:$0xf] }
 0x8a8   : > { %10413 = vmatpush.bf16.msra.mxu1 %v12312_v54  ;;  %v14515_v37 = vld [vmem:[%s25374_s10 + $0x1498] sm:$0xf]  ;;  %v14804_v24 = vor.u32 %v17081_v22, %v14803_v57  ;;  %10401 = vmatpush.bf16.msrb.mxu0 %v12024_v17  ;;  %v10162_v54 = vpop.f32.mrf.mxu1  ;;  %v16725_v51 = vld [vmem:[%s25374_s10 + $0xbdc] sm:$0xf] }
 0x8a9   : > { %v17009_v20 = vld [vmem:[%s25374_s10 + $0x14b4] sm:$0xf0]  ;;  %10324 = vmatpush.bf16.msrb.mxu2 %v14548_v63  ;;  %v10084_v63 = vpop.f32.mrf.mxu3  ;;  %v16653_v54 = vld [vmem:[%s25374_s10 + $0x99c] sm:$0xf] }
 0x8aa   : > { %v14771_v3 = vld [vmem:[%s25374_s10 + $0x1698] sm:$0xf]  ;;  %v14516_v32 = vor.u32 %v17009_v20, %v14515_v37  ;;  %10337 = vmatpush.bf16.msrb.mxu3 %v14804_v24  ;;  %v16645_v13 = vld [vmem:[%s25374_s10 + $0x95c] sm:$0xf] }
 0x8ab   : > { %v17073_v42 = vld [vmem:[%s25374_s10 + $0x16b4] sm:$0xf0]  ;;  %v13077_v47 = vld [vmem:[%s25374_s10 + $0x978] sm:$0xf0] }
 0x8ac   : > { %10414 = vmatpush.bf16.msra.mxu1 %v12280_v53  ;;  %v14483_v38 = vld [vmem:[%s25374_s10 + $0x1458] sm:$0xf]  ;;  %v14772_v27 = vor.u32 %v17073_v42, %v14771_v3  ;;  %10402 = vmatpush.bf16.msrb.mxu0 %v11992_v43  ;;  %v11893_v43 = vld [vmem:[%s25374_s10 + $0x38] sm:$0xf0] }
 0x8ad   : > { %v17001_v25 = vld [vmem:[%s25374_s10 + $0x1474] sm:$0xf0]  ;;  %10325 = vmatpush.bf16.msrb.mxu2 %v14516_v32  ;;  %v16661_v42 = vld [vmem:[%s25374_s10 + $0x9dc] sm:$0xf] }
 0x8ae   : > { %v14739_v50 = vld [vmem:[%s25374_s10 + $0x1658] sm:$0xf]  ;;  %v14484_v46 = vor.u32 %v17001_v25, %v14483_v38  ;;  %10338 = vmatpush.bf16.msrb.mxu3 %v14772_v27  ;;  %v13141_v32 = vld [vmem:[%s25374_s10 + $0x9f8] sm:$0xf0]  ;;  %v11896_v25 = vor.u32 %v16349_v11, %v11893_v43 }
 0x8af   : > { %v17065_v5 = vld [vmem:[%s25374_s10 + $0x1674] sm:$0xf0]  ;;  %v12149_v38 = vld [vmem:[%s25374_s10 + $0x238] sm:$0xf0]  ;;  %v13144_v7 = vor.u32 %v16661_v42, %v13141_v32 }
 0x8b0   : > { %10415 = vmatpush.bf16.msra.mxu1 %v12248_v15  ;;  %v14451_v17 = vld [vmem:[%s25374_s10 + $0x1418] sm:$0xf]  ;;  %v14740_v22 = vor.u32 %v17065_v5, %v14739_v50  ;;  %10403 = vmatpush.bf16.msrb.mxu0 %v11960_v45  ;;  %v16413_v15 = vld [vmem:[%s25374_s10 + $0x21c] sm:$0xf] }
 0x8b1   : > { %v16993_v10 = vld [vmem:[%s25374_s10 + $0x1434] sm:$0xf0]  ;;  %10326 = vmatpush.bf16.msrb.mxu2 %v14484_v46  ;;  %v13397_v27 = vld [vmem:[%s25374_s10 + $0xbf8] sm:$0xf0]  ;;  %v12152_v5 = vor.u32 %v16413_v15, %v12149_v38 }
 0x8b2   : > { %v15699_v57 = vld [vmem:[%s25374_s10 + $0x1dd8] sm:$0xf]  ;;  %v14452_v20 = vor.u32 %v16993_v10, %v14451_v17  ;;  %10339 = vmatpush.bf16.msrb.mxu3 %v14740_v22  ;;  %v13109_v46 = vld [vmem:[%s25374_s10 + $0x9b8] sm:$0xf0]  ;;  %v13400_v19 = vor.u32 %v16725_v51, %v13397_v27 }
 0x8b3   : > { %v17305_v2 = vld [vmem:[%s25374_s10 + $0x1df4] sm:$0xf0]  ;;  %v16717_v17 = vld [vmem:[%s25374_s10 + $0xb9c] sm:$0xf] }
 0x8b4   : > { %v14707_v53 = vld [vmem:[%s25374_s10 + $0x1618] sm:$0xf]  ;;  %10416 = vmatpush.bf16.msra.mxu1 %v12216_v8  ;;  %v15700_v1 = vor.u32 %v17305_v2, %v15699_v57  ;;  %10404 = vmatpush.bf16.msrb.mxu0 %v11928_v29  ;;  %v13365_v10 = vld [vmem:[%s25374_s10 + $0xbb8] sm:$0xf0]  ;;  %v13112_v57 = vor.u32 %v16653_v54, %v13109_v46 }
 0x8b5   : > { %v17057_v37 = vld [vmem:[%s25374_s10 + $0x1634] sm:$0xf0]  ;;  %10327 = vmatpush.bf16.msrb.mxu2 %v14452_v20  ;;  %v13368_v29 = vor.u32 %v16717_v17, %v13365_v10  ;;  %v13045_v42 = vld [vmem:[%s25374_s10 + $0x938] sm:$0xf0] }
 0x8b6   : > { %v15955_v24 = vld [vmem:[%s25374_s10 + $0x1fd8] sm:$0xf]  ;;  %v14708_v3 = vor.u32 %v17057_v37, %v14707_v53  ;;  %v16701_v38 = vld [vmem:[%s25374_s10 + $0xb1c] sm:$0xf] }
 0x8b7   : > { %v17369_v52 = vld [vmem:[%s25374_s10 + $0x1ff4] sm:$0xf0]  ;;  %v16629_v54 = vld [vmem:[%s25374_s10 + $0x8dc] sm:$0xf] }
 0x8b8   : > { %v15667_v18 = vld [vmem:[%s25374_s10 + $0x1d98] sm:$0xf]  ;;  %v15956_v62 = vor.u32 %v17369_v52, %v15955_v24  ;;  %10417 = vmatpush.bf16.msra.mxu1 %v12184_v58  ;;  %10340 = vmatpush.bf16.msrb.mxu3 %v14708_v3  ;;  %v16709_v24 = vld [vmem:[%s25374_s10 + $0xb5c] sm:$0xf]  ;;  %v13080_v52 = vor.u32 %v16645_v13, %v13077_v47 }
 0x8b9   : > { %v17297_v59 = vld [vmem:[%s25374_s10 + $0x1db4] sm:$0xf0]  ;;  %10372 = vmatpush.bf16.msra.mxu2 %v15700_v1  ;;  %10405 = vmatpush.bf16.msrb.mxu0 %v11896_v25  ;;  %v17589_v1 = vld [vmem:[%s25375_s11] sm:$0xff]  ;;  %v13301_v25 = vld [vmem:[%s25374_s10 + $0xb38] sm:$0xf0] }
 0x8ba   : > { %v15923_v14 = vld [vmem:[%s25374_s10 + $0x1f98] sm:$0xf]  ;;  %v15668_v50 = vor.u32 %v17297_v59, %v15667_v18  ;;  %10328 = vmatmul.bf16.vlgmr.msrb.gmra.mxu2 %v19424_v0  ;;  %v8932_v58 = vperm.slane %v17589_v1, 6  ;;  %v10199_v59 = vpop.f32.mrf.mxu0  ;;  %v13013_v46 = vld [vmem:[%s25374_s10 + $0x8f8] sm:$0xf0] }
 0x8bb   : > { %v17361_v45 = vld [vmem:[%s25374_s10 + $0x1fb4] sm:$0xf0]  ;;  %10341 = vmatmul.bf16.vlgmr.msrb.gmra.mxu3 %v19433_v34 }
 0x8bc   : > { %10385 = vmatpush.bf16.msra.mxu3 %v15956_v62  ;;  %v15635_v55 = vld [vmem:[%s25374_s10 + $0x1d58] sm:$0xf]  ;;  %v15924_v8 = vor.u32 %v17361_v45, %v15923_v14  ;;  %10418 = vmatpush.bf16.msra.mxu1 %v12152_v5  ;;  %v10200_v51 = vadd.f32 %v10199_v59, %v8932_v58  ;;  %v10212_v45 = vpop.f32.mrf.mxu1  ;;  %v10121_v5 = vpop.f32.mrf.mxu2  ;;  %v16613_v59 = vld [vmem:[%s25374_s10 + $0x85c] sm:$0xf] }
 0x8bd   : > { %v17289_v12 = vld [vmem:[%s25374_s10 + $0x1d74] sm:$0xf0]  ;;  %10450 = vmatpush.bf16.msra.mxu0 %v13144_v7  ;;  %10373 = vmatpush.bf16.msra.mxu2 %v15668_v50 }
 0x8be   : > { %v15891_v22 = vld [vmem:[%s25374_s10 + $0x1f58] sm:$0xf]  ;;  %v15636_v2 = vor.u32 %v17289_v12, %v15635_v55  ;;  %10406 = vmatmul.bf16.vlgmr.msrb.gmra.mxu0 %v18972_v44  ;;  %v13333_v44 = vld [vmem:[%s25374_s10 + $0xb78] sm:$0xf0]  ;;  %v10122_v55 = vadd.f32 %v10121_v5, %v24258_v4  ;;  %v13304_v12 = vor.u32 %v16701_v38, %v13301_v25 }
 0x8bf   : > { %v17353_v63 = vld [vmem:[%s25374_s10 + $0x1f74] sm:$0xf0]  ;;  %10419 = vmatmul.bf16.vlgmr.msra.gmra.mxu1 %v18984_v41  ;;  %v16637_v41 = vld [vmem:[%s25374_s10 + $0x91c] sm:$0xf]  ;;  %v13336_v32 = vor.u32 %v16709_v24, %v13333_v44 }
 0x8c0   : > { %10463 = vmatpush.bf16.msrb.mxu1 %v13400_v19  ;;  %v15603_v53 = vld [vmem:[%s25374_s10 + $0x1d18] sm:$0xf]  ;;  %10386 = vmatpush.bf16.msra.mxu3 %v15924_v8  ;;  %v15892_v20 = vor.u32 %v17353_v63, %v15891_v22  ;;  %v13048_v27 = vor.u32 %v16637_v41, %v13045_v42  ;;  %v24417_v19 = vadd.f32 %v10212_v45, %v10200_v51  ;;  %v16693_v22 = vld [vmem:[%s25374_s10 + $0xadc] sm:$0xf] }
 0x8c1   : > { %v17281_v37 = vld [vmem:[%s25374_s10 + $0x1d34] sm:$0xf0]  ;;  %10451 = vmatpush.bf16.msra.mxu0 %v13112_v57  ;;  %10374 = vmatpush.bf16.msra.mxu2 %v15636_v2  ;;  %v10134_v57 = vpop.f32.mrf.mxu3  ;;  %v13269_v4 = vld [vmem:[%s25374_s10 + $0xaf8] sm:$0xf0]  ;;  %v13016_v2 = vor.u32 %v16629_v54, %v13013_v46 }
 0x8c2   : > { %v15859_v11 = vld [vmem:[%s25374_s10 + $0x1f18] sm:$0xf]  ;;  %v15604_v3 = vor.u32 %v17281_v37, %v15603_v53  ;;  %v10135_v63 = vadd.f32 %v10134_v57, %v10122_v55  ;;  %v16621_v53 = vld [vmem:[%s25374_s10 + $0x89c] sm:$0xf]  ;;  %v13272_v24 = vor.u32 %v16693_v22, %v13269_v4  ;;  %v10201_v1 = vpop.f32.mrf.mxu0 }
 0x8c3   : > { %v17345_v43 = vld [vmem:[%s25374_s10 + $0x1f34] sm:$0xf0]  ;;  %v12981_v37 = vld [vmem:[%s25374_s10 + $0x8b8] sm:$0xf0] }
 0x8c4   : > { %10464 = vmatpush.bf16.msrb.mxu1 %v13368_v29  ;;  %v15571_v18 = vld [vmem:[%s25374_s10 + $0x1cd8] sm:$0xf]  ;;  %10387 = vmatpush.bf16.msra.mxu3 %v15892_v20  ;;  %v15860_v15 = vor.u32 %v17345_v43, %v15859_v11  ;;  %v10148_v20 = vadd.f32 %v24191_v28, %v10135_v63  ;;  %v16685_v11 = vld [vmem:[%s25374_s10 + $0xa9c] sm:$0xf]  ;;  %v12984_v43 = vor.u32 %v16621_v53, %v12981_v37 }
 0x8c5   : > { %v17273_v62 = vld [vmem:[%s25374_s10 + $0x1cf4] sm:$0xf0]  ;;  %10452 = vmatpush.bf16.msra.mxu0 %v13080_v52  ;;  %10375 = vmatpush.bf16.msra.mxu2 %v15604_v3  ;;  %v13237_v28 = vld [vmem:[%s25374_s10 + $0xab8] sm:$0xf0] }
 0x8c6   : > { %v15827_v7 = vld [vmem:[%s25374_s10 + $0x1ed8] sm:$0xf]  ;;  %v15572_v50 = vor.u32 %v17273_v62, %v15571_v18  ;;  %v24464_v42 = vadd.f32 %v24205_v21, %v10148_v20  ;;  %v10123_v62 = vpop.f32.mrf.mxu2  ;;  %v13240_v38 = vor.u32 %v16685_v11, %v13237_v28  ;;  %v16533_v51 = vld [vmem:[%s25374_s10 + $0x5dc] sm:$0xf] }
 0x8c7   : > { %v17337_v14 = vld [vmem:[%s25374_s10 + $0x1ef4] sm:$0xf0]  ;;  %v16677_v45 = vld [vmem:[%s25374_s10 + $0xa5c] sm:$0xf] }
 0x8c8   : > { %10465 = vmatpush.bf16.msrb.mxu1 %v13336_v32  ;;  %v15539_v8 = vld [vmem:[%s25374_s10 + $0x1c98] sm:$0xf]  ;;  %10388 = vmatpush.bf16.msra.mxu3 %v15860_v15  ;;  %v15828_v10 = vor.u32 %v17337_v14, %v15827_v7  ;;  %v10214_v32 = vpop.f32.mrf.mxu1  ;;  %v12949_v15 = vld [vmem:[%s25374_s10 + $0x878] sm:$0xf0] }
 0x8c9   : > { %v17265_v17 = vld [vmem:[%s25374_s10 + $0x1cb4] sm:$0xf0]  ;;  %10453 = vmatpush.bf16.msra.mxu0 %v13048_v27  ;;  %10376 = vmatpush.bf16.msra.mxu2 %v15572_v50  ;;  %v10136_v7 = vpop.f32.mrf.mxu3  ;;  %v12629_v14 = vld [vmem:[%s25374_s10 + $0x5f8] sm:$0xf0]  ;;  %v12952_v5 = vor.u32 %v16613_v59, %v12949_v15 }
 0x8ca   : > { %v15795_v13 = vld [vmem:[%s25374_s10 + $0x1e98] sm:$0xf]  ;;  %v15540_v29 = vor.u32 %v17265_v17, %v15539_v8  ;;  %v13205_v50 = vld [vmem:[%s25374_s10 + $0xa78] sm:$0xf0]  ;;  %v12632_v17 = vor.u32 %v16533_v51, %v12629_v14 }
 0x8cb   : > { %v17329_v47 = vld [vmem:[%s25374_s10 + $0x1eb4] sm:$0xf0]  ;;  %v12885_v8 = vld [vmem:[%s25374_s10 + $0x7f8] sm:$0xf0] }
 0x8cc   : > { %10466 = vmatpush.bf16.msrb.mxu1 %v13304_v12  ;;  %v15507_v44 = vld [vmem:[%s25374_s10 + $0x1c58] sm:$0xf]  ;;  %10389 = vmatpush.bf16.msra.mxu3 %v15828_v10  ;;  %v15796_v58 = vor.u32 %v17329_v47, %v15795_v13  ;;  %v16597_v12 = vld [vmem:[%s25374_s10 + $0x7dc] sm:$0xf]  ;;  %v13208_v10 = vor.u32 %v16677_v45, %v13205_v50 }
 0x8cd   : > { %v17257_v52 = vld [vmem:[%s25374_s10 + $0x1c74] sm:$0xf0]  ;;  %10454 = vmatpush.bf16.msra.mxu0 %v13016_v2  ;;  %10377 = vmatpush.bf16.msra.mxu2 %v15540_v29  ;;  %v16605_v57 = vld [vmem:[%s25374_s10 + $0x81c] sm:$0xf]  ;;  %v12888_v47 = vor.u32 %v16597_v12, %v12885_v8 }
 0x8ce   : > { %v15763_v3 = vld [vmem:[%s25374_s10 + $0x1e58] sm:$0xf]  ;;  %v15508_v18 = vor.u32 %v17257_v52, %v15507_v44  ;;  %v12917_v22 = vld [vmem:[%s25374_s10 + $0x838] sm:$0xf0] }
 0x8cf   : > { %v17321_v41 = vld [vmem:[%s25374_s10 + $0x1e74] sm:$0xf0]  ;;  %v16917_v63 = vld [vmem:[%s25374_s10 + $0x11dc] sm:$0xf]  ;;  %v12920_v20 = vor.u32 %v16605_v57, %v12917_v22 }
 0x8d0   : > { %10467 = vmatpush.bf16.msrb.mxu1 %v13272_v24  ;;  %v15475_v25 = vld [vmem:[%s25374_s10 + $0x1c18] sm:$0xf]  ;;  %10390 = vmatpush.bf16.msra.mxu3 %v15796_v58  ;;  %v15764_v27 = vor.u32 %v17321_v41, %v15763_v3  ;;  %v14165_v2 = vld [vmem:[%s25374_s10 + $0x11f8] sm:$0xf0] }
 0x8d1   : > { %v17249_v21 = vld [vmem:[%s25374_s10 + $0x1c34] sm:$0xf0]  ;;  %10455 = vmatpush.bf16.msra.mxu0 %v12984_v43  ;;  %10378 = vmatpush.bf16.msra.mxu2 %v15508_v18  ;;  %v16525_v13 = vld [vmem:[%s25374_s10 + $0x59c] sm:$0xf]  ;;  %v14168_v52 = vor.u32 %v16917_v63, %v14165_v2 }
 0x8d2   : > { %v15731_v54 = vld [vmem:[%s25374_s10 + $0x1e18] sm:$0xf]  ;;  %v15476_v55 = vor.u32 %v17249_v21, %v15475_v25  ;;  %v12597_v29 = vld [vmem:[%s25374_s10 + $0x5b8] sm:$0xf0] }
 0x8d3   : > { %v17313_v46 = vld [vmem:[%s25374_s10 + $0x1e34] sm:$0xf0]  ;;  %v16669_v53 = vld [vmem:[%s25374_s10 + $0xa1c] sm:$0xf]  ;;  %v12600_v11 = vor.u32 %v16525_v13, %v12597_v29 }
 0x8d4   : > { %10468 = vmatpush.bf16.msrb.mxu1 %v13240_v38  ;;  %10391 = vmatpush.bf16.msra.mxu3 %v15764_v27  ;;  %v15732_v4 = vor.u32 %v17313_v46, %v15731_v54  ;;  %v13173_v37 = vld [vmem:[%s25374_s10 + $0xa38] sm:$0xf0] }
 0x8d5   : > { %10456 = vmatpush.bf16.msra.mxu0 %v12952_v5  ;;  %10379 = vmatpush.bf16.msra.mxu2 %v15476_v55  ;;  %v16981_v24 = vld [vmem:[%s25374_s10 + $0x13dc] sm:$0xf]  ;;  %v13176_v28 = vor.u32 %v16669_v53, %v13173_v37  ;;  %v24616_v37 = vpop.f32.mrf.mxu1 }
 0x8d6   : > { %v14421_v44 = vld [vmem:[%s25374_s10 + $0x13f8] sm:$0xf0] }
 0x8d7   : > { %v16589_v1 = vld [vmem:[%s25374_s10 + $0x79c] sm:$0xf]  ;;  %v14424_v41 = vor.u32 %v16981_v24, %v14421_v44  ;;  %v10173_v24 = vpop.f32.mrf.mxu2 }
 0x8d8   : > { %10469 = vmatpush.bf16.msrb.mxu1 %v13208_v10  ;;  %v12853_v58 = vld [vmem:[%s25374_s10 + $0x7b8] sm:$0xf0]  ;;  %10392 = vmatpush.bf16.msra.mxu3 %v15732_v4  ;;  %v24602_v4 = vpop.f32.mrf.mxu0 }
 0x8d9   : > { %10424 = vmatpush.bf16.msrb.mxu2 %v12632_v17  ;;  %v16909_v43 = vld [vmem:[%s25374_s10 + $0x119c] sm:$0xf]  ;;  %10457 = vmatpush.bf16.msra.mxu0 %v12920_v20  ;;  %v12856_v62 = vor.u32 %v16589_v1, %v12853_v58  ;;  %v10174_v1 = vadd.f32 %v10173_v24, %v24464_v42 }
 0x8da   : > { %v14133_v3 = vld [vmem:[%s25374_s10 + $0x11b8] sm:$0xf0]  ;;  %10380 = vmatmul.bf16.vlgmr.msra.gmra.mxu2 %v19620_v16 }
 0x8db   : > { %v16517_v32 = vld [vmem:[%s25374_s10 + $0x55c] sm:$0xf]  ;;  %10393 = vmatmul.bf16.vlgmr.msra.gmra.mxu3 %v19635_v6  ;;  %v14136_v38 = vor.u32 %v16909_v43, %v14133_v3  ;;  %v10186_v3 = vpop.f32.mrf.mxu3 }
 0x8dc   : > { %10437 = vmatpush.bf16.msrb.mxu3 %v12888_v47  ;;  %v12565_v18 = vld [vmem:[%s25374_s10 + $0x578] sm:$0xf0]  ;;  %10470 = vmatpush.bf16.msrb.mxu1 %v13176_v28 }
 0x8dd   : > { %v16973_v59 = vld [vmem:[%s25374_s10 + $0x139c] sm:$0xf]  ;;  %10502 = vmatpush.bf16.msrb.mxu0 %v14168_v52  ;;  %10425 = vmatpush.bf16.msrb.mxu2 %v12600_v11  ;;  %v12568_v51 = vor.u32 %v16517_v32, %v12565_v18  ;;  %v24637_v32 = vadd.f32 %v10186_v3, %v10174_v1 }
 0x8de   : > { %v14389_v15 = vld [vmem:[%s25374_s10 + $0x13b8] sm:$0xf0]  ;;  %10458 = vmatmul.bf16.vlgmr.msra.gmra.mxu0 %v18992_v39 }
 0x8df   : > { %v16581_v25 = vld [vmem:[%s25374_s10 + $0x75c] sm:$0xf]  ;;  %v14392_v14 = vor.u32 %v16973_v59, %v14389_v15  ;;  %10471 = vmatmul.bf16.vlgmr.msrb.gmra.mxu1 %v18994_v36 }
 0x8e0   : > { %v12821_v21 = vld [vmem:[%s25374_s10 + $0x778] sm:$0xf0]  ;;  %10515 = vmatpush.bf16.msra.mxu1 %v14424_v41  ;;  %10438 = vmatpush.bf16.msrb.mxu3 %v12856_v62 }
 0x8e1   : > { %v16901_v27 = vld [vmem:[%s25374_s10 + $0x115c] sm:$0xf]  ;;  %v12824_v5 = vor.u32 %v16581_v25, %v12821_v21  ;;  %10503 = vmatpush.bf16.msrb.mxu0 %v14136_v38  ;;  %10426 = vmatpush.bf16.msrb.mxu2 %v12568_v51 }
 0x8e2   : > { %v14101_v7 = vld [vmem:[%s25374_s10 + $0x1178] sm:$0xf0] }
 0x8e3   : > { %v16509_v45 = vld [vmem:[%s25374_s10 + $0x51c] sm:$0xf]  ;;  %v14104_v46 = vor.u32 %v16901_v27, %v14101_v7  ;;  %v10253_v7 = vpop.f32.mrf.mxu0 }
 0x8e4   : > { %v12533_v50 = vld [vmem:[%s25374_s10 + $0x538] sm:$0xf0]  ;;  %10516 = vmatpush.bf16.msra.mxu1 %v14392_v14  ;;  %10439 = vmatpush.bf16.msrb.mxu3 %v12824_v5 }
 0x8e5   : > { %v16965_v54 = vld [vmem:[%s25374_s10 + $0x135c] sm:$0xf]  ;;  %v12536_v8 = vor.u32 %v16509_v45, %v12533_v50  ;;  %10504 = vmatpush.bf16.msrb.mxu0 %v14104_v46  ;;  %v10266_v46 = vpop.f32.mrf.mxu1 }
 0x8e6   : > { %v14357_v39 = vld [vmem:[%s25374_s10 + $0x1378] sm:$0xf0] }
 0x8e7   : > { %v16573_v55 = vld [vmem:[%s25374_s10 + $0x71c] sm:$0xf]  ;;  %v14360_v10 = vor.u32 %v16965_v54, %v14357_v39  ;;  %10427 = vmatpush.bf16.msrb.mxu2 %v12536_v8 }
 0x8e8   : > { %v12789_v12 = vld [vmem:[%s25374_s10 + $0x738] sm:$0xf0] }
 0x8e9   : > { %v16893_v17 = vld [vmem:[%s25374_s10 + $0x111c] sm:$0xf]  ;;  %v12792_v63 = vor.u32 %v16573_v55, %v12789_v12  ;;  %10517 = vmatpush.bf16.msra.mxu1 %v14360_v10  ;;  %v10175_v12 = vpop.f32.mrf.mxu2 }
 0x8ea   : > { %v14069_v36 = vld [vmem:[%s25374_s10 + $0x1138] sm:$0xf0] }
 0x8eb   : > { %v16501_v57 = vld [vmem:[%s25374_s10 + $0x4dc] sm:$0xf]  ;;  %v14072_v47 = vor.u32 %v16893_v17, %v14069_v36  ;;  %10440 = vmatpush.bf16.msrb.mxu3 %v12792_v63 }
 0x8ec   : > { %v12501_v22 = vld [vmem:[%s25374_s10 + $0x4f8] sm:$0xf0] }
 0x8ed   : > { %v16957_v2 = vld [vmem:[%s25374_s10 + $0x131c] sm:$0xf]  ;;  %v12504_v20 = vor.u32 %v16501_v57, %v12501_v22  ;;  %10505 = vmatpush.bf16.msrb.mxu0 %v14072_v47 }
 0x8ee   : > { %v14325_v13 = vld [vmem:[%s25374_s10 + $0x1338] sm:$0xf0] }
 0x8ef   : > { %v16565_v29 = vld [vmem:[%s25374_s10 + $0x6dc] sm:$0xf]  ;;  %v14328_v58 = vor.u32 %v16957_v2, %v14325_v13  ;;  %10428 = vmatpush.bf16.msrb.mxu2 %v12504_v20  ;;  %v10188_v2 = vpop.f32.mrf.mxu3 }
 0x8f0   : > { %v12757_v53 = vld [vmem:[%s25374_s10 + $0x6f8] sm:$0xf0] }
 0x8f1   : > { %v16885_v44 = vld [vmem:[%s25374_s10 + $0x10dc] sm:$0xf]  ;;  %v12760_v43 = vor.u32 %v16565_v29, %v12757_v53  ;;  %10518 = vmatpush.bf16.msra.mxu1 %v14328_v58 }
 0x8f2   : > { %v14037_v52 = vld [vmem:[%s25374_s10 + $0x10f8] sm:$0xf0] }
 0x8f3   : > { %v16493_v11 = vld [vmem:[%s25374_s10 + $0x49c] sm:$0xf]  ;;  %v14040_v18 = vor.u32 %v16885_v44, %v14037_v52  ;;  %10441 = vmatpush.bf16.msrb.mxu3 %v12760_v43 }
 0x8f4   : > { %v12469_v28 = vld [vmem:[%s25374_s10 + $0x4b8] sm:$0xf0] }
 0x8f5   : > { %v16949_v41 = vld [vmem:[%s25374_s10 + $0x12dc] sm:$0xf]  ;;  %v12472_v15 = vor.u32 %v16493_v11, %v12469_v28  ;;  %10506 = vmatpush.bf16.msrb.mxu0 %v14040_v18 }
 0x8f6   : > { %v14293_v42 = vld [vmem:[%s25374_s10 + $0x12f8] sm:$0xf0] }
 0x8f7   : > { %v16557_v62 = vld [vmem:[%s25374_s10 + $0x69c] sm:$0xf]  ;;  %v14296_v21 = vor.u32 %v16949_v41, %v14293_v42  ;;  %10429 = vmatpush.bf16.msrb.mxu2 %v12472_v15 }
 0x8f8   : > { %v12725_v59 = vld [vmem:[%s25374_s10 + $0x6b8] sm:$0xf0] }
 0x8f9   : > { %v16877_v38 = vld [vmem:[%s25374_s10 + $0x109c] sm:$0xf]  ;;  %v12728_v14 = vor.u32 %v16557_v62, %v12725_v59  ;;  %10519 = vmatpush.bf16.msra.mxu1 %v14296_v21 }
 0x8fa   : > { %v14005_v25 = vld [vmem:[%s25374_s10 + $0x10b8] sm:$0xf0] }
 0x8fb   : > { %v16485_v51 = vld [vmem:[%s25374_s10 + $0x45c] sm:$0xf]  ;;  %v14008_v5 = vor.u32 %v16877_v38, %v14005_v25  ;;  %10442 = vmatpush.bf16.msrb.mxu3 %v12728_v14 }
 0x8fc   : > { %v12437_v27 = vld [vmem:[%s25374_s10 + $0x478] sm:$0xf0] }
 0x8fd   : > { %v16941_v45 = vld [vmem:[%s25374_s10 + $0x129c] sm:$0xf]  ;;  %v12440_v55 = vor.u32 %v16485_v51, %v12437_v27  ;;  %10507 = vmatpush.bf16.msrb.mxu0 %v14008_v5 }
 0x8fe   : > { %v14261_v50 = vld [vmem:[%s25374_s10 + $0x12b8] sm:$0xf0] }
 0x8ff   : > { %v16549_v54 = vld [vmem:[%s25374_s10 + $0x65c] sm:$0xf]  ;;  %v14264_v36 = vor.u32 %v16941_v45, %v14261_v50  ;;  %10430 = vmatpush.bf16.msrb.mxu2 %v12440_v55 }
 0x900   : > { %v12693_v39 = vld [vmem:[%s25374_s10 + $0x678] sm:$0xf0] }
 0x901   : > { %v16869_v8 = vld [vmem:[%s25374_s10 + $0x105c] sm:$0xf]  ;;  %v12696_v63 = vor.u32 %v16549_v54, %v12693_v39  ;;  %10520 = vmatpush.bf16.msra.mxu1 %v14264_v36 }
 0x902   : > { %v13973_v17 = vld [vmem:[%s25374_s10 + $0x1078] sm:$0xf0] }
 0x903   : > { %v16477_v10 = vld [vmem:[%s25374_s10 + $0x41c] sm:$0xf]  ;;  %v13976_v53 = vor.u32 %v16869_v8, %v13973_v17  ;;  %10443 = vmatpush.bf16.msrb.mxu3 %v12696_v63 }
 0x904   : > { %v12405_v57 = vld [vmem:[%s25374_s10 + $0x438] sm:$0xf0] }
 0x905   : > { %v16789_v22 = vld [vmem:[%s25374_s10 + $0xddc] sm:$0xf]  ;;  %v12408_v44 = vor.u32 %v16477_v10, %v12405_v57  ;;  %10508 = vmatpush.bf16.msrb.mxu0 %v13976_v53 }
 0x906   : > { %v13653_v13 = vld [vmem:[%s25374_s10 + $0xdf8] sm:$0xf0] }
 0x907   : > { %v16933_v47 = vld [vmem:[%s25374_s10 + $0x125c] sm:$0xf]  ;;  %v13656_v58 = vor.u32 %v16789_v22, %v13653_v13  ;;  %10431 = vmatpush.bf16.msrb.mxu2 %v12408_v44 }
 0x908   : > { %v14229_v29 = vld [vmem:[%s25374_s10 + $0x1278] sm:$0xf0] }
 0x909   : > { %v16541_v20 = vld [vmem:[%s25374_s10 + $0x61c] sm:$0xf]  ;;  %v14232_v11 = vor.u32 %v16933_v47, %v14229_v29 }
 0x90a   : > { %v12661_v24 = vld [vmem:[%s25374_s10 + $0x638] sm:$0xf0]  ;;  %10432 = vmatmul.bf16.vlgmr.msrb.gmra.mxu2 %v19089_v30 }
 0x90b   : > { %v16853_v52 = vld [vmem:[%s25374_s10 + $0xfdc] sm:$0xf]  ;;  %v12664_v3 = vor.u32 %v16541_v20, %v12661_v24  ;;  %10476 = vmatpush.bf16.msra.mxu2 %v13656_v58  ;;  %10521 = vmatpush.bf16.msra.mxu1 %v14232_v11 }
 0x90c   : > { %v13909_v1 = vld [vmem:[%s25374_s10 + $0xff8] sm:$0xf0] }
 0x90d   : > { %v16861_v28 = vld [vmem:[%s25374_s10 + $0x101c] sm:$0xf]  ;;  %v13912_v62 = vor.u32 %v16853_v52, %v13909_v1  ;;  %10444 = vmatpush.bf16.msrb.mxu3 %v12664_v3 }
 0x90e   : > { %v13941_v43 = vld [vmem:[%s25374_s10 + $0x1038] sm:$0xf0] }
 0x90f   : > { %v17173_v41 = vld [vmem:[%s25374_s10 + $0x19dc] sm:$0xf]  ;;  %v13944_v25 = vor.u32 %v16861_v28, %v13941_v43  ;;  %v24805_v28 = vpop.f32.mrf.mxu0 }
 0x910   : > { %v15189_v42 = vld [vmem:[%s25374_s10 + $0x19f8] sm:$0xf0]  ;;  %10445 = vmatmul.bf16.vlgmr.msrb.gmra.mxu3 %v19097_v33 }
 0x911   : > { %v16781_v18 = vld [vmem:[%s25374_s10 + $0xd9c] sm:$0xf]  ;;  %v15192_v27 = vor.u32 %v17173_v41, %v15189_v42  ;;  %10489 = vmatpush.bf16.msra.mxu3 %v13912_v62  ;;  %10509 = vmatpush.bf16.msrb.mxu0 %v13944_v25 }
 0x912   : > { %v13621_v59 = vld [vmem:[%s25374_s10 + $0xdb8] sm:$0xf0] }
 0x913   : > { %v16925_v15 = vld [vmem:[%s25374_s10 + $0x121c] sm:$0xf]  ;;  %v13624_v45 = vor.u32 %v16781_v18, %v13621_v59  ;;  %v24819_v59 = vpop.f32.mrf.mxu1 }
 0x914   : > { %v14197_v38 = vld [vmem:[%s25374_s10 + $0x1238] sm:$0xf0]  ;;  %10510 = vmatmul.bf16.vlgmr.msrb.gmra.mxu0 %v19202_v56 }
 0x915   : > { %v17237_v21 = vld [vmem:[%s25374_s10 + $0x1bdc] sm:$0xf]  ;;  %v14200_v50 = vor.u32 %v16925_v15, %v14197_v38  ;;  %10554 = vmatpush.bf16.msra.mxu0 %v15192_v27  ;;  %10477 = vmatpush.bf16.msra.mxu2 %v13624_v45  ;;  %v10225_v38 = vpop.f32.mrf.mxu2 }
 0x916   : > { %v15445_v51 = vld [vmem:[%s25374_s10 + $0x1bf8] sm:$0xf0] }
 0x917   : > { %v16845_v7 = vld [vmem:[%s25374_s10 + $0xf9c] sm:$0xf]  ;;  %v15448_v39 = vor.u32 %v17237_v21, %v15445_v51  ;;  %10522 = vmatpush.bf16.msra.mxu1 %v14200_v50  ;;  %v10226_v51 = vadd.f32 %v10225_v38, %v24417_v19  ;;  %v10238_v50 = vpop.f32.mrf.mxu3 }
 0x918   : > { %v13877_v14 = vld [vmem:[%s25374_s10 + $0xfb8] sm:$0xf0] }
 0x919   : > { %v17165_v5 = vld [vmem:[%s25374_s10 + $0x199c] sm:$0xf]  ;;  %v13880_v12 = vor.u32 %v16845_v7, %v13877_v14 }
 0x91a   : > { %v15157_v54 = vld [vmem:[%s25374_s10 + $0x19b8] sm:$0xf0]  ;;  %10523 = vmatmul.bf16.vlgmr.msra.gmra.mxu1 %v19217_v35 }
 0x91b   : > { %v16773_v46 = vld [vmem:[%s25374_s10 + $0xd5c] sm:$0xf]  ;;  %v15160_v17 = vor.u32 %v17165_v5, %v15157_v54  ;;  %10567 = vmatpush.bf16.msrb.mxu1 %v15448_v39  ;;  %10490 = vmatpush.bf16.msra.mxu3 %v13880_v12  ;;  %v10239_v54 = vadd.f32 %v10238_v50, %v10226_v51 }
 0x91c   : > { %v13589_v55 = vld [vmem:[%s25374_s10 + $0xd78] sm:$0xf0] }
 0x91d   : > { %v17229_v8 = vld [vmem:[%s25374_s10 + $0x1b9c] sm:$0xf]  ;;  %v13592_v57 = vor.u32 %v16773_v46, %v13589_v55  ;;  %10555 = vmatpush.bf16.msra.mxu0 %v15160_v17  ;;  %v10252_v17 = vadd.f32 %v24602_v4, %v10239_v54 }
 0x91e   : > { %v15413_v30 = vld [vmem:[%s25374_s10 + $0x1bb8] sm:$0xf0] }
 0x91f   : > { %v16837_v36 = vld [vmem:[%s25374_s10 + $0xf5c] sm:$0xf]  ;;  %v15416_v63 = vor.u32 %v17229_v8, %v15413_v30  ;;  %10478 = vmatpush.bf16.msra.mxu2 %v13592_v57 }
 0x920   : > { %v13845_v10 = vld [vmem:[%s25374_s10 + $0xf78] sm:$0xf0] }
 0x921   : > { %v17157_v22 = vld [vmem:[%s25374_s10 + $0x195c] sm:$0xf]  ;;  %v13848_v47 = vor.u32 %v16837_v36, %v13845_v10  ;;  %10568 = vmatpush.bf16.msrb.mxu1 %v15416_v63 }
 0x922   : > { %v15125_v33 = vld [vmem:[%s25374_s10 + $0x1978] sm:$0xf0] }
 0x923   : > { %v16765_v2 = vld [vmem:[%s25374_s10 + $0xd1c] sm:$0xf]  ;;  %v15128_v53 = vor.u32 %v17157_v22, %v15125_v33  ;;  %10491 = vmatpush.bf16.msra.mxu3 %v13848_v47  ;;  %v10305_v22 = vpop.f32.mrf.mxu0 }
 0x924   : > { %v13557_v13 = vld [vmem:[%s25374_s10 + $0xd38] sm:$0xf0] }
 0x925   : > { %v17221_v29 = vld [vmem:[%s25374_s10 + $0x1b5c] sm:$0xf]  ;;  %v13560_v44 = vor.u32 %v16765_v2, %v13557_v13  ;;  %10556 = vmatpush.bf16.msra.mxu0 %v15128_v53 }
 0x926   : > { %v15381_v56 = vld [vmem:[%s25374_s10 + $0x1b78] sm:$0xf0] }
 0x927   : > { %v16829_v20 = vld [vmem:[%s25374_s10 + $0xf1c] sm:$0xf]  ;;  %v15384_v1 = vor.u32 %v17221_v29, %v15381_v56  ;;  %10479 = vmatpush.bf16.msra.mxu2 %v13560_v44  ;;  %v24872_v29 = vadd.f32 %v24616_v37, %v10252_v17  ;;  %v10318_v56 = vpop.f32.mrf.mxu1 }
 0x928   : > { %v13813_v24 = vld [vmem:[%s25374_s10 + $0xf38] sm:$0xf0] }
 0x929   : > { %v17149_v52 = vld [vmem:[%s25374_s10 + $0x191c] sm:$0xf]  ;;  %v13816_v43 = vor.u32 %v16829_v20, %v13813_v24  ;;  %10569 = vmatpush.bf16.msrb.mxu1 %v15384_v1  ;;  %v10227_v20 = vpop.f32.mrf.mxu2 }
 0x92a   : > { %v15093_v35 = vld [vmem:[%s25374_s10 + $0x1938] sm:$0xf0] }
 0x92b   : > { %v16757_v58 = vld [vmem:[%s25374_s10 + $0xcdc] sm:$0xf]  ;;  %v15096_v42 = vor.u32 %v17149_v52, %v15093_v35  ;;  %10492 = vmatpush.bf16.msra.mxu3 %v13816_v43 }
 0x92c   : > { %v13525_v11 = vld [vmem:[%s25374_s10 + $0xcf8] sm:$0xf0] }
 0x92d   : > { %v17213_v3 = vld [vmem:[%s25374_s10 + $0x1b1c] sm:$0xf]  ;;  %v13528_v15 = vor.u32 %v16757_v58, %v13525_v11  ;;  %10557 = vmatpush.bf16.msra.mxu0 %v15096_v42  ;;  %v10240_v11 = vpop.f32.mrf.mxu3 }
 0x92e   : > { %v15349_v41 = vld [vmem:[%s25374_s10 + $0x1b38] sm:$0xf0] }
 0x92f   : > { %v16821_v18 = vld [vmem:[%s25374_s10 + $0xedc] sm:$0xf]  ;;  %v15352_v27 = vor.u32 %v17213_v3, %v15349_v41  ;;  %10480 = vmatpush.bf16.msra.mxu2 %v13528_v15 }
 0x930   : > { %v13781_v62 = vld [vmem:[%s25374_s10 + $0xef8] sm:$0xf0] }
 0x931   : > { %v17141_v25 = vld [vmem:[%s25374_s10 + $0x18dc] sm:$0xf]  ;;  %v13784_v45 = vor.u32 %v16821_v18, %v13781_v62  ;;  %10570 = vmatpush.bf16.msrb.mxu1 %v15352_v27 }
 0x932   : > { %v15061_v21 = vld [vmem:[%s25374_s10 + $0x18f8] sm:$0xf0] }
 0x933   : > { %v16749_v7 = vld [vmem:[%s25374_s10 + $0xc9c] sm:$0xf]  ;;  %v15064_v39 = vor.u32 %v17141_v25, %v15061_v21  ;;  %10493 = vmatpush.bf16.msra.mxu3 %v13784_v45 }
 0x934   : > { %v13493_v14 = vld [vmem:[%s25374_s10 + $0xcb8] sm:$0xf0] }
 0x935   : > { %v17205_v5 = vld [vmem:[%s25374_s10 + $0x1adc] sm:$0xf]  ;;  %v13496_v12 = vor.u32 %v16749_v7, %v13493_v14  ;;  %10558 = vmatpush.bf16.msra.mxu0 %v15064_v39 }
 0x936   : > { %v15317_v19 = vld [vmem:[%s25374_s10 + $0x1af8] sm:$0xf0] }
 0x937   : > { %v16813_v46 = vld [vmem:[%s25374_s10 + $0xe9c] sm:$0xf]  ;;  %v15320_v36 = vor.u32 %v17205_v5, %v15317_v19  ;;  %10481 = vmatpush.bf16.msra.mxu2 %v13496_v12 }
 0x938   : > { %v13749_v55 = vld [vmem:[%s25374_s10 + $0xeb8] sm:$0xf0] }
 0x939   : > { %v17133_v8 = vld [vmem:[%s25374_s10 + $0x189c] sm:$0xf]  ;;  %v13752_v33 = vor.u32 %v16813_v46, %v13749_v55  ;;  %10571 = vmatpush.bf16.msrb.mxu1 %v15320_v36 }
 0x93a   : > { %v15029_v30 = vld [vmem:[%s25374_s10 + $0x18b8] sm:$0xf0] }
 0x93b   : > { %v16741_v10 = vld [vmem:[%s25374_s10 + $0xc5c] sm:$0xf]  ;;  %v15032_v2 = vor.u32 %v17133_v8, %v15029_v30  ;;  %10494 = vmatpush.bf16.msra.mxu3 %v13752_v33 }
 0x93c   : > { %v13461_v57 = vld [vmem:[%s25374_s10 + $0xc78] sm:$0xf0] }
 0x93d   : > { %v17197_v63 = vld [vmem:[%s25374_s10 + $0x1a9c] sm:$0xf]  ;;  %v13464_v53 = vor.u32 %v16741_v10, %v13461_v57  ;;  %10559 = vmatpush.bf16.msra.mxu0 %v15032_v2 }
 0x93e   : > { %v15285_v4 = vld [vmem:[%s25374_s10 + $0x1ab8] sm:$0xf0] }
 0x93f   : > { %v16805_v13 = vld [vmem:[%s25374_s10 + $0xe5c] sm:$0xf]  ;;  %v15288_v52 = vor.u32 %v17197_v63, %v15285_v4  ;;  %10482 = vmatpush.bf16.msra.mxu2 %v13464_v53 }
 0x940   : > { %v13717_v47 = vld [vmem:[%s25374_s10 + $0xe78] sm:$0xf0] }
 0x941   : > { %v17125_v24 = vld [vmem:[%s25374_s10 + $0x185c] sm:$0xf]  ;;  %v13720_v58 = vor.u32 %v16805_v13, %v13717_v47  ;;  %10572 = vmatpush.bf16.msrb.mxu1 %v15288_v52 }
 0x942   : > { %v14997_v44 = vld [vmem:[%s25374_s10 + $0x1878] sm:$0xf0] }
 0x943   : > { %v16733_v35 = vld [vmem:[%s25374_s10 + $0xc1c] sm:$0xf]  ;;  %v15000_v42 = vor.u32 %v17125_v24, %v14997_v44  ;;  %10495 = vmatpush.bf16.msra.mxu3 %v13720_v58  ;;  %v24986_v44 = vpop.f32.mrf.mxu0  ;;  %v24997_v58 = vpop.f32.mrf.mxu1 }
 0x944   : > { %v13429_v37 = vld [vmem:[%s25374_s10 + $0xc38] sm:$0xf0] }
 0x945   : > { %v17045_v1 = vld [vmem:[%s25374_s10 + $0x15dc] sm:$0xf]  ;;  %v13432_v15 = vor.u32 %v16733_v35, %v13429_v37  ;;  %10560 = vmatpush.bf16.msra.mxu0 %v15000_v42  ;;  %v17374_v35 = vld [vmem:[%s25376_s12 + $0x20] sm:$0xff] }
 0x946   : > { %v14677_v43 = vld [vmem:[%s25374_s10 + $0x15f8] sm:$0xf0] }
 0x947   : > { %v17189_v3 = vld [vmem:[%s25374_s10 + $0x1a5c] sm:$0xf]  ;;  %v14680_v21 = vor.u32 %v17045_v1, %v14677_v43  ;;  %10483 = vmatpush.bf16.msra.mxu2 %v13432_v15  ;;  %v10277_v43 = vpop.f32.mrf.mxu2  ;;  %v10290_v15 = vpop.f32.mrf.mxu3 }
 0x948   : > { %v15253_v41 = vld [vmem:[%s25374_s10 + $0x1a78] sm:$0xf0] }
 0x949   : > { %v16797_v18 = vld [vmem:[%s25374_s10 + $0xe1c] sm:$0xf]  ;;  %v15256_v51 = vor.u32 %v17189_v3, %v15253_v41  ;;  %v10278_v3 = vadd.f32 %v10277_v43, %v24872_v29  ;;  %v17382_v41 = vld [vmem:[%s25376_s12 + $0x60] sm:$0xff] }
 0x94a   : > { %v13685_v62 = vld [vmem:[%s25374_s10 + $0xe38] sm:$0xf0]  ;;  %10484 = vmatmul.bf16.vlgmr.msra.gmra.mxu2 %v19212_v26  ;;  %v17376_v26 = vld [vmem:[%s25376_s12 + $0x30] sm:$0xff] }
 0x94b   : > { %v17109_v38 = vld [vmem:[%s25374_s10 + $0x17dc] sm:$0xf]  ;;  %v13688_v14 = vor.u32 %v16797_v18, %v13685_v62  ;;  %10528 = vmatpush.bf16.msrb.mxu2 %v14680_v21  ;;  %10573 = vmatpush.bf16.msrb.mxu1 %v15256_v51 }
 0x94c   : > { %v14933_v25 = vld [vmem:[%s25374_s10 + $0x17f8] sm:$0xf0] }
 0x94d   : > { %v17117_v27 = vld [vmem:[%s25374_s10 + $0x181c] sm:$0xf]  ;;  %v14936_v50 = vor.u32 %v17109_v38, %v14933_v25  ;;  %10496 = vmatpush.bf16.msra.mxu3 %v13688_v14  ;;  %v10291_v38 = vadd.f32 %v10290_v15, %v10278_v3 }
 0x94e   : > { %v14965_v7 = vld [vmem:[%s25374_s10 + $0x1838] sm:$0xf0] }
 0x94f   : > { %v17037_v45 = vld [vmem:[%s25374_s10 + $0x159c] sm:$0xf]  ;;  %v14968_v39 = vor.u32 %v17117_v27, %v14965_v7  ;;  %v10304_v27 = vadd.f32 %v24805_v28, %v10291_v38  ;;  %v17372_v28 = vld [vmem:[%s25376_s12 + $0x10] sm:$0xff] }
 0x950   : > { %v14645_v5 = vld [vmem:[%s25374_s10 + $0x15b8] sm:$0xf0]  ;;  %10497 = vmatmul.bf16.vlgmr.msra.gmra.mxu3 %v19233_v9  ;;  %v17384_v9 = vld [vmem:[%s25376_s12 + $0x70] sm:$0xff] }
 0x951   : > { %v17181_v19 = vld [vmem:[%s25374_s10 + $0x1a1c] sm:$0xf]  ;;  %v14648_v8 = vor.u32 %v17037_v45, %v14645_v5  ;;  %10541 = vmatpush.bf16.msrb.mxu3 %v14936_v50  ;;  %10561 = vmatpush.bf16.msra.mxu0 %v14968_v39  ;;  %v10357_v50 = vpop.f32.mrf.mxu0  ;;  %v25038_v39 = vadd.f32 %v24819_v59, %v10304_v27 }
 0x952   : > { %v15221_v54 = vld [vmem:[%s25374_s10 + $0x1a38] sm:$0xf0]  ;;  %v17415_v50 = vld [vmem:[%s25376_s12 + $0x168] sm:$0xff] }
 0x953   : > { %v17377_v46 = vld [vmem:[%s25376_s12 + $0x38] sm:$0xff]  ;;  %v15224_v30 = vor.u32 %v17181_v19, %v15221_v54  ;;  %10529 = vmatpush.bf16.msrb.mxu2 %v14648_v8  ;;  %v17380_v8 = vld [vmem:[%s25376_s12 + $0x50] sm:$0xff] }
 0x954   : > { %v17101_v55 = vld [vmem:[%s25374_s10 + $0x179c] sm:$0xf]  ;;  %10562 = vmatmul.bf16.vlgmr.msra.gmra.mxu0 %v19323_v60  ;;  %v17375_v60 = vld [vmem:[%s25376_s12 + $0x28] sm:$0xff] }
 0x955   : > { %v14901_v12 = vld [vmem:[%s25374_s10 + $0x17b8] sm:$0xf0]  ;;  %11135 = vmatpush.bf16.msrb.mxu0 %v17377_v46  ;;  %10574 = vmatpush.bf16.msrb.mxu1 %v15224_v30  ;;  %v10370_v46 = vpop.f32.mrf.mxu1 }
 0x956   : > { %v17385_v17 = vld [vmem:[%s25376_s12 + $0x78] sm:$0xff]  ;;  %v14904_v57 = vor.u32 %v17101_v55, %v14901_v12  ;;  %v10279_v12 = vpop.f32.mrf.mxu2 }
 0x957   : > { %v17029_v36 = vld [vmem:[%s25374_s10 + $0x155c] sm:$0xf] }
 0x958   : > { %v14613_v10 = vld [vmem:[%s25374_s10 + $0x1578] sm:$0xf0]  ;;  %10542 = vmatpush.bf16.msrb.mxu3 %v14904_v57  ;;  %10575 = vmatmul.bf16.vlgmr.msrb.gmra.mxu1 %v19338_v23  ;;  %v17383_v23 = vld [vmem:[%s25376_s12 + $0x68] sm:$0xff] }
 0x959   : > { %v17093_v22 = vld [vmem:[%s25374_s10 + $0x175c] sm:$0xf]  ;;  %v14616_v63 = vor.u32 %v17029_v36, %v14613_v10  ;;  %11148 = vmatpush.bf16.msra.mxu1 %v17385_v17  ;;  %11136 = vmatpush.bf16.msrb.mxu0 %v17376_v26  ;;  %v10292_v36 = vpop.f32.mrf.mxu3  ;;  %v17371_v26 = vld [vmem:[%s25376_s12 + $0x8] sm:$0xff] }
 0x95a   : > { %v14869_v33 = vld [vmem:[%s25374_s10 + $0x1778] sm:$0xf0] }
 0x95b   : > { %v17021_v4 = vld [vmem:[%s25374_s10 + $0x151c] sm:$0xf]  ;;  %v14872_v13 = vor.u32 %v17093_v22, %v14869_v33  ;;  %10530 = vmatpush.bf16.msrb.mxu2 %v14616_v63 }
 0x95c   : > { %v14581_v2 = vld [vmem:[%s25374_s10 + $0x1538] sm:$0xf0] }
 0x95d   : > { %v17085_v47 = vld [vmem:[%s25374_s10 + $0x171c] sm:$0xf]  ;;  %v14584_v53 = vor.u32 %v17021_v4, %v14581_v2  ;;  %11149 = vmatpush.bf16.msra.mxu1 %v17384_v9  ;;  %10543 = vmatpush.bf16.msrb.mxu3 %v14872_v13  ;;  %v17379_v13 = vld [vmem:[%s25376_s12 + $0x48] sm:$0xff] }
 0x95e   : > { %v14837_v56 = vld [vmem:[%s25374_s10 + $0x1738] sm:$0xf0]  ;;  %11137 = vmatpush.bf16.msrb.mxu0 %v17375_v60 }
 0x95f   : > { %v17013_v20 = vld [vmem:[%s25374_s10 + $0x14dc] sm:$0xf]  ;;  %v14840_v52 = vor.u32 %v17085_v47, %v14837_v56  ;;  %10531 = vmatpush.bf16.msrb.mxu2 %v14584_v53 }
 0x960   : > { %v14549_v24 = vld [vmem:[%s25374_s10 + $0x14f8] sm:$0xf0] }
 0x961   : > { %v17077_v37 = vld [vmem:[%s25374_s10 + $0x16dc] sm:$0xf]  ;;  %v14552_v11 = vor.u32 %v17013_v20, %v14549_v24  ;;  %11150 = vmatpush.bf16.msra.mxu1 %v17383_v23  ;;  %10544 = vmatpush.bf16.msrb.mxu3 %v14840_v52  ;;  %v17370_v23 = vld [vmem:[%s25376_s12] sm:$0xff]  ;;  %v10606_v20 = vmax.f32 %v20542_v31, 0.0 }
 0x962   : > { %v14805_v1 = vld [vmem:[%s25374_s10 + $0x16f8] sm:$0xf0]  ;;  %11138 = vmatpush.bf16.msrb.mxu0 %v17374_v35  ;;  %v17378_v31 = vld [vmem:[%s25376_s12 + $0x40] sm:$0xff] }
 0x963   : > { %v17005_v42 = vld [vmem:[%s25374_s10 + $0x149c] sm:$0xf]  ;;  %v14808_v62 = vor.u32 %v17077_v37, %v14805_v1  ;;  %10532 = vmatpush.bf16.msrb.mxu2 %v14552_v11  ;;  %v10607_v1 = vmax.f32 %v21361_v61, 0.0 }
 0x964   : > { %v14517_v18 = vld [vmem:[%s25374_s10 + $0x14b8] sm:$0xf0] }
 0x965   : > { %v17373_v29 = vld [vmem:[%s25376_s12 + $0x18] sm:$0xff]  ;;  %v14520_v51 = vor.u32 %v17005_v42, %v14517_v18  ;;  %11151 = vmatpush.bf16.msra.mxu1 %v17382_v41  ;;  %10545 = vmatpush.bf16.msrb.mxu3 %v14808_v62  ;;  %v10614_v42 = vpack.c.bf16 %v10606_v20, %v10606_v20  ;;  %v10615_v15 = vpack.c.bf16 %v10607_v1, %v10607_v1 }
 0x966   : > { %v17069_v25 = vld [vmem:[%s25374_s10 + $0x169c] sm:$0xf]  ;;  %11139 = vmatpush.bf16.msrb.mxu0 %v17373_v29 }
 0x967   : > { %v14773_v21 = vld [vmem:[%s25374_s10 + $0x16b8] sm:$0xf0]  ;;  %10533 = vmatpush.bf16.msrb.mxu2 %v14520_v51  ;;  %v17590_v51 = vld [vmem:[%s25375_s11] sm:$0xff] }
 0x968   : > { %v17381_v7 = vld [vmem:[%s25376_s12 + $0x58] sm:$0xff]  ;;  %v14776_v5 = vor.u32 %v17069_v25, %v14773_v21  ;;  %v17407_v21 = vld [vmem:[%s25376_s12 + $0x128] sm:$0xff]  ;;  %v8933_v27 = vperm.slane %v17590_v51, 7  ;;  %v17410_v51 = vld [vmem:[%s25376_s12 + $0x140] sm:$0xff] }
 0x969   : > { %v16997_v14 = vld [vmem:[%s25374_s10 + $0x145c] sm:$0xf]  ;;  %11152 = vmatpush.bf16.msra.mxu1 %v17381_v7 }
 0x96a   : > { %v14485_v45 = vld [vmem:[%s25374_s10 + $0x1478] sm:$0xf0]  ;;  %10546 = vmatpush.bf16.msrb.mxu3 %v14776_v5  ;;  %11140 = vmatpush.bf16.msrb.mxu0 %v17372_v28 }
 0x96b   : > { %v17061_v19 = vld [vmem:[%s25374_s10 + $0x165c] sm:$0xf]  ;;  %v14488_v55 = vor.u32 %v16997_v14, %v14485_v45 }
 0x96c   : > { %v14741_v54 = vld [vmem:[%s25374_s10 + $0x1678] sm:$0xf0] }
 0x96d   : > { %v16989_v30 = vld [vmem:[%s25374_s10 + $0x141c] sm:$0xf]  ;;  %v14744_v59 = vor.u32 %v17061_v19, %v14741_v54  ;;  %10534 = vmatpush.bf16.msrb.mxu2 %v14488_v55  ;;  %11153 = vmatpush.bf16.msra.mxu1 %v17380_v8  ;;  %v10407_v19 = vpop.f32.mrf.mxu0  ;;  %v17406_v55 = vld [vmem:[%s25376_s12 + $0x120] sm:$0xff] }
 0x96e   : > { %v14453_v17 = vld [vmem:[%s25374_s10 + $0x1438] sm:$0xf0]  ;;  %11141 = vmatpush.bf16.msrb.mxu0 %v17371_v26  ;;  %v10408_v46 = vadd.f32 %v10407_v19, %v8933_v27  ;;  %v10611_v27 = vmax.f32 %v24637_v32, 0.0  ;;  %v17390_v32 = vld [vmem:[%s25376_s12 + $0xa0] sm:$0xff] }
 0x96f   : > { %v17301_v10 = vld [vmem:[%s25374_s10 + $0x1ddc] sm:$0xf]  ;;  %v14456_v63 = vor.u32 %v16989_v30, %v14453_v17  ;;  %10547 = vmatpush.bf16.msrb.mxu3 %v14744_v59  ;;  %v10420_v30 = vpop.f32.mrf.mxu1  ;;  %v10329_v59 = vpop.f32.mrf.mxu2 }
 0x970   : > { %v15701_v57 = vld [vmem:[%s25374_s10 + $0x1df8] sm:$0xf0]  ;;  %v25155_v36 = vadd.f32 %v10420_v30, %v10408_v46  ;;  %v17387_v30 = vld [vmem:[%s25376_s12 + $0x88] sm:$0xff] }
 0x971   : > { %v17053_v22 = vld [vmem:[%s25374_s10 + $0x161c] sm:$0xf]  ;;  %v15704_v2 = vor.u32 %v17301_v10, %v15701_v57  ;;  %10535 = vmatpush.bf16.msrb.mxu2 %v14456_v63  ;;  %11154 = vmatpush.bf16.msra.mxu1 %v17379_v13  ;;  %v10330_v10 = vadd.f32 %v10329_v59, %v25038_v39  ;;  %v17414_v57 = vld [vmem:[%s25376_s12 + $0x160] sm:$0xff]  ;;  %v10342_v63 = vpop.f32.mrf.mxu3 }
 0x972   : > { %v14709_v33 = vld [vmem:[%s25374_s10 + $0x1638] sm:$0xf0]  ;;  %11142 = vmatpush.bf16.msrb.mxu0 %v17370_v23 }
 0x973   : > { %v17365_v9 = vld [vmem:[%s25374_s10 + $0x1fdc] sm:$0xf]  ;;  %v14712_v60 = vor.u32 %v17053_v22, %v14709_v33 }
 0x974   : > { %v15957_v4 = vld [vmem:[%s25374_s10 + $0x1ff8] sm:$0xf0]  ;;  %10536 = vmatmul.bf16.vlgmr.msrb.gmra.mxu2 %v19424_v0  ;;  %v17408_v0 = vld [vmem:[%s25376_s12 + $0x130] sm:$0xff] }
 0x975   : > { %v15960_v47 = vor.u32 %v17365_v9, %v15957_v4  ;;  %v17293_v56 = vld [vmem:[%s25374_s10 + $0x1d9c] sm:$0xf]  ;;  %10580 = vmatpush.bf16.msra.mxu2 %v15704_v2  ;;  %10548 = vmatpush.bf16.msrb.mxu3 %v14712_v60  ;;  %v10343_v9 = vadd.f32 %v10342_v63, %v10330_v10  ;;  %v10409_v23 = vpop.f32.mrf.mxu0  ;;  %v17395_v10 = vld [vmem:[%s25376_s12 + $0xc8] sm:$0xff]  ;;  %v17394_v63 = vld [vmem:[%s25376_s12 + $0xc0] sm:$0xff] }
 0x976   : > { %v15669_v53 = vld [vmem:[%s25374_s10 + $0x1db8] sm:$0xf0]  ;;  %11155 = vmatpush.bf16.msra.mxu1 %v17378_v31  ;;  %11143 = vmatmul.bf16.vlgmr.msrb.gmra.mxu0 %v10614_v42  ;;  %v17403_v42 = vld [vmem:[%s25376_s12 + $0x108] sm:$0xff] }
 0x977   : > { %v17409_v24 = vld [vmem:[%s25376_s12 + $0x138] sm:$0xff]  ;;  %v15672_v37 = vor.u32 %v17293_v56, %v15669_v53  ;;  %v10356_v60 = vadd.f32 %v24986_v44, %v10343_v9  ;;  %v17404_v44 = vld [vmem:[%s25376_s12 + $0x110] sm:$0xff]  ;;  %v10331_v1 = vpop.f32.mrf.mxu2  ;;  %v10609_v9 = vmax.f32 %v22999_v48, 0.0  ;;  %v17422_v48 = vld [vmem:[%s25376_s12 + $0x1a0] sm:$0xff] }
 0x978   : > { %v17357_v52 = vld [vmem:[%s25374_s10 + $0x1f9c] sm:$0xf]  ;;  %11187 = vmatpush.bf16.msra.mxu0 %v17409_v24  ;;  %10549 = vmatmul.bf16.vlgmr.msrb.gmra.mxu3 %v19433_v34  ;;  %v17416_v34 = vld [vmem:[%s25376_s12 + $0x170] sm:$0xff] }
 0x979   : > { %v15925_v35 = vld [vmem:[%s25374_s10 + $0x1fb8] sm:$0xf0]  ;;  %10593 = vmatpush.bf16.msra.mxu3 %v15960_v47  ;;  %10581 = vmatpush.bf16.msra.mxu2 %v15672_v37  ;;  %v10422_v37 = vpop.f32.mrf.mxu1 }
 0x97a   : > { %v17417_v11 = vld [vmem:[%s25376_s12 + $0x178] sm:$0xff]  ;;  %v15928_v41 = vor.u32 %v17357_v52, %v15925_v35  ;;  %11156 = vmatmul.bf16.vlgmr.msra.gmra.mxu1 %v10615_v15  ;;  %v25196_v35 = vadd.f32 %v24997_v58, %v10356_v60  ;;  %v17411_v15 = vld [vmem:[%s25376_s12 + $0x148] sm:$0xff] }
 0x97b   : > { %v17285_v43 = vld [vmem:[%s25374_s10 + $0x1d5c] sm:$0xf]  ;;  %11200 = vmatpush.bf16.msrb.mxu1 %v17417_v11  ;;  %v17412_v11 = vld [vmem:[%s25376_s12 + $0x150] sm:$0xff] }
 0x97c   : > { %v15637_v3 = vld [vmem:[%s25374_s10 + $0x1d78] sm:$0xf0]  ;;  %11188 = vmatpush.bf16.msra.mxu0 %v17408_v0 }
 0x97d   : > { %v17349_v61 = vld [vmem:[%s25374_s10 + $0x1f5c] sm:$0xf]  ;;  %v15640_v62 = vor.u32 %v17285_v43, %v15637_v3  ;;  %10594 = vmatpush.bf16.msra.mxu3 %v15928_v41  ;;  %v10344_v41 = vpop.f32.mrf.mxu3 }
 0x97e   : > { %v15893_v18 = vld [vmem:[%s25374_s10 + $0x1f78] sm:$0xf0] }
 0x97f   : > { %v17277_v38 = vld [vmem:[%s25374_s10 + $0x1d1c] sm:$0xf]  ;;  %v15896_v25 = vor.u32 %v17349_v61, %v15893_v18  ;;  %10582 = vmatpush.bf16.msra.mxu2 %v15640_v62  ;;  %11201 = vmatpush.bf16.msrb.mxu1 %v17416_v34  ;;  %v10381_v19 = vpop.f32.mrf.mxu2 }
 0x980   : > { %v15605_v29 = vld [vmem:[%s25374_s10 + $0x1d38] sm:$0xf0]  ;;  %11189 = vmatpush.bf16.msra.mxu0 %v17407_v21  ;;  %v17392_v21 = vld [vmem:[%s25376_s12 + $0xb0] sm:$0xff] }
 0x981   : > { %v17341_v7 = vld [vmem:[%s25374_s10 + $0x1f1c] sm:$0xf]  ;;  %v15608_v45 = vor.u32 %v17277_v38, %v15605_v29  ;;  %10595 = vmatpush.bf16.msra.mxu3 %v15896_v25  ;;  %v17402_v29 = vld [vmem:[%s25376_s12 + $0x100] sm:$0xff]  ;;  %v10610_v25 = vmax.f32 %v23818_v40, 0.0  ;;  %v17400_v40 = vld [vmem:[%s25376_s12 + $0xf0] sm:$0xff] }
 0x982   : > { %v15861_v14 = vld [vmem:[%s25374_s10 + $0x1f38] sm:$0xf0] }
 0x983   : > { %v17269_v5 = vld [vmem:[%s25374_s10 + $0x1cdc] sm:$0xf]  ;;  %v15864_v54 = vor.u32 %v17341_v7, %v15861_v14  ;;  %10583 = vmatpush.bf16.msra.mxu2 %v15608_v45  ;;  %11202 = vmatpush.bf16.msrb.mxu1 %v17415_v50  ;;  %v10618_v7 = vpack.c.bf16 %v10610_v25, %v10610_v25  ;;  %v17391_v14 = vld [vmem:[%s25376_s12 + $0xa8] sm:$0xff]  ;;  %v10619_v45 = vpack.c.bf16 %v10611_v27, %v10611_v27  ;;  %v10459_v50 = vpop.f32.mrf.mxu0  ;;  %v17432_v27 = vld [vmem:[%s25376_s12 + $0x1f0] sm:$0xff] }
 0x984   : > { %v15573_v28 = vld [vmem:[%s25374_s10 + $0x1cf8] sm:$0xf0]  ;;  %11190 = vmatpush.bf16.msra.mxu0 %v17406_v55  ;;  %v17388_v55 = vld [vmem:[%s25376_s12 + $0x90] sm:$0xff] }
 0x985   : > { %v17333_v12 = vld [vmem:[%s25374_s10 + $0x1edc] sm:$0xf]  ;;  %v15576_v17 = vor.u32 %v17269_v5, %v15573_v28  ;;  %10596 = vmatpush.bf16.msra.mxu3 %v15864_v54  ;;  %v10472_v28 = vpop.f32.mrf.mxu1  ;;  %v10394_v46 = vpop.f32.mrf.mxu3 }
 0x986   : > { %v15829_v8 = vld [vmem:[%s25374_s10 + $0x1ef8] sm:$0xf0] }
 0x987   : > { %v17261_v26 = vld [vmem:[%s25374_s10 + $0x1c9c] sm:$0xf]  ;;  %v15832_v33 = vor.u32 %v17333_v12, %v15829_v8  ;;  %10584 = vmatpush.bf16.msra.mxu2 %v15576_v17  ;;  %11203 = vmatpush.bf16.msrb.mxu1 %v17414_v57  ;;  %v17396_v12 = vld [vmem:[%s25376_s12 + $0xd0] sm:$0xff]  ;;  %v10383_v59 = vpop.f32.mrf.mxu2 }
 0x988   : > { %v15541_v22 = vld [vmem:[%s25374_s10 + $0x1cb8] sm:$0xf0] }
 0x989   : > { %v17405_v39 = vld [vmem:[%s25376_s12 + $0x118] sm:$0xff]  ;;  %v15544_v13 = vor.u32 %v17261_v26, %v15541_v22  ;;  %10597 = vmatpush.bf16.msra.mxu3 %v15832_v33  ;;  %v17386_v26 = vld [vmem:[%s25376_s12 + $0x80] sm:$0xff]  ;;  %v10608_v22 = vmax.f32 %v22180_v49, 0.0  ;;  %v10617_v49 = vpack.c.bf16 %v10609_v9, %v10609_v9 }
 0x98a   : > { %v17325_v4 = vld [vmem:[%s25374_s10 + $0x1e9c] sm:$0xf]  ;;  %11191 = vmatpush.bf16.msra.mxu0 %v17405_v39 }
 0x98b   : > { %v15797_v2 = vld [vmem:[%s25374_s10 + $0x1eb8] sm:$0xf0]  ;;  %10585 = vmatpush.bf16.msra.mxu2 %v15544_v13  ;;  %v10461_v8 = vpop.f32.mrf.mxu0  ;;  %v10616_v39 = vpack.c.bf16 %v10608_v22, %v10608_v22 }
 0x98c   : > { %v17413_v47 = vld [vmem:[%s25376_s12 + $0x158] sm:$0xff]  ;;  %v15800_v20 = vor.u32 %v17325_v4, %v15797_v2  ;;  %v17424_v4 = vld [vmem:[%s25376_s12 + $0x1b0] sm:$0xff]  ;;  %v17423_v2 = vld [vmem:[%s25376_s12 + $0x1a8] sm:$0xff] }
 0x98d   : > { %v17253_v56 = vld [vmem:[%s25374_s10 + $0x1c5c] sm:$0xf]  ;;  %11204 = vmatpush.bf16.msrb.mxu1 %v17413_v47  ;;  %v10474_v17 = vpop.f32.mrf.mxu1  ;;  %v10396_v57 = vpop.f32.mrf.mxu3 }
 0x98e   : > { %v15509_v53 = vld [vmem:[%s25374_s10 + $0x1c78] sm:$0xf0]  ;;  %10598 = vmatpush.bf16.msra.mxu3 %v15800_v20  ;;  %11192 = vmatpush.bf16.msra.mxu0 %v17404_v44  ;;  %v17420_v20 = vld [vmem:[%s25376_s12 + $0x190] sm:$0xff]  ;;  %v10382_v44 = vadd.f32 %v10381_v19, %v25196_v35 }
 0x98f   : > { %v17317_v24 = vld [vmem:[%s25374_s10 + $0x1e5c] sm:$0xf]  ;;  %v15512_v31 = vor.u32 %v17253_v56, %v15509_v53  ;;  %v10433_v56 = vpop.f32.mrf.mxu2 }
 0x990   : > { %v15765_v52 = vld [vmem:[%s25374_s10 + $0x1e78] sm:$0xf0]  ;;  %v10434_v53 = vadd.f32 %v10433_v56, %v25155_v36  ;;  %v10395_v1 = vadd.f32 %v10394_v46, %v10382_v44 }
 0x991   : > { %v17245_v43 = vld [vmem:[%s25374_s10 + $0x1c1c] sm:$0xf]  ;;  %v15768_v58 = vor.u32 %v17317_v24, %v15765_v52  ;;  %10586 = vmatpush.bf16.msra.mxu2 %v15512_v31  ;;  %11205 = vmatpush.bf16.msrb.mxu1 %v17412_v11  ;;  %v17419_v31 = vld [vmem:[%s25376_s12 + $0x188] sm:$0xff] }
 0x992   : > { %v15477_v3 = vld [vmem:[%s25374_s10 + $0x1c38] sm:$0xf0]  ;;  %11193 = vmatpush.bf16.msra.mxu0 %v17403_v42  ;;  %v10612_v41 = vmax.f32 %v10395_v1, 0.0 }
 0x993   : > { %v17309_v0 = vld [vmem:[%s25374_s10 + $0x1e1c] sm:$0xf]  ;;  %v15480_v18 = vor.u32 %v17245_v43, %v15477_v3  ;;  %10599 = vmatpush.bf16.msra.mxu3 %v15768_v58  ;;  %v10511_v13 = vpop.f32.mrf.mxu0  ;;  %v17418_v58 = vld [vmem:[%s25376_s12 + $0x180] sm:$0xff] }
 0x994   : > { %v15733_v61 = vld [vmem:[%s25374_s10 + $0x1e38] sm:$0xf0]  ;;  %v10620_v35 = vpack.c.bf16 %v10612_v41, %v10612_v41 }
 0x995   : > { %v17393_v62 = vld [vmem:[%s25376_s12 + $0xb8] sm:$0xff]  ;;  %v15736_v34 = vor.u32 %v17309_v0, %v15733_v61  ;;  %10587 = vmatpush.bf16.msra.mxu2 %v15480_v18  ;;  %11206 = vmatpush.bf16.msrb.mxu1 %v17411_v15  ;;  %v10446_v23 = vpop.f32.mrf.mxu3 }
 0x996   : > { %v17401_v38 = vld [vmem:[%s25376_s12 + $0xf8] sm:$0xff]  ;;  %11194 = vmatpush.bf16.msra.mxu0 %v17402_v29  ;;  %v10447_v24 = vadd.f32 %v10446_v23, %v10434_v53 }
 0x997   : > { %10600 = vmatpush.bf16.msra.mxu3 %v15736_v34  ;;  %v17389_v5 = vld [vmem:[%s25376_s12 + $0x98] sm:$0xff]  ;;  %v10524_v47 = vpop.f32.mrf.mxu1  ;;  %v10435_v36 = vpop.f32.mrf.mxu2 }
 0x998   : > { %10588 = vmatmul.bf16.vlgmr.msra.gmra.mxu2 %v19620_v16  ;;  %v17399_v16 = vld [vmem:[%s25376_s12 + $0xe8] sm:$0xff]  ;;  %v17397_v54 = vld [vmem:[%s25376_s12 + $0xd8] sm:$0xff]  ;;  %v10460_v52 = vadd.f32 %v10459_v50, %v10447_v24 }
 0x999   : > { %11161 = vmatpush.bf16.msrb.mxu2 %v17393_v62  ;;  %11207 = vmatpush.bf16.msrb.mxu1 %v17410_v51  ;;  %v17425_v33 = vld [vmem:[%s25376_s12 + $0x1b8] sm:$0xff] }
 0x99a   : > { %10601 = vmatmul.bf16.vlgmr.msra.gmra.mxu3 %v19635_v6  ;;  %11195 = vmatmul.bf16.vlgmr.msra.gmra.mxu0 %v10618_v7  ;;  %v17398_v6 = vld [vmem:[%s25376_s12 + $0xe0] sm:$0xff]  ;;  %v17421_v60 = vld [vmem:[%s25376_s12 + $0x198] sm:$0xff]  ;;  %v10473_v11 = vadd.f32 %v10472_v28, %v10460_v52  ;;  %v17431_v7 = vld [vmem:[%s25376_s12 + $0x1e8] sm:$0xff] }
 0x99b   : > { %11174 = vmatpush.bf16.msrb.mxu3 %v17401_v38  ;;  %v10513_v37 = vpop.f32.mrf.mxu0  ;;  %v17433_v38 = vld [vmem:[%s25376_s12 + $0x1f8] sm:$0xff] }
 0x99c   : > { %11208 = vmatmul.bf16.vlgmr.msrb.gmra.mxu1 %v10619_v45  ;;  %v17429_v45 = vld [vmem:[%s25376_s12 + $0x1d8] sm:$0xff] }
 0x99d   : > { %11162 = vmatpush.bf16.msrb.mxu2 %v17392_v21  ;;  %v10448_v3 = vpop.f32.mrf.mxu3 }
 0x99f   : > { %11175 = vmatpush.bf16.msrb.mxu3 %v17400_v40  ;;  %v10526_v43 = vpop.f32.mrf.mxu1 }
 0x9a1   : > { %11163 = vmatpush.bf16.msrb.mxu2 %v17391_v14  ;;  %v17430_v14 = vld [vmem:[%s25376_s12 + $0x1e0] sm:$0xff] }
 0x9a3   : > { %11176 = vmatpush.bf16.msrb.mxu3 %v17399_v16  ;;  %v17428_v16 = vld [vmem:[%s25376_s12 + $0x1d0] sm:$0xff] }
 0x9a5   : > { %11164 = vmatpush.bf16.msrb.mxu2 %v17390_v32  ;;  %v10750_v32 = vld [vmem:[%s25377_s13] sm:$0x1] }
 0x9a7   : > { %11177 = vmatpush.bf16.msrb.mxu3 %v17398_v6 }
 0x9a9   : > { %11165 = vmatpush.bf16.msrb.mxu2 %v17389_v5  ;;  %v17427_v5 = vld [vmem:[%s25376_s12 + $0x1c8] sm:$0xff] }
 0x9ab   : > { %11178 = vmatpush.bf16.msrb.mxu3 %v17397_v54 }
 0x9ad   : > { %11166 = vmatpush.bf16.msrb.mxu2 %v17388_v55  ;;  %v17426_v55 = vld [vmem:[%s25376_s12 + $0x1c0] sm:$0xff] }
 0x9af   : > { %11179 = vmatpush.bf16.msrb.mxu3 %v17396_v12 }
 0x9b1   : > { %11167 = vmatpush.bf16.msrb.mxu2 %v17387_v30 }
 0x9b3   : > { %11180 = vmatpush.bf16.msrb.mxu3 %v17395_v10 }
 0x9b5   : > { %11168 = vmatpush.bf16.msrb.mxu2 %v17386_v26 }
 0x9b7   : > { %11181 = vmatpush.bf16.msrb.mxu3 %v17394_v63 }
 0x9b8   : > { %11169 = vmatmul.bf16.vlgmr.msrb.gmra.mxu2 %v10616_v39 }
 0x9b9   : > { %11213 = vmatpush.bf16.msra.mxu2 %v17425_v33 }
 0x9ba   : > { %11182 = vmatmul.bf16.vlgmr.msrb.gmra.mxu3 %v10617_v49 }
 0x9bb   : > { %11226 = vmatpush.bf16.msra.mxu3 %v17433_v38 }
 0x9bd   : > { %11214 = vmatpush.bf16.msra.mxu2 %v17424_v4 }
 0x9bf   : > { %11227 = vmatpush.bf16.msra.mxu3 %v17432_v27 }
 0x9c1   : > { %11215 = vmatpush.bf16.msra.mxu2 %v17423_v2 }
 0x9c3   : > { %11228 = vmatpush.bf16.msra.mxu3 %v17431_v7 }
 0x9c5   : > { %11216 = vmatpush.bf16.msra.mxu2 %v17422_v48 }
 0x9c7   : > { %11229 = vmatpush.bf16.msra.mxu3 %v17430_v14 }
 0x9c9   : > { %11217 = vmatpush.bf16.msra.mxu2 %v17421_v60 }
 0x9cb   : > { %11230 = vmatpush.bf16.msra.mxu3 %v17429_v45 }
 0x9cd   : > { %11218 = vmatpush.bf16.msra.mxu2 %v17420_v20  ;;  %v10485_v61 = vpop.f32.mrf.mxu2 }
 0x9ce   : > { %v10486_v18 = vadd.f32 %v10485_v61, %v10473_v11 }
 0x9cf   : > { %11231 = vmatpush.bf16.msra.mxu3 %v17428_v16 }
 0x9d1   : > { %11219 = vmatpush.bf16.msra.mxu2 %v17419_v31  ;;  %v10563_v42 = vpop.f32.mrf.mxu0 }
 0x9d3   : > { %v10498_v62 = vpop.f32.mrf.mxu3  ;;  %11232 = vmatpush.bf16.msra.mxu3 %v17427_v5 }
 0x9d4   : > { %v10499_v15 = vadd.f32 %v10498_v62, %v10486_v18 }
 0x9d5   : > { %11220 = vmatpush.bf16.msra.mxu2 %v17418_v58  ;;  %v10576_v0 = vpop.f32.mrf.mxu1  ;;  %v10487_v51 = vpop.f32.mrf.mxu2 }
 0x9d6   : > { %v10512_v34 = vadd.f32 %v10511_v13, %v10499_v15 }
 0x9d7   : > { %11233 = vmatpush.bf16.msra.mxu3 %v17426_v55 }
 0x9d8   : > { %11221 = vmatmul.bf16.vlgmr.msra.gmra.mxu2 %v10620_v35  ;;  %v10525_v25 = vadd.f32 %v10524_v47, %v10512_v34 }
 0x9d9   : > { %v10565_v29 = vpop.f32.mrf.mxu0 }
 0x9db   : > { %v10500_v40 = vpop.f32.mrf.mxu3 }
 0x9dd   : > { %v10578_v21 = vpop.f32.mrf.mxu1 }
 0x9f3   : > { %v11144_v6 = vpop.f32.mrf.mxu0 }
 0x9f4   : > { %v11145_v50 = vadd.f32 %v11144_v6, %v10750_v32 }
 0x9f7   : > { %v11157_v28 = vpop.f32.mrf.mxu1  ;;  %v10537_v19 = vpop.f32.mrf.mxu2 }
 0x9f8   : > { %v11158_v54 = vadd.f32 %v11157_v28, %v11145_v50  ;;  %v10538_v59 = vadd.f32 %v10537_v19, %v10525_v25 }
 0x9fb   : > { %v10550_v46 = vpop.f32.mrf.mxu3  ;;  %v11146_v12 = vpop.f32.mrf.mxu0 }
 0x9fc   : > { %v10551_v10 = vadd.f32 %v10550_v46, %v10538_v59 }
 0x9fe   : > { %v10564_v57 = vadd.f32 %v10563_v42, %v10551_v10 }
 0x9ff   : > { %v11159_v8 = vpop.f32.mrf.mxu1  ;;  %v10539_v30 = vpop.f32.mrf.mxu2 }
 0xa00   : > { %v10577_v22 = vadd.f32 %v10576_v0, %v10564_v57 }
 0xa03   : > { %v10552_v17 = vpop.f32.mrf.mxu3 }
 0xa17   : > { %v11196_v26 = vpop.f32.mrf.mxu0 }
 0xa19   : > { %v11209_v33 = vpop.f32.mrf.mxu1 }
 0xa1b   : > { %v10589_v63 = vpop.f32.mrf.mxu2 }
 0xa1c   : > { %v10590_v9 = vadd.f32 %v10589_v63, %v10577_v22 }
 0xa1d   : > { %v10602_v39 = vpop.f32.mrf.mxu3 }
 0xa1e   : > { %v10603_v4 = vadd.f32 %v10602_v39, %v10590_v9 }
 0xa1f   : > { %v11198_v2 = vpop.f32.mrf.mxu0 }
 0xa20   : > { %v10613_v49 = vmax.f32 %v10603_v4, 0.0 }
 0xa21   : > { %v11211_v13 = vpop.f32.mrf.mxu1 }
 0xa22   : > { %v10621_v48 = vpack.c.bf16 %v10613_v49, %v10613_v49 }
 0xa23   : > { %v10591_v60 = vpop.f32.mrf.mxu2 }
 0xa24   : > { %11234 = vmatmul.bf16.vlgmr.msra.gmra.mxu3 %v10621_v48 }
 0xa25   : > { %v10604_v47 = vpop.f32.mrf.mxu3 }
 0xa3b   : > { %v11170_v56 = vpop.f32.mrf.mxu2 }
 0xa3c   : > { %v11171_v53 = vadd.f32 %v11170_v56, %v11158_v54 }
 0xa3d   : > { %v11183_v23 = vpop.f32.mrf.mxu3 }
 0xa3e   : > { %v11184_v20 = vadd.f32 %v11183_v23, %v11171_v53 }
 0xa40   : > { %v11197_v44 = vadd.f32 %v11196_v26, %v11184_v20 }
 0xa42   : > { %v11210_v24 = vadd.f32 %v11209_v33, %v11197_v44 }
 0xa43   : > { %v11172_v52 = vpop.f32.mrf.mxu2 }
 0xa45   : > { %v11185_v37 = vpop.f32.mrf.mxu3 }
 0xa5b   : > { %v11222_v31 = vpop.f32.mrf.mxu2 }
 0xa5c   : > { %v11223_v1 = vadd.f32 %v11222_v31, %v11210_v24 }
 0xa63   : > { %v11224_v11 = vpop.f32.mrf.mxu2 }
 0xaa7   : > { %v11235_v43 = vpop.f32.mrf.mxu3 }
 0xaa8   : > { %v11236_v36 = vadd.f32 %v11235_v43, %v11223_v1 }
 0xaaa   : > { %11240 = vst.msk [vmem:[%s493_s18] sm:$0x1] %vm11239_vm4, %v11236_v36 }
 0xaab   : > { %17678 = shalt.err (!%p17675_p8)
}
 0xaac   : > { %17442 = dma.vmem_to_hbm [thread:$0]  (%p17842_p5), %s11253_s20, 16, %s11255_s21, %s11242_s26  }
 0xaaf   : > { %v11237_v3 = vpop.f32.mrf.mxu3 }
 0xab0 PF: > { %s25392_s24 = sld [smem:[#allocation15_spill]]  ;;  %p17459_p9 = scmp.ge.s32.totalorder %s17721_s16, 2 }
 0xab2   : > { %p17452_p10 = pnand %p17459_p9, %p17846_p6 }
 0xab4   : > { %p17453_p11 = pneg %p17452_p10 }
 0xab6   : > { %s11266_s18 = sand.u32 1, %s25392_s24  }
 0xab7   : > { %s11267_s19 = scalar_lea.sflag [#allocation8], %s11266_s18 }
 0xab8   : > { %17704 = dma.done.wait (%p17453_p11), %s11267_s19, 16  }
 0xab9   : > { %17706 = vsyncadd (%p17453_p11), %s11267_s19, 4294967280  ;;  %s25394_s16 = sld [smem:[#allocation17_spill]]  ;;  %s25397_s29 = smov %s17713_s30 }
 0xaba   : > { %s25395_s15 = sld [smem:[#allocation16_spill]] }
 0xabb   : > { %s25396_s22 = sld [smem:[#allocation18_spill]] }
 0xabf   : > { %p26_p12 = scmp.ge.s32.totalorder %s25394_s16, 4  }
 0xac0   : > { %s25398_s30 = smov %s25395_s15 }
 0xac1   : > { %s25399_s15 = smov %s25396_s22  ;;  %28 = sbr.rel (!%p26_p12) target bundleno = 5 (0x5), region = 142 }
 0xac6   :  { %11272 = vsyncpa [#allocation7], 1 }
 0xac7   :  { %11274 = vsyncpa [#allocation7 + $0x1], 1 }
 0xac8   :  { %11275 = vsyncpa [#allocation10], 1 }
 0xac9   :  { %11276 = vsyncpa [#allocation8], 1 }
 0xaca   :  { %11278 = vsyncpa [#allocation8 + $0x1], 1 }

</bundles_post_ra>
